<compile_context>
chip_gen: v7x
topology: tpu7x:2x2x1
jax: 0.10.0
libtpu: 0.0.40
codegen_flags: <defaults>
</compile_context>

<pallas_src>
import functools

import jax
import jax.numpy as jnp
from jax.experimental import pallas as pl
from jax.experimental.pallas import tpu as pltpu

_SLOPE = 0.1
_VMEM_LIMIT = 32 * 1024 * 1024          # explicit scoped-VMEM cap (fits v5e/v6e/v7x)
_MAX_W_BLOCK = 4 * 1024 * 1024          # max resident weight block (bytes), fused path


def _round_up(x, m):
    return (x + m - 1) // m * m


def _cdiv(a, b):
    return -(-a // b)


# --------------------------------------------------------------------------- #
# Kernel 1: fused (im2col-free) conv + bias + LeakyReLU                        #
# --------------------------------------------------------------------------- #

def _fused_conv_kernel(*refs, kk, wo, slope):
    """One output row (all Wo columns) x one Cout tile per grid step."""
    x_refs = refs[:kk]                        # kk shifted views of the padded input
    w_ref, b_ref, o_ref = refs[kk], refs[kk + 1], refs[kk + 2]
    tco = w_ref.shape[-1]

    acc = jnp.zeros((wo, tco), jnp.float32)
    for a in range(kk):                       # kernel-row tap (view a holds row i+a)
        row = x_refs[a][0, 0, :, :]           # (Wp, Cin) bf16
        for b in range(kk):                   # kernel-col tap
            acc = acc + jnp.dot(row[b:b + wo, :], w_ref[a, b, :, :],
                                preferred_element_type=jnp.float32)
    y = acc + b_ref[...]                      # f32 bias add
    y = jnp.where(y > 0, y, slope * y)        # LeakyReLU(0.1) in f32
    o_ref[0, 0, :, :] = y.astype(o_ref.dtype)


def _space_to_depth_input(xp):
    """(N, Hp, Wp, C) -> (N, ceil(Hp/2), ceil(Wp/2), 4C); channel order (dy, dx, c)."""
    n, hp, wp, c = xp.shape
    he, we = _round_up(hp, 2), _round_up(wp, 2)
    if (he, we) != (hp, wp):
        xp = jnp.pad(xp, ((0, 0), (0, he - hp), (0, we - wp), (0, 0)))
    xp = xp.reshape(n, he // 2, 2, we // 2, 2, c)
    xp = jnp.transpose(xp, (0, 1, 3, 2, 4, 5))
    return xp.reshape(n, he // 2, we // 2, 4 * c)


def _space_to_depth_weight(w):
    """(k, k, C, Cout) -> (A, A, 4C, Cout), A = ceil(k/2); matches input channel order."""
    k, _, c, cout = w.shape
    a = (k + 1) // 2
    w = jnp.pad(w, ((0, 2 * a - k), (0, 2 * a - k), (0, 0), (0, 0)))
    w = w.reshape(a, 2, a, 2, c, cout)
    w = jnp.transpose(w, (0, 2, 1, 3, 4, 5))      # (a, b, dy, dx, c, cout)
    return w.reshape(a, a, 4 * c, cout)


def _conv_fused(x, weight, bias, *, stride):
    """x (N,H,W,C) bf16, weight (k,k,C,Cout) f32, bias (Cout,) f32 -> (N,Ho,Wo,Cout) bf16."""
    k = weight.shape[0]
    cout = weight.shape[-1]
    pad = (k - 1) // 2
    xp = jnp.pad(x, ((0, 0), (pad, pad), (pad, pad), (0, 0)))
    if stride == 2:
        xp = _space_to_depth_input(xp)
        w = _space_to_depth_weight(weight)
    else:
        w = weight
    kk, _, cin, _ = w.shape
    n, hp, wp, _ = xp.shape
    ho, wo = hp - kk + 1, wp - kk + 1

    xp = xp.astype(jnp.bfloat16)
    w = w.astype(jnp.bfloat16)
    b2 = bias.reshape(1, cout).astype(jnp.float32)

    # Cout tile: keep the resident weight block under ~4 MiB (also v7x-safe).
    per_cout = kk * kk * cin * 2
    tco = cout
    if per_cout * cout > _MAX_W_BLOCK and cout > 128:
        tco = max(128, (_MAX_W_BLOCK // per_cout) // 128 * 128)
        while tco > 128 and cout % tco:
            tco -= 128
        if cout % tco:
            tco = cout
    n_co = cout // tco

    in_specs = [
        pl.BlockSpec((1, 1, wp, cin), (lambda co, bi, i, _a=a: (bi, i + _a, 0, 0)))
        for a in range(kk)
    ]
    in_specs.append(pl.BlockSpec((kk, kk, cin, tco), lambda co, bi, i: (0, 0, 0, co)))
    in_specs.append(pl.BlockSpec((1, tco), lambda co, bi, i: (0, co)))

    kernel = functools.partial(_fused_conv_kernel, kk=kk, wo=wo, slope=_SLOPE)
    flops = 2 * n * ho * wo * kk * kk * cin * cout
    bytes_accessed = n_co * kk * xp.size * 2 + w.size * 2 + n * ho * wo * cout * 2

    return pl.pallas_call(
        kernel,
        out_shape=jax.ShapeDtypeStruct((n, ho, wo, cout), jnp.bfloat16),
        grid_spec=pltpu.PrefetchScalarGridSpec(
            num_scalar_prefetch=0,
            grid=(n_co, n, ho),               # Cout outermost -> weight fetched once
            in_specs=in_specs,
            out_specs=pl.BlockSpec((1, 1, wo, tco), lambda co, bi, i: (bi, i, 0, co)),
        ),
        compiler_params=pltpu.CompilerParams(
            dimension_semantics=("parallel", "parallel", "parallel"),
            vmem_limit_bytes=_VMEM_LIMIT,
        ),
        cost_estimate=pl.CostEstimate(flops=flops, transcendentals=0,
                                      bytes_accessed=bytes_accessed),
    )(*([xp] * kk), w, b2)


# --------------------------------------------------------------------------- #
# Kernel 2: tiled matmul + bias + LeakyReLU (im2col path, deep layers)         #
# --------------------------------------------------------------------------- #

def _matmul_bias_lrelu_kernel(x_ref, w_ref, b_ref, o_ref, acc_ref, *, slope):
    @pl.when(pl.program_id(2) == 0)
    def _():
        acc_ref[...] = jnp.zeros_like(acc_ref)

    acc_ref[...] += jnp.dot(x_ref[...], w_ref[...],
                            preferred_element_type=jnp.float32)

    @pl.when(pl.program_id(2) == pl.num_programs(2) - 1)
    def _():
        y = acc_ref[...] + b_ref[...]
        y = jnp.where(y > 0, y, slope * y)
        o_ref[...] = y.astype(o_ref.dtype)


def _matmul_bias_lrelu(x, w, b):
    """leaky_relu(x @ w + b).  x (M,K), w (K,N), b (N,) -> (M,N) bf16."""
    m, k = x.shape
    _, n = w.shape

    # ---- tile selection: right-size tm for small M, keep >=2 parallel tiles.
    tm = _round_up(m, 8) if m <= 256 else 256
    tn = n if n <= 256 else 256
    if _cdiv(m, tm) * _cdiv(n, tn) < 2:       # v7x has 2 TensorCores
        if tn % 256 == 0:
            tn //= 2
        elif m >= 16:
            tm = _round_up(_cdiv(m, 2), 8)
    mp = _round_up(m, tm)
    np_ = _round_up(n, tn)
    kp = _round_up(k, 128)
    d = min(kp // 128, 16)                    # tk: largest 128-multiple divisor of Kp
    while (kp // 128) % d:                    # that is <= 2048
        d -= 1
    tk = 128 * d

    x = x.astype(jnp.bfloat16)
    w = w.astype(jnp.bfloat16)
    if (mp, kp) != (m, k):
        x = jnp.pad(x, ((0, mp - m), (0, kp - k)))
    if (kp, np_) != (k, n):
        w = jnp.pad(w, ((0, kp - k), (0, np_ - n)))
    b2 = jnp.pad(b.astype(jnp.float32), (0, np_ - n)).reshape(1, np_)

    kernel = functools.partial(_matmul_bias_lrelu_kernel, slope=_SLOPE)
    flops = 2 * mp * np_ * kp
    bytes_accessed = (mp * kp + kp * np_ + mp * np_) * 2

    out = pl.pallas_call(
        kernel,
        out_shape=jax.ShapeDtypeStruct((mp, np_), jnp.bfloat16),
        grid_spec=pltpu.PrefetchScalarGridSpec(
            num_scalar_prefetch=0,
            grid=(mp // tm, np_ // tn, kp // tk),
            in_specs=[
                pl.BlockSpec((tm, tk), lambda i, j, kz: (i, kz)),
                pl.BlockSpec((tk, tn), lambda i, j, kz: (kz, j)),
                pl.BlockSpec((1, tn), lambda i, j, kz: (0, j)),
            ],
            out_specs=pl.BlockSpec((tm, tn), lambda i, j, kz: (i, j)),
            scratch_shapes=[pltpu.VMEM((tm, tn), jnp.float32)],
        ),
        compiler_params=pltpu.CompilerParams(
            dimension_semantics=("parallel", "parallel", "arbitrary"),
            vmem_limit_bytes=_VMEM_LIMIT,
        ),
        cost_estimate=pl.CostEstimate(flops=flops, transcendentals=0,
                                      bytes_accessed=bytes_accessed),
    )(x, w, b2)

    if (mp, np_) != (m, n):
        out = out[:m, :n]
    return out


# ------------------------------ conv dispatcher ---------------------------- #

def _im2col(x, k, stride, pad):
    """k x k patches of NHWC -> (N*Ho*Wo, k*k*C); patch order (kh, kw, C)."""
    x = jnp.pad(x, ((0, 0), (pad, pad), (pad, pad), (0, 0)))
    n, hp, wp, c = x.shape
    ho = (hp - k) // stride + 1
    wo = (wp - k) // stride + 1
    cols = []
    for kh in range(k):
        for kw in range(k):
            cols.append(x[:, kh:kh + (ho - 1) * stride + 1:stride,
                             kw:kw + (wo - 1) * stride + 1:stride, :])
    col = jnp.concatenate(cols, axis=-1)
    return col.reshape(n * ho * wo, k * k * c), ho, wo


def _prefer_fused(n, h, wsp, cin, cout, k, stride):
    """Approximate HBM-traffic comparison (bf16 bytes) between the two lowerings."""
    pad = (k - 1) // 2
    ho = (h + 2 * pad - k) // stride + 1
    wo = (wsp + 2 * pad - k) // stride + 1
    if stride == 2:
        kk, cin_f = (k + 1) // 2, 4 * cin
        hp, wp = _cdiv(h + 2 * pad, 2), _cdiv(wsp + 2 * pad, 2)
    else:
        kk, cin_f, hp, wp = k, cin, h + 2 * pad, wsp + 2 * pad
    out_b = n * ho * wo * cout * 2
    w_fused = kk * kk * cin_f * cout * 2
    n_co = max(1, _cdiv(w_fused, _MAX_W_BLOCK))
    fused_b = n_co * kk * (n * hp * wp * cin_f * 2) + w_fused + out_b

    m = n * ho * wo
    col_b = m * k * k * cin * 2
    w_b = k * k * cin * cout * 2
    matmul_b = n * h * wsp * cin * 2 + 2 * col_b + max(1, _cdiv(m, 256)) * w_b + out_b
    return fused_b < matmul_b


def conv_leaky(x, weight, bias, *, stride):
    """Conv2d(pad=(k-1)//2, bias=True) + LeakyReLU(0.1) on NHWC input.

    weight layout: (k, k, Cin, Cout).
    """
    x = x.astype(jnp.bfloat16)
    k, _, cin, cout = weight.shape
    n, h, wsp, _ = x.shape
    if _prefer_fused(n, h, wsp, cin, cout, k, stride):
        return _conv_fused(x, weight, bias, stride=stride)
    pad = (k - 1) // 2
    col, ho, wo = _im2col(x, k, stride, pad)
    y = _matmul_bias_lrelu(col, weight.reshape(k * k * cin, cout), bias)
    return y.reshape(n, ho, wo, cout)


# ------------------------------ FlowNetS ----------------------------------- #

_LAYERS = [
    # name,     Cin -> Cout, k, stride
    ("conv1",    None,   64, 7, 2),
    ("conv2",      64,  128, 5, 2),
    ("conv3",     128,  256, 5, 2),
    ("conv3_1",   256,  256, 3, 1),
    ("conv4",     256,  512, 3, 2),
    ("conv4_1",   512,  512, 3, 1),
    ("conv5",     512,  512, 3, 2),
    ("conv5_1",   512,  512, 3, 1),
    ("conv6",     512, 1024, 3, 2),
    ("conv6_1",  1024, 1024, 3, 1),
]


def init_params(key, input_channel_size):
    params = {}
    cin_prev = input_channel_size
    for name, cin, cout, k, _ in _LAYERS:
        cin = cin if cin is not None else cin_prev
        key, kw_key, kb_key = jax.random.split(key, 3)
        fan_in = k * k * cin
        scale = 1.0 / jnp.sqrt(jnp.float32(fan_in))
        params[name] = {
            "w": jax.random.normal(kw_key, (k, k, cin, cout), jnp.float32) * scale,
            "b": jax.random.normal(kb_key, (cout,), jnp.float32) * scale,
        }
        cin_prev = cout
    return params


def flownets_forward(params, x_nchw):
    """Matches FlowNetS(batchNorm=False, has_deconv=False).forward."""
    x = jnp.transpose(x_nchw, (0, 2, 3, 1))  # NCHW -> NHWC
    for name, _, _, _, stride in _LAYERS:
        p = params[name]
        x = conv_leaky(x, p["w"], p["b"], stride=stride)
    out_conv6 = jnp.transpose(x, (0, 3, 1, 2)).astype(jnp.float32)  # NHWC -> NCHW
    # TODO(synk): has_deconv=True branch (deconv/predict_flow/upsample) is not used
    # by the default module configuration; forward returns (out_conv6, None).
    return out_conv6, None


# --------------------------------- main ------------------------------------ #

if __name__ == "__main__":
    key = jax.random.PRNGKey(0)
    key, kx = jax.random.split(key)

    batch, in_ch, spatial = 2, 6, 32           # 32 / 2^6 -> 1x1 at conv6
    x = jax.random.normal(kx, (batch, in_ch, spatial, spatial), jnp.float32)
    params = init_params(key, in_ch)

    fwd = jax.jit(flownets_forward)
    out_conv6, other = fwd(params, x)
    out_conv6 = jax.block_until_ready(out_conv6)

    assert out_conv6.shape == (batch, 1024, 1, 1), out_conv6.shape
    assert other is None
    assert bool(jnp.all(jnp.isfinite(out_conv6)))
    print("KERNEL_OK")
</pallas_src>

<mosaic_0001>
module attributes {stable_mosaic.version = 11 : i64} {
  func.func @_fused_conv_kernel(%arg0: i32, %arg1: i32, %arg2: i32, %arg3: memref<1x1x19x24xbf16, #tpu.memory_space<vmem>>, %arg4: memref<1x1x19x24xbf16, #tpu.memory_space<vmem>>, %arg5: memref<1x1x19x24xbf16, #tpu.memory_space<vmem>>, %arg6: memref<1x1x19x24xbf16, #tpu.memory_space<vmem>>, %arg7: memref<4x4x24x64xbf16, #tpu.memory_space<vmem>>, %arg8: memref<1x64xf32, #tpu.memory_space<vmem>>, %arg9: memref<1x1x16x64xbf16, #tpu.memory_space<vmem>>) attributes {dimension_semantics = [#tpu.dimension_semantics<parallel>, #tpu.dimension_semantics<parallel>, #tpu.dimension_semantics<parallel>], iteration_bounds = array<i64: 1, 2, 16>, scalar_prefetch = 0 : i64, scratch_operands = 0 : i64, tpu.core_type = #tpu.core_type<tc>, window_params = [{transform_indices = @transform_0, window_bounds = array<i64: 1, 1, 19, 24>}, {transform_indices = @transform_1, window_bounds = array<i64: 1, 1, 19, 24>}, {transform_indices = @transform_2, window_bounds = array<i64: 1, 1, 19, 24>}, {transform_indices = @transform_3, window_bounds = array<i64: 1, 1, 19, 24>}, {transform_indices = @transform_4, window_bounds = array<i64: 4, 4, 24, 64>}, {transform_indices = @transform_5, window_bounds = array<i64: 1, 64>}, {transform_indices = @transform_6, window_bounds = array<i64: 1, 1, 16, 64>}]} {
    %cst = arith.constant 0.000000e+00 : f32
    %0 = vector.broadcast %cst : f32 to vector<16x64xf32>
    %c0 = arith.constant 0 : index
    %c0_0 = arith.constant 0 : index
    %c0_1 = arith.constant 0 : index
    %c0_2 = arith.constant 0 : index
    %1 = vector.load %arg3[%c0, %c0_0, %c0_1, %c0_2] : memref<1x1x19x24xbf16, #tpu.memory_space<vmem>>, vector<1x1x19x24xbf16>
    %2 = vector.shape_cast %1 : vector<1x1x19x24xbf16> to vector<19x24xbf16>
    %3 = vector.extract_strided_slice %2 {offsets = [0, 0], sizes = [16, 24], strides = [1, 1]} : vector<19x24xbf16> to vector<16x24xbf16>
    %c0_3 = arith.constant 0 : index
    %c0_4 = arith.constant 0 : index
    %c0_5 = arith.constant 0 : index
    %c0_6 = arith.constant 0 : index
    %4 = vector.load %arg7[%c0_3, %c0_4, %c0_5, %c0_6] : memref<4x4x24x64xbf16, #tpu.memory_space<vmem>>, vector<1x1x24x64xbf16>
    %5 = vector.shape_cast %4 : vector<1x1x24x64xbf16> to vector<24x64xbf16>
    %cst_7 = arith.constant dense<0.000000e+00> : vector<16x64xf32>
    %6 = tpu.matmul %3, %5, %cst_7 {dimension_numbers = #tpu.dot_dimension_numbers<[1], [0], [0], [1], [0, 0, 1, 1], [], []>} : vector<16x24xbf16>, vector<24x64xbf16>, vector<16x64xf32> -> vector<16x64xf32>
    %7 = arith.addf %0, %6 : vector<16x64xf32>
    %8 = vector.extract_strided_slice %2 {offsets = [1, 0], sizes = [16, 24], strides = [1, 1]} : vector<19x24xbf16> to vector<16x24xbf16>
    %c0_8 = arith.constant 0 : index
    %c1 = arith.constant 1 : index
    %c0_9 = arith.constant 0 : index
    %c0_10 = arith.constant 0 : index
    %9 = vector.load %arg7[%c0_8, %c1, %c0_9, %c0_10] : memref<4x4x24x64xbf16, #tpu.memory_space<vmem>>, vector<1x1x24x64xbf16>
    %10 = vector.shape_cast %9 : vector<1x1x24x64xbf16> to vector<24x64xbf16>
    %cst_11 = arith.constant dense<0.000000e+00> : vector<16x64xf32>
    %11 = tpu.matmul %8, %10, %cst_11 {dimension_numbers = #tpu.dot_dimension_numbers<[1], [0], [0], [1], [0, 0, 1, 1], [], []>} : vector<16x24xbf16>, vector<24x64xbf16>, vector<16x64xf32> -> vector<16x64xf32>
    %12 = arith.addf %7, %11 : vector<16x64xf32>
    %13 = vector.extract_strided_slice %2 {offsets = [2, 0], sizes = [16, 24], strides = [1, 1]} : vector<19x24xbf16> to vector<16x24xbf16>
    %c0_12 = arith.constant 0 : index
    %c2 = arith.constant 2 : index
    %c0_13 = arith.constant 0 : index
    %c0_14 = arith.constant 0 : index
    %14 = vector.load %arg7[%c0_12, %c2, %c0_13, %c0_14] : memref<4x4x24x64xbf16, #tpu.memory_space<vmem>>, vector<1x1x24x64xbf16>
    %15 = vector.shape_cast %14 : vector<1x1x24x64xbf16> to vector<24x64xbf16>
    %cst_15 = arith.constant dense<0.000000e+00> : vector<16x64xf32>
    %16 = tpu.matmul %13, %15, %cst_15 {dimension_numbers = #tpu.dot_dimension_numbers<[1], [0], [0], [1], [0, 0, 1, 1], [], []>} : vector<16x24xbf16>, vector<24x64xbf16>, vector<16x64xf32> -> vector<16x64xf32>
    %17 = arith.addf %12, %16 : vector<16x64xf32>
    %18 = vector.extract_strided_slice %2 {offsets = [3, 0], sizes = [16, 24], strides = [1, 1]} : vector<19x24xbf16> to vector<16x24xbf16>
    %c0_16 = arith.constant 0 : index
    %c3 = arith.constant 3 : index
    %c0_17 = arith.constant 0 : index
    %c0_18 = arith.constant 0 : index
    %19 = vector.load %arg7[%c0_16, %c3, %c0_17, %c0_18] : memref<4x4x24x64xbf16, #tpu.memory_space<vmem>>, vector<1x1x24x64xbf16>
    %20 = vector.shape_cast %19 : vector<1x1x24x64xbf16> to vector<24x64xbf16>
    %cst_19 = arith.constant dense<0.000000e+00> : vector<16x64xf32>
    %21 = tpu.matmul %18, %20, %cst_19 {dimension_numbers = #tpu.dot_dimension_numbers<[1], [0], [0], [1], [0, 0, 1, 1], [], []>} : vector<16x24xbf16>, vector<24x64xbf16>, vector<16x64xf32> -> vector<16x64xf32>
    %22 = arith.addf %17, %21 : vector<16x64xf32>
    %c0_20 = arith.constant 0 : index
    %c0_21 = arith.constant 0 : index
    %c0_22 = arith.constant 0 : index
    %c0_23 = arith.constant 0 : index
    %23 = vector.load %arg4[%c0_20, %c0_21, %c0_22, %c0_23] : memref<1x1x19x24xbf16, #tpu.memory_space<vmem>>, vector<1x1x19x24xbf16>
    %24 = vector.shape_cast %23 : vector<1x1x19x24xbf16> to vector<19x24xbf16>
    %25 = vector.extract_strided_slice %24 {offsets = [0, 0], sizes = [16, 24], strides = [1, 1]} : vector<19x24xbf16> to vector<16x24xbf16>
    %c1_24 = arith.constant 1 : index
    %c0_25 = arith.constant 0 : index
    %c0_26 = arith.constant 0 : index
    %c0_27 = arith.constant 0 : index
    %26 = vector.load %arg7[%c1_24, %c0_25, %c0_26, %c0_27] : memref<4x4x24x64xbf16, #tpu.memory_space<vmem>>, vector<1x1x24x64xbf16>
    %27 = vector.shape_cast %26 : vector<1x1x24x64xbf16> to vector<24x64xbf16>
    %cst_28 = arith.constant dense<0.000000e+00> : vector<16x64xf32>
    %28 = tpu.matmul %25, %27, %cst_28 {dimension_numbers = #tpu.dot_dimension_numbers<[1], [0], [0], [1], [0, 0, 1, 1], [], []>} : vector<16x24xbf16>, vector<24x64xbf16>, vector<16x64xf32> -> vector<16x64xf32>
    %29 = arith.addf %22, %28 : vector<16x64xf32>
    %30 = vector.extract_strided_slice %24 {offsets = [1, 0], sizes = [16, 24], strides = [1, 1]} : vector<19x24xbf16> to vector<16x24xbf16>
    %c1_29 = arith.constant 1 : index
    %c1_30 = arith.constant 1 : index
    %c0_31 = arith.constant 0 : index
    %c0_32 = arith.constant 0 : index
    %31 = vector.load %arg7[%c1_29, %c1_30, %c0_31, %c0_32] : memref<4x4x24x64xbf16, #tpu.memory_space<vmem>>, vector<1x1x24x64xbf16>
    %32 = vector.shape_cast %31 : vector<1x1x24x64xbf16> to vector<24x64xbf16>
    %cst_33 = arith.constant dense<0.000000e+00> : vector<16x64xf32>
    %33 = tpu.matmul %30, %32, %cst_33 {dimension_numbers = #tpu.dot_dimension_numbers<[1], [0], [0], [1], [0, 0, 1, 1], [], []>} : vector<16x24xbf16>, vector<24x64xbf16>, vector<16x64xf32> -> vector<16x64xf32>
    %34 = arith.addf %29, %33 : vector<16x64xf32>
    %35 = vector.extract_strided_slice %24 {offsets = [2, 0], sizes = [16, 24], strides = [1, 1]} : vector<19x24xbf16> to vector<16x24xbf16>
    %c1_34 = arith.constant 1 : index
    %c2_35 = arith.constant 2 : index
    %c0_36 = arith.constant 0 : index
    %c0_37 = arith.constant 0 : index
    %36 = vector.load %arg7[%c1_34, %c2_35, %c0_36, %c0_37] : memref<4x4x24x64xbf16, #tpu.memory_space<vmem>>, vector<1x1x24x64xbf16>
    %37 = vector.shape_cast %36 : vector<1x1x24x64xbf16> to vector<24x64xbf16>
    %cst_38 = arith.constant dense<0.000000e+00> : vector<16x64xf32>
    %38 = tpu.matmul %35, %37, %cst_38 {dimension_numbers = #tpu.dot_dimension_numbers<[1], [0], [0], [1], [0, 0, 1, 1], [], []>} : vector<16x24xbf16>, vector<24x64xbf16>, vector<16x64xf32> -> vector<16x64xf32>
    %39 = arith.addf %34, %38 : vector<16x64xf32>
    %40 = vector.extract_strided_slice %24 {offsets = [3, 0], sizes = [16, 24], strides = [1, 1]} : vector<19x24xbf16> to vector<16x24xbf16>
    %c1_39 = arith.constant 1 : index
    %c3_40 = arith.constant 3 : index
    %c0_41 = arith.constant 0 : index
    %c0_42 = arith.constant 0 : index
    %41 = vector.load %arg7[%c1_39, %c3_40, %c0_41, %c0_42] : memref<4x4x24x64xbf16, #tpu.memory_space<vmem>>, vector<1x1x24x64xbf16>
    %42 = vector.shape_cast %41 : vector<1x1x24x64xbf16> to vector<24x64xbf16>
    %cst_43 = arith.constant dense<0.000000e+00> : vector<16x64xf32>
    %43 = tpu.matmul %40, %42, %cst_43 {dimension_numbers = #tpu.dot_dimension_numbers<[1], [0], [0], [1], [0, 0, 1, 1], [], []>} : vector<16x24xbf16>, vector<24x64xbf16>, vector<16x64xf32> -> vector<16x64xf32>
    %44 = arith.addf %39, %43 : vector<16x64xf32>
    %c0_44 = arith.constant 0 : index
    %c0_45 = arith.constant 0 : index
    %c0_46 = arith.constant 0 : index
    %c0_47 = arith.constant 0 : index
    %45 = vector.load %arg5[%c0_44, %c0_45, %c0_46, %c0_47] : memref<1x1x19x24xbf16, #tpu.memory_space<vmem>>, vector<1x1x19x24xbf16>
    %46 = vector.shape_cast %45 : vector<1x1x19x24xbf16> to vector<19x24xbf16>
    %47 = vector.extract_strided_slice %46 {offsets = [0, 0], sizes = [16, 24], strides = [1, 1]} : vector<19x24xbf16> to vector<16x24xbf16>
    %c2_48 = arith.constant 2 : index
    %c0_49 = arith.constant 0 : index
    %c0_50 = arith.constant 0 : index
    %c0_51 = arith.constant 0 : index
    %48 = vector.load %arg7[%c2_48, %c0_49, %c0_50, %c0_51] : memref<4x4x24x64xbf16, #tpu.memory_space<vmem>>, vector<1x1x24x64xbf16>
    %49 = vector.shape_cast %48 : vector<1x1x24x64xbf16> to vector<24x64xbf16>
    %cst_52 = arith.constant dense<0.000000e+00> : vector<16x64xf32>
    %50 = tpu.matmul %47, %49, %cst_52 {dimension_numbers = #tpu.dot_dimension_numbers<[1], [0], [0], [1], [0, 0, 1, 1], [], []>} : vector<16x24xbf16>, vector<24x64xbf16>, vector<16x64xf32> -> vector<16x64xf32>
    %51 = arith.addf %44, %50 : vector<16x64xf32>
    %52 = vector.extract_strided_slice %46 {offsets = [1, 0], sizes = [16, 24], strides = [1, 1]} : vector<19x24xbf16> to vector<16x24xbf16>
    %c2_53 = arith.constant 2 : index
    %c1_54 = arith.constant 1 : index
    %c0_55 = arith.constant 0 : index
    %c0_56 = arith.constant 0 : index
    %53 = vector.load %arg7[%c2_53, %c1_54, %c0_55, %c0_56] : memref<4x4x24x64xbf16, #tpu.memory_space<vmem>>, vector<1x1x24x64xbf16>
    %54 = vector.shape_cast %53 : vector<1x1x24x64xbf16> to vector<24x64xbf16>
    %cst_57 = arith.constant dense<0.000000e+00> : vector<16x64xf32>
    %55 = tpu.matmul %52, %54, %cst_57 {dimension_numbers = #tpu.dot_dimension_numbers<[1], [0], [0], [1], [0, 0, 1, 1], [], []>} : vector<16x24xbf16>, vector<24x64xbf16>, vector<16x64xf32> -> vector<16x64xf32>
    %56 = arith.addf %51, %55 : vector<16x64xf32>
    %57 = vector.extract_strided_slice %46 {offsets = [2, 0], sizes = [16, 24], strides = [1, 1]} : vector<19x24xbf16> to vector<16x24xbf16>
    %c2_58 = arith.constant 2 : index
    %c2_59 = arith.constant 2 : index
    %c0_60 = arith.constant 0 : index
    %c0_61 = arith.constant 0 : index
    %58 = vector.load %arg7[%c2_58, %c2_59, %c0_60, %c0_61] : memref<4x4x24x64xbf16, #tpu.memory_space<vmem>>, vector<1x1x24x64xbf16>
    %59 = vector.shape_cast %58 : vector<1x1x24x64xbf16> to vector<24x64xbf16>
    %cst_62 = arith.constant dense<0.000000e+00> : vector<16x64xf32>
    %60 = tpu.matmul %57, %59, %cst_62 {dimension_numbers = #tpu.dot_dimension_numbers<[1], [0], [0], [1], [0, 0, 1, 1], [], []>} : vector<16x24xbf16>, vector<24x64xbf16>, vector<16x64xf32> -> vector<16x64xf32>
    %61 = arith.addf %56, %60 : vector<16x64xf32>
    %62 = vector.extract_strided_slice %46 {offsets = [3, 0], sizes = [16, 24], strides = [1, 1]} : vector<19x24xbf16> to vector<16x24xbf16>
    %c2_63 = arith.constant 2 : index
    %c3_64 = arith.constant 3 : index
    %c0_65 = arith.constant 0 : index
    %c0_66 = arith.constant 0 : index
    %63 = vector.load %arg7[%c2_63, %c3_64, %c0_65, %c0_66] : memref<4x4x24x64xbf16, #tpu.memory_space<vmem>>, vector<1x1x24x64xbf16>
    %64 = vector.shape_cast %63 : vector<1x1x24x64xbf16> to vector<24x64xbf16>
    %cst_67 = arith.constant dense<0.000000e+00> : vector<16x64xf32>
    %65 = tpu.matmul %62, %64, %cst_67 {dimension_numbers = #tpu.dot_dimension_numbers<[1], [0], [0], [1], [0, 0, 1, 1], [], []>} : vector<16x24xbf16>, vector<24x64xbf16>, vector<16x64xf32> -> vector<16x64xf32>
    %66 = arith.addf %61, %65 : vector<16x64xf32>
    %c0_68 = arith.constant 0 : index
    %c0_69 = arith.constant 0 : index
    %c0_70 = arith.constant 0 : index
    %c0_71 = arith.constant 0 : index
    %67 = vector.load %arg6[%c0_68, %c0_69, %c0_70, %c0_71] : memref<1x1x19x24xbf16, #tpu.memory_space<vmem>>, vector<1x1x19x24xbf16>
    %68 = vector.shape_cast %67 : vector<1x1x19x24xbf16> to vector<19x24xbf16>
    %69 = vector.extract_strided_slice %68 {offsets = [0, 0], sizes = [16, 24], strides = [1, 1]} : vector<19x24xbf16> to vector<16x24xbf16>
    %c3_72 = arith.constant 3 : index
    %c0_73 = arith.constant 0 : index
    %c0_74 = arith.constant 0 : index
    %c0_75 = arith.constant 0 : index
    %70 = vector.load %arg7[%c3_72, %c0_73, %c0_74, %c0_75] : memref<4x4x24x64xbf16, #tpu.memory_space<vmem>>, vector<1x1x24x64xbf16>
    %71 = vector.shape_cast %70 : vector<1x1x24x64xbf16> to vector<24x64xbf16>
    %cst_76 = arith.constant dense<0.000000e+00> : vector<16x64xf32>
    %72 = tpu.matmul %69, %71, %cst_76 {dimension_numbers = #tpu.dot_dimension_numbers<[1], [0], [0], [1], [0, 0, 1, 1], [], []>} : vector<16x24xbf16>, vector<24x64xbf16>, vector<16x64xf32> -> vector<16x64xf32>
    %73 = arith.addf %66, %72 : vector<16x64xf32>
    %74 = vector.extract_strided_slice %68 {offsets = [1, 0], sizes = [16, 24], strides = [1, 1]} : vector<19x24xbf16> to vector<16x24xbf16>
    %c3_77 = arith.constant 3 : index
    %c1_78 = arith.constant 1 : index
    %c0_79 = arith.constant 0 : index
    %c0_80 = arith.constant 0 : index
    %75 = vector.load %arg7[%c3_77, %c1_78, %c0_79, %c0_80] : memref<4x4x24x64xbf16, #tpu.memory_space<vmem>>, vector<1x1x24x64xbf16>
    %76 = vector.shape_cast %75 : vector<1x1x24x64xbf16> to vector<24x64xbf16>
    %cst_81 = arith.constant dense<0.000000e+00> : vector<16x64xf32>
    %77 = tpu.matmul %74, %76, %cst_81 {dimension_numbers = #tpu.dot_dimension_numbers<[1], [0], [0], [1], [0, 0, 1, 1], [], []>} : vector<16x24xbf16>, vector<24x64xbf16>, vector<16x64xf32> -> vector<16x64xf32>
    %78 = arith.addf %73, %77 : vector<16x64xf32>
    %79 = vector.extract_strided_slice %68 {offsets = [2, 0], sizes = [16, 24], strides = [1, 1]} : vector<19x24xbf16> to vector<16x24xbf16>
    %c3_82 = arith.constant 3 : index
    %c2_83 = arith.constant 2 : index
    %c0_84 = arith.constant 0 : index
    %c0_85 = arith.constant 0 : index
    %80 = vector.load %arg7[%c3_82, %c2_83, %c0_84, %c0_85] : memref<4x4x24x64xbf16, #tpu.memory_space<vmem>>, vector<1x1x24x64xbf16>
    %81 = vector.shape_cast %80 : vector<1x1x24x64xbf16> to vector<24x64xbf16>
    %cst_86 = arith.constant dense<0.000000e+00> : vector<16x64xf32>
    %82 = tpu.matmul %79, %81, %cst_86 {dimension_numbers = #tpu.dot_dimension_numbers<[1], [0], [0], [1], [0, 0, 1, 1], [], []>} : vector<16x24xbf16>, vector<24x64xbf16>, vector<16x64xf32> -> vector<16x64xf32>
    %83 = arith.addf %78, %82 : vector<16x64xf32>
    %84 = vector.extract_strided_slice %68 {offsets = [3, 0], sizes = [16, 24], strides = [1, 1]} : vector<19x24xbf16> to vector<16x24xbf16>
    %c3_87 = arith.constant 3 : index
    %c3_88 = arith.constant 3 : index
    %c0_89 = arith.constant 0 : index
    %c0_90 = arith.constant 0 : index
    %85 = vector.load %arg7[%c3_87, %c3_88, %c0_89, %c0_90] : memref<4x4x24x64xbf16, #tpu.memory_space<vmem>>, vector<1x1x24x64xbf16>
    %86 = vector.shape_cast %85 : vector<1x1x24x64xbf16> to vector<24x64xbf16>
    %cst_91 = arith.constant dense<0.000000e+00> : vector<16x64xf32>
    %87 = tpu.matmul %84, %86, %cst_91 {dimension_numbers = #tpu.dot_dimension_numbers<[1], [0], [0], [1], [0, 0, 1, 1], [], []>} : vector<16x24xbf16>, vector<24x64xbf16>, vector<16x64xf32> -> vector<16x64xf32>
    %88 = arith.addf %83, %87 : vector<16x64xf32>
    %c0_92 = arith.constant 0 : index
    %c0_93 = arith.constant 0 : index
    %89 = vector.load %arg8[%c0_92, %c0_93] : memref<1x64xf32, #tpu.memory_space<vmem>>, vector<1x64xf32>
    %90 = vector.broadcast %89 : vector<1x64xf32> to vector<16x64xf32>
    %91 = arith.addf %88, %90 : vector<16x64xf32>
    %cst_94 = arith.constant 0.000000e+00 : f32
    %92 = vector.broadcast %cst_94 : f32 to vector<16x64xf32>
    %93 = arith.cmpf ogt, %91, %92 : vector<16x64xf32>
    %cst_95 = arith.constant 1.000000e-01 : f32
    %94 = vector.broadcast %cst_95 : f32 to vector<16x64xf32>
    %95 = arith.mulf %94, %91 : vector<16x64xf32>
    %96 = arith.select %93, %91, %95 : vector<16x64xi1>, vector<16x64xf32>
    %97 = arith.truncf %96 : vector<16x64xf32> to vector<16x64xbf16>
    %c0_96 = arith.constant 0 : index
    %c0_97 = arith.constant 0 : index
    %c0_98 = arith.constant 0 : index
    %c0_99 = arith.constant 0 : index
    %98 = vector.load %arg9[%c0_96, %c0_97, %c0_98, %c0_99] : memref<1x1x16x64xbf16, #tpu.memory_space<vmem>>, vector<1x1x16x64xbf16>
    %99 = vector.shape_cast %98 : vector<1x1x16x64xbf16> to vector<16x64xbf16>
    %100 = vector.shape_cast %97 : vector<16x64xbf16> to vector<1x1x16x64xbf16>
    tpu.vector_store %arg9[%c0_96, %c0_97, %c0_98, %c0_99], %100 {strides = array<i32>} : memref<1x1x16x64xbf16, #tpu.memory_space<vmem>>, vector<1x1x16x64xbf16>,
    return
  }
  func.func @transform_0(%arg0: i32, %arg1: i32, %arg2: i32) -> (i32, i32, i32, i32) {
    %c0_i32 = arith.constant 0 : i32
    %0 = arith.addi %arg2, %c0_i32 : i32
    %c0_i32_0 = arith.constant 0 : i32
    %c0_i32_1 = arith.constant 0 : i32
    %c0_i32_2 = arith.constant 0 : i32
    return %arg1, %0, %c0_i32_0, %c0_i32_1 : i32, i32, i32, i32
  }
  func.func @transform_1(%arg0: i32, %arg1: i32, %arg2: i32) -> (i32, i32, i32, i32) {
    %c1_i32 = arith.constant 1 : i32
    %0 = arith.addi %arg2, %c1_i32 : i32
    %c0_i32 = arith.constant 0 : i32
    %c0_i32_0 = arith.constant 0 : i32
    %c0_i32_1 = arith.constant 0 : i32
    return %arg1, %0, %c0_i32, %c0_i32_0 : i32, i32, i32, i32
  }
  func.func @transform_2(%arg0: i32, %arg1: i32, %arg2: i32) -> (i32, i32, i32, i32) {
    %c2_i32 = arith.constant 2 : i32
    %0 = arith.addi %arg2, %c2_i32 : i32
    %c0_i32 = arith.constant 0 : i32
    %c0_i32_0 = arith.constant 0 : i32
    %c0_i32_1 = arith.constant 0 : i32
    return %arg1, %0, %c0_i32, %c0_i32_0 : i32, i32, i32, i32
  }
  func.func @transform_3(%arg0: i32, %arg1: i32, %arg2: i32) -> (i32, i32, i32, i32) {
    %c3_i32 = arith.constant 3 : i32
    %0 = arith.addi %arg2, %c3_i32 : i32
    %c0_i32 = arith.constant 0 : i32
    %c0_i32_0 = arith.constant 0 : i32
    %c0_i32_1 = arith.constant 0 : i32
    return %arg1, %0, %c0_i32, %c0_i32_0 : i32, i32, i32, i32
  }
  func.func @transform_4(%arg0: i32, %arg1: i32, %arg2: i32) -> (i32, i32, i32, i32) {
    %c0_i32 = arith.constant 0 : i32
    %c0_i32_0 = arith.constant 0 : i32
    %c0_i32_1 = arith.constant 0 : i32
    %c0_i32_2 = arith.constant 0 : i32
    return %c0_i32, %c0_i32_0, %c0_i32_1, %arg0 : i32, i32, i32, i32
  }
  func.func @transform_5(%arg0: i32, %arg1: i32, %arg2: i32) -> (i32, i32) {
    %c0_i32 = arith.constant 0 : i32
    %c0_i32_0 = arith.constant 0 : i32
    return %c0_i32, %arg0 : i32, i32
  }
  func.func @transform_6(%arg0: i32, %arg1: i32, %arg2: i32) -> (i32, i32, i32, i32) {
    %c0_i32 = arith.constant 0 : i32
    %c0_i32_0 = arith.constant 0 : i32
    return %arg1, %arg2, %c0_i32, %arg0 : i32, i32, i32, i32
  }
}

module attributes {stable_mosaic.version = 11 : i64} {
  func.func @_fused_conv_kernel(%arg0: i32, %arg1: i32, %arg2: i32, %arg3: memref<1x1x10x256xbf16, #tpu.memory_space<vmem>>, %arg4: memref<1x1x10x256xbf16, #tpu.memory_space<vmem>>, %arg5: memref<1x1x10x256xbf16, #tpu.memory_space<vmem>>, %arg6: memref<3x3x256x128xbf16, #tpu.memory_space<vmem>>, %arg7: memref<1x128xf32, #tpu.memory_space<vmem>>, %arg8: memref<1x1x8x128xbf16, #tpu.memory_space<vmem>>) attributes {dimension_semantics = [#tpu.dimension_semantics<parallel>, #tpu.dimension_semantics<parallel>, #tpu.dimension_semantics<parallel>], iteration_bounds = array<i64: 1, 2, 8>, scalar_prefetch = 0 : i64, scratch_operands = 0 : i64, tpu.core_type = #tpu.core_type<tc>, window_params = [{transform_indices = @transform_0, window_bounds = array<i64: 1, 1, 10, 256>}, {transform_indices = @transform_1, window_bounds = array<i64: 1, 1, 10, 256>}, {transform_indices = @transform_2, window_bounds = array<i64: 1, 1, 10, 256>}, {transform_indices = @transform_3, window_bounds = array<i64: 3, 3, 256, 128>}, {transform_indices = @transform_4, window_bounds = array<i64: 1, 128>}, {transform_indices = @transform_5, window_bounds = array<i64: 1, 1, 8, 128>}]} {
    %cst = arith.constant 0.000000e+00 : f32
    %0 = vector.broadcast %cst : f32 to vector<8x128xf32>
    %c0 = arith.constant 0 : index
    %c0_0 = arith.constant 0 : index
    %c0_1 = arith.constant 0 : index
    %c0_2 = arith.constant 0 : index
    %1 = vector.load %arg3[%c0, %c0_0, %c0_1, %c0_2] : memref<1x1x10x256xbf16, #tpu.memory_space<vmem>>, vector<1x1x10x256xbf16>
    %2 = vector.shape_cast %1 : vector<1x1x10x256xbf16> to vector<10x256xbf16>
    %3 = vector.extract_strided_slice %2 {offsets = [0, 0], sizes = [8, 256], strides = [1, 1]} : vector<10x256xbf16> to vector<8x256xbf16>
    %c0_3 = arith.constant 0 : index
    %c0_4 = arith.constant 0 : index
    %c0_5 = arith.constant 0 : index
    %c0_6 = arith.constant 0 : index
    %4 = vector.load %arg6[%c0_3, %c0_4, %c0_5, %c0_6] : memref<3x3x256x128xbf16, #tpu.memory_space<vmem>>, vector<1x1x256x128xbf16>
    %5 = vector.shape_cast %4 : vector<1x1x256x128xbf16> to vector<256x128xbf16>
    %cst_7 = arith.constant dense<0.000000e+00> : vector<8x128xf32>
    %6 = tpu.matmul %3, %5, %cst_7 {dimension_numbers = #tpu.dot_dimension_numbers<[1], [0], [0], [1], [0, 0, 1, 1], [], []>} : vector<8x256xbf16>, vector<256x128xbf16>, vector<8x128xf32> -> vector<8x128xf32>
    %7 = arith.addf %0, %6 : vector<8x128xf32>
    %8 = vector.extract_strided_slice %2 {offsets = [1, 0], sizes = [8, 256], strides = [1, 1]} : vector<10x256xbf16> to vector<8x256xbf16>
    %c0_8 = arith.constant 0 : index
    %c1 = arith.constant 1 : index
    %c0_9 = arith.constant 0 : index
    %c0_10 = arith.constant 0 : index
    %9 = vector.load %arg6[%c0_8, %c1, %c0_9, %c0_10] : memref<3x3x256x128xbf16, #tpu.memory_space<vmem>>, vector<1x1x256x128xbf16>
    %10 = vector.shape_cast %9 : vector<1x1x256x128xbf16> to vector<256x128xbf16>
    %cst_11 = arith.constant dense<0.000000e+00> : vector<8x128xf32>
    %11 = tpu.matmul %8, %10, %cst_11 {dimension_numbers = #tpu.dot_dimension_numbers<[1], [0], [0], [1], [0, 0, 1, 1], [], []>} : vector<8x256xbf16>, vector<256x128xbf16>, vector<8x128xf32> -> vector<8x128xf32>
    %12 = arith.addf %7, %11 : vector<8x128xf32>
    %13 = vector.extract_strided_slice %2 {offsets = [2, 0], sizes = [8, 256], strides = [1, 1]} : vector<10x256xbf16> to vector<8x256xbf16>
    %c0_12 = arith.constant 0 : index
    %c2 = arith.constant 2 : index
    %c0_13 = arith.constant 0 : index
    %c0_14 = arith.constant 0 : index
    %14 = vector.load %arg6[%c0_12, %c2, %c0_13, %c0_14] : memref<3x3x256x128xbf16, #tpu.memory_space<vmem>>, vector<1x1x256x128xbf16>
    %15 = vector.shape_cast %14 : vector<1x1x256x128xbf16> to vector<256x128xbf16>
    %cst_15 = arith.constant dense<0.000000e+00> : vector<8x128xf32>
    %16 = tpu.matmul %13, %15, %cst_15 {dimension_numbers = #tpu.dot_dimension_numbers<[1], [0], [0], [1], [0, 0, 1, 1], [], []>} : vector<8x256xbf16>, vector<256x128xbf16>, vector<8x128xf32> -> vector<8x128xf32>
    %17 = arith.addf %12, %16 : vector<8x128xf32>
    %c0_16 = arith.constant 0 : index
    %c0_17 = arith.constant 0 : index
    %c0_18 = arith.constant 0 : index
    %c0_19 = arith.constant 0 : index
    %18 = vector.load %arg4[%c0_16, %c0_17, %c0_18, %c0_19] : memref<1x1x10x256xbf16, #tpu.memory_space<vmem>>, vector<1x1x10x256xbf16>
    %19 = vector.shape_cast %18 : vector<1x1x10x256xbf16> to vector<10x256xbf16>
    %20 = vector.extract_strided_slice %19 {offsets = [0, 0], sizes = [8, 256], strides = [1, 1]} : vector<10x256xbf16> to vector<8x256xbf16>
    %c1_20 = arith.constant 1 : index
    %c0_21 = arith.constant 0 : index
    %c0_22 = arith.constant 0 : index
    %c0_23 = arith.constant 0 : index
    %21 = vector.load %arg6[%c1_20, %c0_21, %c0_22, %c0_23] : memref<3x3x256x128xbf16, #tpu.memory_space<vmem>>, vector<1x1x256x128xbf16>
    %22 = vector.shape_cast %21 : vector<1x1x256x128xbf16> to vector<256x128xbf16>
    %cst_24 = arith.constant dense<0.000000e+00> : vector<8x128xf32>
    %23 = tpu.matmul %20, %22, %cst_24 {dimension_numbers = #tpu.dot_dimension_numbers<[1], [0], [0], [1], [0, 0, 1, 1], [], []>} : vector<8x256xbf16>, vector<256x128xbf16>, vector<8x128xf32> -> vector<8x128xf32>
    %24 = arith.addf %17, %23 : vector<8x128xf32>
    %25 = vector.extract_strided_slice %19 {offsets = [1, 0], sizes = [8, 256], strides = [1, 1]} : vector<10x256xbf16> to vector<8x256xbf16>
    %c1_25 = arith.constant 1 : index
    %c1_26 = arith.constant 1 : index
    %c0_27 = arith.constant 0 : index
    %c0_28 = arith.constant 0 : index
    %26 = vector.load %arg6[%c1_25, %c1_26, %c0_27, %c0_28] : memref<3x3x256x128xbf16, #tpu.memory_space<vmem>>, vector<1x1x256x128xbf16>
    %27 = vector.shape_cast %26 : vector<1x1x256x128xbf16> to vector<256x128xbf16>
    %cst_29 = arith.constant dense<0.000000e+00> : vector<8x128xf32>
    %28 = tpu.matmul %25, %27, %cst_29 {dimension_numbers = #tpu.dot_dimension_numbers<[1], [0], [0], [1], [0, 0, 1, 1], [], []>} : vector<8x256xbf16>, vector<256x128xbf16>, vector<8x128xf32> -> vector<8x128xf32>
    %29 = arith.addf %24, %28 : vector<8x128xf32>
    %30 = vector.extract_strided_slice %19 {offsets = [2, 0], sizes = [8, 256], strides = [1, 1]} : vector<10x256xbf16> to vector<8x256xbf16>
    %c1_30 = arith.constant 1 : index
    %c2_31 = arith.constant 2 : index
    %c0_32 = arith.constant 0 : index
    %c0_33 = arith.constant 0 : index
    %31 = vector.load %arg6[%c1_30, %c2_31, %c0_32, %c0_33] : memref<3x3x256x128xbf16, #tpu.memory_space<vmem>>, vector<1x1x256x128xbf16>
    %32 = vector.shape_cast %31 : vector<1x1x256x128xbf16> to vector<256x128xbf16>
    %cst_34 = arith.constant dense<0.000000e+00> : vector<8x128xf32>
    %33 = tpu.matmul %30, %32, %cst_34 {dimension_numbers = #tpu.dot_dimension_numbers<[1], [0], [0], [1], [0, 0, 1, 1], [], []>} : vector<8x256xbf16>, vector<256x128xbf16>, vector<8x128xf32> -> vector<8x128xf32>
    %34 = arith.addf %29, %33 : vector<8x128xf32>
    %c0_35 = arith.constant 0 : index
    %c0_36 = arith.constant 0 : index
    %c0_37 = arith.constant 0 : index
    %c0_38 = arith.constant 0 : index
    %35 = vector.load %arg5[%c0_35, %c0_36, %c0_37, %c0_38] : memref<1x1x10x256xbf16, #tpu.memory_space<vmem>>, vector<1x1x10x256xbf16>
    %36 = vector.shape_cast %35 : vector<1x1x10x256xbf16> to vector<10x256xbf16>
    %37 = vector.extract_strided_slice %36 {offsets = [0, 0], sizes = [8, 256], strides = [1, 1]} : vector<10x256xbf16> to vector<8x256xbf16>
    %c2_39 = arith.constant 2 : index
    %c0_40 = arith.constant 0 : index
    %c0_41 = arith.constant 0 : index
    %c0_42 = arith.constant 0 : index
    %38 = vector.load %arg6[%c2_39, %c0_40, %c0_41, %c0_42] : memref<3x3x256x128xbf16, #tpu.memory_space<vmem>>, vector<1x1x256x128xbf16>
    %39 = vector.shape_cast %38 : vector<1x1x256x128xbf16> to vector<256x128xbf16>
    %cst_43 = arith.constant dense<0.000000e+00> : vector<8x128xf32>
    %40 = tpu.matmul %37, %39, %cst_43 {dimension_numbers = #tpu.dot_dimension_numbers<[1], [0], [0], [1], [0, 0, 1, 1], [], []>} : vector<8x256xbf16>, vector<256x128xbf16>, vector<8x128xf32> -> vector<8x128xf32>
    %41 = arith.addf %34, %40 : vector<8x128xf32>
    %42 = vector.extract_strided_slice %36 {offsets = [1, 0], sizes = [8, 256], strides = [1, 1]} : vector<10x256xbf16> to vector<8x256xbf16>
    %c2_44 = arith.constant 2 : index
    %c1_45 = arith.constant 1 : index
    %c0_46 = arith.constant 0 : index
    %c0_47 = arith.constant 0 : index
    %43 = vector.load %arg6[%c2_44, %c1_45, %c0_46, %c0_47] : memref<3x3x256x128xbf16, #tpu.memory_space<vmem>>, vector<1x1x256x128xbf16>
    %44 = vector.shape_cast %43 : vector<1x1x256x128xbf16> to vector<256x128xbf16>
    %cst_48 = arith.constant dense<0.000000e+00> : vector<8x128xf32>
    %45 = tpu.matmul %42, %44, %cst_48 {dimension_numbers = #tpu.dot_dimension_numbers<[1], [0], [0], [1], [0, 0, 1, 1], [], []>} : vector<8x256xbf16>, vector<256x128xbf16>, vector<8x128xf32> -> vector<8x128xf32>
    %46 = arith.addf %41, %45 : vector<8x128xf32>
    %47 = vector.extract_strided_slice %36 {offsets = [2, 0], sizes = [8, 256], strides = [1, 1]} : vector<10x256xbf16> to vector<8x256xbf16>
    %c2_49 = arith.constant 2 : index
    %c2_50 = arith.constant 2 : index
    %c0_51 = arith.constant 0 : index
    %c0_52 = arith.constant 0 : index
    %48 = vector.load %arg6[%c2_49, %c2_50, %c0_51, %c0_52] : memref<3x3x256x128xbf16, #tpu.memory_space<vmem>>, vector<1x1x256x128xbf16>
    %49 = vector.shape_cast %48 : vector<1x1x256x128xbf16> to vector<256x128xbf16>
    %cst_53 = arith.constant dense<0.000000e+00> : vector<8x128xf32>
    %50 = tpu.matmul %47, %49, %cst_53 {dimension_numbers = #tpu.dot_dimension_numbers<[1], [0], [0], [1], [0, 0, 1, 1], [], []>} : vector<8x256xbf16>, vector<256x128xbf16>, vector<8x128xf32> -> vector<8x128xf32>
    %51 = arith.addf %46, %50 : vector<8x128xf32>
    %c0_54 = arith.constant 0 : index
    %c0_55 = arith.constant 0 : index
    %52 = vector.load %arg7[%c0_54, %c0_55] : memref<1x128xf32, #tpu.memory_space<vmem>>, vector<1x128xf32>
    %53 = vector.broadcast %52 : vector<1x128xf32> to vector<8x128xf32>
    %54 = arith.addf %51, %53 : vector<8x128xf32>
    %cst_56 = arith.constant 0.000000e+00 : f32
    %55 = vector.broadcast %cst_56 : f32 to vector<8x128xf32>
    %56 = arith.cmpf ogt, %54, %55 : vector<8x128xf32>
    %cst_57 = arith.constant 1.000000e-01 : f32
    %57 = vector.broadcast %cst_57 : f32 to vector<8x128xf32>
    %58 = arith.mulf %57, %54 : vector<8x128xf32>
    %59 = arith.select %56, %54, %58 : vector<8x128xi1>, vector<8x128xf32>
    %60 = arith.truncf %59 : vector<8x128xf32> to vector<8x128xbf16>
    %c0_58 = arith.constant 0 : index
    %c0_59 = arith.constant 0 : index
    %c0_60 = arith.constant 0 : index
    %c0_61 = arith.constant 0 : index
    %61 = vector.load %arg8[%c0_58, %c0_59, %c0_60, %c0_61] : memref<1x1x8x128xbf16, #tpu.memory_space<vmem>>, vector<1x1x8x128xbf16>
    %62 = vector.shape_cast %61 : vector<1x1x8x128xbf16> to vector<8x128xbf16>
    %63 = vector.shape_cast %60 : vector<8x128xbf16> to vector<1x1x8x128xbf16>
    tpu.vector_store %arg8[%c0_58, %c0_59, %c0_60, %c0_61], %63 {strides = array<i32>} : memref<1x1x8x128xbf16, #tpu.memory_space<vmem>>, vector<1x1x8x128xbf16>,
    return
  }
  func.func @transform_0(%arg0: i32, %arg1: i32, %arg2: i32) -> (i32, i32, i32, i32) {
    %c0_i32 = arith.constant 0 : i32
    %0 = arith.addi %arg2, %c0_i32 : i32
    %c0_i32_0 = arith.constant 0 : i32
    %c0_i32_1 = arith.constant 0 : i32
    %c0_i32_2 = arith.constant 0 : i32
    return %arg1, %0, %c0_i32_0, %c0_i32_1 : i32, i32, i32, i32
  }
  func.func @transform_1(%arg0: i32, %arg1: i32, %arg2: i32) -> (i32, i32, i32, i32) {
    %c1_i32 = arith.constant 1 : i32
    %0 = arith.addi %arg2, %c1_i32 : i32
    %c0_i32 = arith.constant 0 : i32
    %c0_i32_0 = arith.constant 0 : i32
    %c0_i32_1 = arith.constant 0 : i32
    return %arg1, %0, %c0_i32, %c0_i32_0 : i32, i32, i32, i32
  }
  func.func @transform_2(%arg0: i32, %arg1: i32, %arg2: i32) -> (i32, i32, i32, i32) {
    %c2_i32 = arith.constant 2 : i32
    %0 = arith.addi %arg2, %c2_i32 : i32
    %c0_i32 = arith.constant 0 : i32
    %c0_i32_0 = arith.constant 0 : i32
    %c0_i32_1 = arith.constant 0 : i32
    return %arg1, %0, %c0_i32, %c0_i32_0 : i32, i32, i32, i32
  }
  func.func @transform_3(%arg0: i32, %arg1: i32, %arg2: i32) -> (i32, i32, i32, i32) {
    %c0_i32 = arith.constant 0 : i32
    %c0_i32_0 = arith.constant 0 : i32
    %c0_i32_1 = arith.constant 0 : i32
    %c0_i32_2 = arith.constant 0 : i32
    return %c0_i32, %c0_i32_0, %c0_i32_1, %arg0 : i32, i32, i32, i32
  }
  func.func @transform_4(%arg0: i32, %arg1: i32, %arg2: i32) -> (i32, i32) {
    %c0_i32 = arith.constant 0 : i32
    %c0_i32_0 = arith.constant 0 : i32
    return %c0_i32, %arg0 : i32, i32
  }
  func.func @transform_5(%arg0: i32, %arg1: i32, %arg2: i32) -> (i32, i32, i32, i32) {
    %c0_i32 = arith.constant 0 : i32
    %c0_i32_0 = arith.constant 0 : i32
    return %arg1, %arg2, %c0_i32, %arg0 : i32, i32, i32, i32
  }
}

module attributes {stable_mosaic.version = 11 : i64} {
  func.func @_matmul_bias_lrelu_kernel(%arg0: i32, %arg1: i32, %arg2: i32, %arg3: memref<32x640xbf16, #tpu.memory_space<vmem>>, %arg4: memref<640x128xbf16, #tpu.memory_space<vmem>>, %arg5: memref<1x128xf32, #tpu.memory_space<vmem>>, %arg6: memref<32x128xbf16, #tpu.memory_space<vmem>>, %arg7: memref<32x128xf32, #tpu.memory_space<vmem>>) attributes {dimension_semantics = [#tpu.dimension_semantics<parallel>, #tpu.dimension_semantics<parallel>, #tpu.dimension_semantics<arbitrary>], iteration_bounds = array<i64: 1, 2, 5>, scalar_prefetch = 0 : i64, scratch_operands = 1 : i64, tpu.core_type = #tpu.core_type<tc>, window_params = [{transform_indices = @transform_0, window_bounds = array<i64: 32, 640>}, {transform_indices = @transform_1, window_bounds = array<i64: 640, 128>}, {transform_indices = @transform_2, window_bounds = array<i64: 1, 128>}, {transform_indices = @transform_3, window_bounds = array<i64: 32, 128>}]} {
    %c0_i32 = arith.constant 0 : i32
    %0 = arith.cmpi eq, %arg2, %c0_i32 : i32
    %1 = arith.extui %0 : i1 to i32
    %c0_i32_0 = arith.constant 0 : i32
    %2 = arith.cmpi ne, %1, %c0_i32_0 : i32
    scf.if %2 {
      %cst_9 = arith.constant 0.000000e+00 : f32
      %12 = vector.broadcast %cst_9 : f32 to vector<32x128xf32>
      %c0_10 = arith.constant 0 : index
      %c0_11 = arith.constant 0 : index
      %13 = vector.load %arg7[%c0_10, %c0_11] : memref<32x128xf32, #tpu.memory_space<vmem>>, vector<32x128xf32>
      tpu.vector_store %arg7[%c0_10, %c0_11], %12 {strides = array<i32>} : memref<32x128xf32, #tpu.memory_space<vmem>>, vector<32x128xf32>,
    } else {
    }
    %c0 = arith.constant 0 : index
    %c0_1 = arith.constant 0 : index
    %3 = vector.load %arg7[%c0, %c0_1] : memref<32x128xf32, #tpu.memory_space<vmem>>, vector<32x128xf32>
    %c0_2 = arith.constant 0 : index
    %c0_3 = arith.constant 0 : index
    %4 = vector.load %arg3[%c0_2, %c0_3] : memref<32x640xbf16, #tpu.memory_space<vmem>>, vector<32x640xbf16>
    %c0_4 = arith.constant 0 : index
    %c0_5 = arith.constant 0 : index
    %5 = vector.load %arg4[%c0_4, %c0_5] : memref<640x128xbf16, #tpu.memory_space<vmem>>, vector<640x128xbf16>
    %cst = arith.constant dense<0.000000e+00> : vector<32x128xf32>
    %6 = tpu.matmul %4, %5, %cst {dimension_numbers = #tpu.dot_dimension_numbers<[1], [0], [0], [1], [0, 0, 1, 1], [], []>} : vector<32x640xbf16>, vector<640x128xbf16>, vector<32x128xf32> -> vector<32x128xf32>
    %7 = arith.addf %3, %6 : vector<32x128xf32>
    %c0_6 = arith.constant 0 : index
    %c0_7 = arith.constant 0 : index
    %8 = vector.load %arg7[%c0_6, %c0_7] : memref<32x128xf32, #tpu.memory_space<vmem>>, vector<32x128xf32>
    tpu.vector_store %arg7[%c0_6, %c0_7], %7 {strides = array<i32>} : memref<32x128xf32, #tpu.memory_space<vmem>>, vector<32x128xf32>,
    %c4_i32 = arith.constant 4 : i32
    %9 = arith.cmpi eq, %arg2, %c4_i32 : i32
    %10 = arith.extui %9 : i1 to i32
    %c0_i32_8 = arith.constant 0 : i32
    %11 = arith.cmpi ne, %10, %c0_i32_8 : i32
    scf.if %11 {
      %c0_9 = arith.constant 0 : index
      %c0_10 = arith.constant 0 : index
      %12 = vector.load %arg7[%c0_9, %c0_10] : memref<32x128xf32, #tpu.memory_space<vmem>>, vector<32x128xf32>
      %c0_11 = arith.constant 0 : index
      %c0_12 = arith.constant 0 : index
      %13 = vector.load %arg5[%c0_11, %c0_12] : memref<1x128xf32, #tpu.memory_space<vmem>>, vector<1x128xf32>
      %14 = vector.broadcast %13 : vector<1x128xf32> to vector<32x128xf32>
      %15 = arith.addf %12, %14 : vector<32x128xf32>
      %cst_13 = arith.constant 0.000000e+00 : f32
      %16 = vector.broadcast %cst_13 : f32 to vector<32x128xf32>
      %17 = arith.cmpf ogt, %15, %16 : vector<32x128xf32>
      %cst_14 = arith.constant 1.000000e-01 : f32
      %18 = vector.broadcast %cst_14 : f32 to vector<32x128xf32>
      %19 = arith.mulf %18, %15 : vector<32x128xf32>
      %20 = arith.select %17, %15, %19 : vector<32x128xi1>, vector<32x128xf32>
      %21 = arith.truncf %20 : vector<32x128xf32> to vector<32x128xbf16>
      %c0_15 = arith.constant 0 : index
      %c0_16 = arith.constant 0 : index
      %22 = vector.load %arg6[%c0_15, %c0_16] : memref<32x128xbf16, #tpu.memory_space<vmem>>, vector<32x128xbf16>
      tpu.vector_store %arg6[%c0_15, %c0_16], %21 {strides = array<i32>} : memref<32x128xbf16, #tpu.memory_space<vmem>>, vector<32x128xbf16>,
    } else {
    }
    return
  }
  func.func @transform_0(%arg0: i32, %arg1: i32, %arg2: i32) -> (i32, i32) {
    %c0_i32 = arith.constant 0 : i32
    return %arg0, %arg2 : i32, i32
  }
  func.func @transform_1(%arg0: i32, %arg1: i32, %arg2: i32) -> (i32, i32) {
    %c0_i32 = arith.constant 0 : i32
    return %arg2, %arg1 : i32, i32
  }
  func.func @transform_2(%arg0: i32, %arg1: i32, %arg2: i32) -> (i32, i32) {
    %c0_i32 = arith.constant 0 : i32
    %c0_i32_0 = arith.constant 0 : i32
    return %c0_i32, %arg1 : i32, i32
  }
  func.func @transform_3(%arg0: i32, %arg1: i32, %arg2: i32) -> (i32, i32) {
    %c0_i32 = arith.constant 0 : i32
    return %arg0, %arg1 : i32, i32
  }
}

module attributes {stable_mosaic.version = 11 : i64} {
  func.func @_fused_conv_kernel(%arg0: i32, %arg1: i32, %arg2: i32, %arg3: memref<1x1x6x256xbf16, #tpu.memory_space<vmem>>, %arg4: memref<1x1x6x256xbf16, #tpu.memory_space<vmem>>, %arg5: memref<1x1x6x256xbf16, #tpu.memory_space<vmem>>, %arg6: memref<3x3x256x256xbf16, #tpu.memory_space<vmem>>, %arg7: memref<1x256xf32, #tpu.memory_space<vmem>>, %arg8: memref<1x1x4x256xbf16, #tpu.memory_space<vmem>>) attributes {dimension_semantics = [#tpu.dimension_semantics<parallel>, #tpu.dimension_semantics<parallel>, #tpu.dimension_semantics<parallel>], iteration_bounds = array<i64: 1, 2, 4>, scalar_prefetch = 0 : i64, scratch_operands = 0 : i64, tpu.core_type = #tpu.core_type<tc>, window_params = [{transform_indices = @transform_0, window_bounds = array<i64: 1, 1, 6, 256>}, {transform_indices = @transform_1, window_bounds = array<i64: 1, 1, 6, 256>}, {transform_indices = @transform_2, window_bounds = array<i64: 1, 1, 6, 256>}, {transform_indices = @transform_3, window_bounds = array<i64: 3, 3, 256, 256>}, {transform_indices = @transform_4, window_bounds = array<i64: 1, 256>}, {transform_indices = @transform_5, window_bounds = array<i64: 1, 1, 4, 256>}]} {
    %cst = arith.constant 0.000000e+00 : f32
    %0 = vector.broadcast %cst : f32 to vector<4x256xf32>
    %c0 = arith.constant 0 : index
    %c0_0 = arith.constant 0 : index
    %c0_1 = arith.constant 0 : index
    %c0_2 = arith.constant 0 : index
    %1 = vector.load %arg3[%c0, %c0_0, %c0_1, %c0_2] : memref<1x1x6x256xbf16, #tpu.memory_space<vmem>>, vector<1x1x6x256xbf16>
    %2 = vector.shape_cast %1 : vector<1x1x6x256xbf16> to vector<6x256xbf16>
    %3 = vector.extract_strided_slice %2 {offsets = [0, 0], sizes = [4, 256], strides = [1, 1]} : vector<6x256xbf16> to vector<4x256xbf16>
    %c0_3 = arith.constant 0 : index
    %c0_4 = arith.constant 0 : index
    %c0_5 = arith.constant 0 : index
    %c0_6 = arith.constant 0 : index
    %4 = vector.load %arg6[%c0_3, %c0_4, %c0_5, %c0_6] : memref<3x3x256x256xbf16, #tpu.memory_space<vmem>>, vector<1x1x256x256xbf16>
    %5 = vector.shape_cast %4 : vector<1x1x256x256xbf16> to vector<256x256xbf16>
    %cst_7 = arith.constant dense<0.000000e+00> : vector<4x256xf32>
    %6 = tpu.matmul %3, %5, %cst_7 {dimension_numbers = #tpu.dot_dimension_numbers<[1], [0], [0], [1], [0, 0, 1, 1], [], []>} : vector<4x256xbf16>, vector<256x256xbf16>, vector<4x256xf32> -> vector<4x256xf32>
    %7 = arith.addf %0, %6 : vector<4x256xf32>
    %8 = vector.extract_strided_slice %2 {offsets = [1, 0], sizes = [4, 256], strides = [1, 1]} : vector<6x256xbf16> to vector<4x256xbf16>
    %c0_8 = arith.constant 0 : index
    %c1 = arith.constant 1 : index
    %c0_9 = arith.constant 0 : index
    %c0_10 = arith.constant 0 : index
    %9 = vector.load %arg6[%c0_8, %c1, %c0_9, %c0_10] : memref<3x3x256x256xbf16, #tpu.memory_space<vmem>>, vector<1x1x256x256xbf16>
    %10 = vector.shape_cast %9 : vector<1x1x256x256xbf16> to vector<256x256xbf16>
    %cst_11 = arith.constant dense<0.000000e+00> : vector<4x256xf32>
    %11 = tpu.matmul %8, %10, %cst_11 {dimension_numbers = #tpu.dot_dimension_numbers<[1], [0], [0], [1], [0, 0, 1, 1], [], []>} : vector<4x256xbf16>, vector<256x256xbf16>, vector<4x256xf32> -> vector<4x256xf32>
    %12 = arith.addf %7, %11 : vector<4x256xf32>
    %13 = vector.extract_strided_slice %2 {offsets = [2, 0], sizes = [4, 256], strides = [1, 1]} : vector<6x256xbf16> to vector<4x256xbf16>
    %c0_12 = arith.constant 0 : index
    %c2 = arith.constant 2 : index
    %c0_13 = arith.constant 0 : index
    %c0_14 = arith.constant 0 : index
    %14 = vector.load %arg6[%c0_12, %c2, %c0_13, %c0_14] : memref<3x3x256x256xbf16, #tpu.memory_space<vmem>>, vector<1x1x256x256xbf16>
    %15 = vector.shape_cast %14 : vector<1x1x256x256xbf16> to vector<256x256xbf16>
    %cst_15 = arith.constant dense<0.000000e+00> : vector<4x256xf32>
    %16 = tpu.matmul %13, %15, %cst_15 {dimension_numbers = #tpu.dot_dimension_numbers<[1], [0], [0], [1], [0, 0, 1, 1], [], []>} : vector<4x256xbf16>, vector<256x256xbf16>, vector<4x256xf32> -> vector<4x256xf32>
    %17 = arith.addf %12, %16 : vector<4x256xf32>
    %c0_16 = arith.constant 0 : index
    %c0_17 = arith.constant 0 : index
    %c0_18 = arith.constant 0 : index
    %c0_19 = arith.constant 0 : index
    %18 = vector.load %arg4[%c0_16, %c0_17, %c0_18, %c0_19] : memref<1x1x6x256xbf16, #tpu.memory_space<vmem>>, vector<1x1x6x256xbf16>
    %19 = vector.shape_cast %18 : vector<1x1x6x256xbf16> to vector<6x256xbf16>
    %20 = vector.extract_strided_slice %19 {offsets = [0, 0], sizes = [4, 256], strides = [1, 1]} : vector<6x256xbf16> to vector<4x256xbf16>
    %c1_20 = arith.constant 1 : index
    %c0_21 = arith.constant 0 : index
    %c0_22 = arith.constant 0 : index
    %c0_23 = arith.constant 0 : index
    %21 = vector.load %arg6[%c1_20, %c0_21, %c0_22, %c0_23] : memref<3x3x256x256xbf16, #tpu.memory_space<vmem>>, vector<1x1x256x256xbf16>
    %22 = vector.shape_cast %21 : vector<1x1x256x256xbf16> to vector<256x256xbf16>
    %cst_24 = arith.constant dense<0.000000e+00> : vector<4x256xf32>
    %23 = tpu.matmul %20, %22, %cst_24 {dimension_numbers = #tpu.dot_dimension_numbers<[1], [0], [0], [1], [0, 0, 1, 1], [], []>} : vector<4x256xbf16>, vector<256x256xbf16>, vector<4x256xf32> -> vector<4x256xf32>
    %24 = arith.addf %17, %23 : vector<4x256xf32>
    %25 = vector.extract_strided_slice %19 {offsets = [1, 0], sizes = [4, 256], strides = [1, 1]} : vector<6x256xbf16> to vector<4x256xbf16>
    %c1_25 = arith.constant 1 : index
    %c1_26 = arith.constant 1 : index
    %c0_27 = arith.constant 0 : index
    %c0_28 = arith.constant 0 : index
    %26 = vector.load %arg6[%c1_25, %c1_26, %c0_27, %c0_28] : memref<3x3x256x256xbf16, #tpu.memory_space<vmem>>, vector<1x1x256x256xbf16>
    %27 = vector.shape_cast %26 : vector<1x1x256x256xbf16> to vector<256x256xbf16>
    %cst_29 = arith.constant dense<0.000000e+00> : vector<4x256xf32>
    %28 = tpu.matmul %25, %27, %cst_29 {dimension_numbers = #tpu.dot_dimension_numbers<[1], [0], [0], [1], [0, 0, 1, 1], [], []>} : vector<4x256xbf16>, vector<256x256xbf16>, vector<4x256xf32> -> vector<4x256xf32>
    %29 = arith.addf %24, %28 : vector<4x256xf32>
    %30 = vector.extract_strided_slice %19 {offsets = [2, 0], sizes = [4, 256], strides = [1, 1]} : vector<6x256xbf16> to vector<4x256xbf16>
    %c1_30 = arith.constant 1 : index
    %c2_31 = arith.constant 2 : index
    %c0_32 = arith.constant 0 : index
    %c0_33 = arith.constant 0 : index
    %31 = vector.load %arg6[%c1_30, %c2_31, %c0_32, %c0_33] : memref<3x3x256x256xbf16, #tpu.memory_space<vmem>>, vector<1x1x256x256xbf16>
    %32 = vector.shape_cast %31 : vector<1x1x256x256xbf16> to vector<256x256xbf16>
    %cst_34 = arith.constant dense<0.000000e+00> : vector<4x256xf32>
    %33 = tpu.matmul %30, %32, %cst_34 {dimension_numbers = #tpu.dot_dimension_numbers<[1], [0], [0], [1], [0, 0, 1, 1], [], []>} : vector<4x256xbf16>, vector<256x256xbf16>, vector<4x256xf32> -> vector<4x256xf32>
    %34 = arith.addf %29, %33 : vector<4x256xf32>
    %c0_35 = arith.constant 0 : index
    %c0_36 = arith.constant 0 : index
    %c0_37 = arith.constant 0 : index
    %c0_38 = arith.constant 0 : index
    %35 = vector.load %arg5[%c0_35, %c0_36, %c0_37, %c0_38] : memref<1x1x6x256xbf16, #tpu.memory_space<vmem>>, vector<1x1x6x256xbf16>
    %36 = vector.shape_cast %35 : vector<1x1x6x256xbf16> to vector<6x256xbf16>
    %37 = vector.extract_strided_slice %36 {offsets = [0, 0], sizes = [4, 256], strides = [1, 1]} : vector<6x256xbf16> to vector<4x256xbf16>
    %c2_39 = arith.constant 2 : index
    %c0_40 = arith.constant 0 : index
    %c0_41 = arith.constant 0 : index
    %c0_42 = arith.constant 0 : index
    %38 = vector.load %arg6[%c2_39, %c0_40, %c0_41, %c0_42] : memref<3x3x256x256xbf16, #tpu.memory_space<vmem>>, vector<1x1x256x256xbf16>
    %39 = vector.shape_cast %38 : vector<1x1x256x256xbf16> to vector<256x256xbf16>
    %cst_43 = arith.constant dense<0.000000e+00> : vector<4x256xf32>
    %40 = tpu.matmul %37, %39, %cst_43 {dimension_numbers = #tpu.dot_dimension_numbers<[1], [0], [0], [1], [0, 0, 1, 1], [], []>} : vector<4x256xbf16>, vector<256x256xbf16>, vector<4x256xf32> -> vector<4x256xf32>
    %41 = arith.addf %34, %40 : vector<4x256xf32>
    %42 = vector.extract_strided_slice %36 {offsets = [1, 0], sizes = [4, 256], strides = [1, 1]} : vector<6x256xbf16> to vector<4x256xbf16>
    %c2_44 = arith.constant 2 : index
    %c1_45 = arith.constant 1 : index
    %c0_46 = arith.constant 0 : index
    %c0_47 = arith.constant 0 : index
    %43 = vector.load %arg6[%c2_44, %c1_45, %c0_46, %c0_47] : memref<3x3x256x256xbf16, #tpu.memory_space<vmem>>, vector<1x1x256x256xbf16>
    %44 = vector.shape_cast %43 : vector<1x1x256x256xbf16> to vector<256x256xbf16>
    %cst_48 = arith.constant dense<0.000000e+00> : vector<4x256xf32>
    %45 = tpu.matmul %42, %44, %cst_48 {dimension_numbers = #tpu.dot_dimension_numbers<[1], [0], [0], [1], [0, 0, 1, 1], [], []>} : vector<4x256xbf16>, vector<256x256xbf16>, vector<4x256xf32> -> vector<4x256xf32>
    %46 = arith.addf %41, %45 : vector<4x256xf32>
    %47 = vector.extract_strided_slice %36 {offsets = [2, 0], sizes = [4, 256], strides = [1, 1]} : vector<6x256xbf16> to vector<4x256xbf16>
    %c2_49 = arith.constant 2 : index
    %c2_50 = arith.constant 2 : index
    %c0_51 = arith.constant 0 : index
    %c0_52 = arith.constant 0 : index
    %48 = vector.load %arg6[%c2_49, %c2_50, %c0_51, %c0_52] : memref<3x3x256x256xbf16, #tpu.memory_space<vmem>>, vector<1x1x256x256xbf16>
    %49 = vector.shape_cast %48 : vector<1x1x256x256xbf16> to vector<256x256xbf16>
    %cst_53 = arith.constant dense<0.000000e+00> : vector<4x256xf32>
    %50 = tpu.matmul %47, %49, %cst_53 {dimension_numbers = #tpu.dot_dimension_numbers<[1], [0], [0], [1], [0, 0, 1, 1], [], []>} : vector<4x256xbf16>, vector<256x256xbf16>, vector<4x256xf32> -> vector<4x256xf32>
    %51 = arith.addf %46, %50 : vector<4x256xf32>
    %c0_54 = arith.constant 0 : index
    %c0_55 = arith.constant 0 : index
    %52 = vector.load %arg7[%c0_54, %c0_55] : memref<1x256xf32, #tpu.memory_space<vmem>>, vector<1x256xf32>
    %53 = vector.broadcast %52 : vector<1x256xf32> to vector<4x256xf32>
    %54 = arith.addf %51, %53 : vector<4x256xf32>
    %cst_56 = arith.constant 0.000000e+00 : f32
    %55 = vector.broadcast %cst_56 : f32 to vector<4x256xf32>
    %56 = arith.cmpf ogt, %54, %55 : vector<4x256xf32>
    %cst_57 = arith.constant 1.000000e-01 : f32
    %57 = vector.broadcast %cst_57 : f32 to vector<4x256xf32>
    %58 = arith.mulf %57, %54 : vector<4x256xf32>
    %59 = arith.select %56, %54, %58 : vector<4x256xi1>, vector<4x256xf32>
    %60 = arith.truncf %59 : vector<4x256xf32> to vector<4x256xbf16>
    %c0_58 = arith.constant 0 : index
    %c0_59 = arith.constant 0 : index
    %c0_60 = arith.constant 0 : index
    %c0_61 = arith.constant 0 : index
    %61 = vector.load %arg8[%c0_58, %c0_59, %c0_60, %c0_61] : memref<1x1x4x256xbf16, #tpu.memory_space<vmem>>, vector<1x1x4x256xbf16>
    %62 = vector.shape_cast %61 : vector<1x1x4x256xbf16> to vector<4x256xbf16>
    %63 = vector.shape_cast %60 : vector<4x256xbf16> to vector<1x1x4x256xbf16>
    tpu.vector_store %arg8[%c0_58, %c0_59, %c0_60, %c0_61], %63 {strides = array<i32>} : memref<1x1x4x256xbf16, #tpu.memory_space<vmem>>, vector<1x1x4x256xbf16>,
    return
  }
  func.func @transform_0(%arg0: i32, %arg1: i32, %arg2: i32) -> (i32, i32, i32, i32) {
    %c0_i32 = arith.constant 0 : i32
    %0 = arith.addi %arg2, %c0_i32 : i32
    %c0_i32_0 = arith.constant 0 : i32
    %c0_i32_1 = arith.constant 0 : i32
    %c0_i32_2 = arith.constant 0 : i32
    return %arg1, %0, %c0_i32_0, %c0_i32_1 : i32, i32, i32, i32
  }
  func.func @transform_1(%arg0: i32, %arg1: i32, %arg2: i32) -> (i32, i32, i32, i32) {
    %c1_i32 = arith.constant 1 : i32
    %0 = arith.addi %arg2, %c1_i32 : i32
    %c0_i32 = arith.constant 0 : i32
    %c0_i32_0 = arith.constant 0 : i32
    %c0_i32_1 = arith.constant 0 : i32
    return %arg1, %0, %c0_i32, %c0_i32_0 : i32, i32, i32, i32
  }
  func.func @transform_2(%arg0: i32, %arg1: i32, %arg2: i32) -> (i32, i32, i32, i32) {
    %c2_i32 = arith.constant 2 : i32
    %0 = arith.addi %arg2, %c2_i32 : i32
    %c0_i32 = arith.constant 0 : i32
    %c0_i32_0 = arith.constant 0 : i32
    %c0_i32_1 = arith.constant 0 : i32
    return %arg1, %0, %c0_i32, %c0_i32_0 : i32, i32, i32, i32
  }
  func.func @transform_3(%arg0: i32, %arg1: i32, %arg2: i32) -> (i32, i32, i32, i32) {
    %c0_i32 = arith.constant 0 : i32
    %c0_i32_0 = arith.constant 0 : i32
    %c0_i32_1 = arith.constant 0 : i32
    %c0_i32_2 = arith.constant 0 : i32
    return %c0_i32, %c0_i32_0, %c0_i32_1, %arg0 : i32, i32, i32, i32
  }
  func.func @transform_4(%arg0: i32, %arg1: i32, %arg2: i32) -> (i32, i32) {
    %c0_i32 = arith.constant 0 : i32
    %c0_i32_0 = arith.constant 0 : i32
    return %c0_i32, %arg0 : i32, i32
  }
  func.func @transform_5(%arg0: i32, %arg1: i32, %arg2: i32) -> (i32, i32, i32, i32) {
    %c0_i32 = arith.constant 0 : i32
    %c0_i32_0 = arith.constant 0 : i32
    return %arg1, %arg2, %c0_i32, %arg0 : i32, i32, i32, i32
  }
}

module attributes {stable_mosaic.version = 11 : i64} {
  func.func @_matmul_bias_lrelu_kernel(%arg0: i32, %arg1: i32, %arg2: i32, %arg3: memref<8x1152xbf16, #tpu.memory_space<vmem>>, %arg4: memref<1152x256xbf16, #tpu.memory_space<vmem>>, %arg5: memref<1x256xf32, #tpu.memory_space<vmem>>, %arg6: memref<8x256xbf16, #tpu.memory_space<vmem>>, %arg7: memref<8x256xf32, #tpu.memory_space<vmem>>) attributes {dimension_semantics = [#tpu.dimension_semantics<parallel>, #tpu.dimension_semantics<parallel>, #tpu.dimension_semantics<arbitrary>], iteration_bounds = array<i64: 1, 2, 2>, scalar_prefetch = 0 : i64, scratch_operands = 1 : i64, tpu.core_type = #tpu.core_type<tc>, window_params = [{transform_indices = @transform_0, window_bounds = array<i64: 8, 1152>}, {transform_indices = @transform_1, window_bounds = array<i64: 1152, 256>}, {transform_indices = @transform_2, window_bounds = array<i64: 1, 256>}, {transform_indices = @transform_3, window_bounds = array<i64: 8, 256>}]} {
    %c0_i32 = arith.constant 0 : i32
    %0 = arith.cmpi eq, %arg2, %c0_i32 : i32
    %1 = arith.extui %0 : i1 to i32
    %c0_i32_0 = arith.constant 0 : i32
    %2 = arith.cmpi ne, %1, %c0_i32_0 : i32
    scf.if %2 {
      %cst_9 = arith.constant 0.000000e+00 : f32
      %12 = vector.broadcast %cst_9 : f32 to vector<8x256xf32>
      %c0_10 = arith.constant 0 : index
      %c0_11 = arith.constant 0 : index
      %13 = vector.load %arg7[%c0_10, %c0_11] : memref<8x256xf32, #tpu.memory_space<vmem>>, vector<8x256xf32>
      tpu.vector_store %arg7[%c0_10, %c0_11], %12 {strides = array<i32>} : memref<8x256xf32, #tpu.memory_space<vmem>>, vector<8x256xf32>,
    } else {
    }
    %c0 = arith.constant 0 : index
    %c0_1 = arith.constant 0 : index
    %3 = vector.load %arg7[%c0, %c0_1] : memref<8x256xf32, #tpu.memory_space<vmem>>, vector<8x256xf32>
    %c0_2 = arith.constant 0 : index
    %c0_3 = arith.constant 0 : index
    %4 = vector.load %arg3[%c0_2, %c0_3] : memref<8x1152xbf16, #tpu.memory_space<vmem>>, vector<8x1152xbf16>
    %c0_4 = arith.constant 0 : index
    %c0_5 = arith.constant 0 : index
    %5 = vector.load %arg4[%c0_4, %c0_5] : memref<1152x256xbf16, #tpu.memory_space<vmem>>, vector<1152x256xbf16>
    %cst = arith.constant dense<0.000000e+00> : vector<8x256xf32>
    %6 = tpu.matmul %4, %5, %cst {dimension_numbers = #tpu.dot_dimension_numbers<[1], [0], [0], [1], [0, 0, 1, 1], [], []>} : vector<8x1152xbf16>, vector<1152x256xbf16>, vector<8x256xf32> -> vector<8x256xf32>
    %7 = arith.addf %3, %6 : vector<8x256xf32>
    %c0_6 = arith.constant 0 : index
    %c0_7 = arith.constant 0 : index
    %8 = vector.load %arg7[%c0_6, %c0_7] : memref<8x256xf32, #tpu.memory_space<vmem>>, vector<8x256xf32>
    tpu.vector_store %arg7[%c0_6, %c0_7], %7 {strides = array<i32>} : memref<8x256xf32, #tpu.memory_space<vmem>>, vector<8x256xf32>,
    %c1_i32 = arith.constant 1 : i32
    %9 = arith.cmpi eq, %arg2, %c1_i32 : i32
    %10 = arith.extui %9 : i1 to i32
    %c0_i32_8 = arith.constant 0 : i32
    %11 = arith.cmpi ne, %10, %c0_i32_8 : i32
    scf.if %11 {
      %c0_9 = arith.constant 0 : index
      %c0_10 = arith.constant 0 : index
      %12 = vector.load %arg7[%c0_9, %c0_10] : memref<8x256xf32, #tpu.memory_space<vmem>>, vector<8x256xf32>
      %c0_11 = arith.constant 0 : index
      %c0_12 = arith.constant 0 : index
      %13 = vector.load %arg5[%c0_11, %c0_12] : memref<1x256xf32, #tpu.memory_space<vmem>>, vector<1x256xf32>
      %14 = vector.broadcast %13 : vector<1x256xf32> to vector<8x256xf32>
      %15 = arith.addf %12, %14 : vector<8x256xf32>
      %cst_13 = arith.constant 0.000000e+00 : f32
      %16 = vector.broadcast %cst_13 : f32 to vector<8x256xf32>
      %17 = arith.cmpf ogt, %15, %16 : vector<8x256xf32>
      %cst_14 = arith.constant 1.000000e-01 : f32
      %18 = vector.broadcast %cst_14 : f32 to vector<8x256xf32>
      %19 = arith.mulf %18, %15 : vector<8x256xf32>
      %20 = arith.select %17, %15, %19 : vector<8x256xi1>, vector<8x256xf32>
      %21 = arith.truncf %20 : vector<8x256xf32> to vector<8x256xbf16>
      %c0_15 = arith.constant 0 : index
      %c0_16 = arith.constant 0 : index
      %22 = vector.load %arg6[%c0_15, %c0_16] : memref<8x256xbf16, #tpu.memory_space<vmem>>, vector<8x256xbf16>
      tpu.vector_store %arg6[%c0_15, %c0_16], %21 {strides = array<i32>} : memref<8x256xbf16, #tpu.memory_space<vmem>>, vector<8x256xbf16>,
    } else {
    }
    return
  }
  func.func @transform_0(%arg0: i32, %arg1: i32, %arg2: i32) -> (i32, i32) {
    %c0_i32 = arith.constant 0 : i32
    return %arg0, %arg2 : i32, i32
  }
  func.func @transform_1(%arg0: i32, %arg1: i32, %arg2: i32) -> (i32, i32) {
    %c0_i32 = arith.constant 0 : i32
    return %arg2, %arg1 : i32, i32
  }
  func.func @transform_2(%arg0: i32, %arg1: i32, %arg2: i32) -> (i32, i32) {
    %c0_i32 = arith.constant 0 : i32
    %c0_i32_0 = arith.constant 0 : i32
    return %c0_i32, %arg1 : i32, i32
  }
  func.func @transform_3(%arg0: i32, %arg1: i32, %arg2: i32) -> (i32, i32) {
    %c0_i32 = arith.constant 0 : i32
    return %arg0, %arg1 : i32, i32
  }
}

module attributes {stable_mosaic.version = 11 : i64} {
  func.func @_matmul_bias_lrelu_kernel(%arg0: i32, %arg1: i32, %arg2: i32, %arg3: memref<8x1536xbf16, #tpu.memory_space<vmem>>, %arg4: memref<1536x256xbf16, #tpu.memory_space<vmem>>, %arg5: memref<1x256xf32, #tpu.memory_space<vmem>>, %arg6: memref<8x256xbf16, #tpu.memory_space<vmem>>, %arg7: memref<8x256xf32, #tpu.memory_space<vmem>>) attributes {dimension_semantics = [#tpu.dimension_semantics<parallel>, #tpu.dimension_semantics<parallel>, #tpu.dimension_semantics<arbitrary>], iteration_bounds = array<i64: 1, 2, 3>, scalar_prefetch = 0 : i64, scratch_operands = 1 : i64, tpu.core_type = #tpu.core_type<tc>, window_params = [{transform_indices = @transform_0, window_bounds = array<i64: 8, 1536>}, {transform_indices = @transform_1, window_bounds = array<i64: 1536, 256>}, {transform_indices = @transform_2, window_bounds = array<i64: 1, 256>}, {transform_indices = @transform_3, window_bounds = array<i64: 8, 256>}]} {
    %c0_i32 = arith.constant 0 : i32
    %0 = arith.cmpi eq, %arg2, %c0_i32 : i32
    %1 = arith.extui %0 : i1 to i32
    %c0_i32_0 = arith.constant 0 : i32
    %2 = arith.cmpi ne, %1, %c0_i32_0 : i32
    scf.if %2 {
      %cst_9 = arith.constant 0.000000e+00 : f32
      %12 = vector.broadcast %cst_9 : f32 to vector<8x256xf32>
      %c0_10 = arith.constant 0 : index
      %c0_11 = arith.constant 0 : index
      %13 = vector.load %arg7[%c0_10, %c0_11] : memref<8x256xf32, #tpu.memory_space<vmem>>, vector<8x256xf32>
      tpu.vector_store %arg7[%c0_10, %c0_11], %12 {strides = array<i32>} : memref<8x256xf32, #tpu.memory_space<vmem>>, vector<8x256xf32>,
    } else {
    }
    %c0 = arith.constant 0 : index
    %c0_1 = arith.constant 0 : index
    %3 = vector.load %arg7[%c0, %c0_1] : memref<8x256xf32, #tpu.memory_space<vmem>>, vector<8x256xf32>
    %c0_2 = arith.constant 0 : index
    %c0_3 = arith.constant 0 : index
    %4 = vector.load %arg3[%c0_2, %c0_3] : memref<8x1536xbf16, #tpu.memory_space<vmem>>, vector<8x1536xbf16>
    %c0_4 = arith.constant 0 : index
    %c0_5 = arith.constant 0 : index
    %5 = vector.load %arg4[%c0_4, %c0_5] : memref<1536x256xbf16, #tpu.memory_space<vmem>>, vector<1536x256xbf16>
    %cst = arith.constant dense<0.000000e+00> : vector<8x256xf32>
    %6 = tpu.matmul %4, %5, %cst {dimension_numbers = #tpu.dot_dimension_numbers<[1], [0], [0], [1], [0, 0, 1, 1], [], []>} : vector<8x1536xbf16>, vector<1536x256xbf16>, vector<8x256xf32> -> vector<8x256xf32>
    %7 = arith.addf %3, %6 : vector<8x256xf32>
    %c0_6 = arith.constant 0 : index
    %c0_7 = arith.constant 0 : index
    %8 = vector.load %arg7[%c0_6, %c0_7] : memref<8x256xf32, #tpu.memory_space<vmem>>, vector<8x256xf32>
    tpu.vector_store %arg7[%c0_6, %c0_7], %7 {strides = array<i32>} : memref<8x256xf32, #tpu.memory_space<vmem>>, vector<8x256xf32>,
    %c2_i32 = arith.constant 2 : i32
    %9 = arith.cmpi eq, %arg2, %c2_i32 : i32
    %10 = arith.extui %9 : i1 to i32
    %c0_i32_8 = arith.constant 0 : i32
    %11 = arith.cmpi ne, %10, %c0_i32_8 : i32
    scf.if %11 {
      %c0_9 = arith.constant 0 : index
      %c0_10 = arith.constant 0 : index
      %12 = vector.load %arg7[%c0_9, %c0_10] : memref<8x256xf32, #tpu.memory_space<vmem>>, vector<8x256xf32>
      %c0_11 = arith.constant 0 : index
      %c0_12 = arith.constant 0 : index
      %13 = vector.load %arg5[%c0_11, %c0_12] : memref<1x256xf32, #tpu.memory_space<vmem>>, vector<1x256xf32>
      %14 = vector.broadcast %13 : vector<1x256xf32> to vector<8x256xf32>
      %15 = arith.addf %12, %14 : vector<8x256xf32>
      %cst_13 = arith.constant 0.000000e+00 : f32
      %16 = vector.broadcast %cst_13 : f32 to vector<8x256xf32>
      %17 = arith.cmpf ogt, %15, %16 : vector<8x256xf32>
      %cst_14 = arith.constant 1.000000e-01 : f32
      %18 = vector.broadcast %cst_14 : f32 to vector<8x256xf32>
      %19 = arith.mulf %18, %15 : vector<8x256xf32>
      %20 = arith.select %17, %15, %19 : vector<8x256xi1>, vector<8x256xf32>
      %21 = arith.truncf %20 : vector<8x256xf32> to vector<8x256xbf16>
      %c0_15 = arith.constant 0 : index
      %c0_16 = arith.constant 0 : index
      %22 = vector.load %arg6[%c0_15, %c0_16] : memref<8x256xbf16, #tpu.memory_space<vmem>>, vector<8x256xbf16>
      tpu.vector_store %arg6[%c0_15, %c0_16], %21 {strides = array<i32>} : memref<8x256xbf16, #tpu.memory_space<vmem>>, vector<8x256xbf16>,
    } else {
    }
    return
  }
  func.func @transform_0(%arg0: i32, %arg1: i32, %arg2: i32) -> (i32, i32) {
    %c0_i32 = arith.constant 0 : i32
    return %arg0, %arg2 : i32, i32
  }
  func.func @transform_1(%arg0: i32, %arg1: i32, %arg2: i32) -> (i32, i32) {
    %c0_i32 = arith.constant 0 : i32
    return %arg2, %arg1 : i32, i32
  }
  func.func @transform_2(%arg0: i32, %arg1: i32, %arg2: i32) -> (i32, i32) {
    %c0_i32 = arith.constant 0 : i32
    %c0_i32_0 = arith.constant 0 : i32
    return %c0_i32, %arg1 : i32, i32
  }
  func.func @transform_3(%arg0: i32, %arg1: i32, %arg2: i32) -> (i32, i32) {
    %c0_i32 = arith.constant 0 : i32
    return %arg0, %arg1 : i32, i32
  }
}

module attributes {stable_mosaic.version = 11 : i64} {
  func.func @_matmul_bias_lrelu_kernel(%arg0: i32, %arg1: i32, %arg2: i32, %arg3: memref<8x1536xbf16, #tpu.memory_space<vmem>>, %arg4: memref<1536x256xbf16, #tpu.memory_space<vmem>>, %arg5: memref<1x256xf32, #tpu.memory_space<vmem>>, %arg6: memref<8x256xbf16, #tpu.memory_space<vmem>>, %arg7: memref<8x256xf32, #tpu.memory_space<vmem>>) attributes {dimension_semantics = [#tpu.dimension_semantics<parallel>, #tpu.dimension_semantics<parallel>, #tpu.dimension_semantics<arbitrary>], iteration_bounds = array<i64: 1, 4, 3>, scalar_prefetch = 0 : i64, scratch_operands = 1 : i64, tpu.core_type = #tpu.core_type<tc>, window_params = [{transform_indices = @transform_0, window_bounds = array<i64: 8, 1536>}, {transform_indices = @transform_1, window_bounds = array<i64: 1536, 256>}, {transform_indices = @transform_2, window_bounds = array<i64: 1, 256>}, {transform_indices = @transform_3, window_bounds = array<i64: 8, 256>}]} {
    %c0_i32 = arith.constant 0 : i32
    %0 = arith.cmpi eq, %arg2, %c0_i32 : i32
    %1 = arith.extui %0 : i1 to i32
    %c0_i32_0 = arith.constant 0 : i32
    %2 = arith.cmpi ne, %1, %c0_i32_0 : i32
    scf.if %2 {
      %cst_9 = arith.constant 0.000000e+00 : f32
      %12 = vector.broadcast %cst_9 : f32 to vector<8x256xf32>
      %c0_10 = arith.constant 0 : index
      %c0_11 = arith.constant 0 : index
      %13 = vector.load %arg7[%c0_10, %c0_11] : memref<8x256xf32, #tpu.memory_space<vmem>>, vector<8x256xf32>
      tpu.vector_store %arg7[%c0_10, %c0_11], %12 {strides = array<i32>} : memref<8x256xf32, #tpu.memory_space<vmem>>, vector<8x256xf32>,
    } else {
    }
    %c0 = arith.constant 0 : index
    %c0_1 = arith.constant 0 : index
    %3 = vector.load %arg7[%c0, %c0_1] : memref<8x256xf32, #tpu.memory_space<vmem>>, vector<8x256xf32>
    %c0_2 = arith.constant 0 : index
    %c0_3 = arith.constant 0 : index
    %4 = vector.load %arg3[%c0_2, %c0_3] : memref<8x1536xbf16, #tpu.memory_space<vmem>>, vector<8x1536xbf16>
    %c0_4 = arith.constant 0 : index
    %c0_5 = arith.constant 0 : index
    %5 = vector.load %arg4[%c0_4, %c0_5] : memref<1536x256xbf16, #tpu.memory_space<vmem>>, vector<1536x256xbf16>
    %cst = arith.constant dense<0.000000e+00> : vector<8x256xf32>
    %6 = tpu.matmul %4, %5, %cst {dimension_numbers = #tpu.dot_dimension_numbers<[1], [0], [0], [1], [0, 0, 1, 1], [], []>} : vector<8x1536xbf16>, vector<1536x256xbf16>, vector<8x256xf32> -> vector<8x256xf32>
    %7 = arith.addf %3, %6 : vector<8x256xf32>
    %c0_6 = arith.constant 0 : index
    %c0_7 = arith.constant 0 : index
    %8 = vector.load %arg7[%c0_6, %c0_7] : memref<8x256xf32, #tpu.memory_space<vmem>>, vector<8x256xf32>
    tpu.vector_store %arg7[%c0_6, %c0_7], %7 {strides = array<i32>} : memref<8x256xf32, #tpu.memory_space<vmem>>, vector<8x256xf32>,
    %c2_i32 = arith.constant 2 : i32
    %9 = arith.cmpi eq, %arg2, %c2_i32 : i32
    %10 = arith.extui %9 : i1 to i32
    %c0_i32_8 = arith.constant 0 : i32
    %11 = arith.cmpi ne, %10, %c0_i32_8 : i32
    scf.if %11 {
      %c0_9 = arith.constant 0 : index
      %c0_10 = arith.constant 0 : index
      %12 = vector.load %arg7[%c0_9, %c0_10] : memref<8x256xf32, #tpu.memory_space<vmem>>, vector<8x256xf32>
      %c0_11 = arith.constant 0 : index
      %c0_12 = arith.constant 0 : index
      %13 = vector.load %arg5[%c0_11, %c0_12] : memref<1x256xf32, #tpu.memory_space<vmem>>, vector<1x256xf32>
      %14 = vector.broadcast %13 : vector<1x256xf32> to vector<8x256xf32>
      %15 = arith.addf %12, %14 : vector<8x256xf32>
      %cst_13 = arith.constant 0.000000e+00 : f32
      %16 = vector.broadcast %cst_13 : f32 to vector<8x256xf32>
      %17 = arith.cmpf ogt, %15, %16 : vector<8x256xf32>
      %cst_14 = arith.constant 1.000000e-01 : f32
      %18 = vector.broadcast %cst_14 : f32 to vector<8x256xf32>
      %19 = arith.mulf %18, %15 : vector<8x256xf32>
      %20 = arith.select %17, %15, %19 : vector<8x256xi1>, vector<8x256xf32>
      %21 = arith.truncf %20 : vector<8x256xf32> to vector<8x256xbf16>
      %c0_15 = arith.constant 0 : index
      %c0_16 = arith.constant 0 : index
      %22 = vector.load %arg6[%c0_15, %c0_16] : memref<8x256xbf16, #tpu.memory_space<vmem>>, vector<8x256xbf16>
      tpu.vector_store %arg6[%c0_15, %c0_16], %21 {strides = array<i32>} : memref<8x256xbf16, #tpu.memory_space<vmem>>, vector<8x256xbf16>,
    } else {
    }
    return
  }
  func.func @transform_0(%arg0: i32, %arg1: i32, %arg2: i32) -> (i32, i32) {
    %c0_i32 = arith.constant 0 : i32
    return %arg0, %arg2 : i32, i32
  }
  func.func @transform_1(%arg0: i32, %arg1: i32, %arg2: i32) -> (i32, i32) {
    %c0_i32 = arith.constant 0 : i32
    return %arg2, %arg1 : i32, i32
  }
  func.func @transform_2(%arg0: i32, %arg1: i32, %arg2: i32) -> (i32, i32) {
    %c0_i32 = arith.constant 0 : i32
    %c0_i32_0 = arith.constant 0 : i32
    return %c0_i32, %arg1 : i32, i32
  }
  func.func @transform_3(%arg0: i32, %arg1: i32, %arg2: i32) -> (i32, i32) {
    %c0_i32 = arith.constant 0 : i32
    return %arg0, %arg1 : i32, i32
  }
}

module attributes {stable_mosaic.version = 11 : i64} {
  func.func @_matmul_bias_lrelu_kernel(%arg0: i32, %arg1: i32, %arg2: i32, %arg3: memref<8x1536xbf16, #tpu.memory_space<vmem>>, %arg4: memref<1536x256xbf16, #tpu.memory_space<vmem>>, %arg5: memref<1x256xf32, #tpu.memory_space<vmem>>, %arg6: memref<8x256xbf16, #tpu.memory_space<vmem>>, %arg7: memref<8x256xf32, #tpu.memory_space<vmem>>) attributes {dimension_semantics = [#tpu.dimension_semantics<parallel>, #tpu.dimension_semantics<parallel>, #tpu.dimension_semantics<arbitrary>], iteration_bounds = array<i64: 1, 4, 6>, scalar_prefetch = 0 : i64, scratch_operands = 1 : i64, tpu.core_type = #tpu.core_type<tc>, window_params = [{transform_indices = @transform_0, window_bounds = array<i64: 8, 1536>}, {transform_indices = @transform_1, window_bounds = array<i64: 1536, 256>}, {transform_indices = @transform_2, window_bounds = array<i64: 1, 256>}, {transform_indices = @transform_3, window_bounds = array<i64: 8, 256>}]} {
    %c0_i32 = arith.constant 0 : i32
    %0 = arith.cmpi eq, %arg2, %c0_i32 : i32
    %1 = arith.extui %0 : i1 to i32
    %c0_i32_0 = arith.constant 0 : i32
    %2 = arith.cmpi ne, %1, %c0_i32_0 : i32
    scf.if %2 {
      %cst_9 = arith.constant 0.000000e+00 : f32
      %12 = vector.broadcast %cst_9 : f32 to vector<8x256xf32>
      %c0_10 = arith.constant 0 : index
      %c0_11 = arith.constant 0 : index
      %13 = vector.load %arg7[%c0_10, %c0_11] : memref<8x256xf32, #tpu.memory_space<vmem>>, vector<8x256xf32>
      tpu.vector_store %arg7[%c0_10, %c0_11], %12 {strides = array<i32>} : memref<8x256xf32, #tpu.memory_space<vmem>>, vector<8x256xf32>,
    } else {
    }
    %c0 = arith.constant 0 : index
    %c0_1 = arith.constant 0 : index
    %3 = vector.load %arg7[%c0, %c0_1] : memref<8x256xf32, #tpu.memory_space<vmem>>, vector<8x256xf32>
    %c0_2 = arith.constant 0 : index
    %c0_3 = arith.constant 0 : index
    %4 = vector.load %arg3[%c0_2, %c0_3] : memref<8x1536xbf16, #tpu.memory_space<vmem>>, vector<8x1536xbf16>
    %c0_4 = arith.constant 0 : index
    %c0_5 = arith.constant 0 : index
    %5 = vector.load %arg4[%c0_4, %c0_5] : memref<1536x256xbf16, #tpu.memory_space<vmem>>, vector<1536x256xbf16>
    %cst = arith.constant dense<0.000000e+00> : vector<8x256xf32>
    %6 = tpu.matmul %4, %5, %cst {dimension_numbers = #tpu.dot_dimension_numbers<[1], [0], [0], [1], [0, 0, 1, 1], [], []>} : vector<8x1536xbf16>, vector<1536x256xbf16>, vector<8x256xf32> -> vector<8x256xf32>
    %7 = arith.addf %3, %6 : vector<8x256xf32>
    %c0_6 = arith.constant 0 : index
    %c0_7 = arith.constant 0 : index
    %8 = vector.load %arg7[%c0_6, %c0_7] : memref<8x256xf32, #tpu.memory_space<vmem>>, vector<8x256xf32>
    tpu.vector_store %arg7[%c0_6, %c0_7], %7 {strides = array<i32>} : memref<8x256xf32, #tpu.memory_space<vmem>>, vector<8x256xf32>,
    %c5_i32 = arith.constant 5 : i32
    %9 = arith.cmpi eq, %arg2, %c5_i32 : i32
    %10 = arith.extui %9 : i1 to i32
    %c0_i32_8 = arith.constant 0 : i32
    %11 = arith.cmpi ne, %10, %c0_i32_8 : i32
    scf.if %11 {
      %c0_9 = arith.constant 0 : index
      %c0_10 = arith.constant 0 : index
      %12 = vector.load %arg7[%c0_9, %c0_10] : memref<8x256xf32, #tpu.memory_space<vmem>>, vector<8x256xf32>
      %c0_11 = arith.constant 0 : index
      %c0_12 = arith.constant 0 : index
      %13 = vector.load %arg5[%c0_11, %c0_12] : memref<1x256xf32, #tpu.memory_space<vmem>>, vector<1x256xf32>
      %14 = vector.broadcast %13 : vector<1x256xf32> to vector<8x256xf32>
      %15 = arith.addf %12, %14 : vector<8x256xf32>
      %cst_13 = arith.constant 0.000000e+00 : f32
      %16 = vector.broadcast %cst_13 : f32 to vector<8x256xf32>
      %17 = arith.cmpf ogt, %15, %16 : vector<8x256xf32>
      %cst_14 = arith.constant 1.000000e-01 : f32
      %18 = vector.broadcast %cst_14 : f32 to vector<8x256xf32>
      %19 = arith.mulf %18, %15 : vector<8x256xf32>
      %20 = arith.select %17, %15, %19 : vector<8x256xi1>, vector<8x256xf32>
      %21 = arith.truncf %20 : vector<8x256xf32> to vector<8x256xbf16>
      %c0_15 = arith.constant 0 : index
      %c0_16 = arith.constant 0 : index
      %22 = vector.load %arg6[%c0_15, %c0_16] : memref<8x256xbf16, #tpu.memory_space<vmem>>, vector<8x256xbf16>
      tpu.vector_store %arg6[%c0_15, %c0_16], %21 {strides = array<i32>} : memref<8x256xbf16, #tpu.memory_space<vmem>>, vector<8x256xbf16>,
    } else {
    }
    return
  }
  func.func @transform_0(%arg0: i32, %arg1: i32, %arg2: i32) -> (i32, i32) {
    %c0_i32 = arith.constant 0 : i32
    return %arg0, %arg2 : i32, i32
  }
  func.func @transform_1(%arg0: i32, %arg1: i32, %arg2: i32) -> (i32, i32) {
    %c0_i32 = arith.constant 0 : i32
    return %arg2, %arg1 : i32, i32
  }
  func.func @transform_2(%arg0: i32, %arg1: i32, %arg2: i32) -> (i32, i32) {
    %c0_i32 = arith.constant 0 : i32
    %c0_i32_0 = arith.constant 0 : i32
    return %c0_i32, %arg1 : i32, i32
  }
  func.func @transform_3(%arg0: i32, %arg1: i32, %arg2: i32) -> (i32, i32) {
    %c0_i32 = arith.constant 0 : i32
    return %arg0, %arg1 : i32, i32
  }
}

</mosaic_0001>

<bundles_post_ra>
// kernel: flownets_forward.10
= control target key start
LH: loop header
LB: loop body
LE: loop exit
PB: predicated region body
PF: predicated region fallthrough
CT: control target
= control target key end

     0   :  { %s2273_s21 = smov 0   ;;  %s2275_s22 = smov 0   ;;  %s2596_s0 = inlined_call_operand.vmem [shape: bf16[2,19,19,24], index: 0, kind: input, shape index: {}, may-alias: {0,1,2,3}]   ;;  %s2597_s1 = inlined_call_operand.vmem [shape: bf16[2,19,19,24], index: 1, kind: input, shape index: {}, may-alias: {0,1,2,3}]   ;;  %s2598_s2 = inlined_call_operand.vmem [shape: bf16[2,19,19,24], index: 2, kind: input, shape index: {}, may-alias: {0,1,2,3}]   ;;  %s2599_s3 = inlined_call_operand.vmem [shape: bf16[2,19,19,24], index: 3, kind: input, shape index: {}, may-alias: {0,1,2,3}]   ;;  %s2600_s4 = inlined_call_operand.vmem [shape: bf16[4,4,24,64], index: 4, kind: input, shape index: {}]   ;;  %s2601_s5 = inlined_call_operand.vmem [shape: f32[1,64], index: 5, kind: input, shape index: {}]   ;;  %s2602_s6 = inlined_call_operand.vmem [shape: bf16[2,16,16,64], index: 6, kind: output, shape index: {}]  }
   0x1   :  { %s2277_s23 = smov 0   ;;  %s2279_s24 = smov 0  }
   0x2   :  { %s2281_s25 = smov 0  }
   0x3 LB: > { %s28_s26 = sadd.s32 1, %s2226_s23  ;;  %s31_s27 = sadd.s32 1, %s2230_s24  ;;  %s2234_s25 = sphi %s2281_s25, %s16_s25   ;;  %s2230_s24 = sphi %s2279_s24, %s2606_s24   ;;  %s2226_s23 = sphi %s2277_s23, %s2605_s23   ;;  %s2222_s22 = sphi %s2275_s22, %s2604_s22   ;;  %s2218_s21 = sphi %s2273_s21, %s2603_s21  }
   0x4   : > { %p29_p0 = scmp.ge.s32.totalorder %s28_s26, 16  ;;  %p1817_p1 = scmp.ge.s32.totalorder %s2234_s25, 1 }
   0x5   : > { %p318_p2 = scmp.lt.s32.totalorder %s2234_s25, 33 }
   0x6   : > { %s2608_s26 = smov (%p29_p0, %s28_s26), 0  ;;  %s2610_s27 = smov (!%p29_p0, %s31_s27), %s2230_s24 }
   0x7   : > { %p319_p3 = pnand %p1817_p1, %p318_p2  ;;  %p33_p4 = scmp.ge.s32.totalorder %s2610_s27, 2 }
   0x8   : > { %v2156_v0 = vld [vmem:[%s2600_s4 + $0xc] sm:$0xff] (!%p319_p3)   ;;  %v2236_v1 = vmov (!%p319_p3), 0.0   ;;  %v2157_v2 = vld [vmem:[%s2600_s4] sm:$0xff] (!%p319_p3)   ;;  %vm502_vm0 = vcmask (!%p319_p3), 1043456   ;;  %v2158_v3 = vld [vmem:[%s2600_s4 + $0x14] ss:$0 sps:$4 sm:$0xff] (!%p319_p3)  }
   0x9   : > { %s2612_s27 = smov (%p33_p4, %s2610_s27), 0  ;;  %322 = sbr.rel (%p319_p3) target bundleno = 314 (0x13a), region = 44 }
   0xa   : > { %1981 = vmatprep.subr.bf16.mxu0 (!%p319_p3), %v2236_v1  ;;  %1989 = vmatprep.subr.bf16.mxu1 (!%p319_p3), %v2236_v1  ;;  %v2159_v4 = vld [vmem:[%s2600_s4 + $0x8] ss:$0 sps:$4 sm:$0xff] (!%p319_p3)   ;;  %p396_p5 = scmp.lt.s32.totalorder (!%p319_p3), %s2222_s22, 1  ;;  %p398_p6 = scmp.lt.s32.totalorder (!%p319_p3), %s2218_s21, 18  ;;  %v504_v5 = vsel (!%p319_p3), %vm502_vm0, %v2158_v3, 0  ;;  %vm2237_vm1 = vmmov (!%p319_p3), 0  }
   0xb   : > { %1982 = vmatpush3.bf16.msra.mxu0 (!%p319_p3), %v2156_v0  ;;  %1990 = vmatpush3.bf16.msra.mxu1 (!%p319_p3), %v2157_v2  ;;  %v559_v6 = vsel (!%p319_p3), %vm502_vm0, %v2159_v4, 0  ;;  %s405_s16 = sadd.s32 (!%p319_p3), 1, %s2218_s21  ;;  %vm498_vm2 = vcmask (!%p319_p3), 195584   ;;  %v2163_v7 = vld [vmem:[%s2600_s4 + $0x24] sm:$0xff] (!%p319_p3)   ;;  %v2165_v8 = vld [vmem:[%s2600_s4 + $0x2c] ss:$0 sps:$4 sm:$0xff] (!%p319_p3)  }
   0xc   : > { %1983 = vmatprep.subr.bf16.mxu0 (!%p319_p3), %v2236_v1  ;;  %1991 = vmatprep.subr.bf16.mxu1 (!%p319_p3), %v2236_v1  ;;  %p408_p7 = scmp.lt.s32.totalorder (!%p319_p3), %s405_s16, 18  ;;  %vm476_vm3 = vsmask.f32 (!%p319_p3), 7424  ;;  %v695_v15 = vsel (!%p319_p3), %vm502_vm0, %v2165_v8, 0  ;;  %v2162_v20 = vld [vmem:[%s2600_s4 + $0x18] sm:$0xff] (!%p319_p3)   ;;  %vm606_vm5 = vcmask (!%p319_p3), 1046528  }
   0xd   : > { %1993 = vmatprep.mubr.msk.bf16.mxu1 (!%p319_p3), %vm2237_vm1, %v2236_v1  ;;  %1985 = vmatprep.mubr.msk.bf16.mxu0 (!%p319_p3), %vm2237_vm1, %v2236_v1  ;;  %v2164_v21 = vld [vmem:[%s2600_s4 + $0x20] ss:$0 sps:$4 sm:$0xff] (!%p319_p3)   ;;  %vm672_vm4 = vsmask.f32 (!%p319_p3), 6400  ;;  %v2169_v28 = vld [vmem:[%s2600_s4 + $0x44] ss:$0 sps:$4 sm:$0xff] (!%p319_p3)  }
   0xe   : > { %v2167_v25 = vld [vmem:[%s2600_s4 + $0x3c] sm:$0xff] (!%p319_p3)   ;;  %s416_s30 = sadd.s32 (!%p319_p3), 2, %s2218_s21  ;;  %v623_v35 = vsel (!%p319_p3), %vm502_vm0, %v2164_v21, 0  ;;  %v2168_v40 = vld [vmem:[%s2600_s4 + $0x38] ss:$0 sps:$4 sm:$0xff] (!%p319_p3)   ;;  %v841_v41 = vsel (!%p319_p3), %vm502_vm0, %v2169_v28, 0 }
   0xf   : > { %1984 = vmatpush3.bf16.msra.mxu0 (!%p319_p3), %v504_v5  ;;  %1992 = vmatpush3.bf16.msra.mxu1 (!%p319_p3), %v559_v6  ;;  %p419_p8 = scmp.lt.s32.totalorder (!%p319_p3), %s416_s30, 18  ;;  %v2166_v45 = vld [vmem:[%s2600_s4 + $0x30] sm:$0xff] (!%p319_p3)   ;;  %v2175_v47 = vld [vmem:[%s2600_s4 + $0x5c] ss:$0 sps:$4 sm:$0xff] (!%p319_p3)   ;;  %v765_v54 = vsel (!%p319_p3), %vm502_vm0, %v2168_v40, 0  ;;  %v2172_v55 = vld [vmem:[%s2600_s4 + $0x48] sm:$0xff] (!%p319_p3)  }
  0x10   : > { %s2614_s22 = smov (!%p396_p5, %s2222_s22), 1  ;;  %1997 = vmatprep.subr.bf16.mxu0 %v2236_v1  ;;  %2005 = vmatprep.subr.bf16.mxu1 %v2236_v1  ;;  %s2616_s16 = smov (!%p408_p7, %s405_s16), 18  ;;  %v2173_v46 = vld [vmem:[%s2600_s4 + $0x54] sm:$0xff]   ;;  %v977_v56 = vsel %vm502_vm0, %v2175_v47, 0  ;;  %v2174_v59 = vld [vmem:[%s2600_s4 + $0x50] ss:$0 sps:$4 sm:$0xff]  }
  0x11   : > { %s399_s12 = scalar_select %p398_p6, %s2218_s21, 18  ;;  %v2177_v63 = vld [vmem:[%s2600_s4 + $0x6c] sm:$0xff]   ;;  %v2179_v4 = vld [vmem:[%s2600_s4 + $0x74] ss:$0 sps:$4 sm:$0xff]   ;;  %v906_v8 = vsel %vm502_vm0, %v2174_v59, 0  ;;  %vm1609_vm7 = vcmask 519168  }
  0x12   : > { %s2336_s13 = smul.u32 57, %s2614_s22  ;;  %s2618_s30 = smov (!%p419_p8, %s416_s30), 18  ;;  %v2188_v47 = vld [vmem:[%s2600_s4 + $0x98] ss:$0 sps:$4 sm:$0xff]   ;;  %v2192_v59 = vld [vmem:[%s2600_s4 + $0xa8] sm:$0xff]  }
  0x13   : > { %s2109_s14 = smul.u32 3, %s399_s12  ;;  %s427_s7 = sadd.s32 3, %s2218_s21 }
  0x14   : > { %s2111_s8 = smul.u32 3, %s2616_s16  ;;  %p430_p9 = scmp.lt.s32.totalorder %s427_s7, 18 }
  0x15   : > { %s402_s15 = sadd.s32 %s2336_s13, %s2109_s14  ;;  %s2112_s16 = smul.u32 3, %s2618_s30 }
  0x16   : > { %s1818_s17 = sshll.u32 %s402_s15, 2  ;;  %s412_s14 = sadd.s32 %s2111_s8, %s2336_s13 }
  0x17   : > { %s404_s29 = scalar_lea.vmem %s2596_s0, %s1818_s17  ;;  %s1819_s17 = sshll.u32 %s412_s14, 2 }
  0x18   : > { %v2160_v9 = vld [vmem:[%s404_s29] sm:$0xff]   ;;  %v2161_v10 = vld [vmem:[%s404_s29 + $0x8] ss:$0 sps:$4 sm:$0x33]   ;;  %s414_s29 = scalar_lea.vmem %s2597_s1, %s1819_s17  ;;  %s423_s17 = sadd.s32 %s2112_s16, %s2336_s13 }
  0x19   : > { %1994 = vmatmul.mubr.msk.bf16.vlgmr.msra.gmra.mrb[0].mxu1 %vm498_vm2, %v2160_v9  ;;  %v478_v11 = vshrl.u32 %v2160_v9, 16  ;;  %v480_v12 = vshll.u32 %v2160_v9, 16  ;;  %v485_v13 = vshll.u32 %v2161_v10, 16  ;;  %v676_v14 = vshrl.u32 %v2161_v10, 16  ;;  %v2376_v31 = vld [vmem:[%s414_s29] sm:$0xff]   ;;  %s1820_s18 = sshll.u32 %s423_s17, 2 }
  0x1a   : > { %2006 = vmatpush3.bf16.msra.mxu1 %v2163_v7  ;;  %2009 = vmatprep.mubr.msk.bf16.mxu1 %vm2237_vm1, %v2236_v1  ;;  %v2378_v32 = vld [vmem:[%s414_s29 + $0x8] ss:$0 sps:$4 sm:$0x33]   ;;  %v607_v33 = vrot.slane %v2160_v9, 1  ;;  %v608_v34 = vrot.slane %v2161_v10, 1  ;;  %v817_v36 = vshrl.u32 %v2376_v31, 16  ;;  %s425_s30 = scalar_lea.vmem %s2598_s2, %s1820_s18 }
  0x1b   : > { %v482_v16 = vrot.slane %v480_v12, 1  ;;  %v487_v17 = vrot.slane %v485_v13, 1  ;;  %v673_v18 = vrot.slane %v478_v11, 1  ;;  %v679_v19 = vrot.slane %v485_v13, 2  ;;  %2007 = vmatprep.subr.bf16.mxu1 %v2236_v1  ;;  %v2431_v60 = vld [vmem:[%s425_s30] sm:$0xff]   ;;  %s2620_s7 = smov (!%p430_p9, %s427_s7), 18 }
  0x1c   : > { %v674_v22 = vrot.slane %v480_v12, 2  ;;  %v678_v23 = vrot.slane %v676_v14, 1  ;;  %v819_v37 = vshll.u32 %v2376_v31, 16  ;;  %v824_v38 = vshll.u32 %v2378_v32, 16  ;;  %s2113_s15 = smul.u32 3, %s2620_s7  ;;  %v2176_v14 = vld [vmem:[%s2600_s4 + $0x60] sm:$0xff]  }
  0x1d   : > { %v483_v24 = vor.u32 %v482_v16, %v478_v11  ;;  %v958_v39 = vshrl.u32 %v2378_v32, 16  ;;  %v609_v44 = vsel %vm606_vm5, %v607_v33, %v608_v34  ;;  %v955_v48 = vrot.slane %v817_v36, 1  ;;  %v2433_v61 = vld [vmem:[%s425_s30 + $0x8] ss:$0 sps:$4 sm:$0x33]   ;;  %v2187_v33 = vld [vmem:[%s2600_s4 + $0x9c] sm:$0xff]  }
  0x1e   : > { %2008 = vmatpush3.bf16.msra.mxu1 %v695_v15  ;;  %v675_v26 = vor.u32 %v674_v22, %v673_v18  ;;  %v680_v27 = vor.u32 %v679_v19, %v678_v23  ;;  %v821_v42 = vrot.slane %v819_v37, 1  ;;  %v826_v43 = vrot.slane %v824_v38, 1  ;;  %s434_s16 = sadd.s32 %s2113_s15, %s2336_s13  ;;  %v2178_v15 = vld [vmem:[%s2600_s4 + $0x68] ss:$0 sps:$4 sm:$0xff]   ;;  %v2185_v22 = vld [vmem:[%s2600_s4 + $0x8c] ss:$0 sps:$4 sm:$0xff]  }
  0x1f   : > { %v488_v29 = vsel %vm476_vm3, %v483_v24, %v487_v17  ;;  %2021 = vmatprep.subr.bf16.mxu1 %v2236_v1  ;;  %v956_v50 = vrot.slane %v819_v37, 2  ;;  %v960_v51 = vrot.slane %v958_v39, 1  ;;  %v961_v52 = vrot.slane %v824_v38, 2  ;;  %s1821_s28 = sshll.u32 %s434_s16, 2  ;;  %v2183_v16 = vld [vmem:[%s2600_s4 + $0x84] sm:$0xff]   ;;  %p447_p10 = scmp.lt.s32.totalorder %s2218_s21, 15 }
  0x20   : > { %1986 = vmatmul.mubr.msk.bf16.vlgmr.msra.gmra.mrb[0].mxu0 %vm498_vm2, %v488_v29  ;;  %v681_v30 = vsel %vm672_vm4, %v675_v26, %v680_v27  ;;  %v822_v49 = vor.u32 %v821_v42, %v817_v36  ;;  %v1099_v0 = vshrl.u32 %v2431_v60, 16  ;;  %v1101_v2 = vshll.u32 %v2431_v60, 16  ;;  %s436_s8 = scalar_lea.vmem %s2599_s3, %s1821_s28  ;;  %v2189_v37 = vld [vmem:[%s2600_s4 + $0xa4] ss:$0 sps:$4 sm:$0xff]   ;;  %s1823_s16 = sshll.u32 %s2614_s22, 5 }
  0x21   : > { %1998 = vmatpush3.bf16.msra.mxu0 %v2162_v20  ;;  %2001 = vmatprep.mubr.msk.bf16.mxu0 %vm2237_vm1, %v2236_v1  ;;  %v957_v57 = vor.u32 %v956_v50, %v955_v48  ;;  %v962_v58 = vor.u32 %v961_v52, %v960_v51  ;;  %v1106_v3 = vshll.u32 %v2433_v61, 16  ;;  %v890_v5 = vrot.slane %v2376_v31, 1  ;;  %v2482_v23 = vld [vmem:[%s436_s8] sm:$0xff]   ;;  %v2491_v27 = vld [vmem:[%s436_s8 + $0x8] ss:$0 sps:$4 sm:$0x33]  }
  0x22   : > { %1999 = vmatprep.subr.bf16.mxu0 %v2236_v1  ;;  %2010 = vmatmul.mubr.msk.bf16.vlgmr.msra.gmra.mrb[4].mxu1 %vm498_vm2, %v681_v30  ;;  %v827_v53 = vsel %vm476_vm3, %v822_v49, %v826_v43  ;;  %v891_v6 = vrot.slane %v2378_v32, 1  ;;  %v1103_v7 = vrot.slane %v1101_v2, 1  ;;  %v1240_v9 = vshrl.u32 %v2433_v61, 16  ;;  %v2182_v30 = vld [vmem:[%s2600_s4 + $0x78] sm:$0xff]   ;;  %s2622_s21 = smov (!%p447_p10, %s2218_s21), 15 }
  0x23   : > { %2022 = vmatpush3.bf16.msra.mxu1 %v2167_v25  ;;  %2025 = vmatprep.mubr.msk.bf16.mxu1 %vm2237_vm1, %v2236_v1  ;;  %v963_v62 = vsel %vm672_vm4, %v957_v57, %v962_v58  ;;  %v1108_v11 = vrot.slane %v1106_v3, 1  ;;  %v1123_v12 = vsel %vm502_vm0, %v2179_v4, 0  ;;  %v1237_v17 = vrot.slane %v1099_v0, 1  ;;  %v2193_v50 = vld [vmem:[%s2600_s4 + $0xb4] sm:$0xff]   ;;  %s1822_s15 = sshll.u32 %s2622_s21, 1 }
  0x24   : > { %2023 = vmatprep.subr.bf16.mxu1 %v2236_v1  ;;  %v1104_v10 = vor.u32 %v1103_v7, %v1099_v0  ;;  %v892_v13 = vsel %vm606_vm5, %v890_v5, %v891_v6  ;;  %v1238_v18 = vrot.slane %v1101_v2, 2  ;;  %v1242_v19 = vrot.slane %v1240_v9, 1  ;;  %s454_s19 = sadd.s32 %s1823_s16, %s1822_s15 }
  0x25   : > { %2000 = vmatpush3.bf16.msra.mxu0 %v623_v35  ;;  %v1243_v20 = vrot.slane %v1106_v3, 2  ;;  %v1047_v24 = vsel %vm502_vm0, %v2178_v15, 0  ;;  %v1383_v28 = vshll.u32 %v2482_v23, 16  ;;  %v1259_v29 = vsel %vm502_vm0, %v2185_v22, 0  ;;  %s1824_s20 = sshll.u32 %s454_s19, 2 }
  0x26   : > { %2013 = vmatprep.subr.bf16.mxu0 %v2236_v1  ;;  %v1109_v21 = vsel %vm476_vm3, %v1104_v10, %v1108_v11  ;;  %v1239_v25 = vor.u32 %v1238_v18, %v1237_v17  ;;  %v1381_v34 = vshrl.u32 %v2482_v23, 16  ;;  %v1388_v36 = vshll.u32 %v2491_v27, 16  ;;  %s456_s28 = scalar_lea.vmem %s2602_s6, %s1824_s20 }
  0x27   : > { %2024 = vmatpush3.bf16.msra.mxu1 %v841_v41  ;;  %v1244_v26 = vor.u32 %v1243_v20, %v1242_v19  ;;  %v1385_v35 = vrot.slane %v1383_v28, 1  ;;  %v1172_v38 = vrot.slane %v2431_v60, 1  ;;  %v1173_v39 = vrot.slane %v2433_v61, 1 }
  0x28   : > { %2002 = vmatmul.mubr.msk.bf16.vlgmr.msra.gmra.mrb[4].mxu0 %vm498_vm2, %v609_v44  ;;  %2037 = vmatprep.subr.bf16.mxu1 %v2236_v1  ;;  %v1390_v42 = vrot.slane %v1388_v36, 1  ;;  %v1522_v43 = vshrl.u32 %v2491_v27, 16  ;;  %v1405_v44 = vsel %vm502_vm0, %v2189_v37, 0  ;;  %v1519_v48 = vrot.slane %v1381_v34, 1 }
  0x29   : > { %2014 = vmatpush3.bf16.msra.mxu0 %v2166_v45  ;;  %2017 = vmatprep.mubr.msk.bf16.mxu0 %vm2237_vm1, %v2236_v1  ;;  %v1245_v32 = vsel %vm672_vm4, %v1239_v25, %v1244_v26  ;;  %v1386_v41 = vor.u32 %v1385_v35, %v1381_v34  ;;  %v1174_v45 = vsel %vm606_vm5, %v1172_v38, %v1173_v39  ;;  %v1520_v51 = vrot.slane %v1383_v28, 2 }
  0x2a   : > { %2015 = vmatprep.subr.bf16.mxu0 %v2236_v1  ;;  %2026 = vmatmul.mubr.msk.bf16.vlgmr.msra.gmra.mrb[8].mxu1 %vm498_vm2, %v827_v53  ;;  %v1524_v52 = vrot.slane %v1522_v43, 1  ;;  %v1525_v53 = vrot.slane %v1388_v36, 2 }
  0x2b   : > { %2038 = vmatpush3.bf16.msra.mxu1 %v2173_v46  ;;  %2041 = vmatprep.mubr.msk.bf16.mxu1 %vm2237_vm1, %v2236_v1  ;;  %v2186_v46 = vld [vmem:[%s2600_s4 + $0x90] sm:$0xff]   ;;  %v1391_v49 = vsel %vm476_vm3, %v1386_v41, %v1390_v42 }
  0x2c   : > { %2039 = vmatprep.subr.bf16.mxu1 %v2236_v1  ;;  %v1526_v57 = vor.u32 %v1525_v53, %v1524_v52 }
  0x2d   : > { %2016 = vmatpush3.bf16.msra.mxu0 %v765_v54  ;;  %v2195_v54 = vld [vmem:[%s2600_s4 + $0xbc] ss:$0 sps:$4 sm:$0xff]  }
  0x2e   : > { %2029 = vmatprep.subr.bf16.mxu0 %v2236_v1  ;;  %v1541_v58 = vsel %vm502_vm0, %v2195_v54, 0 }
  0x2f   : > { %2040 = vmatpush3.bf16.msra.mxu1 %v977_v56  ;;  %v1521_v56 = vor.u32 %v1520_v51, %v1519_v48 }
  0x30   : > { %2018 = vmatmul.mubr.msk.bf16.vlgmr.msra.gmra.mrb[8].mxu0 %vm498_vm2, %v2376_v31  ;;  %2053 = vmatprep.subr.bf16.mxu1 %v2236_v1  ;;  %v2184_v31 = vld [vmem:[%s2600_s4 + $0x80] ss:$0 sps:$4 sm:$0xff]  }
  0x31   : > { %2030 = vmatpush3.bf16.msra.mxu0 %v2172_v55  ;;  %2033 = vmatprep.mubr.msk.bf16.mxu0 %vm2237_vm1, %v2236_v1  ;;  %v1188_v40 = vsel %vm502_vm0, %v2184_v31, 0  ;;  %v1329_v55 = vsel %vm502_vm0, %v2188_v47, 0  ;;  %v1527_v61 = vsel %vm672_vm4, %v1521_v56, %v1526_v57 }
  0x32   : > { %2031 = vmatprep.subr.bf16.mxu0 %v2236_v1  ;;  %2042 = vmatmul.mubr.msk.bf16.vlgmr.msra.gmra.mrb[12].mxu1 %vm498_vm2, %v963_v62  ;;  %v1454_v62 = vrot.slane %v2482_v23, 1 }
  0x33   : > { %2054 = vmatpush3.bf16.msra.mxu1 %v2177_v63  ;;  %2057 = vmatprep.mubr.msk.bf16.mxu1 %vm2237_vm1, %v2236_v1  ;;  %v1455_v63 = vrot.slane %v2491_v27, 1 }
  0x34   : > { %2055 = vmatprep.subr.bf16.mxu1 %v2236_v1 }
  0x35   : > { %2032 = vmatpush3.bf16.msra.mxu0 %v906_v8  ;;  %v1456_v2 = vsel %vm606_vm5, %v1454_v62, %v1455_v63 }
  0x36   : > { %2045 = vmatprep.subr.bf16.mxu0 %v2236_v1 }
  0x37   : > { %2056 = vmatpush3.bf16.msra.mxu1 %v1123_v12 }
  0x38   : > { %2034 = vmatmul.mubr.msk.bf16.vlgmr.msra.gmra.mrb[12].mxu0 %vm498_vm2, %v892_v13  ;;  %2069 = vmatprep.subr.bf16.mxu1 %v2236_v1 }
  0x39   : > { %2046 = vmatpush3.bf16.msra.mxu0 %v2176_v14  ;;  %2049 = vmatprep.mubr.msk.bf16.mxu0 %vm2237_vm1, %v2236_v1 }
  0x3a   : > { %2047 = vmatprep.subr.bf16.mxu0 %v2236_v1  ;;  %2058 = vmatmul.mubr.msk.bf16.vlgmr.msra.gmra.mrb[16].mxu1 %vm498_vm2, %v1109_v21 }
  0x3b   : > { %2070 = vmatpush3.bf16.msra.mxu1 %v2183_v16  ;;  %2073 = vmatprep.mubr.msk.bf16.mxu1 %vm2237_vm1, %v2236_v1 }
  0x3c   : > { %2071 = vmatprep.subr.bf16.mxu1 %v2236_v1 }
  0x3d   : > { %2048 = vmatpush3.bf16.msra.mxu0 %v1047_v24 }
  0x3e   : > { %2061 = vmatprep.subr.bf16.mxu0 %v2236_v1 }
  0x3f   : > { %2072 = vmatpush3.bf16.msra.mxu1 %v1259_v29 }
  0x40   : > { %2050 = vmatmul.mubr.msk.bf16.vlgmr.msra.gmra.mrb[16].mxu0 %vm498_vm2, %v2431_v60  ;;  %2085 = vmatprep.subr.bf16.mxu1 %v2236_v1  ;;  %v2194_v60 = vld [vmem:[%s2600_s4 + $0xb0] ss:$0 sps:$4 sm:$0xff]  }
  0x41   : > { %2062 = vmatpush3.bf16.msra.mxu0 %v2182_v30  ;;  %2065 = vmatprep.mubr.msk.bf16.mxu0 %vm2237_vm1, %v2236_v1  ;;  %v1470_v0 = vsel %vm502_vm0, %v2194_v60, 0 }
  0x42   : > { %2063 = vmatprep.subr.bf16.mxu0 %v2236_v1  ;;  %2074 = vmatmul.mubr.msk.bf16.vlgmr.msra.gmra.mrb[20].mxu1 %vm498_vm2, %v1245_v32 }
  0x43   : > { %2086 = vmatpush3.bf16.msra.mxu1 %v2187_v33  ;;  %2089 = vmatprep.mubr.msk.bf16.mxu1 %vm2237_vm1, %v2236_v1 }
  0x44   : > { %2087 = vmatprep.subr.bf16.mxu1 %v2236_v1 }
  0x45   : > { %2064 = vmatpush3.bf16.msra.mxu0 %v1188_v40 }
  0x46   : > { %2077 = vmatprep.subr.bf16.mxu0 %v2236_v1 }
  0x47   : > { %2088 = vmatpush3.bf16.msra.mxu1 %v1405_v44 }
  0x48   : > { %2066 = vmatmul.mubr.msk.bf16.vlgmr.msra.gmra.mrb[20].mxu0 %vm498_vm2, %v1174_v45  ;;  %2101 = vmatprep.subr.bf16.mxu1 %v2236_v1 }
  0x49   : > { %2078 = vmatpush3.bf16.msra.mxu0 %v2186_v46  ;;  %2081 = vmatprep.mubr.msk.bf16.mxu0 %vm2237_vm1, %v2236_v1 }
  0x4a   : > { %2079 = vmatprep.subr.bf16.mxu0 %v2236_v1  ;;  %2090 = vmatmul.mubr.msk.bf16.vlgmr.msra.gmra.mrb[24].mxu1 %vm498_vm2, %v1391_v49 }
  0x4b   : > { %2102 = vmatpush3.bf16.msra.mxu1 %v2193_v50  ;;  %2105 = vmatprep.mubr.msk.bf16.mxu1 %vm2237_vm1, %v2236_v1 }
  0x4c   : > { %2103 = vmatprep.subr.bf16.mxu1 %v2236_v1 }
  0x4d   : > { %2080 = vmatpush3.bf16.msra.mxu0 %v1329_v55 }
  0x4e   : > { %2093 = vmatprep.subr.bf16.mxu0 %v2236_v1 }
  0x4f   : > { %2104 = vmatpush3.bf16.msra.mxu1 %v1541_v58 }
  0x50   : > { %2082 = vmatmul.mubr.msk.bf16.vlgmr.msra.gmra.mrb[24].mxu0 %vm498_vm2, %v2482_v23 }
  0x51   : > { %2094 = vmatpush3.bf16.msra.mxu0 %v2192_v59  ;;  %2097 = vmatprep.mubr.msk.bf16.mxu0 %vm2237_vm1, %v2236_v1 }
  0x52   : > { %2095 = vmatprep.subr.bf16.mxu0 %v2236_v1  ;;  %2106 = vmatmul.mubr.msk.bf16.vlgmr.msra.gmra.mrb[28].mxu1 %vm498_vm2, %v1527_v61 }
  0x55   : > { %2096 = vmatpush3.bf16.msra.mxu0 %v1470_v0 }
  0x58   : > { %2098 = vmatmul.mubr.msk.bf16.vlgmr.msra.gmra.mrb[28].mxu0 %vm498_vm2, %v1456_v2 }
  0xec   : > { %v595_v3 = vpop.f32.mrb[0].mxu1 }
  0xed   : > { %v1995_v4 = vpop.f32.mrb[1].mxu1 }
  0xee   : > { %v598_v5 = vpop.f32.mrb[2].mxu1 }
  0xef   : > { %v1996_v6 = vpop.f32.mrb[3].mxu1 }
  0xf3   : > { %v540_v7 = vpop.f32.mrb[0].mxu0 }
  0xf4   : > { %v596_v8 = vadd.f32 %v595_v3, %v540_v7  ;;  %v1987_v9 = vpop.f32.mrb[1].mxu0 }
  0xf5   : > { %v543_v10 = vpop.f32.mrb[2].mxu0  ;;  %v731_v11 = vpop.f32.mrb[4].mxu1 }
  0xf6   : > { %v599_v12 = vadd.f32 %v598_v5, %v543_v10  ;;  %v1988_v1 = vpop.f32.mrb[3].mxu0  ;;  %v2011_v13 = vpop.f32.mrb[5].mxu1 }
  0xf7   : > { %v734_v14 = vpop.f32.mrb[6].mxu1 }
  0xf8   : > { %v2012_v15 = vpop.f32.mrb[7].mxu1 }
  0xfb   : > { %v659_v16 = vpop.f32.mrb[4].mxu0 }
  0xfc   : > { %v666_v17 = vadd.f32 %v659_v16, %v596_v8  ;;  %v2003_v18 = vpop.f32.mrb[5].mxu0 }
  0xfd   : > { %v662_v19 = vpop.f32.mrb[6].mxu0  ;;  %v877_v20 = vpop.f32.mrb[8].mxu1 }
  0xfe   : > { %v667_v21 = vadd.f32 %v662_v19, %v599_v12  ;;  %v2004_v22 = vpop.f32.mrb[7].mxu0  ;;  %v738_v23 = vadd.f32 %v731_v11, %v666_v17  ;;  %v2027_v24 = vpop.f32.mrb[9].mxu1 }
  0xff   : > { %v880_v25 = vpop.f32.mrb[10].mxu1 }
 0x100   : > { %v739_v26 = vadd.f32 %v734_v14, %v667_v21  ;;  %v2028_v27 = vpop.f32.mrb[11].mxu1 }
 0x101   : > { %v1926_v27 = vld [vmem:[%s2601_s5] ss:$0 sm:$0xff] }
 0x103   : > { %v801_v28 = vpop.f32.mrb[8].mxu0 }
 0x104   : > { %v808_v29 = vadd.f32 %v801_v28, %v738_v23  ;;  %v2019_v30 = vpop.f32.mrb[9].mxu0 }
 0x105   : > { %v804_v31 = vpop.f32.mrb[10].mxu0  ;;  %v1013_v32 = vpop.f32.mrb[12].mxu1 }
 0x106   : > { %v809_v33 = vadd.f32 %v804_v31, %v739_v26  ;;  %v2020_v34 = vpop.f32.mrb[11].mxu0  ;;  %v884_v35 = vadd.f32 %v877_v20, %v808_v29  ;;  %v2043_v36 = vpop.f32.mrb[13].mxu1 }
 0x107   : > { %v1016_v37 = vpop.f32.mrb[14].mxu1 }
 0x108   : > { %v885_v38 = vadd.f32 %v880_v25, %v809_v33  ;;  %v2044_v39 = vpop.f32.mrb[15].mxu1 }
 0x10b   : > { %v942_v40 = vpop.f32.mrb[12].mxu0 }
 0x10c   : > { %v949_v41 = vadd.f32 %v942_v40, %v884_v35  ;;  %v2035_v42 = vpop.f32.mrb[13].mxu0 }
 0x10d   : > { %v945_v43 = vpop.f32.mrb[14].mxu0  ;;  %v1159_v44 = vpop.f32.mrb[16].mxu1 }
 0x10e   : > { %v950_v45 = vadd.f32 %v945_v43, %v885_v38  ;;  %v2036_v46 = vpop.f32.mrb[15].mxu0  ;;  %v1020_v47 = vadd.f32 %v1013_v32, %v949_v41  ;;  %v2059_v48 = vpop.f32.mrb[17].mxu1 }
 0x10f   : > { %v1162_v49 = vpop.f32.mrb[18].mxu1 }
 0x110   : > { %v1021_v50 = vadd.f32 %v1016_v37, %v950_v45  ;;  %v2060_v51 = vpop.f32.mrb[19].mxu1 }
 0x113   : > { %v1083_v52 = vpop.f32.mrb[16].mxu0 }
 0x114   : > { %v1090_v53 = vadd.f32 %v1083_v52, %v1020_v47  ;;  %v2051_v54 = vpop.f32.mrb[17].mxu0 }
 0x115   : > { %v1086_v55 = vpop.f32.mrb[18].mxu0  ;;  %v1295_v56 = vpop.f32.mrb[20].mxu1 }
 0x116   : > { %v1091_v57 = vadd.f32 %v1086_v55, %v1021_v50  ;;  %v2052_v58 = vpop.f32.mrb[19].mxu0  ;;  %v1166_v59 = vadd.f32 %v1159_v44, %v1090_v53  ;;  %v2075_v60 = vpop.f32.mrb[21].mxu1 }
 0x117   : > { %v1298_v61 = vpop.f32.mrb[22].mxu1 }
 0x118   : > { %v1167_v62 = vadd.f32 %v1162_v49, %v1091_v57  ;;  %v2076_v63 = vpop.f32.mrb[23].mxu1 }
 0x11b   : > { %v1224_v0 = vpop.f32.mrb[20].mxu0 }
 0x11c   : > { %v1231_v2 = vadd.f32 %v1224_v0, %v1166_v59  ;;  %v2067_v3 = vpop.f32.mrb[21].mxu0 }
 0x11d   : > { %v1227_v4 = vpop.f32.mrb[22].mxu0  ;;  %v1441_v5 = vpop.f32.mrb[24].mxu1 }
 0x11e   : > { %v1232_v6 = vadd.f32 %v1227_v4, %v1167_v62  ;;  %v2068_v7 = vpop.f32.mrb[23].mxu0  ;;  %v1302_v8 = vadd.f32 %v1295_v56, %v1231_v2  ;;  %v2091_v9 = vpop.f32.mrb[25].mxu1 }
 0x11f   : > { %v1444_v10 = vpop.f32.mrb[26].mxu1 }
 0x120   : > { %v1303_v11 = vadd.f32 %v1298_v61, %v1232_v6  ;;  %v2092_v12 = vpop.f32.mrb[27].mxu1 }
 0x123   : > { %v1365_v1 = vpop.f32.mrb[24].mxu0 }
 0x124   : > { %v1372_v13 = vadd.f32 %v1365_v1, %v1302_v8  ;;  %v2083_v14 = vpop.f32.mrb[25].mxu0 }
 0x125   : > { %v1368_v15 = vpop.f32.mrb[26].mxu0  ;;  %v1577_v16 = vpop.f32.mrb[28].mxu1 }
 0x126   : > { %v1373_v17 = vadd.f32 %v1368_v15, %v1303_v11  ;;  %v2084_v18 = vpop.f32.mrb[27].mxu0  ;;  %v1448_v19 = vadd.f32 %v1441_v5, %v1372_v13  ;;  %v2107_v20 = vpop.f32.mrb[29].mxu1 }
 0x127   : > { %v1580_v21 = vpop.f32.mrb[30].mxu1 }
 0x128   : > { %v1449_v22 = vadd.f32 %v1444_v10, %v1373_v17  ;;  %v2108_v23 = vpop.f32.mrb[31].mxu1 }
 0x12b   : > { %v1506_v24 = vpop.f32.mrb[28].mxu0 }
 0x12c   : > { %v1513_v25 = vadd.f32 %v1506_v24, %v1448_v19  ;;  %v2099_v26 = vpop.f32.mrb[29].mxu0 }
 0x12d   : > { %v1509_v28 = vpop.f32.mrb[30].mxu0 }
 0x12e   : > { %v1584_v29 = vadd.f32 %v1577_v16, %v1513_v25  ;;  %v1514_v30 = vadd.f32 %v1509_v28, %v1449_v22  ;;  %v2100_v31 = vpop.f32.mrb[31].mxu0 }
 0x130   : > { %v1593_v32 = vadd.f32 %v1926_v27, %v1584_v29  ;;  %v1585_v33 = vadd.f32 %v1580_v21, %v1514_v30 }
 0x132   : > { %vm1595_vm6 = vcmp.gt.f32.partialorder %v1593_v32, 0.0  ;;  %v1597_v34 = vmul.f32 0.1, %v1593_v32  ;;  %v1594_v35 = vadd.f32 %v1926_v27, %v1585_v33 }
 0x134   : > { %v1599_v36 = vsel %vm1595_vm6, %v1593_v32, %v1597_v34  ;;  %vm1596_vm8 = vcmp.gt.f32.partialorder %v1594_v35, 0.0  ;;  %v1598_v37 = vmul.f32 0.1, %v1594_v35 }
 0x135   : > { %v1931_v38 = vpack.c.bf16 %v1599_v36, %v1599_v36 }
 0x136   : > { %v1600_v39 = vsel %vm1596_vm8, %v1594_v35, %v1598_v37 }
 0x137   : > { %1610 = vst.msk [vmem:[%s456_s28] sm:$0xf] %vm1609_vm7, %v1931_v38  ;;  %v1932_v40 = vpack.c.bf16 %v1600_v39, %v1600_v39 }
 0x139   : > { %1611 = vst.msk [vmem:[%s456_s28 + $0x4] sm:$0xf] %vm1609_vm7, %v1932_v40 }
 0x13a PF: > { %s16_s25 = sadd.s32 1, %s2234_s25   ;;  %s2603_s21 = smov %s2226_s23 }
 0x13b   : > { %p13_p11 = scmp.ge.s32.totalorder %s16_s25, 34   ;;  %s2604_s22 = smov %s2230_s24 }
 0x13c   : > { %s2605_s23 = smov %s2608_s26  ;;  %s2606_s24 = smov %s2612_s27 }
 0x13d   :  { %15 = sbr.rel (!%p13_p11) target bundleno = 3 (0x3), region = 104 }

// kernel: flownets_forward.11
= control target key start
LH: loop header
LB: loop body
LE: loop exit
PB: predicated region body
PF: predicated region fallthrough
CT: control target
= control target key end

     0   :  { %s3097_s18 = smov 0   ;;  %s3099_s19 = smov 0   ;;  %s3615_s0 = inlined_call_operand.vmem [shape: bf16[2,10,10,256], index: 0, kind: input, shape index: {}, may-alias: {0,1,2}]   ;;  %s3616_s1 = inlined_call_operand.vmem [shape: bf16[2,10,10,256], index: 1, kind: input, shape index: {}, may-alias: {0,1,2}]   ;;  %s3617_s2 = inlined_call_operand.vmem [shape: bf16[2,10,10,256], index: 2, kind: input, shape index: {}, may-alias: {0,1,2}]   ;;  %s3618_s3 = inlined_call_operand.vmem [shape: bf16[3,3,256,128], index: 3, kind: input, shape index: {}]   ;;  %s3619_s4 = inlined_call_operand.vmem [shape: f32[1,128], index: 4, kind: input, shape index: {}]   ;;  %s3620_s5 = inlined_call_operand.vmem [shape: bf16[2,8,8,128], index: 5, kind: output, shape index: {}]  }
   0x1   :  { %s3101_s20 = smov 0   ;;  %s3103_s21 = smov 0  }
   0x2   :  { %s3105_s22 = smov 0  }
   0x3 LB: > { %s27_s23 = sadd.s32 1, %s3057_s20  ;;  %s30_s24 = sadd.s32 1, %s3061_s21  ;;  %s3065_s22 = sphi %s3105_s22, %s15_s22   ;;  %s3061_s21 = sphi %s3103_s21, %s3624_s21   ;;  %s3057_s20 = sphi %s3101_s20, %s3623_s20   ;;  %s3053_s19 = sphi %s3099_s19, %s3622_s19   ;;  %s3049_s18 = sphi %s3097_s18, %s3621_s18  }
   0x4   : > { %p28_p0 = scmp.ge.s32.totalorder %s27_s23, 8  ;;  %p2208_p1 = scmp.ge.s32.totalorder %s3065_s22, 1 }
   0x5   : > { %p273_p2 = scmp.lt.s32.totalorder %s3065_s22, 17 }
   0x6   : > { %s3626_s23 = smov (%p28_p0, %s27_s23), 0  ;;  %s3628_s24 = smov (!%p28_p0, %s30_s24), %s3061_s21 }
   0x7   : > { %p274_p3 = pnand %p2208_p1, %p273_p2  ;;  %p32_p4 = scmp.ge.s32.totalorder %s3628_s24, 2 }
   0x8   : > { %v2871_v0 = vld [vmem:[%s3618_s3 + $0xc0] sm:$0xff] (!%p274_p3)   ;;  %v2875_v4 = vld [vmem:[%s3618_s3 + $0xc8] sm:$0xff] (!%p274_p3)   ;;  %v2879_v8 = vld [vmem:[%s3618_s3 + $0xd0] sm:$0xff] (!%p274_p3)   ;;  %p338_p5 = scmp.lt.s32.totalorder (!%p274_p3), %s3053_s19, 1  ;;  %p340_p6 = scmp.lt.s32.totalorder (!%p274_p3), %s3049_s18, 9 }
   0x9   : > { %s3630_s24 = smov (%p32_p4, %s3628_s24), 0  ;;  %277 = sbr.rel (%p274_p3) target bundleno = 396 (0x18c), region = 40 }
   0xa   : > { %v2872_v1 = vld [vmem:[%s3618_s3 + $0x40] sm:$0xff] (!%p274_p3)   ;;  %2632 = vmatprep.subr.bf16.mxu0 (!%p274_p3), %v2871_v0  ;;  %v2876_v5 = vld [vmem:[%s3618_s3 + $0x48] sm:$0xff] (!%p274_p3)   ;;  %v2880_v9 = vld [vmem:[%s3618_s3 + $0x50] sm:$0xff] (!%p274_p3)   ;;  %s347_s27 = sadd.s32 (!%p274_p3), 1, %s3049_s18  ;;  %p378_p9 = scmp.lt.s32.totalorder (!%p274_p3), %s3049_s18, 7 }
   0xb   : > { %v2873_v2 = vld [vmem:[%s3618_s3 + $0x80] sm:$0xff] (!%p274_p3)   ;;  %2654 = vmatprep.subr.bf16.mxu1 (!%p274_p3), %v2872_v1  ;;  %v2877_v6 = vld [vmem:[%s3618_s3 + $0x88] sm:$0xff] (!%p274_p3)   ;;  %v2881_v10 = vld [vmem:[%s3618_s3 + $0x90] sm:$0xff] (!%p274_p3)   ;;  %p350_p7 = scmp.lt.s32.totalorder (!%p274_p3), %s347_s27, 9 }
   0xc   : > { %v2874_v3 = vld [vmem:[%s3618_s3] sm:$0xff] (!%p274_p3)   ;;  %2633 = vmatpush3.bf16.msra.mxu0 (!%p274_p3), %v2873_v2  ;;  %v2878_v7 = vld [vmem:[%s3618_s3 + $0x8] sm:$0xff] (!%p274_p3)   ;;  %v2882_v11 = vld [vmem:[%s3618_s3 + $0x10] sm:$0xff] (!%p274_p3)  }
   0xd   : > { %2655 = vmatpush3.bf16.msra.mxu1 (!%p274_p3), %v2874_v3  ;;  %2634 = vmatprep.subr.bf16.mxu0 (!%p274_p3), %v2875_v4  ;;  %v2883_v12 = vld [vmem:[%s3618_s3 + $0xd8] sm:$0xff] (!%p274_p3)   ;;  %v2887_v16 = vld [vmem:[%s3618_s3 + $0xe0] sm:$0xff] (!%p274_p3)   ;;  %v2891_v20 = vld [vmem:[%s3618_s3 + $0xe8] sm:$0xff] (!%p274_p3)  }
   0xe   : > { %2656 = vmatprep.subr.bf16.mxu1 (!%p274_p3), %v2876_v5  ;;  %v2884_v13 = vld [vmem:[%s3618_s3 + $0x58] sm:$0xff] (!%p274_p3)   ;;  %v2888_v17 = vld [vmem:[%s3618_s3 + $0x60] sm:$0xff] (!%p274_p3)   ;;  %v2892_v21 = vld [vmem:[%s3618_s3 + $0x68] sm:$0xff] (!%p274_p3)  }
   0xf   : > { %v2885_v14 = vld [vmem:[%s3618_s3 + $0x98] sm:$0xff] (!%p274_p3)   ;;  %v2889_v18 = vld [vmem:[%s3618_s3 + $0xa0] sm:$0xff] (!%p274_p3)   ;;  %v2893_v22 = vld [vmem:[%s3618_s3 + $0xa8] sm:$0xff] (!%p274_p3)  }
  0x10   : > { %2635 = vmatpush3.bf16.msra.mxu0 %v2877_v6  ;;  %v2886_v15 = vld [vmem:[%s3618_s3 + $0x18] sm:$0xff]   ;;  %s3632_s19 = smov (!%p338_p5, %s3053_s19), 1  ;;  %v2890_v19 = vld [vmem:[%s3618_s3 + $0x20] sm:$0xff]   ;;  %v2894_v23 = vld [vmem:[%s3618_s3 + $0x28] sm:$0xff]   ;;  %s3634_s27 = smov (!%p350_p7, %s347_s27), 9 }
  0x11   : > { %2657 = vmatpush3.bf16.msra.mxu1 %v2878_v7  ;;  %2636 = vmatprep.subr.bf16.mxu0 %v2879_v8  ;;  %s341_s16 = scalar_select %p340_p6, %s3049_s18, 9  ;;  %v2895_v24 = vld [vmem:[%s3618_s3 + $0xf0] sm:$0xff]   ;;  %v2899_v28 = vld [vmem:[%s3618_s3 + $0xf8] sm:$0xff]   ;;  %v2907_v38 = vld [vmem:[%s3618_s3 + $0x140] sm:$0xff]  }
  0x12   : > { %2658 = vmatprep.subr.bf16.mxu1 %v2880_v9  ;;  %s3198_s30 = smul.u32 40, %s3632_s19  ;;  %v2896_v25 = vld [vmem:[%s3618_s3 + $0x70] sm:$0xff]   ;;  %v2900_v29 = vld [vmem:[%s3618_s3 + $0x78] sm:$0xff]   ;;  %v2909_v43 = vld [vmem:[%s3618_s3 + $0x1c0] sm:$0xff]   ;;  %s2211_s10 = sshll.u32 %s3634_s27, 2 }
  0x13   : > { %s2209_s8 = sshll.u32 %s341_s16, 2  ;;  %v2897_v26 = vld [vmem:[%s3618_s3 + $0xb0] sm:$0xff]   ;;  %v2901_v30 = vld [vmem:[%s3618_s3 + $0xb8] sm:$0xff]   ;;  %v2908_v46 = vld [vmem:[%s3618_s3 + $0x100] sm:$0xff]   ;;  %s358_s16 = sadd.s32 2, %s3049_s18 }
  0x14   : > { %2637 = vmatpush3.bf16.msra.mxu0 %v2881_v10  ;;  %s344_s15 = sadd.s32 %s3198_s30, %s2209_s8  ;;  %v2898_v27 = vld [vmem:[%s3618_s3 + $0x30] sm:$0xff]   ;;  %v2902_v31 = vld [vmem:[%s3618_s3 + $0x38] sm:$0xff]   ;;  %v2910_v47 = vld [vmem:[%s3618_s3 + $0x180] sm:$0xff]   ;;  %s354_s25 = sadd.s32 %s3198_s30, %s2211_s10 }
  0x15   : > { %2659 = vmatpush3.bf16.msra.mxu1 %v2882_v11  ;;  %2638 = vmatprep.subr.bf16.mxu0 %v2883_v12  ;;  %s2210_s29 = sshll.u32 %s344_s15, 2  ;;  %v2911_v50 = vld [vmem:[%s3618_s3 + $0x148] sm:$0xff]   ;;  %v2915_v55 = vld [vmem:[%s3618_s3 + $0x150] sm:$0xff]   ;;  %v2919_v59 = vld [vmem:[%s3618_s3 + $0x158] sm:$0xff]   ;;  %s2212_s7 = sshll.u32 %s354_s25, 2 }
  0x16   : > { %2660 = vmatprep.subr.bf16.mxu1 %v2884_v13  ;;  %s346_s14 = scalar_lea.vmem %s3615_s0, %s2210_s29  ;;  %v2913_v51 = vld [vmem:[%s3618_s3 + $0x1c8] sm:$0xff]   ;;  %v2917_v56 = vld [vmem:[%s3618_s3 + $0x1d0] sm:$0xff]   ;;  %v2921_v60 = vld [vmem:[%s3618_s3 + $0x1d8] sm:$0xff]   ;;  %s356_s17 = scalar_lea.vmem %s3616_s1, %s2212_s7 }
  0x17   : > { %v388_v32 = vld [vmem:[%s346_s14] sm:$0xff]  ;;  %v389_v33 = vld [vmem:[%s346_s14 + $0x8] sm:$0x11]  ;;  %v2918_v57 = vld [vmem:[%s3618_s3 + $0x190] sm:$0xff]   ;;  %p361_p8 = scmp.lt.s32.totalorder %s358_s16, 9  ;;  %s3638_s18 = smov (!%p378_p9, %s3049_s18), 7 }
  0x18   : > { %2639 = vmatpush3.bf16.msra.mxu0 %v2885_v14  ;;  %v3240_v34 = vcombine.low %v388_v32, %v389_v33  ;;  %v2250_v35 = vcombine.high %v388_v32, %v389_v33  ;;  %v2268_v36 = vcombine.high %v388_v32, %v388_v32  ;;  %v2267_v37 = vcombine.low %v388_v32, %v388_v32  ;;  %v2914_v53 = vld [vmem:[%s3618_s3 + $0x188] sm:$0xff]   ;;  %v2916_v58 = vld [vmem:[%s3618_s3 + $0x110] sm:$0xff]   ;;  %v2922_v61 = vld [vmem:[%s3618_s3 + $0x198] sm:$0xff]  }
  0x19   : > { %2661 = vmatpush3.bf16.msra.mxu1 %v2886_v15  ;;  %2640 = vmatprep.subr.bf16.mxu0 %v2887_v16  ;;  %v2912_v54 = vld [vmem:[%s3618_s3 + $0x108] sm:$0xff]   ;;  %v2920_v62 = vld [vmem:[%s3618_s3 + $0x118] sm:$0xff]   ;;  %v2923_v63 = vld [vmem:[%s3618_s3 + $0x160] sm:$0xff]   ;;  %s3636_s16 = smov (!%p361_p8, %s358_s16), 9 }
  0x1a   : > { %2662 = vmatprep.subr.bf16.mxu1 %v2888_v17  ;;  %v471_v39 = vshrl.u32 %v2250_v35, 16  ;;  %v473_v40 = vshll.u32 %v2250_v35, 16  ;;  %747 = vmatprep.mubr.bf16.mxu1 %v2268_v36  ;;  %v464_v41 = vshrl.u32 %v3240_v34, 16  ;;  %v466_v42 = vshll.u32 %v3240_v34, 16  ;;  %v2925_v0 = vld [vmem:[%s3618_s3 + $0x1e0] sm:$0xff]   ;;  %v2927_v3 = vld [vmem:[%s3618_s3 + $0x168] sm:$0xff]  }
  0x1b   : > { %v789_v52 = vrot.slane %v2250_v35, 1  ;;  %v2926_v1 = vld [vmem:[%s3618_s3 + $0x1a0] sm:$0xff]   ;;  %v2929_v4 = vld [vmem:[%s3618_s3 + $0x1e8] sm:$0xff]   ;;  %v2931_v7 = vld [vmem:[%s3618_s3 + $0x170] sm:$0xff]   ;;  %s2213_s8 = sshll.u32 %s3636_s16, 2  ;;  %s2215_s16 = sshll.u32 %s3632_s19, 3 }
  0x1c   : > { %2641 = vmatpush3.bf16.msra.mxu0 %v2889_v18  ;;  %v475_v44 = vrot.slane %v473_v40, 1  ;;  %v468_v45 = vrot.slane %v466_v42, 1  ;;  %v2924_v2 = vld [vmem:[%s3618_s3 + $0x120] sm:$0xff]   ;;  %v2930_v5 = vld [vmem:[%s3618_s3 + $0x1a8] sm:$0xff]   ;;  %v2933_v8 = vld [vmem:[%s3618_s3 + $0x1f0] sm:$0xff]   ;;  %s365_s15 = sadd.s32 %s3198_s30, %s2213_s8  ;;  %s384_s28 = sadd.s32 %s2215_s16, %s3638_s18 }
  0x1d   : > { %2663 = vmatpush3.bf16.msra.mxu1 %v2890_v19  ;;  %2642 = vmatprep.subr.bf16.mxu0 %v2891_v20  ;;  %v2928_v6 = vld [vmem:[%s3618_s3 + $0x128] sm:$0xff]   ;;  %v2934_v9 = vld [vmem:[%s3618_s3 + $0x1b0] sm:$0xff]   ;;  %v2935_v11 = vld [vmem:[%s3618_s3 + $0x178] sm:$0xff]   ;;  %s2214_s29 = sshll.u32 %s365_s15, 2 }
  0x1e   : > { %2664 = vmatprep.subr.bf16.mxu1 %v2892_v21  ;;  %v476_v48 = vor.u32 %v475_v44, %v471_v39  ;;  %v469_v49 = vor.u32 %v468_v45, %v464_v41  ;;  %v2932_v10 = vld [vmem:[%s3618_s3 + $0x130] sm:$0xff]   ;;  %v2937_v12 = vld [vmem:[%s3618_s3 + $0x1f8] sm:$0xff]   ;;  %v929_v15 = vld [vmem:[%s356_s17] sm:$0xff]  ;;  %s367_s13 = scalar_lea.vmem %s3617_s2, %s2214_s29  ;;  %s2216_s29 = sshll.u32 %s384_s28, 2 }
  0x1f   : > { %v2938_v13 = vld [vmem:[%s3618_s3 + $0x1b8] sm:$0xff]   ;;  %v930_v16 = vld [vmem:[%s356_s17 + $0x8] sm:$0x11]  ;;  %v2939_v17 = vld [vmem:[%s3618_s3 + $0x240] sm:$0xff]   ;;  %v2366_v18 = vcombine.high %v929_v15, %v929_v15  ;;  %v2365_v19 = vcombine.low %v929_v15, %v929_v15  ;;  %s386_s30 = scalar_lea.vmem %s3620_s5, %s2216_s29 }
  0x20   : > { %2643 = vmatpush3.bf16.msra.mxu0 %v2893_v22  ;;  %607 = vmatprep.mubr.bf16.mxu0 %v476_v48  ;;  %v2936_v14 = vld [vmem:[%s3618_s3 + $0x138] sm:$0xff]   ;;  %v2944_v20 = vld [vmem:[%s3618_s3 + $0x2c0] sm:$0xff]   ;;  %v2416_v21 = vcombine.high %v929_v15, %v930_v16  ;;  %v2950_v32 = vld [vmem:[%s3618_s3 + $0x250] sm:$0xff]   ;;  %v2415_v48 = vcombine.low %v929_v15, %v930_v16 }
  0x21   : > { %2665 = vmatpush3.bf16.msra.mxu1 %v2894_v23  ;;  %2644 = vmatprep.subr.bf16.mxu0 %v2895_v24  ;;  %v2942_v22 = vld [vmem:[%s3618_s3 + $0x200] sm:$0xff]   ;;  %v788_v24 = vrot.slane %v3240_v34, 1  ;;  %v2952_v35 = vld [vmem:[%s3618_s3 + $0x2d0] sm:$0xff]   ;;  %v2956_v39 = vld [vmem:[%s3618_s3 + $0x2d8] sm:$0xff]  }
  0x22   : > { %2666 = vmatprep.subr.bf16.mxu1 %v2896_v25  ;;  %v2945_v23 = vld [vmem:[%s3618_s3 + $0x280] sm:$0xff]   ;;  %v2946_v25 = vld [vmem:[%s3618_s3 + $0x248] sm:$0xff]   ;;  %v1333_v34 = vrot.slane %v2416_v21, 1  ;;  %v2953_v36 = vld [vmem:[%s3618_s3 + $0x290] sm:$0xff]  }
  0x23   : > { %v2957_v40 = vld [vmem:[%s3618_s3 + $0x298] sm:$0xff]   ;;  %v2958_v42 = vld [vmem:[%s3618_s3 + $0x260] sm:$0xff]  }
  0x24   : > { %2645 = vmatpush3.bf16.msra.mxu0 %v2897_v26  ;;  %v1154_v26 = vshrl.u32 %v2416_v21, 16  ;;  %v2955_v41 = vld [vmem:[%s3618_s3 + $0x218] sm:$0xff]   ;;  %v2961_v44 = vld [vmem:[%s3618_s3 + $0x2a0] sm:$0xff]  }
  0x25   : > { %2667 = vmatpush3.bf16.msra.mxu1 %v2898_v27  ;;  %2646 = vmatprep.subr.bf16.mxu0 %v2899_v28  ;;  %v1156_v27 = vshll.u32 %v2416_v21, 16  ;;  %v2948_v28 = vld [vmem:[%s3618_s3 + $0x2c8] sm:$0xff]   ;;  %v2959_v45 = vld [vmem:[%s3618_s3 + $0x220] sm:$0xff]   ;;  %v2988_v15 = vld [vmem:[%s3618_s3 + $0x318] sm:$0xff]  }
  0x26   : > { %2668 = vmatprep.subr.bf16.mxu1 %v2900_v29  ;;  %v2949_v29 = vld [vmem:[%s3618_s3 + $0x288] sm:$0xff]   ;;  %v2991_v16 = vld [vmem:[%s3618_s3 + $0x360] sm:$0xff]  }
  0x27   : > { %v2997_v21 = vld [vmem:[%s3618_s3 + $0x3e8] sm:$0xff]  }
  0x28   : > { %2647 = vmatpush3.bf16.msra.mxu0 %v2901_v30  ;;  %v1158_v30 = vrot.slane %v1156_v27, 1  ;;  %v3000_v27 = vld [vmem:[%s3618_s3 + $0x330] sm:$0xff]  }
  0x29   : > { %2669 = vmatpush3.bf16.msra.mxu1 %v2902_v31  ;;  %2676 = vmatprep.subr.bf16.mxu0 %v2907_v38  ;;  %v2947_v31 = vld [vmem:[%s3618_s3 + $0x208] sm:$0xff]   ;;  %v2954_v38 = vld [vmem:[%s3618_s3 + $0x258] sm:$0xff]  }
  0x2a   : > { %2698 = vmatprep.subr.bf16.mxu1 %v2909_v43  ;;  %v1159_v33 = vor.u32 %v1158_v30, %v1154_v26  ;;  %v2960_v43 = vld [vmem:[%s3618_s3 + $0x2e0] sm:$0xff]   ;;  %v3002_v26 = vld [vmem:[%s3618_s3 + $0x3b0] sm:$0xff]  }
  0x2b   : > { %608 = vmatmul.mubr.bf16.vlgmr.msra.gmra.mrb[0].mxu0 %v469_v49  ;;  %v2965_v49 = vld [vmem:[%s3618_s3 + $0x2a8] sm:$0xff]   ;;  %v1473_v30 = vld [vmem:[%s367_s13] sm:$0xff] }
  0x2c   : > { %748 = vmatmul.mubr.bf16.vlgmr.msra.gmra.mrb[0].mxu1 %v2267_v37  ;;  %2677 = vmatpush3.bf16.msra.mxu0 %v2908_v46  ;;  %v2951_v37 = vld [vmem:[%s3618_s3 + $0x210] sm:$0xff]   ;;  %v2962_v46 = vld [vmem:[%s3618_s3 + $0x268] sm:$0xff]  }
  0x2d   : > { %2699 = vmatpush3.bf16.msra.mxu1 %v2910_v47  ;;  %2678 = vmatprep.subr.bf16.mxu0 %v2911_v50  ;;  %v2964_v47 = vld [vmem:[%s3618_s3 + $0x2e8] sm:$0xff]  }
  0x2e   : > { %2700 = vmatprep.subr.bf16.mxu1 %v2913_v51  ;;  %920 = vmatprep.mubr.bf16.mxu0 %v789_v52  ;;  %v2963_v50 = vld [vmem:[%s3618_s3 + $0x228] sm:$0xff]   ;;  %v2966_v51 = vld [vmem:[%s3618_s3 + $0x270] sm:$0xff]  }
  0x2f   : > { %1099 = vmatprep.mubr.bf16.mxu1 %v2366_v18  ;;  %v2968_v52 = vld [vmem:[%s3618_s3 + $0x2f0] sm:$0xff]   ;;  %v2994_v18 = vld [vmem:[%s3618_s3 + $0x3a0] sm:$0xff]  }
  0x30   : > { %2679 = vmatpush3.bf16.msra.mxu0 %v2912_v54  ;;  %v1149_v54 = vshll.u32 %v2415_v48, 16 }
  0x31   : > { %2701 = vmatpush3.bf16.msra.mxu1 %v2914_v53  ;;  %2680 = vmatprep.subr.bf16.mxu0 %v2915_v55  ;;  %v2969_v53 = vld [vmem:[%s3618_s3 + $0x2b0] sm:$0xff]  }
  0x32   : > { %2702 = vmatprep.subr.bf16.mxu1 %v2917_v56  ;;  %v2967_v55 = vld [vmem:[%s3618_s3 + $0x230] sm:$0xff]   ;;  %v2970_v56 = vld [vmem:[%s3618_s3 + $0x278] sm:$0xff]  }
  0x34   : > { %2681 = vmatpush3.bf16.msra.mxu0 %v2916_v58  ;;  %v1147_v58 = vshrl.u32 %v2415_v48, 16 }
  0x35   : > { %2703 = vmatpush3.bf16.msra.mxu1 %v2918_v57  ;;  %2682 = vmatprep.subr.bf16.mxu0 %v2919_v59  ;;  %v2972_v57 = vld [vmem:[%s3618_s3 + $0x2f8] sm:$0xff]  }
  0x36   : > { %2704 = vmatprep.subr.bf16.mxu1 %v2921_v60  ;;  %v2974_v59 = vld [vmem:[%s3618_s3 + $0x2b8] sm:$0xff]   ;;  %v1151_v60 = vrot.slane %v1149_v54, 1 }
  0x37   : > { %v3018_v54 = vld [vmem:[%s3618_s3 + $0x418] sm:$0xff]  }
  0x38   : > { %2683 = vmatpush3.bf16.msra.mxu0 %v2920_v62  ;;  %v1332_v62 = vrot.slane %v2415_v48, 1 }
  0x39   : > { %2705 = vmatpush3.bf16.msra.mxu1 %v2922_v61  ;;  %2684 = vmatprep.subr.bf16.mxu0 %v2923_v63  ;;  %v2971_v61 = vld [vmem:[%s3618_s3 + $0x238] sm:$0xff]   ;;  %v2975_v63 = vld [vmem:[%s3618_s3 + $0x340] sm:$0xff]  }
  0x3a   : > { %2706 = vmatprep.subr.bf16.mxu1 %v2925_v0  ;;  %v2977_v0 = vld [vmem:[%s3618_s3 + $0x3c0] sm:$0xff]  }
  0x3c   : > { %2685 = vmatpush3.bf16.msra.mxu0 %v2924_v2  ;;  %v1152_v2 = vor.u32 %v1151_v60, %v1147_v58  ;;  %v3022_v58 = vld [vmem:[%s3618_s3 + $0x428] sm:$0xff]   ;;  %v3024_v60 = vld [vmem:[%s3618_s3 + $0x430] sm:$0xff]  }
  0x3d   : > { %2707 = vmatpush3.bf16.msra.mxu1 %v2926_v1  ;;  %2686 = vmatprep.subr.bf16.mxu0 %v2927_v3  ;;  %v2978_v1 = vld [vmem:[%s3618_s3 + $0x380] sm:$0xff]  }
  0x3e   : > { %2708 = vmatprep.subr.bf16.mxu1 %v2929_v4  ;;  %v2976_v3 = vld [vmem:[%s3618_s3 + $0x300] sm:$0xff]   ;;  %v2979_v4 = vld [vmem:[%s3618_s3 + $0x348] sm:$0xff]  }
  0x40   : > { %2687 = vmatpush3.bf16.msra.mxu0 %v2928_v6  ;;  %v2982_v6 = vld [vmem:[%s3618_s3 + $0x388] sm:$0xff]  }
  0x41   : > { %2709 = vmatpush3.bf16.msra.mxu1 %v2930_v5  ;;  %2688 = vmatprep.subr.bf16.mxu0 %v2931_v7  ;;  %v2981_v5 = vld [vmem:[%s3618_s3 + $0x3c8] sm:$0xff]  }
  0x42   : > { %2710 = vmatprep.subr.bf16.mxu1 %v2933_v8  ;;  %v2980_v7 = vld [vmem:[%s3618_s3 + $0x308] sm:$0xff]   ;;  %v2983_v8 = vld [vmem:[%s3618_s3 + $0x350] sm:$0xff]  }
  0x44   : > { %2689 = vmatpush3.bf16.msra.mxu0 %v2932_v10  ;;  %v2986_v10 = vld [vmem:[%s3618_s3 + $0x390] sm:$0xff]  }
  0x45   : > { %2711 = vmatpush3.bf16.msra.mxu1 %v2934_v9  ;;  %2690 = vmatprep.subr.bf16.mxu0 %v2935_v11  ;;  %v2985_v9 = vld [vmem:[%s3618_s3 + $0x3d0] sm:$0xff]  }
  0x46   : > { %2712 = vmatprep.subr.bf16.mxu1 %v2937_v12  ;;  %v2984_v11 = vld [vmem:[%s3618_s3 + $0x310] sm:$0xff]   ;;  %v2987_v12 = vld [vmem:[%s3618_s3 + $0x358] sm:$0xff]  }
  0x48   : > { %2691 = vmatpush3.bf16.msra.mxu0 %v2936_v14  ;;  %v2990_v14 = vld [vmem:[%s3618_s3 + $0x398] sm:$0xff]  }
  0x49   : > { %2713 = vmatpush3.bf16.msra.mxu1 %v2938_v13  ;;  %2720 = vmatprep.subr.bf16.mxu0 %v2939_v17  ;;  %v2989_v13 = vld [vmem:[%s3618_s3 + $0x3d8] sm:$0xff]   ;;  %v2993_v17 = vld [vmem:[%s3618_s3 + $0x3e0] sm:$0xff]  }
  0x4a   : > { %2742 = vmatprep.subr.bf16.mxu1 %v2944_v20  ;;  %v2995_v20 = vld [vmem:[%s3618_s3 + $0x368] sm:$0xff]  }
  0x4b   : > { %921 = vmatmul.mubr.bf16.vlgmr.msra.gmra.mrb[4].mxu0 %v788_v24  ;;  %v2999_v24 = vld [vmem:[%s3618_s3 + $0x370] sm:$0xff]  }
  0x4c   : > { %1100 = vmatmul.mubr.bf16.vlgmr.msra.gmra.mrb[4].mxu1 %v2365_v19  ;;  %2721 = vmatpush3.bf16.msra.mxu0 %v2942_v22  ;;  %v2992_v19 = vld [vmem:[%s3618_s3 + $0x320] sm:$0xff]   ;;  %v2998_v22 = vld [vmem:[%s3618_s3 + $0x3a8] sm:$0xff]  }
  0x4d   : > { %2743 = vmatpush3.bf16.msra.mxu1 %v2945_v23  ;;  %2722 = vmatprep.subr.bf16.mxu0 %v2946_v25  ;;  %v2996_v23 = vld [vmem:[%s3618_s3 + $0x328] sm:$0xff]   ;;  %v3001_v25 = vld [vmem:[%s3618_s3 + $0x3f0] sm:$0xff]  }
  0x4e   : > { %2744 = vmatprep.subr.bf16.mxu1 %v2948_v28  ;;  %1290 = vmatprep.mubr.bf16.mxu0 %v1159_v33  ;;  %v3003_v28 = vld [vmem:[%s3618_s3 + $0x378] sm:$0xff]  }
  0x4f   : > { %1464 = vmatprep.mubr.bf16.mxu1 %v1333_v34  ;;  %v3008_v34 = vld [vmem:[%s3618_s3 + $0x3b8] sm:$0xff]  }
  0x50   : > { %2723 = vmatpush3.bf16.msra.mxu0 %v2947_v31  ;;  %v1474_v31 = vld [vmem:[%s367_s13 + $0x8] sm:$0x11] }
  0x51   : > { %2745 = vmatpush3.bf16.msra.mxu1 %v2949_v29  ;;  %2724 = vmatprep.subr.bf16.mxu0 %v2950_v32  ;;  %v3005_v29 = vld [vmem:[%s3618_s3 + $0x3f8] sm:$0xff]   ;;  %v2514_v32 = vcombine.high %v1473_v30, %v1473_v30  ;;  %v2563_v33 = vcombine.low %v1473_v30, %v1474_v31 }
  0x52   : > { %2746 = vmatprep.subr.bf16.mxu1 %v2952_v35  ;;  %v2564_v35 = vcombine.high %v1473_v30, %v1474_v31 }
  0x54   : > { %2725 = vmatpush3.bf16.msra.mxu0 %v2951_v37  ;;  %v3010_v37 = vld [vmem:[%s3618_s3 + $0x440] sm:$0xff]   ;;  %v1877_v48 = vrot.slane %v2564_v35, 1 }
  0x55   : > { %2747 = vmatpush3.bf16.msra.mxu1 %v2953_v36  ;;  %2726 = vmatprep.subr.bf16.mxu0 %v2954_v38  ;;  %v3004_v36 = vld [vmem:[%s3618_s3 + $0x338] sm:$0xff]   ;;  %v1698_v38 = vshrl.u32 %v2564_v35, 16 }
  0x56   : > { %2748 = vmatprep.subr.bf16.mxu1 %v2956_v39  ;;  %v1700_v39 = vshll.u32 %v2564_v35, 16 }
  0x58   : > { %2727 = vmatpush3.bf16.msra.mxu0 %v2955_v41  ;;  %v1693_v41 = vshll.u32 %v2563_v33, 16 }
  0x59   : > { %2749 = vmatpush3.bf16.msra.mxu1 %v2957_v40  ;;  %2728 = vmatprep.subr.bf16.mxu0 %v2958_v42  ;;  %v1691_v40 = vshrl.u32 %v2563_v33, 16  ;;  %v2513_v42 = vcombine.low %v1473_v30, %v1473_v30 }
  0x5a   : > { %2750 = vmatprep.subr.bf16.mxu1 %v2960_v43  ;;  %v1702_v43 = vrot.slane %v1700_v39, 1 }
  0x5c   : > { %2729 = vmatpush3.bf16.msra.mxu0 %v2959_v45  ;;  %v1695_v45 = vrot.slane %v1693_v41, 1 }
  0x5d   : > { %2751 = vmatpush3.bf16.msra.mxu1 %v2961_v44  ;;  %2730 = vmatprep.subr.bf16.mxu0 %v2962_v46  ;;  %v3012_v44 = vld [vmem:[%s3618_s3 + $0x400] sm:$0xff]   ;;  %v1703_v46 = vor.u32 %v1702_v43, %v1698_v38 }
  0x5e   : > { %2752 = vmatprep.subr.bf16.mxu1 %v2964_v47  ;;  %v3013_v47 = vld [vmem:[%s3618_s3 + $0x448] sm:$0xff]  }
  0x60   : > { %2731 = vmatpush3.bf16.msra.mxu0 %v2963_v50  ;;  %v3014_v50 = vld [vmem:[%s3618_s3 + $0x408] sm:$0xff]  }
  0x61   : > { %2753 = vmatpush3.bf16.msra.mxu1 %v2965_v49  ;;  %2732 = vmatprep.subr.bf16.mxu0 %v2966_v51  ;;  %v1696_v49 = vor.u32 %v1695_v45, %v1691_v40  ;;  %v3015_v51 = vld [vmem:[%s3618_s3 + $0x450] sm:$0xff]  }
  0x62   : > { %2754 = vmatprep.subr.bf16.mxu1 %v2968_v52  ;;  %v3016_v52 = vld [vmem:[%s3618_s3 + $0x410] sm:$0xff]  }
  0x64   : > { %2733 = vmatpush3.bf16.msra.mxu0 %v2967_v55  ;;  %v3019_v55 = vld [vmem:[%s3618_s3 + $0x460] sm:$0xff]  }
  0x65   : > { %2755 = vmatpush3.bf16.msra.mxu1 %v2969_v53  ;;  %2734 = vmatprep.subr.bf16.mxu0 %v2970_v56  ;;  %v3017_v53 = vld [vmem:[%s3618_s3 + $0x458] sm:$0xff]   ;;  %v3020_v56 = vld [vmem:[%s3618_s3 + $0x420] sm:$0xff]  }
  0x66   : > { %2756 = vmatprep.subr.bf16.mxu1 %v2972_v57  ;;  %v3021_v57 = vld [vmem:[%s3618_s3 + $0x468] sm:$0xff]  }
  0x68   : > { %2735 = vmatpush3.bf16.msra.mxu0 %v2971_v61  ;;  %v3025_v61 = vld [vmem:[%s3618_s3 + $0x478] sm:$0xff]  }
  0x69   : > { %2757 = vmatpush3.bf16.msra.mxu1 %v2974_v59  ;;  %2764 = vmatprep.subr.bf16.mxu0 %v2975_v63  ;;  %v3023_v59 = vld [vmem:[%s3618_s3 + $0x470] sm:$0xff]   ;;  %v1876_v63 = vrot.slane %v2563_v33, 1 }
  0x6a   : > { %2786 = vmatprep.subr.bf16.mxu1 %v2977_v0 }
  0x6b   : > { %1291 = vmatmul.mubr.bf16.vlgmr.msra.gmra.mrb[8].mxu0 %v1152_v2 }
  0x6c   : > { %1465 = vmatmul.mubr.bf16.vlgmr.msra.gmra.mrb[8].mxu1 %v1332_v62  ;;  %2765 = vmatpush3.bf16.msra.mxu0 %v2976_v3  ;;  %v3026_v62 = vld [vmem:[%s3618_s3 + $0x438] sm:$0xff]  }
  0x6d   : > { %2787 = vmatpush3.bf16.msra.mxu1 %v2978_v1  ;;  %2766 = vmatprep.subr.bf16.mxu0 %v2979_v4 }
  0x6e   : > { %2788 = vmatprep.subr.bf16.mxu1 %v2981_v5  ;;  %1643 = vmatprep.mubr.bf16.mxu0 %v2514_v32 }
  0x6f   : > { %1834 = vmatprep.mubr.bf16.mxu1 %v1703_v46 }
  0x70   : > { %2767 = vmatpush3.bf16.msra.mxu0 %v2980_v7 }
  0x71   : > { %2789 = vmatpush3.bf16.msra.mxu1 %v2982_v6  ;;  %2768 = vmatprep.subr.bf16.mxu0 %v2983_v8 }
  0x72   : > { %2790 = vmatprep.subr.bf16.mxu1 %v2985_v9 }
  0x74   : > { %2769 = vmatpush3.bf16.msra.mxu0 %v2984_v11 }
  0x75   : > { %2791 = vmatpush3.bf16.msra.mxu1 %v2986_v10  ;;  %2770 = vmatprep.subr.bf16.mxu0 %v2987_v12 }
  0x76   : > { %2792 = vmatprep.subr.bf16.mxu1 %v2989_v13 }
  0x78   : > { %2771 = vmatpush3.bf16.msra.mxu0 %v2988_v15 }
  0x79   : > { %2793 = vmatpush3.bf16.msra.mxu1 %v2990_v14  ;;  %2772 = vmatprep.subr.bf16.mxu0 %v2991_v16 }
  0x7a   : > { %2794 = vmatprep.subr.bf16.mxu1 %v2993_v17 }
  0x7c   : > { %2773 = vmatpush3.bf16.msra.mxu0 %v2992_v19 }
  0x7d   : > { %2795 = vmatpush3.bf16.msra.mxu1 %v2994_v18  ;;  %2774 = vmatprep.subr.bf16.mxu0 %v2995_v20 }
  0x7e   : > { %2796 = vmatprep.subr.bf16.mxu1 %v2997_v21 }
  0x80   : > { %2775 = vmatpush3.bf16.msra.mxu0 %v2996_v23 }
  0x81   : > { %2797 = vmatpush3.bf16.msra.mxu1 %v2998_v22  ;;  %2776 = vmatprep.subr.bf16.mxu0 %v2999_v24 }
  0x82   : > { %2798 = vmatprep.subr.bf16.mxu1 %v3001_v25 }
  0x84   : > { %2777 = vmatpush3.bf16.msra.mxu0 %v3000_v27 }
  0x85   : > { %2799 = vmatpush3.bf16.msra.mxu1 %v3002_v26  ;;  %2778 = vmatprep.subr.bf16.mxu0 %v3003_v28 }
  0x86   : > { %2800 = vmatprep.subr.bf16.mxu1 %v3005_v29 }
  0x88   : > { %2779 = vmatpush3.bf16.msra.mxu0 %v3004_v36 }
  0x89   : > { %2801 = vmatpush3.bf16.msra.mxu1 %v3008_v34  ;;  %2808 = vmatprep.subr.bf16.mxu0 %v3010_v37 }
  0x8b   : > { %1644 = vmatmul.mubr.bf16.vlgmr.msra.gmra.mrb[12].mxu0 %v2513_v42 }
  0x8c   : > { %2809 = vmatpush3.bf16.msra.mxu0 %v3012_v44  ;;  %1835 = vmatmul.mubr.bf16.vlgmr.msra.gmra.mrb[12].mxu1 %v1696_v49 }
  0x8d   : > { %2810 = vmatprep.subr.bf16.mxu0 %v3013_v47  ;;  %2008 = vmatprep.mubr.bf16.mxu0 %v1877_v48 }
  0x90   : > { %2811 = vmatpush3.bf16.msra.mxu0 %v3014_v50 }
  0x91   : > { %2812 = vmatprep.subr.bf16.mxu0 %v3015_v51  ;;  %v2629_v51 = vld [vmem:[%s3619_s4] ss:$0 sm:$0xff] }
  0x94   : > { %2813 = vmatpush3.bf16.msra.mxu0 %v3016_v52 }
  0x95   : > { %2814 = vmatprep.subr.bf16.mxu0 %v3017_v53 }
  0x98   : > { %2815 = vmatpush3.bf16.msra.mxu0 %v3018_v54 }
  0x99   : > { %2816 = vmatprep.subr.bf16.mxu0 %v3019_v55 }
  0x9c   : > { %2817 = vmatpush3.bf16.msra.mxu0 %v3020_v56 }
  0x9d   : > { %2818 = vmatprep.subr.bf16.mxu0 %v3021_v57 }
  0xa0   : > { %2819 = vmatpush3.bf16.msra.mxu0 %v3022_v58 }
  0xa1   : > { %2820 = vmatprep.subr.bf16.mxu0 %v3023_v59 }
  0xa4   : > { %2821 = vmatpush3.bf16.msra.mxu0 %v3024_v60 }
  0xa5   : > { %2822 = vmatprep.subr.bf16.mxu0 %v3025_v61 }
  0xa8   : > { %2823 = vmatpush3.bf16.msra.mxu0 %v3026_v62 }
  0xab   : > { %2009 = vmatmul.mubr.bf16.vlgmr.msra.gmra.mrb[16].mxu0 %v1876_v63 }
  0xfe   : > { %v2648_v5 = vpop.f32.mrb[0].mxu0 }
  0xff   : > { %v2670_v0 = vpop.f32.mrb[0].mxu1  ;;  %v2649_v6 = vpop.f32.mrb[1].mxu0 }
 0x100   : > { %v2671_v1 = vpop.f32.mrb[1].mxu1  ;;  %v2650_v7 = vadd.f32 %v2649_v6, %v2648_v5  ;;  %v2651_v8 = vpop.f32.mrb[2].mxu0 }
 0x101   : > { %v2672_v2 = vadd.f32 %v2671_v1, %v2670_v0  ;;  %v2673_v3 = vpop.f32.mrb[2].mxu1  ;;  %v2652_v9 = vpop.f32.mrb[3].mxu0 }
 0x102   : > { %v2674_v4 = vpop.f32.mrb[3].mxu1 }
 0x103   : > { %v750_v10 = vadd.f32 %v2672_v2, %v2650_v7 }
 0x11e   : > { %v2692_v16 = vpop.f32.mrb[4].mxu0 }
 0x11f   : > { %v2714_v11 = vpop.f32.mrb[4].mxu1  ;;  %v2693_v17 = vpop.f32.mrb[5].mxu0 }
 0x120   : > { %v2715_v12 = vpop.f32.mrb[5].mxu1  ;;  %v2694_v18 = vadd.f32 %v2693_v17, %v2692_v16  ;;  %v2695_v19 = vpop.f32.mrb[6].mxu0 }
 0x121   : > { %v2716_v13 = vadd.f32 %v2715_v12, %v2714_v11  ;;  %v2717_v14 = vpop.f32.mrb[6].mxu1  ;;  %v2696_v20 = vpop.f32.mrb[7].mxu0 }
 0x122   : > { %v2718_v15 = vpop.f32.mrb[7].mxu1  ;;  %v928_v21 = vadd.f32 %v2694_v18, %v750_v10 }
 0x124   : > { %v1107_v22 = vadd.f32 %v2716_v13, %v928_v21 }
 0x13e   : > { %v2736_v28 = vpop.f32.mrb[8].mxu0 }
 0x13f   : > { %v2758_v23 = vpop.f32.mrb[8].mxu1  ;;  %v2737_v29 = vpop.f32.mrb[9].mxu0 }
 0x140   : > { %v2759_v24 = vpop.f32.mrb[9].mxu1  ;;  %v2738_v30 = vadd.f32 %v2737_v29, %v2736_v28  ;;  %v2739_v31 = vpop.f32.mrb[10].mxu0 }
 0x141   : > { %v2760_v25 = vadd.f32 %v2759_v24, %v2758_v23  ;;  %v2761_v26 = vpop.f32.mrb[10].mxu1  ;;  %v2740_v32 = vpop.f32.mrb[11].mxu0 }
 0x142   : > { %v2762_v27 = vpop.f32.mrb[11].mxu1  ;;  %v1298_v33 = vadd.f32 %v2738_v30, %v1107_v22 }
 0x144   : > { %v1472_v34 = vadd.f32 %v2760_v25, %v1298_v33 }
 0x15e   : > { %v2780_v35 = vpop.f32.mrb[12].mxu0 }
 0x15f   : > { %v2781_v36 = vpop.f32.mrb[13].mxu0  ;;  %v2802_v37 = vpop.f32.mrb[12].mxu1 }
 0x160   : > { %v2782_v38 = vadd.f32 %v2781_v36, %v2780_v35  ;;  %v2783_v39 = vpop.f32.mrb[14].mxu0  ;;  %v2803_v40 = vpop.f32.mrb[13].mxu1 }
 0x161   : > { %v2784_v41 = vpop.f32.mrb[15].mxu0  ;;  %v2804_v42 = vadd.f32 %v2803_v40, %v2802_v37  ;;  %v2805_v43 = vpop.f32.mrb[14].mxu1 }
 0x162   : > { %v1651_v44 = vadd.f32 %v2782_v38, %v1472_v34  ;;  %v2806_v45 = vpop.f32.mrb[15].mxu1 }
 0x164   : > { %v1842_v46 = vadd.f32 %v2804_v42, %v1651_v44 }
 0x17e   : > { %v2824_v47 = vpop.f32.mrb[16].mxu0 }
 0x17f   : > { %v2825_v48 = vpop.f32.mrb[17].mxu0 }
 0x180   : > { %v2826_v49 = vadd.f32 %v2825_v48, %v2824_v47  ;;  %v2827_v50 = vpop.f32.mrb[18].mxu0 }
 0x181   : > { %v2828_v52 = vpop.f32.mrb[19].mxu0 }
 0x182   : > { %v2016_v53 = vadd.f32 %v2826_v49, %v1842_v46 }
 0x184   : > { %v2024_v54 = vadd.f32 %v2629_v51, %v2016_v53 }
 0x186   : > { %vm2025_vm0 = vcmp.gt.f32.partialorder %v2024_v54, 0.0  ;;  %v2026_v55 = vmul.f32 0.1, %v2024_v54 }
 0x188   : > { %v2027_v56 = vsel %vm2025_vm0, %v2024_v54, %v2026_v55 }
 0x189   : > { %v2028_v57 = vpack.c.bf16 %v2027_v56, %v2027_v56 }
 0x18b   : > { %2029 = vst [vmem:[%s386_s30] sm:$0xf] %v2028_v57 }
 0x18c PF: > { %s15_s22 = sadd.s32 1, %s3065_s22   ;;  %s3621_s18 = smov %s3057_s20 }
 0x18d   : > { %p12_p10 = scmp.ge.s32.totalorder %s15_s22, 18   ;;  %s3622_s19 = smov %s3061_s21 }
 0x18e   : > { %s3623_s20 = smov %s3626_s23  ;;  %s3624_s21 = smov %s3630_s24 }
 0x18f   :  { %14 = sbr.rel (!%p12_p10) target bundleno = 3 (0x3), region = 90 }

// kernel: flownets_forward.12
= control target key start
LH: loop header
LB: loop body
LE: loop exit
PB: predicated region body
PF: predicated region fallthrough
CT: control target
= control target key end

     0   :  { %s2253_s0 = inlined_call_operand.vmem [shape: bf16[32,3200], index: 0, kind: input, shape index: {}]   ;;  %s2254_s1 = inlined_call_operand.vmem [shape: bf16[3200,256], index: 1, kind: input, shape index: {}]   ;;  %s2255_s2 = inlined_call_operand.vmem [shape: f32[1,256], index: 2, kind: input, shape index: {}]   ;;  %s2256_s3 = inlined_call_operand.vmem [shape: bf16[32,256], index: 3, kind: output, shape index: {}]  }
   0x1   :  { %2258 = sst [smem:[#allocation7_spill]] %s2253_s0 }
   0x2   :  { %2259 = sst [smem:[#allocation8_spill]] %s2254_s1 }
   0x3   :  { %s1854_s12 = smov 0   ;;  %s1856_s13 = smov 0  }
   0x4   :  { %s1858_s14 = smov 0   ;;  %s1860_s15 = smov 0  }
   0x5   :  { %s1862_s16 = smov 0   ;;  %s1864_s17 = smov 0  }
   0x6   :  { %s1866_s18 = smov 0   ;;  %s1868_s19 = smov 0  }
   0x7   :  { %s1870_s20 = smov 0   ;;  %s1872_s21 = smov 0  }
   0x8   :  { %s1874_s22 = smov 0  }
   0x9 LB: > { %s1417_s23 = sadd.s32 4294967295, %s1831_s22   ;;  %s25_s24 = sadd.s32 1, %s1823_s20  ;;  %s1831_s22 = sphi %s1874_s22, %s13_s22   ;;  %s1827_s21 = sphi %s1872_s21, %s2276_s21   ;;  %s1823_s20 = sphi %s1870_s20, %s2275_s20   ;;  %s1819_s19 = sphi %s1868_s19, %s2274_s19   ;;  %s1815_s18 = sphi %s1866_s18, %s2273_s18   ;;  %s1811_s17 = sphi %s1864_s17, %s2272_s17   ;;  %s1807_s16 = sphi %s1862_s16, %s2271_s16   ;;  %s1803_s15 = sphi %s1860_s15, %s2270_s15   ;;  %s1799_s14 = sphi %s1858_s14, %s2269_s14   ;;  %s1795_s13 = sphi %s1856_s13, %s2268_s13   ;;  %s1791_s12 = sphi %s1854_s12, %s2267_s12  }
   0xa   : > { %p26_p0 = scmp.ge.s32.totalorder %s25_s24, 5  ;;  %s28_s25 = sadd.s32 1, %s1827_s21 }
   0xb   : > { %s41_s26 = sadd.s32 1, %s1811_s17  ;;  %p48_p1 = scmp.ne.s32.totalorder %s1811_s17, %s1807_s16 }
   0xc   : > { %s2278_s24 = smov (%p26_p0, %s25_s24), 0  ;;  %s2280_s25 = smov (!%p26_p0, %s28_s25), %s1827_s21 }
   0xd   : > { %s37_s27 = ssub.s32 %s1823_s20, %s2278_s24  ;;  %p49_p2 = scmp.eq.s32.totalorder %s1831_s22, 0 }
   0xe   : > { %p30_p3 = scmp.ge.s32.totalorder %s2280_s25, 2  ;;  %p39_p4 = scmp.eq.s32.totalorder %s37_s27, 0 }
   0xf   : > { %p1921_p5 = por %p49_p2, %p48_p1  ;;  %s69_s29 = sadd.s32 1, %s1803_s15 }
  0x10   : > { %s2282_s25 = smov (%p30_p3, %s2280_s25), 0  ;;  %p76_p6 = scmp.ne.s32.totalorder %s1803_s15, %s1799_s14 }
  0x11   : > { %2261 = sst [smem:[#allocation6_spill]] %s2282_s25  ;;  %s65_s4 = ssub.s32 %s1827_s21, %s2282_s25 }
  0x12   : > { %s1929_s30 = scalar_select %p39_p4, %s1811_s17, %s41_s26  }
  0x13   : > { %s66_s5 = sor.u32 %s65_s4, %s37_s27  ;;  %p121_p7 = scmp.eq.s32.totalorder %s65_s4, 0 }
  0x14   : > { %p67_p8 = scmp.eq.s32.totalorder %s66_s5, 0  ;;  %p1935_p9 = por %p76_p6, %p49_p2 }
  0x15   : > { %s123_s7 = sadd.s32 1, %s1795_s13  ;;  %p133_p10 = scmp.ne.s32.totalorder %s1795_s13, %s1791_s12 }
  0x16   : > { %s1943_s8 = scalar_select %p67_p8, %s1803_s15, %s69_s29  }
  0x17   : > { %s1946_s9 = scalar_select %p121_p7, %s1795_s13, %s123_s7  }
  0x18   : > { %p134_p11 = scmp.eq.s32.totalorder %s1417_s23, 9  ;;  %p1420_p13 = scmp.ge.s32.totalorder %s1831_s22, 10 }
  0x1a   : > { %p1948_p12 = por %p134_p11, %p133_p10  ;;  %156 = sbr.rel (%p1420_p13) target bundleno = 110 (0x6e), region = 16 }
  0x21   : > { %159 = sbr.rel (!%p1921_p5) target bundleno = 48 (0x30), region = 20  ;;  %s161_s11 = sand.u32 (%p1921_p5), 1, %s1811_s17  }
  0x22   : > { %s1495_s26 = smul.u32 (%p1921_p5), 20, %s1823_s20  ;;  %s2264_s0 = sld [smem:[#allocation7_spill]] (%p1921_p5) }
  0x23   : > { %s1598_s27 = smul.u32 (%p1921_p5), 80, %s161_s11 }
  0x25   : > { %s163_s23 = scalar_lea.vmem (%p1921_p5), [#allocation3], %s1598_s27 }
  0x28   : > { %s169_s5 = scalar_lea.vmem %s2264_s0, %s1495_s26 }
  0x29   : > { %v184_v0 = vld [vmem:[%s169_s5] sm:$0xff]  ;;  %v186_v1 = vld [vmem:[%s169_s5 + $0x8] sm:$0xff]  ;;  %v194_v5 = vld [vmem:[%s169_s5 + $0xd0] sm:$0xff] }
  0x2a   : > { %v188_v2 = vld [vmem:[%s169_s5 + $0x64] sm:$0xff]  ;;  %185 = vst [vmem:[%s163_s23] sm:$0xff] %v184_v0  ;;  %187 = vst [vmem:[%s163_s23 + $0x8] sm:$0xff] %v186_v1  ;;  %v190_v3 = vld [vmem:[%s169_s5 + $0x6c] sm:$0xff] }
  0x2b   : > { %189 = vst [vmem:[%s163_s23 + $0x14] sm:$0xff] %v188_v2  ;;  %v192_v4 = vld [vmem:[%s169_s5 + $0xc8] sm:$0xff]  ;;  %191 = vst [vmem:[%s163_s23 + $0x1c] sm:$0xff] %v190_v3  ;;  %v198_v7 = vld [vmem:[%s169_s5 + $0x134] sm:$0xff] }
  0x2c   : > { %193 = vst [vmem:[%s163_s23 + $0x28] sm:$0xff] %v192_v4  ;;  %195 = vst [vmem:[%s163_s23 + $0x30] sm:$0xff] %v194_v5  ;;  %v196_v6 = vld [vmem:[%s169_s5 + $0x12c] sm:$0xff]  ;;  %v1424_v9 = vld [vmem:[%s169_s5 + $0x74] sm:$0xf] }
  0x2d   : > { %v1422_v8 = vld [vmem:[%s169_s5 + $0x10] sm:$0xf]  ;;  %197 = vst [vmem:[%s163_s23 + $0x3c] sm:$0xff] %v196_v6  ;;  %199 = vst [vmem:[%s163_s23 + $0x44] sm:$0xff] %v198_v7  ;;  %v1426_v10 = vld [vmem:[%s169_s5 + $0xd8] sm:$0xf] }
  0x2e   : > { %1423 = vst [vmem:[%s163_s23 + $0x10] sm:$0xf] %v1422_v8  ;;  %v1428_v11 = vld [vmem:[%s169_s5 + $0x13c] sm:$0xf]  ;;  %1425 = vst [vmem:[%s163_s23 + $0x24] sm:$0xf] %v1424_v9 }
  0x2f   : > { %1427 = vst [vmem:[%s163_s23 + $0x38] sm:$0xf] %v1426_v10  ;;  %1429 = vst [vmem:[%s163_s23 + $0x4c] sm:$0xf] %v1428_v11 }
  0x30 PF: > { %220 = sbr.rel (!%p1935_p9) target bundleno = 110 (0x6e), region = 46  ;;  %s222_s28 = sand.u32 (%p1935_p9), 1, %s1803_s15  }
  0x31   : > { %s1496_s7 = smul.u32 (%p1935_p9), 160, %s1823_s20  ;;  %s2265_s1 = sld [smem:[#allocation8_spill]] (%p1935_p9) }
  0x32   : > { %s1599_s11 = smul.u32 (%p1935_p9), 320, %s222_s28 }
  0x33   : > { %s227_s26 = sadd.s32 (%p1935_p9), %s1827_s21, %s1496_s7 }
  0x34   : > { %s1431_s27 = sshll.u32 (%p1935_p9), %s227_s26, 2  ;;  %s1973_s6 = scalar_lea.vmem (%p1935_p9), [#allocation4], %s1599_s11 }
  0x37   : > { %s1968_s0 = scalar_lea.vmem %s2265_s1, %s1431_s27 }
  0x38   : > { %v245_v12 = vld [vmem:[%s1968_s0] sm:$0xf]  ;;  %v247_v13 = vld [vmem:[%s1968_s0 + $0x8] sm:$0xf]  ;;  %v249_v14 = vld [vmem:[%s1968_s0 + $0x10] sm:$0xf] }
  0x39   : > { %246 = vst [vmem:[%s1973_s6] sm:$0xf] %v245_v12  ;;  %248 = vst [vmem:[%s1973_s6 + $0x4] sm:$0xf] %v247_v13  ;;  %v251_v15 = vld [vmem:[%s1968_s0 + $0x18] sm:$0xf] }
  0x3a   : > { %250 = vst [vmem:[%s1973_s6 + $0x8] sm:$0xf] %v249_v14  ;;  %v253_v16 = vld [vmem:[%s1968_s0 + $0x20] sm:$0xf]  ;;  %v255_v17 = vld [vmem:[%s1968_s0 + $0x28] sm:$0xf] }
  0x3b   : > { %252 = vst [vmem:[%s1973_s6 + $0xc] sm:$0xf] %v251_v15  ;;  %254 = vst [vmem:[%s1973_s6 + $0x10] sm:$0xf] %v253_v16  ;;  %v257_v18 = vld [vmem:[%s1968_s0 + $0x30] sm:$0xf] }
  0x3c   : > { %256 = vst [vmem:[%s1973_s6 + $0x14] sm:$0xf] %v255_v17  ;;  %v259_v19 = vld [vmem:[%s1968_s0 + $0x38] sm:$0xf]  ;;  %v261_v20 = vld [vmem:[%s1968_s0 + $0x40] sm:$0xf] }
  0x3d   : > { %258 = vst [vmem:[%s1973_s6 + $0x18] sm:$0xf] %v257_v18  ;;  %260 = vst [vmem:[%s1973_s6 + $0x1c] sm:$0xf] %v259_v19  ;;  %v263_v21 = vld [vmem:[%s1968_s0 + $0x48] sm:$0xf] }
  0x3e   : > { %262 = vst [vmem:[%s1973_s6 + $0x20] sm:$0xf] %v261_v20  ;;  %v265_v22 = vld [vmem:[%s1968_s0 + $0x50] sm:$0xf]  ;;  %v267_v23 = vld [vmem:[%s1968_s0 + $0x58] sm:$0xf] }
  0x3f   : > { %264 = vst [vmem:[%s1973_s6 + $0x24] sm:$0xf] %v263_v21  ;;  %266 = vst [vmem:[%s1973_s6 + $0x28] sm:$0xf] %v265_v22  ;;  %v269_v24 = vld [vmem:[%s1968_s0 + $0x60] sm:$0xf] }
  0x40   : > { %268 = vst [vmem:[%s1973_s6 + $0x2c] sm:$0xf] %v267_v23  ;;  %v271_v25 = vld [vmem:[%s1968_s0 + $0x68] sm:$0xf]  ;;  %v273_v26 = vld [vmem:[%s1968_s0 + $0x70] sm:$0xf] }
  0x41   : > { %270 = vst [vmem:[%s1973_s6 + $0x30] sm:$0xf] %v269_v24  ;;  %272 = vst [vmem:[%s1973_s6 + $0x34] sm:$0xf] %v271_v25  ;;  %v275_v27 = vld [vmem:[%s1968_s0 + $0x78] sm:$0xf] }
  0x42   : > { %274 = vst [vmem:[%s1973_s6 + $0x38] sm:$0xf] %v273_v26  ;;  %v277_v28 = vld [vmem:[%s1968_s0 + $0x80] sm:$0xf]  ;;  %v279_v29 = vld [vmem:[%s1968_s0 + $0x88] sm:$0xf] }
  0x43   : > { %276 = vst [vmem:[%s1973_s6 + $0x3c] sm:$0xf] %v275_v27  ;;  %278 = vst [vmem:[%s1973_s6 + $0x40] sm:$0xf] %v277_v28  ;;  %v281_v30 = vld [vmem:[%s1968_s0 + $0x90] sm:$0xf] }
  0x44   : > { %280 = vst [vmem:[%s1973_s6 + $0x44] sm:$0xf] %v279_v29  ;;  %v283_v31 = vld [vmem:[%s1968_s0 + $0x98] sm:$0xf]  ;;  %v285_v32 = vld [vmem:[%s1968_s0 + $0xa0] sm:$0xf] }
  0x45   : > { %282 = vst [vmem:[%s1973_s6 + $0x48] sm:$0xf] %v281_v30  ;;  %284 = vst [vmem:[%s1973_s6 + $0x4c] sm:$0xf] %v283_v31  ;;  %v287_v33 = vld [vmem:[%s1968_s0 + $0xa8] sm:$0xf] }
  0x46   : > { %286 = vst [vmem:[%s1973_s6 + $0x50] sm:$0xf] %v285_v32  ;;  %v289_v34 = vld [vmem:[%s1968_s0 + $0xb0] sm:$0xf]  ;;  %v291_v35 = vld [vmem:[%s1968_s0 + $0xb8] sm:$0xf] }
  0x47   : > { %288 = vst [vmem:[%s1973_s6 + $0x54] sm:$0xf] %v287_v33  ;;  %290 = vst [vmem:[%s1973_s6 + $0x58] sm:$0xf] %v289_v34  ;;  %v293_v36 = vld [vmem:[%s1968_s0 + $0xc0] sm:$0xf] }
  0x48   : > { %292 = vst [vmem:[%s1973_s6 + $0x5c] sm:$0xf] %v291_v35  ;;  %v295_v37 = vld [vmem:[%s1968_s0 + $0xc8] sm:$0xf]  ;;  %v297_v38 = vld [vmem:[%s1968_s0 + $0xd0] sm:$0xf] }
  0x49   : > { %294 = vst [vmem:[%s1973_s6 + $0x60] sm:$0xf] %v293_v36  ;;  %296 = vst [vmem:[%s1973_s6 + $0x64] sm:$0xf] %v295_v37  ;;  %v299_v39 = vld [vmem:[%s1968_s0 + $0xd8] sm:$0xf] }
  0x4a   : > { %298 = vst [vmem:[%s1973_s6 + $0x68] sm:$0xf] %v297_v38  ;;  %v301_v40 = vld [vmem:[%s1968_s0 + $0xe0] sm:$0xf]  ;;  %v303_v41 = vld [vmem:[%s1968_s0 + $0xe8] sm:$0xf] }
  0x4b   : > { %300 = vst [vmem:[%s1973_s6 + $0x6c] sm:$0xf] %v299_v39  ;;  %302 = vst [vmem:[%s1973_s6 + $0x70] sm:$0xf] %v301_v40  ;;  %v305_v42 = vld [vmem:[%s1968_s0 + $0xf0] sm:$0xf] }
  0x4c   : > { %304 = vst [vmem:[%s1973_s6 + $0x74] sm:$0xf] %v303_v41  ;;  %v307_v43 = vld [vmem:[%s1968_s0 + $0xf8] sm:$0xf]  ;;  %v309_v44 = vld [vmem:[%s1968_s0 + $0x100] sm:$0xf] }
  0x4d   : > { %306 = vst [vmem:[%s1973_s6 + $0x78] sm:$0xf] %v305_v42  ;;  %308 = vst [vmem:[%s1973_s6 + $0x7c] sm:$0xf] %v307_v43  ;;  %v311_v45 = vld [vmem:[%s1968_s0 + $0x108] sm:$0xf] }
  0x4e   : > { %310 = vst [vmem:[%s1973_s6 + $0x80] sm:$0xf] %v309_v44  ;;  %v313_v46 = vld [vmem:[%s1968_s0 + $0x110] sm:$0xf]  ;;  %v315_v47 = vld [vmem:[%s1968_s0 + $0x118] sm:$0xf] }
  0x4f   : > { %312 = vst [vmem:[%s1973_s6 + $0x84] sm:$0xf] %v311_v45  ;;  %314 = vst [vmem:[%s1973_s6 + $0x88] sm:$0xf] %v313_v46  ;;  %v317_v48 = vld [vmem:[%s1968_s0 + $0x120] sm:$0xf] }
  0x50   : > { %316 = vst [vmem:[%s1973_s6 + $0x8c] sm:$0xf] %v315_v47  ;;  %v319_v49 = vld [vmem:[%s1968_s0 + $0x128] sm:$0xf]  ;;  %v321_v50 = vld [vmem:[%s1968_s0 + $0x130] sm:$0xf] }
  0x51   : > { %318 = vst [vmem:[%s1973_s6 + $0x90] sm:$0xf] %v317_v48  ;;  %320 = vst [vmem:[%s1973_s6 + $0x94] sm:$0xf] %v319_v49  ;;  %v323_v51 = vld [vmem:[%s1968_s0 + $0x138] sm:$0xf] }
  0x52   : > { %322 = vst [vmem:[%s1973_s6 + $0x98] sm:$0xf] %v321_v50  ;;  %v325_v52 = vld [vmem:[%s1968_s0 + $0x140] sm:$0xf]  ;;  %v327_v53 = vld [vmem:[%s1968_s0 + $0x148] sm:$0xf] }
  0x53   : > { %324 = vst [vmem:[%s1973_s6 + $0x9c] sm:$0xf] %v323_v51  ;;  %326 = vst [vmem:[%s1973_s6 + $0xa0] sm:$0xf] %v325_v52  ;;  %v329_v54 = vld [vmem:[%s1968_s0 + $0x150] sm:$0xf] }
  0x54   : > { %328 = vst [vmem:[%s1973_s6 + $0xa4] sm:$0xf] %v327_v53  ;;  %v331_v55 = vld [vmem:[%s1968_s0 + $0x158] sm:$0xf]  ;;  %v333_v56 = vld [vmem:[%s1968_s0 + $0x160] sm:$0xf] }
  0x55   : > { %330 = vst [vmem:[%s1973_s6 + $0xa8] sm:$0xf] %v329_v54  ;;  %332 = vst [vmem:[%s1973_s6 + $0xac] sm:$0xf] %v331_v55  ;;  %v335_v57 = vld [vmem:[%s1968_s0 + $0x168] sm:$0xf] }
  0x56   : > { %334 = vst [vmem:[%s1973_s6 + $0xb0] sm:$0xf] %v333_v56  ;;  %v337_v58 = vld [vmem:[%s1968_s0 + $0x170] sm:$0xf]  ;;  %v339_v59 = vld [vmem:[%s1968_s0 + $0x178] sm:$0xf] }
  0x57   : > { %336 = vst [vmem:[%s1973_s6 + $0xb4] sm:$0xf] %v335_v57  ;;  %338 = vst [vmem:[%s1973_s6 + $0xb8] sm:$0xf] %v337_v58  ;;  %v341_v60 = vld [vmem:[%s1968_s0 + $0x180] sm:$0xf] }
  0x58   : > { %340 = vst [vmem:[%s1973_s6 + $0xbc] sm:$0xf] %v339_v59  ;;  %v343_v61 = vld [vmem:[%s1968_s0 + $0x188] sm:$0xf]  ;;  %v345_v62 = vld [vmem:[%s1968_s0 + $0x190] sm:$0xf] }
  0x59   : > { %342 = vst [vmem:[%s1973_s6 + $0xc0] sm:$0xf] %v341_v60  ;;  %344 = vst [vmem:[%s1973_s6 + $0xc4] sm:$0xf] %v343_v61  ;;  %v347_v63 = vld [vmem:[%s1968_s0 + $0x198] sm:$0xf] }
  0x5a   : > { %346 = vst [vmem:[%s1973_s6 + $0xc8] sm:$0xf] %v345_v62  ;;  %v349_v0 = vld [vmem:[%s1968_s0 + $0x1a0] sm:$0xf]  ;;  %v351_v1 = vld [vmem:[%s1968_s0 + $0x1a8] sm:$0xf] }
  0x5b   : > { %348 = vst [vmem:[%s1973_s6 + $0xcc] sm:$0xf] %v347_v63  ;;  %350 = vst [vmem:[%s1973_s6 + $0xd0] sm:$0xf] %v349_v0  ;;  %v353_v2 = vld [vmem:[%s1968_s0 + $0x1b0] sm:$0xf] }
  0x5c   : > { %352 = vst [vmem:[%s1973_s6 + $0xd4] sm:$0xf] %v351_v1  ;;  %v355_v3 = vld [vmem:[%s1968_s0 + $0x1b8] sm:$0xf]  ;;  %v357_v4 = vld [vmem:[%s1968_s0 + $0x1c0] sm:$0xf] }
  0x5d   : > { %354 = vst [vmem:[%s1973_s6 + $0xd8] sm:$0xf] %v353_v2  ;;  %356 = vst [vmem:[%s1973_s6 + $0xdc] sm:$0xf] %v355_v3  ;;  %v359_v5 = vld [vmem:[%s1968_s0 + $0x1c8] sm:$0xf] }
  0x5e   : > { %358 = vst [vmem:[%s1973_s6 + $0xe0] sm:$0xf] %v357_v4  ;;  %v361_v6 = vld [vmem:[%s1968_s0 + $0x1d0] sm:$0xf]  ;;  %v363_v7 = vld [vmem:[%s1968_s0 + $0x1d8] sm:$0xf] }
  0x5f   : > { %360 = vst [vmem:[%s1973_s6 + $0xe4] sm:$0xf] %v359_v5  ;;  %362 = vst [vmem:[%s1973_s6 + $0xe8] sm:$0xf] %v361_v6  ;;  %v365_v8 = vld [vmem:[%s1968_s0 + $0x1e0] sm:$0xf] }
  0x60   : > { %364 = vst [vmem:[%s1973_s6 + $0xec] sm:$0xf] %v363_v7  ;;  %v367_v9 = vld [vmem:[%s1968_s0 + $0x1e8] sm:$0xf]  ;;  %v369_v10 = vld [vmem:[%s1968_s0 + $0x1f0] sm:$0xf] }
  0x61   : > { %366 = vst [vmem:[%s1973_s6 + $0xf0] sm:$0xf] %v365_v8  ;;  %368 = vst [vmem:[%s1973_s6 + $0xf4] sm:$0xf] %v367_v9  ;;  %v371_v11 = vld [vmem:[%s1968_s0 + $0x1f8] sm:$0xf] }
  0x62   : > { %370 = vst [vmem:[%s1973_s6 + $0xf8] sm:$0xf] %v369_v10  ;;  %v373_v12 = vld [vmem:[%s1968_s0 + $0x200] sm:$0xf]  ;;  %v375_v13 = vld [vmem:[%s1968_s0 + $0x208] sm:$0xf] }
  0x63   : > { %372 = vst [vmem:[%s1973_s6 + $0xfc] sm:$0xf] %v371_v11  ;;  %374 = vst [vmem:[%s1973_s6 + $0x100] sm:$0xf] %v373_v12  ;;  %v377_v14 = vld [vmem:[%s1968_s0 + $0x210] sm:$0xf] }
  0x64   : > { %376 = vst [vmem:[%s1973_s6 + $0x104] sm:$0xf] %v375_v13  ;;  %v379_v15 = vld [vmem:[%s1968_s0 + $0x218] sm:$0xf]  ;;  %v381_v16 = vld [vmem:[%s1968_s0 + $0x220] sm:$0xf] }
  0x65   : > { %378 = vst [vmem:[%s1973_s6 + $0x108] sm:$0xf] %v377_v14  ;;  %380 = vst [vmem:[%s1973_s6 + $0x10c] sm:$0xf] %v379_v15  ;;  %v383_v17 = vld [vmem:[%s1968_s0 + $0x228] sm:$0xf] }
  0x66   : > { %382 = vst [vmem:[%s1973_s6 + $0x110] sm:$0xf] %v381_v16  ;;  %v385_v18 = vld [vmem:[%s1968_s0 + $0x230] sm:$0xf]  ;;  %v387_v19 = vld [vmem:[%s1968_s0 + $0x238] sm:$0xf] }
  0x67   : > { %384 = vst [vmem:[%s1973_s6 + $0x114] sm:$0xf] %v383_v17  ;;  %386 = vst [vmem:[%s1973_s6 + $0x118] sm:$0xf] %v385_v18  ;;  %v389_v20 = vld [vmem:[%s1968_s0 + $0x240] sm:$0xf] }
  0x68   : > { %388 = vst [vmem:[%s1973_s6 + $0x11c] sm:$0xf] %v387_v19  ;;  %v391_v21 = vld [vmem:[%s1968_s0 + $0x248] sm:$0xf]  ;;  %v393_v22 = vld [vmem:[%s1968_s0 + $0x250] sm:$0xf] }
  0x69   : > { %390 = vst [vmem:[%s1973_s6 + $0x120] sm:$0xf] %v389_v20  ;;  %392 = vst [vmem:[%s1973_s6 + $0x124] sm:$0xf] %v391_v21  ;;  %v395_v23 = vld [vmem:[%s1968_s0 + $0x258] sm:$0xf] }
  0x6a   : > { %394 = vst [vmem:[%s1973_s6 + $0x128] sm:$0xf] %v393_v22  ;;  %v397_v24 = vld [vmem:[%s1968_s0 + $0x260] sm:$0xf]  ;;  %v399_v25 = vld [vmem:[%s1968_s0 + $0x268] sm:$0xf] }
  0x6b   : > { %396 = vst [vmem:[%s1973_s6 + $0x12c] sm:$0xf] %v395_v23  ;;  %398 = vst [vmem:[%s1973_s6 + $0x130] sm:$0xf] %v397_v24  ;;  %v401_v26 = vld [vmem:[%s1968_s0 + $0x270] sm:$0xf] }
  0x6c   : > { %400 = vst [vmem:[%s1973_s6 + $0x134] sm:$0xf] %v399_v25  ;;  %v403_v27 = vld [vmem:[%s1968_s0 + $0x278] sm:$0xf]  ;;  %402 = vst [vmem:[%s1973_s6 + $0x138] sm:$0xf] %v401_v26 }
  0x6d   : > { %404 = vst [vmem:[%s1973_s6 + $0x13c] sm:$0xf] %v403_v27 }
  0x6e PF: > { %p1432_p0 = scmp.ge.s32.totalorder %s1831_s22, 1  ;;  %p592_p1 = scmp.lt.s32.totalorder %s1831_s22, 11 }
  0x70   : > { %p593_p2 = pnand %p1432_p0, %p592_p1 }
  0x71   : > { %s599_s5 = sand.u32 (!%p593_p2), 1, %s1807_s16   ;;  %s606_s23 = sand.u32 (!%p593_p2), 1, %s1799_s14  }
  0x72   : > { %596 = sbr.rel (%p593_p2) target bundleno = 439 (0x1b7), region = 91  ;;  %s632_s7 = sand.u32 (!%p593_p2), 1, %s1791_s12  }
  0x73   : > { %s1600_s28 = smul.u32 (!%p593_p2), 80, %s599_s5  ;;  %s1433_s11 = sshll.u32 (!%p593_p2), %s632_s7, 4 }
  0x74   : > { %s1601_s0 = smul.u32 (!%p593_p2), 320, %s606_s23  ;;  %p638_p3 = scmp.lt.s32.totalorder (!%p593_p2), %s1819_s19, 1 }
  0x75   : > { %s2145_s6 = scalar_lea.vmem (!%p593_p2), [#allocation3], %s1600_s28  ;;  %s2149_s25 = scalar_lea.vmem (!%p593_p2), [#allocation5], %s1433_s11 }
  0x76   : > { %s2147_s1 = scalar_lea.vmem (!%p593_p2), [#allocation4], %s1601_s0  ;;  %p1434_p4 = scmp.ne.s32.totalorder (!%p593_p2), %s1815_s18, 0 }
  0x79   : > { %s2139_s26 = scalar_select %p638_p3, %s1819_s19, 1 }
  0x7a   : > { %646 = sbr.rel (%p1434_p4) target bundleno = 129 (0x81), region = 103  ;;  %v1833_v28 = vmov (!%p1434_p4), 0.0  }
  0x7b   : > { %s640_s4 = scalar_lea.vmem %s2255_s2, %s2139_s26  ;;  %647 = vst [vmem:[#allocation2] sm:$0xff] (!%p1434_p4), %v1833_v28  ;;  %648 = vst [vmem:[#allocation2 + $0x8] sm:$0xff] (!%p1434_p4), %v1833_v28 }
  0x7c   : > { %649 = vst [vmem:[#allocation2 + $0x10] sm:$0xff] (!%p1434_p4), %v1833_v28  ;;  %650 = vst [vmem:[#allocation2 + $0x18] sm:$0xff] (!%p1434_p4), %v1833_v28 }
  0x81 PF: > { %v1691_v29 = vld [vmem:[%s2147_s1 + $0x40] sm:$0xff]   ;;  %v1695_v33 = vld [vmem:[%s2147_s1 + $0x48] sm:$0xff]   ;;  %v1699_v37 = vld [vmem:[%s2147_s1 + $0x50] sm:$0xff]   ;;  %p1485_p5 = scmp.ne.s32.totalorder %s1815_s18, 4 }
  0x82   : > { %v1692_v30 = vld [vmem:[%s2147_s1 + $0xc0] sm:$0xff]   ;;  %1512 = vmatprep.subr.bf16.mxu0 %v1691_v29  ;;  %v1696_v34 = vld [vmem:[%s2147_s1 + $0xc8] sm:$0xff]   ;;  %v1700_v38 = vld [vmem:[%s2147_s1 + $0xd0] sm:$0xff]  }
  0x83   : > { %v1693_v31 = vld [vmem:[%s2147_s1] sm:$0xff]   ;;  %1540 = vmatprep.subr.bf16.mxu1 %v1692_v30  ;;  %v1697_v35 = vld [vmem:[%s2147_s1 + $0x8] sm:$0xff]   ;;  %v1701_v39 = vld [vmem:[%s2147_s1 + $0x10] sm:$0xff]  }
  0x84   : > { %v1694_v32 = vld [vmem:[%s2147_s1 + $0x80] sm:$0xff]   ;;  %1513 = vmatpush3.bf16.msra.mxu0 %v1693_v31  ;;  %v1698_v36 = vld [vmem:[%s2147_s1 + $0x88] sm:$0xff]   ;;  %v1702_v40 = vld [vmem:[%s2147_s1 + $0x90] sm:$0xff]  }
  0x85   : > { %1541 = vmatpush3.bf16.msra.mxu1 %v1694_v32  ;;  %1514 = vmatprep.subr.bf16.mxu0 %v1695_v33  ;;  %v1703_v41 = vld [vmem:[%s2147_s1 + $0x58] sm:$0xff]   ;;  %v1707_v45 = vld [vmem:[%s2147_s1 + $0x60] sm:$0xff]   ;;  %v1711_v49 = vld [vmem:[%s2147_s1 + $0x68] sm:$0xff]  }
  0x86   : > { %1542 = vmatprep.subr.bf16.mxu1 %v1696_v34  ;;  %v1704_v42 = vld [vmem:[%s2147_s1 + $0xd8] sm:$0xff]   ;;  %v1708_v46 = vld [vmem:[%s2147_s1 + $0xe0] sm:$0xff]   ;;  %v1712_v50 = vld [vmem:[%s2147_s1 + $0xe8] sm:$0xff]  }
  0x87   : > { %v1705_v43 = vld [vmem:[%s2147_s1 + $0x18] sm:$0xff]   ;;  %v1709_v47 = vld [vmem:[%s2147_s1 + $0x20] sm:$0xff]   ;;  %v1713_v51 = vld [vmem:[%s2147_s1 + $0x28] sm:$0xff]  }
  0x88   : > { %1515 = vmatpush3.bf16.msra.mxu0 %v1697_v35  ;;  %v1706_v44 = vld [vmem:[%s2147_s1 + $0x98] sm:$0xff]   ;;  %v1710_v48 = vld [vmem:[%s2147_s1 + $0xa0] sm:$0xff]   ;;  %v1714_v52 = vld [vmem:[%s2147_s1 + $0xa8] sm:$0xff]  }
  0x89   : > { %1543 = vmatpush3.bf16.msra.mxu1 %v1698_v36  ;;  %1516 = vmatprep.subr.bf16.mxu0 %v1699_v37  ;;  %v1715_v53 = vld [vmem:[%s2147_s1 + $0x70] sm:$0xff]   ;;  %v1719_v57 = vld [vmem:[%s2147_s1 + $0x78] sm:$0xff]   ;;  %v1729_v1 = vld [vmem:[%s2147_s1 + $0x100] sm:$0xff]  }
  0x8a   : > { %1544 = vmatprep.subr.bf16.mxu1 %v1700_v38  ;;  %v1716_v54 = vld [vmem:[%s2147_s1 + $0xf0] sm:$0xff]   ;;  %v1720_v58 = vld [vmem:[%s2147_s1 + $0xf8] sm:$0xff]   ;;  %v1730_v2 = vld [vmem:[%s2147_s1 + $0x108] sm:$0xff]  }
  0x8b   : > { %v1717_v55 = vld [vmem:[%s2147_s1 + $0x30] sm:$0xff]   ;;  %v1721_v59 = vld [vmem:[%s2147_s1 + $0x38] sm:$0xff]   ;;  %v1733_v10 = vld [vmem:[%s2147_s1 + $0x120] sm:$0xff]  }
  0x8c   : > { %1517 = vmatpush3.bf16.msra.mxu0 %v1701_v39  ;;  %v1718_v56 = vld [vmem:[%s2147_s1 + $0xb0] sm:$0xff]   ;;  %v1722_v60 = vld [vmem:[%s2147_s1 + $0xb8] sm:$0xff]   ;;  %v1738_v11 = vld [vmem:[%s2147_s1 + $0x128] sm:$0xff]  }
  0x8d   : > { %1545 = vmatpush3.bf16.msra.mxu1 %v1702_v40  ;;  %1518 = vmatprep.subr.bf16.mxu0 %v1703_v41  ;;  %v1723_v61 = vld [vmem:[%s2145_s6] ss:$20 sps:$4 sm:$0xff]   ;;  %v1725_v62 = vld [vmem:[%s2145_s6 + $0x4] ss:$20 sps:$4 sm:$0xff]   ;;  %v1726_v63 = vld [vmem:[%s2145_s6 + $0x8] ss:$20 sps:$4 sm:$0xff]  }
  0x8e   : > { %1546 = vmatprep.subr.bf16.mxu1 %v1704_v42  ;;  %v1728_v0 = vld [vmem:[%s2145_s6 + $0xc] ss:$20 sps:$4 sm:$0xff]   ;;  %1071 = vmatprep.mubr.bf16.mxu0 %v1725_v62  ;;  %v1736_v5 = vld [vmem:[%s2145_s6 + $0x34] ss:$20 sps:$4 sm:$0xff]   ;;  %v1740_v8 = vld [vmem:[%s2145_s6 + $0x30] ss:$20 sps:$4 sm:$0xff]  }
  0x8f   : > { %1120 = vmatprep.mubr.bf16.mxu1 %v1728_v0  ;;  %v1731_v3 = vld [vmem:[%s2147_s1 + $0x110] sm:$0xff]   ;;  %v1732_v6 = vld [vmem:[%s2147_s1 + $0x118] sm:$0xff]  }
  0x90   : > { %1519 = vmatpush3.bf16.msra.mxu0 %v1705_v43  ;;  %v1734_v4 = vld [vmem:[%s2145_s6 + $0x2c] ss:$20 sps:$4 sm:$0xff]   ;;  %v1739_v7 = vld [vmem:[%s2145_s6 + $0x28] ss:$20 sps:$4 sm:$0xff]   ;;  %v1743_v9 = vld [vmem:[%s2145_s6 + $0x10] ss:$20 sps:$4 sm:$0xff]  }
  0x91   : > { %1547 = vmatpush3.bf16.msra.mxu1 %v1706_v44  ;;  %1520 = vmatprep.subr.bf16.mxu0 %v1707_v45  ;;  %v1741_v12 = vld [vmem:[%s2147_s1 + $0x130] sm:$0xff]   ;;  %v1742_v13 = vld [vmem:[%s2147_s1 + $0x138] sm:$0xff]  }
  0x92   : > { %1548 = vmatprep.subr.bf16.mxu1 %v1708_v46  ;;  %v1744_v14 = vld [vmem:[%s2145_s6 + $0x38] ss:$20 sps:$4 sm:$0xff]   ;;  %v653_v43 = vld [vmem:[#allocation2 + $0x10] sm:$0xff]  ;;  %v651_v46 = vld [vmem:[#allocation2] sm:$0xff] }
  0x94   : > { %1521 = vmatpush3.bf16.msra.mxu0 %v1709_v47 }
  0x95   : > { %1549 = vmatpush3.bf16.msra.mxu1 %v1710_v48  ;;  %1522 = vmatprep.subr.bf16.mxu0 %v1711_v49  ;;  %v654_v49 = vld [vmem:[#allocation2 + $0x18] sm:$0xff] }
  0x96   : > { %1550 = vmatprep.subr.bf16.mxu1 %v1712_v50 }
  0x98   : > { %1523 = vmatpush3.bf16.msra.mxu0 %v1713_v51 }
  0x99   : > { %1551 = vmatpush3.bf16.msra.mxu1 %v1714_v52  ;;  %1524 = vmatprep.subr.bf16.mxu0 %v1715_v53  ;;  %v652_v53 = vld [vmem:[#allocation2 + $0x8] sm:$0xff] }
  0x9a   : > { %1552 = vmatprep.subr.bf16.mxu1 %v1716_v54 }
  0x9c   : > { %1525 = vmatpush3.bf16.msra.mxu0 %v1717_v55 }
  0x9d   : > { %1553 = vmatpush3.bf16.msra.mxu1 %v1718_v56  ;;  %1526 = vmatprep.subr.bf16.mxu0 %v1719_v57 }
  0x9e   : > { %1554 = vmatprep.subr.bf16.mxu1 %v1720_v58 }
  0xa0   : > { %1527 = vmatpush3.bf16.msra.mxu0 %v1721_v59 }
  0xa1   : > { %1555 = vmatpush3.bf16.msra.mxu1 %v1722_v60  ;;  %1578 = vmatprep.subr.bf16.mxu0 %v1729_v1 }
  0xa3   : > { %1072 = vmatmul.mubr.bf16.vlgmr.msra.gmra.mrb[0].mxu0 %v1723_v61  ;;  %v1486_v61 = vld [vmem:[%s640_s4] ss:$0 sm:$0xff] (!%p1485_p5) }
  0xa4   : > { %1121 = vmatmul.mubr.bf16.vlgmr.msra.gmra.mrb[0].mxu1 %v1726_v63  ;;  %1579 = vmatpush3.bf16.msra.mxu0 %v1729_v1 }
  0xa5   : > { %1580 = vmatprep.subr.bf16.mxu0 %v1730_v2  ;;  %1079 = vmatprep.mubr.bf16.mxu0 %v1734_v4 }
  0xa6   : > { %1128 = vmatprep.mubr.bf16.mxu1 %v1736_v5 }
  0xa8   : > { %1581 = vmatpush3.bf16.msra.mxu0 %v1730_v2 }
  0xa9   : > { %1582 = vmatprep.subr.bf16.mxu0 %v1731_v3 }
  0xab   : > { %1080 = vmatmul.mubr.bf16.gmra.mrb[4].mxu0 %v1739_v7 }
  0xac   : > { %1129 = vmatmul.mubr.bf16.gmra.mrb[4].mxu1 %v1740_v8  ;;  %1583 = vmatpush3.bf16.msra.mxu0 %v1731_v3 }
  0xad   : > { %1584 = vmatprep.subr.bf16.mxu0 %v1732_v6  ;;  %1594 = vmatprep.mubr.bf16.mxu0 %v1743_v9 }
  0xb0   : > { %1585 = vmatpush3.bf16.msra.mxu0 %v1732_v6 }
  0xb1   : > { %1586 = vmatprep.subr.bf16.mxu0 %v1733_v10 }
  0xb4   : > { %1587 = vmatpush3.bf16.msra.mxu0 %v1733_v10 }
  0xb5   : > { %1588 = vmatprep.subr.bf16.mxu0 %v1738_v11 }
  0xb8   : > { %1589 = vmatpush3.bf16.msra.mxu0 %v1738_v11 }
  0xb9   : > { %1590 = vmatprep.subr.bf16.mxu0 %v1741_v12 }
  0xbc   : > { %1591 = vmatpush3.bf16.msra.mxu0 %v1741_v12 }
  0xbd   : > { %1592 = vmatprep.subr.bf16.mxu0 %v1742_v13 }
  0xc0   : > { %1593 = vmatpush3.bf16.msra.mxu0 %v1742_v13 }
  0xc3   : > { %1595 = vmatmul.mubr.bf16.vlgmr.msra.gmra.mrb[8].mxu0 %v1744_v14 }
 0x176   : > { %v1528_v15 = vpop.f32.mrb[0].mxu0 }
 0x177   : > { %v1556_v16 = vpop.f32.mrb[0].mxu1  ;;  %v1529_v17 = vpop.f32.mrb[1].mxu0 }
 0x178   : > { %v1530_v18 = vadd.f32 %v1529_v17, %v1528_v15  ;;  %v1557_v19 = vpop.f32.mrb[1].mxu1  ;;  %v1531_v20 = vpop.f32.mrb[2].mxu0 }
 0x179   : > { %v1558_v21 = vadd.f32 %v1557_v19, %v1556_v16  ;;  %v1559_v22 = vpop.f32.mrb[2].mxu1  ;;  %v1532_v23 = vpop.f32.mrb[3].mxu0 }
 0x17a   : > { %v1533_v24 = vadd.f32 %v1532_v23, %v1531_v20  ;;  %v1560_v25 = vpop.f32.mrb[3].mxu1 }
 0x17b   : > { %v1561_v26 = vadd.f32 %v1560_v25, %v1559_v22  ;;  %v1123_v27 = vadd.f32 %v1558_v21, %v1530_v18 }
 0x17d   : > { %v1126_v28 = vadd.f32 %v1561_v26, %v1533_v24 }
 0x17e   : > { %v1534_v29 = vpop.f32.mrb[4].mxu0 }
 0x17f   : > { %v1562_v30 = vpop.f32.mrb[4].mxu1  ;;  %v1535_v31 = vpop.f32.mrb[5].mxu0 }
 0x180   : > { %v1536_v32 = vadd.f32 %v1535_v31, %v1534_v29  ;;  %v1563_v33 = vpop.f32.mrb[5].mxu1  ;;  %v1537_v34 = vpop.f32.mrb[6].mxu0 }
 0x181   : > { %v1564_v35 = vadd.f32 %v1563_v33, %v1562_v30  ;;  %v1565_v36 = vpop.f32.mrb[6].mxu1  ;;  %v1538_v37 = vpop.f32.mrb[7].mxu0 }
 0x182   : > { %v1539_v38 = vadd.f32 %v1538_v37, %v1537_v34  ;;  %v1566_v39 = vpop.f32.mrb[7].mxu1 }
 0x183   : > { %v1567_v40 = vadd.f32 %v1566_v39, %v1565_v36  ;;  %v1131_v41 = vadd.f32 %v1564_v35, %v1536_v32 }
 0x185   : > { %v1134_v42 = vadd.f32 %v1567_v40, %v1539_v38 }
 0x196   : > { %v1596_v44 = vpop.f32.mrb[8].mxu0 }
 0x197   : > { %v1180_v45 = vadd.f32 %v1596_v44, %v1131_v41  ;;  %v1171_v47 = vpop.f32.mrb[9].mxu0 }
 0x198   : > { %v1172_v48 = vadd.f32 %v1171_v47, %v1123_v27  ;;  %v1597_v50 = vpop.f32.mrb[10].mxu0  ;;  %1197 = sbr.rel (%p1485_p5) target bundleno = 430 (0x1ae), region = 107 }
 0x199   : > { %v1188_v51 = vadd.f32 %v1180_v45, %v653_v43  ;;  %v1183_v52 = vadd.f32 %v1597_v50, %v1134_v42  ;;  %v1174_v54 = vpop.f32.mrb[11].mxu0 }
 0x19a   : > { %v1186_v55 = vadd.f32 %v1172_v48, %v651_v46  ;;  %v1175_v56 = vadd.f32 %v1174_v54, %v1126_v28 }
 0x19b   : > { %1192 = vst [vmem:[#allocation2 + $0x10] sm:$0xff] %v1188_v51  ;;  %v1189_v57 = vadd.f32 %v1183_v52, %v654_v49 }
 0x19c   : > { %1190 = vst [vmem:[#allocation2] sm:$0xff] %v1186_v55  ;;  %v1187_v58 = vadd.f32 %v1175_v56, %v652_v53 }
 0x19d   : > { %1193 = vst [vmem:[#allocation2 + $0x18] sm:$0xff] %v1189_v57 }
 0x19e   : > { %1191 = vst [vmem:[#allocation2 + $0x8] sm:$0xff] %v1187_v58 }
 0x1a2   : > { %v1200_v0 = vld [vmem:[#allocation2 + $0x10] sm:$0xff] }
 0x1a3   : > { %v1198_v59 = vld [vmem:[#allocation2] sm:$0xff]  ;;  %v1211_v2 = vadd.f32 %v1486_v61, %v1200_v0 }
 0x1a4   : > { %v1209_v62 = vadd.f32 %v1486_v61, %v1198_v59  ;;  %v1201_v1 = vld [vmem:[#allocation2 + $0x18] sm:$0xff] }
 0x1a5   : > { %v1199_v60 = vld [vmem:[#allocation2 + $0x8] sm:$0xff]  ;;  %v1212_v3 = vadd.f32 %v1486_v61, %v1201_v1  ;;  %vm1215_vm2 = vcmp.gt.f32.partialorder %v1211_v2, 0.0  ;;  %v1219_v6 = vmul.f32 0.1, %v1211_v2 }
 0x1a6   : > { %v1210_v63 = vadd.f32 %v1486_v61, %v1199_v60  ;;  %vm1213_vm0 = vcmp.gt.f32.partialorder %v1209_v62, 0.0  ;;  %v1217_v4 = vmul.f32 0.1, %v1209_v62 }
 0x1a7   : > { %vm1216_vm3 = vcmp.gt.f32.partialorder %v1212_v3, 0.0  ;;  %v1220_v7 = vmul.f32 0.1, %v1212_v3  ;;  %v1223_v11 = vsel %vm1215_vm2, %v1211_v2, %v1219_v6 }
 0x1a8   : > { %vm1214_vm1 = vcmp.gt.f32.partialorder %v1210_v63, 0.0  ;;  %v1218_v5 = vmul.f32 0.1, %v1210_v63  ;;  %v1221_v8 = vsel %vm1213_vm0, %v1209_v62, %v1217_v4 }
 0x1a9   : > { %v1224_v12 = vsel %vm1216_vm3, %v1212_v3, %v1220_v7 }
 0x1aa   : > { %v1222_v9 = vsel %vm1214_vm1, %v1210_v63, %v1218_v5  ;;  %v1509_v13 = vpack.c.bf16 %v1224_v12, %v1223_v11 }
 0x1ab   : > { %v1504_v10 = vpack.c.bf16 %v1222_v9, %v1221_v8 }
 0x1ac   : > { %1511 = vst [vmem:[%s2149_s25 + $0x8] sm:$0xff] %v1509_v13  }
 0x1ad   : > { %1505 = vst [vmem:[%s2149_s25] sm:$0xff] %v1504_v10  }
 0x1ae PF: > { %1251 = sbr.rel (!%p1948_p12) target bundleno = 439 (0x1b7), region = 111  ;;  %s1492_s14 = sshll.u32 (%p1948_p12), %s1819_s19, 2 }
 0x1af   : > { %s1256_s5 = scalar_lea.vmem (%p1948_p12), %s2256_s3, %s1492_s14 }
 0x1b3   : > { %v1276_v16 = vld [vmem:[%s2149_s25 + $0x8] sm:$0xf] (%p1948_p12)  ;;  %v1278_v17 = vld [vmem:[%s2149_s25 + $0xc] sm:$0xf] (%p1948_p12) }
 0x1b4   : > { %v1272_v14 = vld [vmem:[%s2149_s25] sm:$0xf] (%p1948_p12)  ;;  %v1274_v15 = vld [vmem:[%s2149_s25 + $0x4] sm:$0xf] (%p1948_p12)  ;;  %1277 = vst [vmem:[%s1256_s5 + $0x10] sm:$0xf] (%p1948_p12), %v1276_v16 }
 0x1b5   : > { %1273 = vst [vmem:[%s1256_s5] sm:$0xf] %v1272_v14  ;;  %1275 = vst [vmem:[%s1256_s5 + $0x8] sm:$0xf] %v1274_v15 }
 0x1b6   : > { %1279 = vst [vmem:[%s1256_s5 + $0x18] sm:$0xf] %v1278_v17 }
 0x1b7 PF: > { %s13_s22 = sadd.s32 1, %s1831_s22   ;;  %s2266_s10 = sld [smem:[#allocation6_spill]] }
 0x1b8   : > { %p10_p6 = scmp.ge.s32.totalorder %s13_s22, 12   ;;  %s2267_s12 = smov %s1795_s13 }
 0x1b9   : > { %s2268_s13 = smov %s1946_s9  ;;  %s2269_s14 = smov %s1803_s15 }
 0x1ba   : > { %s2270_s15 = smov %s1943_s8  ;;  %s2271_s16 = smov %s1811_s17 }
 0x1bb   : > { %s2272_s17 = smov %s1929_s30  ;;  %s2273_s18 = smov %s1823_s20 }
 0x1bc   : > { %s2274_s19 = smov %s1827_s21  ;;  %s2275_s20 = smov %s2278_s24 }
 0x1bd   : > { %s2276_s21 = smov %s2266_s10  ;;  %12 = sbr.rel (!%p10_p6) target bundleno = 9 (0x9), region = 200 }

// kernel: flownets_forward.14
= control target key start
LH: loop header
LB: loop body
LE: loop exit
PB: predicated region body
PF: predicated region fallthrough
CT: control target
= control target key end

     0   :  { %s2682_s12 = smov 0   ;;  %s2684_s13 = smov 0   ;;  %s3248_s0 = inlined_call_operand.vmem [shape: bf16[8,2304], index: 0, kind: input, shape index: {}]   ;;  %s3249_s1 = inlined_call_operand.vmem [shape: bf16[2304,512], index: 1, kind: input, shape index: {}]   ;;  %s3250_s2 = inlined_call_operand.vmem [shape: f32[1,512], index: 2, kind: input, shape index: {}]   ;;  %s3251_s3 = inlined_call_operand.vmem [shape: bf16[8,512], index: 3, kind: output, shape index: {}]  }
   0x1   :  { %s2686_s14 = smov 0   ;;  %s2688_s15 = smov 0  }
   0x2   :  { %s2690_s16 = smov 0   ;;  %s2692_s17 = smov 0  }
   0x3   :  { %s2694_s18 = smov 0  }
   0x4 LB: > { %s25_s19 = sadd.s32 1, %s2650_s16  ;;  %s28_s20 = sadd.s32 1, %s2654_s17  ;;  %s2658_s18 = sphi %s2694_s18, %s13_s18   ;;  %s2654_s17 = sphi %s2692_s17, %s3257_s17   ;;  %s2650_s16 = sphi %s2690_s16, %s3256_s16   ;;  %s2646_s15 = sphi %s2688_s15, %s3255_s15   ;;  %s2642_s14 = sphi %s2686_s14, %s3254_s14   ;;  %s2638_s13 = sphi %s2684_s13, %s3253_s13   ;;  %s2634_s12 = sphi %s2682_s12, %s3252_s12  }
   0x5   : > { %p26_p0 = scmp.ge.s32.totalorder %s25_s19, 2  ;;  %p76_p1 = scmp.ne.s32.totalorder %s2638_s13, %s2634_s12 }
   0x6   : > { %p77_p2 = scmp.eq.s32.totalorder %s2658_s18, 0  ;;  %s69_s24 = sadd.s32 1, %s2638_s13 }
   0x7   : > { %s3259_s19 = smov (%p26_p0, %s25_s19), 0  ;;  %s3261_s20 = smov (!%p26_p0, %s28_s20), %s2654_s17 }
   0x8   : > { %p78_p3 = por %p77_p2, %p76_p1  ;;  %p30_p4 = scmp.ge.s32.totalorder %s3261_s20, 2 }
   0x9   : > { %s64_s21 = ssub.s32 %s2650_s16, %s3259_s19  ;;  %p2150_p6 = scmp.ge.s32.totalorder %s2658_s18, 4 }
   0xa   : > { %s3263_s20 = smov (%p30_p4, %s3261_s20), 0 }
   0xb   : > { %s65_s22 = ssub.s32 %s2654_s17, %s3263_s20  ;;  %156 = sbr.rel (%p2150_p6) target bundleno = 98 (0x62), region = 16 }
   0xc   : > { %s66_s23 = sor.u32 %s65_s22, %s64_s21 }
   0xd   : > { %p67_p5 = scmp.eq.s32.totalorder %s66_s23, 0 }
   0xf   : > { %s2733_s25 = scalar_select %p67_p5, %s2638_s13, %s69_s24  }
  0x12   : > { %172 = sbr.rel (!%p78_p3) target bundleno = 98 (0x62), region = 24  ;;  %s174_s26 = sand.u32 (%p78_p3), 1, %s2638_s13  }
  0x13   : > { %s2319_s27 = smul.u32 (%p78_p3), 1152, %s174_s26  ;;  %s2151_s28 = sshll.u32 (%p78_p3), %s2654_s17, 1 }
  0x14   : > { %s2317_s29 = smul.u32 (%p78_p3), 576, %s2650_s16 }
  0x15   : > { %s2747_s8 = scalar_lea.vmem (%p78_p3), [#allocation3], %s2319_s27 }
  0x16   : > { %s180_s30 = sadd.s32 (%p78_p3), %s2317_s29, %s2151_s28 }
  0x17   : > { %s2153_s4 = sshll.u32 (%p78_p3), %s180_s30, 2 }
  0x18   : > { %s2742_s7 = scalar_lea.vmem (%p78_p3), %s3249_s1, %s2153_s4 }
  0x19   : > { %v496_v0 = vld [vmem:[%s2742_s7] sm:$0xff]  ;;  %v498_v1 = vld [vmem:[%s2742_s7 + $0x10] sm:$0xff] }
  0x1a   : > { %v500_v2 = vld [vmem:[%s2742_s7 + $0x20] sm:$0xff]  ;;  %497 = vst [vmem:[%s2747_s8] sm:$0xff] %v496_v0  ;;  %499 = vst [vmem:[%s2747_s8 + $0x8] sm:$0xff] %v498_v1  ;;  %v502_v3 = vld [vmem:[%s2742_s7 + $0x30] sm:$0xff] }
  0x1b   : > { %501 = vst [vmem:[%s2747_s8 + $0x10] sm:$0xff] %v500_v2  ;;  %v504_v4 = vld [vmem:[%s2742_s7 + $0x40] sm:$0xff]  ;;  %v506_v5 = vld [vmem:[%s2742_s7 + $0x50] sm:$0xff]  ;;  %503 = vst [vmem:[%s2747_s8 + $0x18] sm:$0xff] %v502_v3 }
  0x1c   : > { %505 = vst [vmem:[%s2747_s8 + $0x20] sm:$0xff] %v504_v4  ;;  %507 = vst [vmem:[%s2747_s8 + $0x28] sm:$0xff] %v506_v5  ;;  %v508_v6 = vld [vmem:[%s2742_s7 + $0x60] sm:$0xff]  ;;  %v510_v7 = vld [vmem:[%s2742_s7 + $0x70] sm:$0xff] }
  0x1d   : > { %v512_v8 = vld [vmem:[%s2742_s7 + $0x80] sm:$0xff]  ;;  %509 = vst [vmem:[%s2747_s8 + $0x30] sm:$0xff] %v508_v6  ;;  %511 = vst [vmem:[%s2747_s8 + $0x38] sm:$0xff] %v510_v7  ;;  %v514_v9 = vld [vmem:[%s2742_s7 + $0x90] sm:$0xff] }
  0x1e   : > { %513 = vst [vmem:[%s2747_s8 + $0x40] sm:$0xff] %v512_v8  ;;  %v516_v10 = vld [vmem:[%s2742_s7 + $0xa0] sm:$0xff]  ;;  %v518_v11 = vld [vmem:[%s2742_s7 + $0xb0] sm:$0xff]  ;;  %515 = vst [vmem:[%s2747_s8 + $0x48] sm:$0xff] %v514_v9 }
  0x1f   : > { %517 = vst [vmem:[%s2747_s8 + $0x50] sm:$0xff] %v516_v10  ;;  %519 = vst [vmem:[%s2747_s8 + $0x58] sm:$0xff] %v518_v11  ;;  %v520_v12 = vld [vmem:[%s2742_s7 + $0xc0] sm:$0xff]  ;;  %v522_v13 = vld [vmem:[%s2742_s7 + $0xd0] sm:$0xff] }
  0x20   : > { %v524_v14 = vld [vmem:[%s2742_s7 + $0xe0] sm:$0xff]  ;;  %521 = vst [vmem:[%s2747_s8 + $0x60] sm:$0xff] %v520_v12  ;;  %523 = vst [vmem:[%s2747_s8 + $0x68] sm:$0xff] %v522_v13  ;;  %v526_v15 = vld [vmem:[%s2742_s7 + $0xf0] sm:$0xff] }
  0x21   : > { %525 = vst [vmem:[%s2747_s8 + $0x70] sm:$0xff] %v524_v14  ;;  %v528_v16 = vld [vmem:[%s2742_s7 + $0x100] sm:$0xff]  ;;  %v530_v17 = vld [vmem:[%s2742_s7 + $0x110] sm:$0xff]  ;;  %527 = vst [vmem:[%s2747_s8 + $0x78] sm:$0xff] %v526_v15 }
  0x22   : > { %529 = vst [vmem:[%s2747_s8 + $0x80] sm:$0xff] %v528_v16  ;;  %531 = vst [vmem:[%s2747_s8 + $0x88] sm:$0xff] %v530_v17  ;;  %v532_v18 = vld [vmem:[%s2742_s7 + $0x120] sm:$0xff]  ;;  %v534_v19 = vld [vmem:[%s2742_s7 + $0x130] sm:$0xff] }
  0x23   : > { %v536_v20 = vld [vmem:[%s2742_s7 + $0x140] sm:$0xff]  ;;  %533 = vst [vmem:[%s2747_s8 + $0x90] sm:$0xff] %v532_v18  ;;  %535 = vst [vmem:[%s2747_s8 + $0x98] sm:$0xff] %v534_v19  ;;  %v538_v21 = vld [vmem:[%s2742_s7 + $0x150] sm:$0xff] }
  0x24   : > { %537 = vst [vmem:[%s2747_s8 + $0xa0] sm:$0xff] %v536_v20  ;;  %v540_v22 = vld [vmem:[%s2742_s7 + $0x160] sm:$0xff]  ;;  %v542_v23 = vld [vmem:[%s2742_s7 + $0x170] sm:$0xff]  ;;  %539 = vst [vmem:[%s2747_s8 + $0xa8] sm:$0xff] %v538_v21 }
  0x25   : > { %541 = vst [vmem:[%s2747_s8 + $0xb0] sm:$0xff] %v540_v22  ;;  %543 = vst [vmem:[%s2747_s8 + $0xb8] sm:$0xff] %v542_v23  ;;  %v544_v24 = vld [vmem:[%s2742_s7 + $0x180] sm:$0xff]  ;;  %v546_v25 = vld [vmem:[%s2742_s7 + $0x190] sm:$0xff] }
  0x26   : > { %v548_v26 = vld [vmem:[%s2742_s7 + $0x1a0] sm:$0xff]  ;;  %545 = vst [vmem:[%s2747_s8 + $0xc0] sm:$0xff] %v544_v24  ;;  %547 = vst [vmem:[%s2747_s8 + $0xc8] sm:$0xff] %v546_v25  ;;  %v550_v27 = vld [vmem:[%s2742_s7 + $0x1b0] sm:$0xff] }
  0x27   : > { %549 = vst [vmem:[%s2747_s8 + $0xd0] sm:$0xff] %v548_v26  ;;  %v552_v28 = vld [vmem:[%s2742_s7 + $0x1c0] sm:$0xff]  ;;  %v554_v29 = vld [vmem:[%s2742_s7 + $0x1d0] sm:$0xff]  ;;  %551 = vst [vmem:[%s2747_s8 + $0xd8] sm:$0xff] %v550_v27 }
  0x28   : > { %553 = vst [vmem:[%s2747_s8 + $0xe0] sm:$0xff] %v552_v28  ;;  %555 = vst [vmem:[%s2747_s8 + $0xe8] sm:$0xff] %v554_v29  ;;  %v556_v30 = vld [vmem:[%s2742_s7 + $0x1e0] sm:$0xff]  ;;  %v558_v31 = vld [vmem:[%s2742_s7 + $0x1f0] sm:$0xff] }
  0x29   : > { %v560_v32 = vld [vmem:[%s2742_s7 + $0x200] sm:$0xff]  ;;  %557 = vst [vmem:[%s2747_s8 + $0xf0] sm:$0xff] %v556_v30  ;;  %559 = vst [vmem:[%s2747_s8 + $0xf8] sm:$0xff] %v558_v31  ;;  %v562_v33 = vld [vmem:[%s2742_s7 + $0x210] sm:$0xff] }
  0x2a   : > { %561 = vst [vmem:[%s2747_s8 + $0x100] sm:$0xff] %v560_v32  ;;  %v564_v34 = vld [vmem:[%s2742_s7 + $0x220] sm:$0xff]  ;;  %v566_v35 = vld [vmem:[%s2742_s7 + $0x230] sm:$0xff]  ;;  %563 = vst [vmem:[%s2747_s8 + $0x108] sm:$0xff] %v562_v33 }
  0x2b   : > { %565 = vst [vmem:[%s2747_s8 + $0x110] sm:$0xff] %v564_v34  ;;  %567 = vst [vmem:[%s2747_s8 + $0x118] sm:$0xff] %v566_v35  ;;  %v568_v36 = vld [vmem:[%s2742_s7 + $0x240] sm:$0xff]  ;;  %v570_v37 = vld [vmem:[%s2742_s7 + $0x250] sm:$0xff] }
  0x2c   : > { %v572_v38 = vld [vmem:[%s2742_s7 + $0x260] sm:$0xff]  ;;  %569 = vst [vmem:[%s2747_s8 + $0x120] sm:$0xff] %v568_v36  ;;  %571 = vst [vmem:[%s2747_s8 + $0x128] sm:$0xff] %v570_v37  ;;  %v574_v39 = vld [vmem:[%s2742_s7 + $0x270] sm:$0xff] }
  0x2d   : > { %573 = vst [vmem:[%s2747_s8 + $0x130] sm:$0xff] %v572_v38  ;;  %v576_v40 = vld [vmem:[%s2742_s7 + $0x280] sm:$0xff]  ;;  %v578_v41 = vld [vmem:[%s2742_s7 + $0x290] sm:$0xff]  ;;  %575 = vst [vmem:[%s2747_s8 + $0x138] sm:$0xff] %v574_v39 }
  0x2e   : > { %577 = vst [vmem:[%s2747_s8 + $0x140] sm:$0xff] %v576_v40  ;;  %579 = vst [vmem:[%s2747_s8 + $0x148] sm:$0xff] %v578_v41  ;;  %v580_v42 = vld [vmem:[%s2742_s7 + $0x2a0] sm:$0xff]  ;;  %v582_v43 = vld [vmem:[%s2742_s7 + $0x2b0] sm:$0xff] }
  0x2f   : > { %v584_v44 = vld [vmem:[%s2742_s7 + $0x2c0] sm:$0xff]  ;;  %581 = vst [vmem:[%s2747_s8 + $0x150] sm:$0xff] %v580_v42  ;;  %583 = vst [vmem:[%s2747_s8 + $0x158] sm:$0xff] %v582_v43  ;;  %v586_v45 = vld [vmem:[%s2742_s7 + $0x2d0] sm:$0xff] }
  0x30   : > { %585 = vst [vmem:[%s2747_s8 + $0x160] sm:$0xff] %v584_v44  ;;  %v588_v46 = vld [vmem:[%s2742_s7 + $0x2e0] sm:$0xff]  ;;  %v590_v47 = vld [vmem:[%s2742_s7 + $0x2f0] sm:$0xff]  ;;  %587 = vst [vmem:[%s2747_s8 + $0x168] sm:$0xff] %v586_v45 }
  0x31   : > { %589 = vst [vmem:[%s2747_s8 + $0x170] sm:$0xff] %v588_v46  ;;  %591 = vst [vmem:[%s2747_s8 + $0x178] sm:$0xff] %v590_v47  ;;  %v592_v48 = vld [vmem:[%s2742_s7 + $0x300] sm:$0xff]  ;;  %v594_v49 = vld [vmem:[%s2742_s7 + $0x310] sm:$0xff] }
  0x32   : > { %v596_v50 = vld [vmem:[%s2742_s7 + $0x320] sm:$0xff]  ;;  %593 = vst [vmem:[%s2747_s8 + $0x180] sm:$0xff] %v592_v48  ;;  %595 = vst [vmem:[%s2747_s8 + $0x188] sm:$0xff] %v594_v49  ;;  %v598_v51 = vld [vmem:[%s2742_s7 + $0x330] sm:$0xff] }
  0x33   : > { %597 = vst [vmem:[%s2747_s8 + $0x190] sm:$0xff] %v596_v50  ;;  %v600_v52 = vld [vmem:[%s2742_s7 + $0x340] sm:$0xff]  ;;  %v602_v53 = vld [vmem:[%s2742_s7 + $0x350] sm:$0xff]  ;;  %599 = vst [vmem:[%s2747_s8 + $0x198] sm:$0xff] %v598_v51 }
  0x34   : > { %601 = vst [vmem:[%s2747_s8 + $0x1a0] sm:$0xff] %v600_v52  ;;  %603 = vst [vmem:[%s2747_s8 + $0x1a8] sm:$0xff] %v602_v53  ;;  %v604_v54 = vld [vmem:[%s2742_s7 + $0x360] sm:$0xff]  ;;  %v606_v55 = vld [vmem:[%s2742_s7 + $0x370] sm:$0xff] }
  0x35   : > { %v608_v56 = vld [vmem:[%s2742_s7 + $0x380] sm:$0xff]  ;;  %605 = vst [vmem:[%s2747_s8 + $0x1b0] sm:$0xff] %v604_v54  ;;  %607 = vst [vmem:[%s2747_s8 + $0x1b8] sm:$0xff] %v606_v55  ;;  %v610_v57 = vld [vmem:[%s2742_s7 + $0x390] sm:$0xff] }
  0x36   : > { %609 = vst [vmem:[%s2747_s8 + $0x1c0] sm:$0xff] %v608_v56  ;;  %v612_v58 = vld [vmem:[%s2742_s7 + $0x3a0] sm:$0xff]  ;;  %v614_v59 = vld [vmem:[%s2742_s7 + $0x3b0] sm:$0xff]  ;;  %611 = vst [vmem:[%s2747_s8 + $0x1c8] sm:$0xff] %v610_v57 }
  0x37   : > { %613 = vst [vmem:[%s2747_s8 + $0x1d0] sm:$0xff] %v612_v58  ;;  %615 = vst [vmem:[%s2747_s8 + $0x1d8] sm:$0xff] %v614_v59  ;;  %v616_v60 = vld [vmem:[%s2742_s7 + $0x3c0] sm:$0xff]  ;;  %v618_v61 = vld [vmem:[%s2742_s7 + $0x3d0] sm:$0xff] }
  0x38   : > { %v620_v62 = vld [vmem:[%s2742_s7 + $0x3e0] sm:$0xff]  ;;  %617 = vst [vmem:[%s2747_s8 + $0x1e0] sm:$0xff] %v616_v60  ;;  %619 = vst [vmem:[%s2747_s8 + $0x1e8] sm:$0xff] %v618_v61  ;;  %v622_v63 = vld [vmem:[%s2742_s7 + $0x3f0] sm:$0xff] }
  0x39   : > { %621 = vst [vmem:[%s2747_s8 + $0x1f0] sm:$0xff] %v620_v62  ;;  %v624_v0 = vld [vmem:[%s2742_s7 + $0x400] sm:$0xff]  ;;  %v626_v1 = vld [vmem:[%s2742_s7 + $0x410] sm:$0xff]  ;;  %623 = vst [vmem:[%s2747_s8 + $0x1f8] sm:$0xff] %v622_v63 }
  0x3a   : > { %625 = vst [vmem:[%s2747_s8 + $0x200] sm:$0xff] %v624_v0  ;;  %627 = vst [vmem:[%s2747_s8 + $0x208] sm:$0xff] %v626_v1  ;;  %v628_v2 = vld [vmem:[%s2742_s7 + $0x420] sm:$0xff]  ;;  %v630_v3 = vld [vmem:[%s2742_s7 + $0x430] sm:$0xff] }
  0x3b   : > { %v632_v4 = vld [vmem:[%s2742_s7 + $0x440] sm:$0xff]  ;;  %629 = vst [vmem:[%s2747_s8 + $0x210] sm:$0xff] %v628_v2  ;;  %631 = vst [vmem:[%s2747_s8 + $0x218] sm:$0xff] %v630_v3  ;;  %v634_v5 = vld [vmem:[%s2742_s7 + $0x450] sm:$0xff] }
  0x3c   : > { %633 = vst [vmem:[%s2747_s8 + $0x220] sm:$0xff] %v632_v4  ;;  %v636_v6 = vld [vmem:[%s2742_s7 + $0x460] sm:$0xff]  ;;  %v638_v7 = vld [vmem:[%s2742_s7 + $0x470] sm:$0xff]  ;;  %635 = vst [vmem:[%s2747_s8 + $0x228] sm:$0xff] %v634_v5 }
  0x3d   : > { %637 = vst [vmem:[%s2747_s8 + $0x230] sm:$0xff] %v636_v6  ;;  %639 = vst [vmem:[%s2747_s8 + $0x238] sm:$0xff] %v638_v7  ;;  %v640_v8 = vld [vmem:[%s2742_s7 + $0x480] sm:$0xff]  ;;  %v642_v9 = vld [vmem:[%s2742_s7 + $0x490] sm:$0xff] }
  0x3e   : > { %v644_v10 = vld [vmem:[%s2742_s7 + $0x4a0] sm:$0xff]  ;;  %641 = vst [vmem:[%s2747_s8 + $0x240] sm:$0xff] %v640_v8  ;;  %643 = vst [vmem:[%s2747_s8 + $0x248] sm:$0xff] %v642_v9  ;;  %v646_v11 = vld [vmem:[%s2742_s7 + $0x4b0] sm:$0xff] }
  0x3f   : > { %645 = vst [vmem:[%s2747_s8 + $0x250] sm:$0xff] %v644_v10  ;;  %v648_v12 = vld [vmem:[%s2742_s7 + $0x4c0] sm:$0xff]  ;;  %v650_v13 = vld [vmem:[%s2742_s7 + $0x4d0] sm:$0xff]  ;;  %647 = vst [vmem:[%s2747_s8 + $0x258] sm:$0xff] %v646_v11 }
  0x40   : > { %649 = vst [vmem:[%s2747_s8 + $0x260] sm:$0xff] %v648_v12  ;;  %651 = vst [vmem:[%s2747_s8 + $0x268] sm:$0xff] %v650_v13  ;;  %v652_v14 = vld [vmem:[%s2742_s7 + $0x4e0] sm:$0xff]  ;;  %v654_v15 = vld [vmem:[%s2742_s7 + $0x4f0] sm:$0xff] }
  0x41   : > { %v656_v16 = vld [vmem:[%s2742_s7 + $0x500] sm:$0xff]  ;;  %653 = vst [vmem:[%s2747_s8 + $0x270] sm:$0xff] %v652_v14  ;;  %655 = vst [vmem:[%s2747_s8 + $0x278] sm:$0xff] %v654_v15  ;;  %v658_v17 = vld [vmem:[%s2742_s7 + $0x510] sm:$0xff] }
  0x42   : > { %657 = vst [vmem:[%s2747_s8 + $0x280] sm:$0xff] %v656_v16  ;;  %v660_v18 = vld [vmem:[%s2742_s7 + $0x520] sm:$0xff]  ;;  %v662_v19 = vld [vmem:[%s2742_s7 + $0x530] sm:$0xff]  ;;  %659 = vst [vmem:[%s2747_s8 + $0x288] sm:$0xff] %v658_v17 }
  0x43   : > { %661 = vst [vmem:[%s2747_s8 + $0x290] sm:$0xff] %v660_v18  ;;  %663 = vst [vmem:[%s2747_s8 + $0x298] sm:$0xff] %v662_v19  ;;  %v664_v20 = vld [vmem:[%s2742_s7 + $0x540] sm:$0xff]  ;;  %v666_v21 = vld [vmem:[%s2742_s7 + $0x550] sm:$0xff] }
  0x44   : > { %v668_v22 = vld [vmem:[%s2742_s7 + $0x560] sm:$0xff]  ;;  %665 = vst [vmem:[%s2747_s8 + $0x2a0] sm:$0xff] %v664_v20  ;;  %667 = vst [vmem:[%s2747_s8 + $0x2a8] sm:$0xff] %v666_v21  ;;  %v670_v23 = vld [vmem:[%s2742_s7 + $0x570] sm:$0xff] }
  0x45   : > { %669 = vst [vmem:[%s2747_s8 + $0x2b0] sm:$0xff] %v668_v22  ;;  %v672_v24 = vld [vmem:[%s2742_s7 + $0x580] sm:$0xff]  ;;  %v674_v25 = vld [vmem:[%s2742_s7 + $0x590] sm:$0xff]  ;;  %671 = vst [vmem:[%s2747_s8 + $0x2b8] sm:$0xff] %v670_v23 }
  0x46   : > { %673 = vst [vmem:[%s2747_s8 + $0x2c0] sm:$0xff] %v672_v24  ;;  %675 = vst [vmem:[%s2747_s8 + $0x2c8] sm:$0xff] %v674_v25  ;;  %v676_v26 = vld [vmem:[%s2742_s7 + $0x5a0] sm:$0xff]  ;;  %v678_v27 = vld [vmem:[%s2742_s7 + $0x5b0] sm:$0xff] }
  0x47   : > { %v680_v28 = vld [vmem:[%s2742_s7 + $0x5c0] sm:$0xff]  ;;  %677 = vst [vmem:[%s2747_s8 + $0x2d0] sm:$0xff] %v676_v26  ;;  %679 = vst [vmem:[%s2747_s8 + $0x2d8] sm:$0xff] %v678_v27  ;;  %v682_v29 = vld [vmem:[%s2742_s7 + $0x5d0] sm:$0xff] }
  0x48   : > { %681 = vst [vmem:[%s2747_s8 + $0x2e0] sm:$0xff] %v680_v28  ;;  %v684_v30 = vld [vmem:[%s2742_s7 + $0x5e0] sm:$0xff]  ;;  %v686_v31 = vld [vmem:[%s2742_s7 + $0x5f0] sm:$0xff]  ;;  %683 = vst [vmem:[%s2747_s8 + $0x2e8] sm:$0xff] %v682_v29 }
  0x49   : > { %685 = vst [vmem:[%s2747_s8 + $0x2f0] sm:$0xff] %v684_v30  ;;  %687 = vst [vmem:[%s2747_s8 + $0x2f8] sm:$0xff] %v686_v31  ;;  %v688_v32 = vld [vmem:[%s2742_s7 + $0x600] sm:$0xff]  ;;  %v690_v33 = vld [vmem:[%s2742_s7 + $0x610] sm:$0xff] }
  0x4a   : > { %v692_v34 = vld [vmem:[%s2742_s7 + $0x620] sm:$0xff]  ;;  %689 = vst [vmem:[%s2747_s8 + $0x300] sm:$0xff] %v688_v32  ;;  %691 = vst [vmem:[%s2747_s8 + $0x308] sm:$0xff] %v690_v33  ;;  %v694_v35 = vld [vmem:[%s2742_s7 + $0x630] sm:$0xff] }
  0x4b   : > { %693 = vst [vmem:[%s2747_s8 + $0x310] sm:$0xff] %v692_v34  ;;  %v696_v36 = vld [vmem:[%s2742_s7 + $0x640] sm:$0xff]  ;;  %v698_v37 = vld [vmem:[%s2742_s7 + $0x650] sm:$0xff]  ;;  %695 = vst [vmem:[%s2747_s8 + $0x318] sm:$0xff] %v694_v35 }
  0x4c   : > { %697 = vst [vmem:[%s2747_s8 + $0x320] sm:$0xff] %v696_v36  ;;  %699 = vst [vmem:[%s2747_s8 + $0x328] sm:$0xff] %v698_v37  ;;  %v700_v38 = vld [vmem:[%s2742_s7 + $0x660] sm:$0xff]  ;;  %v702_v39 = vld [vmem:[%s2742_s7 + $0x670] sm:$0xff] }
  0x4d   : > { %v704_v40 = vld [vmem:[%s2742_s7 + $0x680] sm:$0xff]  ;;  %701 = vst [vmem:[%s2747_s8 + $0x330] sm:$0xff] %v700_v38  ;;  %703 = vst [vmem:[%s2747_s8 + $0x338] sm:$0xff] %v702_v39  ;;  %v706_v41 = vld [vmem:[%s2742_s7 + $0x690] sm:$0xff] }
  0x4e   : > { %705 = vst [vmem:[%s2747_s8 + $0x340] sm:$0xff] %v704_v40  ;;  %v708_v42 = vld [vmem:[%s2742_s7 + $0x6a0] sm:$0xff]  ;;  %v710_v43 = vld [vmem:[%s2742_s7 + $0x6b0] sm:$0xff]  ;;  %707 = vst [vmem:[%s2747_s8 + $0x348] sm:$0xff] %v706_v41 }
  0x4f   : > { %709 = vst [vmem:[%s2747_s8 + $0x350] sm:$0xff] %v708_v42  ;;  %711 = vst [vmem:[%s2747_s8 + $0x358] sm:$0xff] %v710_v43  ;;  %v712_v44 = vld [vmem:[%s2742_s7 + $0x6c0] sm:$0xff]  ;;  %v714_v45 = vld [vmem:[%s2742_s7 + $0x6d0] sm:$0xff] }
  0x50   : > { %v716_v46 = vld [vmem:[%s2742_s7 + $0x6e0] sm:$0xff]  ;;  %713 = vst [vmem:[%s2747_s8 + $0x360] sm:$0xff] %v712_v44  ;;  %715 = vst [vmem:[%s2747_s8 + $0x368] sm:$0xff] %v714_v45  ;;  %v718_v47 = vld [vmem:[%s2742_s7 + $0x6f0] sm:$0xff] }
  0x51   : > { %717 = vst [vmem:[%s2747_s8 + $0x370] sm:$0xff] %v716_v46  ;;  %v720_v48 = vld [vmem:[%s2742_s7 + $0x700] sm:$0xff]  ;;  %v722_v49 = vld [vmem:[%s2742_s7 + $0x710] sm:$0xff]  ;;  %719 = vst [vmem:[%s2747_s8 + $0x378] sm:$0xff] %v718_v47 }
  0x52   : > { %721 = vst [vmem:[%s2747_s8 + $0x380] sm:$0xff] %v720_v48  ;;  %723 = vst [vmem:[%s2747_s8 + $0x388] sm:$0xff] %v722_v49  ;;  %v724_v50 = vld [vmem:[%s2742_s7 + $0x720] sm:$0xff]  ;;  %v726_v51 = vld [vmem:[%s2742_s7 + $0x730] sm:$0xff] }
  0x53   : > { %v728_v52 = vld [vmem:[%s2742_s7 + $0x740] sm:$0xff]  ;;  %725 = vst [vmem:[%s2747_s8 + $0x390] sm:$0xff] %v724_v50  ;;  %727 = vst [vmem:[%s2747_s8 + $0x398] sm:$0xff] %v726_v51  ;;  %v730_v53 = vld [vmem:[%s2742_s7 + $0x750] sm:$0xff] }
  0x54   : > { %729 = vst [vmem:[%s2747_s8 + $0x3a0] sm:$0xff] %v728_v52  ;;  %v732_v54 = vld [vmem:[%s2742_s7 + $0x760] sm:$0xff]  ;;  %v734_v55 = vld [vmem:[%s2742_s7 + $0x770] sm:$0xff]  ;;  %731 = vst [vmem:[%s2747_s8 + $0x3a8] sm:$0xff] %v730_v53 }
  0x55   : > { %733 = vst [vmem:[%s2747_s8 + $0x3b0] sm:$0xff] %v732_v54  ;;  %735 = vst [vmem:[%s2747_s8 + $0x3b8] sm:$0xff] %v734_v55  ;;  %v736_v56 = vld [vmem:[%s2742_s7 + $0x780] sm:$0xff]  ;;  %v738_v57 = vld [vmem:[%s2742_s7 + $0x790] sm:$0xff] }
  0x56   : > { %v740_v58 = vld [vmem:[%s2742_s7 + $0x7a0] sm:$0xff]  ;;  %737 = vst [vmem:[%s2747_s8 + $0x3c0] sm:$0xff] %v736_v56  ;;  %739 = vst [vmem:[%s2747_s8 + $0x3c8] sm:$0xff] %v738_v57  ;;  %v742_v59 = vld [vmem:[%s2742_s7 + $0x7b0] sm:$0xff] }
  0x57   : > { %741 = vst [vmem:[%s2747_s8 + $0x3d0] sm:$0xff] %v740_v58  ;;  %v744_v60 = vld [vmem:[%s2742_s7 + $0x7c0] sm:$0xff]  ;;  %v746_v61 = vld [vmem:[%s2742_s7 + $0x7d0] sm:$0xff]  ;;  %743 = vst [vmem:[%s2747_s8 + $0x3d8] sm:$0xff] %v742_v59 }
  0x58   : > { %745 = vst [vmem:[%s2747_s8 + $0x3e0] sm:$0xff] %v744_v60  ;;  %747 = vst [vmem:[%s2747_s8 + $0x3e8] sm:$0xff] %v746_v61  ;;  %v748_v62 = vld [vmem:[%s2742_s7 + $0x7e0] sm:$0xff]  ;;  %v750_v63 = vld [vmem:[%s2742_s7 + $0x7f0] sm:$0xff] }
  0x59   : > { %v752_v0 = vld [vmem:[%s2742_s7 + $0x800] sm:$0xff]  ;;  %749 = vst [vmem:[%s2747_s8 + $0x3f0] sm:$0xff] %v748_v62  ;;  %751 = vst [vmem:[%s2747_s8 + $0x3f8] sm:$0xff] %v750_v63  ;;  %v754_v1 = vld [vmem:[%s2742_s7 + $0x810] sm:$0xff] }
  0x5a   : > { %753 = vst [vmem:[%s2747_s8 + $0x400] sm:$0xff] %v752_v0  ;;  %v756_v2 = vld [vmem:[%s2742_s7 + $0x820] sm:$0xff]  ;;  %v758_v3 = vld [vmem:[%s2742_s7 + $0x830] sm:$0xff]  ;;  %755 = vst [vmem:[%s2747_s8 + $0x408] sm:$0xff] %v754_v1 }
  0x5b   : > { %757 = vst [vmem:[%s2747_s8 + $0x410] sm:$0xff] %v756_v2  ;;  %759 = vst [vmem:[%s2747_s8 + $0x418] sm:$0xff] %v758_v3  ;;  %v760_v4 = vld [vmem:[%s2742_s7 + $0x840] sm:$0xff]  ;;  %v762_v5 = vld [vmem:[%s2742_s7 + $0x850] sm:$0xff] }
  0x5c   : > { %v764_v6 = vld [vmem:[%s2742_s7 + $0x860] sm:$0xff]  ;;  %761 = vst [vmem:[%s2747_s8 + $0x420] sm:$0xff] %v760_v4  ;;  %763 = vst [vmem:[%s2747_s8 + $0x428] sm:$0xff] %v762_v5  ;;  %v766_v7 = vld [vmem:[%s2742_s7 + $0x870] sm:$0xff] }
  0x5d   : > { %765 = vst [vmem:[%s2747_s8 + $0x430] sm:$0xff] %v764_v6  ;;  %v768_v8 = vld [vmem:[%s2742_s7 + $0x880] sm:$0xff]  ;;  %v770_v9 = vld [vmem:[%s2742_s7 + $0x890] sm:$0xff]  ;;  %767 = vst [vmem:[%s2747_s8 + $0x438] sm:$0xff] %v766_v7 }
  0x5e   : > { %769 = vst [vmem:[%s2747_s8 + $0x440] sm:$0xff] %v768_v8  ;;  %771 = vst [vmem:[%s2747_s8 + $0x448] sm:$0xff] %v770_v9  ;;  %v772_v10 = vld [vmem:[%s2742_s7 + $0x8a0] sm:$0xff]  ;;  %v774_v11 = vld [vmem:[%s2742_s7 + $0x8b0] sm:$0xff] }
  0x5f   : > { %v776_v12 = vld [vmem:[%s2742_s7 + $0x8c0] sm:$0xff]  ;;  %773 = vst [vmem:[%s2747_s8 + $0x450] sm:$0xff] %v772_v10  ;;  %775 = vst [vmem:[%s2747_s8 + $0x458] sm:$0xff] %v774_v11  ;;  %v778_v13 = vld [vmem:[%s2742_s7 + $0x8d0] sm:$0xff] }
  0x60   : > { %777 = vst [vmem:[%s2747_s8 + $0x460] sm:$0xff] %v776_v12  ;;  %v780_v14 = vld [vmem:[%s2742_s7 + $0x8e0] sm:$0xff]  ;;  %v782_v15 = vld [vmem:[%s2742_s7 + $0x8f0] sm:$0xff]  ;;  %779 = vst [vmem:[%s2747_s8 + $0x468] sm:$0xff] %v778_v13 }
  0x61   : > { %781 = vst [vmem:[%s2747_s8 + $0x470] sm:$0xff] %v780_v14  ;;  %783 = vst [vmem:[%s2747_s8 + $0x478] sm:$0xff] %v782_v15 }
  0x62 PF: > { %p2154_p7 = scmp.ge.s32.totalorder %s2658_s18, 1  ;;  %p796_p8 = scmp.lt.s32.totalorder %s2658_s18, 5 }
  0x64   : > { %p797_p9 = pnand %p2154_p7, %p796_p8 }
  0x65   : > { %s803_s9 = sand.u32 (!%p797_p9), 1, %s2634_s12   ;;  %s843_s10 = smul.u32 (!%p797_p9), 9, %s2642_s14 }
  0x66   : > { %800 = sbr.rel (%p797_p9) target bundleno = 513 (0x201), region = 66  ;;  %s2156_s21 = sshll.u32 (!%p797_p9), %s2646_s15, 1 }
  0x67   : > { %s2320_s11 = smul.u32 (!%p797_p9), 1152, %s803_s9  ;;  %p846_p10 = scmp.lt.s32.totalorder (!%p797_p9), %s843_s10, 17 }
  0x68   : > { %p856_p11 = scmp.lt.s32.totalorder (!%p797_p9), %s2156_s21, 3  ;;  %p2159_p12 = scmp.ne.s32.totalorder (!%p797_p9), %s2642_s14, 0 }
  0x69   : > { %s3056_s5 = scalar_lea.vmem (!%p797_p9), [#allocation3], %s2320_s11 }
  0x6d   : > { %s3265_s10 = smov (!%p846_p10, %s843_s10), 17  ;;  %s3267_s21 = smov (!%p856_p11, %s2156_s21), 3 }
  0x6e   : > { %s2155_s22 = sshll.u32 %s3265_s10, 2  ;;  %s858_s12 = scalar_lea.vmem %s3250_s2, %s3267_s21  ;;  %v2660_v16 = vmov (!%p2159_p12), 0.0  }
  0x6f   : > { %s3044_s26 = scalar_lea.vmem %s3248_s0, %s2155_s22  ;;  %s2158_s29 = sshll.u32 %s3267_s21, 2  ;;  %875 = vst [vmem:[#allocation2] sm:$0xff] (!%p2159_p12), %v2660_v16  ;;  %876 = vst [vmem:[#allocation2 + $0x8] sm:$0xff] (!%p2159_p12), %v2660_v16 }
  0x70   : > { %s3054_s4 = scalar_lea.vmem %s3251_s3, %s2158_s29  ;;  %874 = sbr.rel (%p2159_p12) target bundleno = 119 (0x77), region = 74 }
  0x77 PF: > { %v2379_v17 = vld [vmem:[%s3056_s5 + $0x4] ss:$8 sps:$4 sm:$0xff]   ;;  %v2383_v19 = vld [vmem:[%s3056_s5] ss:$8 sps:$4 sm:$0xff]   ;;  %v2385_v21 = vld [vmem:[%s3056_s5 + $0x14] ss:$8 sps:$4 sm:$0xff]  }
  0x78   : > { %v2381_v18 = vld [vmem:[%s3056_s5 + $0x104] ss:$8 sps:$4 sm:$0xff]   ;;  %1780 = vmatprep.subr.bf16.mxu0 %v2379_v17  ;;  %v2384_v20 = vld [vmem:[%s3056_s5 + $0x100] ss:$8 sps:$4 sm:$0xff]   ;;  %v2387_v22 = vld [vmem:[%s3056_s5 + $0x114] ss:$8 sps:$4 sm:$0xff]  }
  0x79   : > { %1821 = vmatprep.subr.bf16.mxu1 %v2381_v18  ;;  %1781 = vmatpush1.bf16.msra.mxu0 %v2383_v19  ;;  %v2389_v23 = vld [vmem:[%s3056_s5 + $0x10] ss:$8 sps:$4 sm:$0xff]   ;;  %v2391_v25 = vld [vmem:[%s3056_s5 + $0x24] ss:$8 sps:$4 sm:$0xff]   ;;  %v2395_v27 = vld [vmem:[%s3056_s5 + $0x20] ss:$8 sps:$4 sm:$0xff]  }
  0x7a   : > { %1822 = vmatpush1.bf16.msra.mxu1 %v2384_v20  ;;  %1782 = vmatprep.subr.bf16.mxu0 %v2385_v21  ;;  %v2390_v24 = vld [vmem:[%s3056_s5 + $0x110] ss:$8 sps:$4 sm:$0xff]   ;;  %v2393_v26 = vld [vmem:[%s3056_s5 + $0x124] ss:$8 sps:$4 sm:$0xff]   ;;  %v2396_v28 = vld [vmem:[%s3056_s5 + $0x120] ss:$8 sps:$4 sm:$0xff]  }
  0x7b   : > { %1823 = vmatprep.subr.bf16.mxu1 %v2387_v22  ;;  %v2397_v29 = vld [vmem:[%s3056_s5 + $0x34] ss:$8 sps:$4 sm:$0xff]   ;;  %v2401_v31 = vld [vmem:[%s3056_s5 + $0x30] ss:$8 sps:$4 sm:$0xff]   ;;  %v2403_v33 = vld [vmem:[%s3056_s5 + $0x44] ss:$8 sps:$4 sm:$0xff]  }
  0x7c   : > { %v2399_v30 = vld [vmem:[%s3056_s5 + $0x134] ss:$8 sps:$4 sm:$0xff]   ;;  %v2402_v32 = vld [vmem:[%s3056_s5 + $0x130] ss:$8 sps:$4 sm:$0xff]   ;;  %v2405_v34 = vld [vmem:[%s3056_s5 + $0x144] ss:$8 sps:$4 sm:$0xff]  }
  0x7d   : > { %1783 = vmatpush1.bf16.msra.mxu0 %v2389_v23  ;;  %v2407_v35 = vld [vmem:[%s3056_s5 + $0x40] ss:$8 sps:$4 sm:$0xff]   ;;  %v2409_v37 = vld [vmem:[%s3056_s5 + $0x54] ss:$8 sps:$4 sm:$0xff]   ;;  %v2413_v39 = vld [vmem:[%s3056_s5 + $0x50] ss:$8 sps:$4 sm:$0xff]  }
  0x7e   : > { %1824 = vmatpush1.bf16.msra.mxu1 %v2390_v24  ;;  %1784 = vmatprep.subr.bf16.mxu0 %v2391_v25  ;;  %v2408_v36 = vld [vmem:[%s3056_s5 + $0x140] ss:$8 sps:$4 sm:$0xff]   ;;  %v2411_v38 = vld [vmem:[%s3056_s5 + $0x154] ss:$8 sps:$4 sm:$0xff]   ;;  %v2414_v40 = vld [vmem:[%s3056_s5 + $0x150] ss:$8 sps:$4 sm:$0xff]  }
  0x7f   : > { %1825 = vmatprep.subr.bf16.mxu1 %v2393_v26  ;;  %v2415_v41 = vld [vmem:[%s3056_s5 + $0x64] ss:$8 sps:$4 sm:$0xff]   ;;  %v2419_v43 = vld [vmem:[%s3056_s5 + $0x60] ss:$8 sps:$4 sm:$0xff]   ;;  %v2421_v45 = vld [vmem:[%s3056_s5 + $0x74] ss:$8 sps:$4 sm:$0xff]  }
  0x80   : > { %v2417_v42 = vld [vmem:[%s3056_s5 + $0x164] ss:$8 sps:$4 sm:$0xff]   ;;  %v2420_v44 = vld [vmem:[%s3056_s5 + $0x160] ss:$8 sps:$4 sm:$0xff]   ;;  %v2423_v46 = vld [vmem:[%s3056_s5 + $0x174] ss:$8 sps:$4 sm:$0xff]  }
  0x81   : > { %1785 = vmatpush1.bf16.msra.mxu0 %v2395_v27  ;;  %v2425_v47 = vld [vmem:[%s3056_s5 + $0x70] ss:$8 sps:$4 sm:$0xff]   ;;  %v2427_v49 = vld [vmem:[%s3056_s5 + $0x84] ss:$8 sps:$4 sm:$0xff]   ;;  %v2431_v51 = vld [vmem:[%s3056_s5 + $0x80] ss:$8 sps:$4 sm:$0xff]  }
  0x82   : > { %1826 = vmatpush1.bf16.msra.mxu1 %v2396_v28  ;;  %1786 = vmatprep.subr.bf16.mxu0 %v2397_v29  ;;  %v2426_v48 = vld [vmem:[%s3056_s5 + $0x170] ss:$8 sps:$4 sm:$0xff]   ;;  %v2429_v50 = vld [vmem:[%s3056_s5 + $0x184] ss:$8 sps:$4 sm:$0xff]   ;;  %v2432_v52 = vld [vmem:[%s3056_s5 + $0x180] ss:$8 sps:$4 sm:$0xff]  }
  0x83   : > { %1827 = vmatprep.subr.bf16.mxu1 %v2399_v30  ;;  %v2433_v53 = vld [vmem:[%s3056_s5 + $0x94] ss:$8 sps:$4 sm:$0xff]   ;;  %v2437_v55 = vld [vmem:[%s3056_s5 + $0x90] ss:$8 sps:$4 sm:$0xff]   ;;  %v2439_v57 = vld [vmem:[%s3056_s5 + $0xa4] ss:$8 sps:$4 sm:$0xff]  }
  0x84   : > { %v2435_v54 = vld [vmem:[%s3056_s5 + $0x194] ss:$8 sps:$4 sm:$0xff]   ;;  %v2438_v56 = vld [vmem:[%s3056_s5 + $0x190] ss:$8 sps:$4 sm:$0xff]   ;;  %v2441_v58 = vld [vmem:[%s3056_s5 + $0x1a4] ss:$8 sps:$4 sm:$0xff]  }
  0x85   : > { %1787 = vmatpush1.bf16.msra.mxu0 %v2401_v31  ;;  %v2443_v59 = vld [vmem:[%s3056_s5 + $0xa0] ss:$8 sps:$4 sm:$0xff]   ;;  %v2445_v61 = vld [vmem:[%s3056_s5 + $0xb4] ss:$8 sps:$4 sm:$0xff]   ;;  %v2449_v2 = vld [vmem:[%s3056_s5 + $0xb0] ss:$8 sps:$4 sm:$0xff]  }
  0x86   : > { %1828 = vmatpush1.bf16.msra.mxu1 %v2402_v32  ;;  %1788 = vmatprep.subr.bf16.mxu0 %v2403_v33  ;;  %v2444_v60 = vld [vmem:[%s3056_s5 + $0x1a0] ss:$8 sps:$4 sm:$0xff]   ;;  %v2447_v62 = vld [vmem:[%s3056_s5 + $0x1b4] ss:$8 sps:$4 sm:$0xff]   ;;  %v2450_v3 = vld [vmem:[%s3056_s5 + $0x1b0] ss:$8 sps:$4 sm:$0xff]  }
  0x87   : > { %1829 = vmatprep.subr.bf16.mxu1 %v2405_v34  ;;  %v879_v63 = vld [vmem:[%s3044_s26] sm:$0xff]  ;;  %v880_v1 = vld [vmem:[%s3044_s26 + $0x8] sm:$0xff]  ;;  %v2451_v5 = vld [vmem:[%s3056_s5 + $0xc4] ss:$8 sps:$4 sm:$0xff]   ;;  %p2313_p13 = scmp.ne.s32.totalorder %s2642_s14, 1 }
  0x88   : > { %v2161_v0 = vcombine.high %v879_v63, %v879_v63  ;;  %v2163_v4 = vcombine.high %v880_v1, %v880_v1  ;;  %v2453_v6 = vld [vmem:[%s3056_s5 + $0x1c4] ss:$8 sps:$4 sm:$0xff]   ;;  %v2455_v7 = vld [vmem:[%s3056_s5 + $0xc0] ss:$8 sps:$4 sm:$0xff]   ;;  %v2457_v9 = vld [vmem:[%s3056_s5 + $0xd4] ss:$8 sps:$4 sm:$0xff]   ;;  %v2160_v23 = vcombine.low %v879_v63, %v879_v63  ;;  %v2162_v24 = vcombine.low %v880_v1, %v880_v1 }
  0x89   : > { %1789 = vmatpush1.bf16.msra.mxu0 %v2407_v35  ;;  %v2456_v8 = vld [vmem:[%s3056_s5 + $0x1c0] ss:$8 sps:$4 sm:$0xff]   ;;  %v2459_v10 = vld [vmem:[%s3056_s5 + $0x1d4] ss:$8 sps:$4 sm:$0xff]   ;;  %v2461_v11 = vld [vmem:[%s3056_s5 + $0xd0] ss:$8 sps:$4 sm:$0xff]  }
  0x8a   : > { %1830 = vmatpush1.bf16.msra.mxu1 %v2408_v36  ;;  %1790 = vmatprep.subr.bf16.mxu0 %v2409_v37  ;;  %v2462_v12 = vld [vmem:[%s3056_s5 + $0x1d0] ss:$8 sps:$4 sm:$0xff]   ;;  %v2463_v13 = vld [vmem:[%s3056_s5 + $0xe4] ss:$8 sps:$4 sm:$0xff]   ;;  %v2467_v15 = vld [vmem:[%s3056_s5 + $0xe0] ss:$8 sps:$4 sm:$0xff]  }
  0x8b   : > { %1831 = vmatprep.subr.bf16.mxu1 %v2411_v38  ;;  %1812 = vmatprep.mubr.bf16.mxu0 %v2161_v0  ;;  %v2465_v14 = vld [vmem:[%s3056_s5 + $0x1e4] ss:$8 sps:$4 sm:$0xff]   ;;  %v2468_v16 = vld [vmem:[%s3056_s5 + $0x1e0] ss:$8 sps:$4 sm:$0xff]   ;;  %v2469_v17 = vld [vmem:[%s3056_s5 + $0xf4] ss:$8 sps:$4 sm:$0xff]  }
  0x8c   : > { %1853 = vmatprep.mubr.bf16.mxu1 %v2163_v4  ;;  %v2471_v18 = vld [vmem:[%s3056_s5 + $0x1f4] ss:$8 sps:$4 sm:$0xff]   ;;  %v2473_v19 = vld [vmem:[%s3056_s5 + $0xf0] ss:$8 sps:$4 sm:$0xff]   ;;  %v2481_v21 = vld [vmem:[%s3056_s5 + $0x204] ss:$8 sps:$4 sm:$0xff]  }
  0x8d   : > { %1791 = vmatpush1.bf16.msra.mxu0 %v2413_v39  ;;  %v2474_v20 = vld [vmem:[%s3056_s5 + $0x1f0] ss:$8 sps:$4 sm:$0xff]   ;;  %v2484_v22 = vld [vmem:[%s3056_s5 + $0x304] ss:$8 sps:$4 sm:$0xff]   ;;  %v2479_v25 = vld [vmem:[%s3056_s5 + $0x200] ss:$8 sps:$4 sm:$0xff]  }
  0x8e   : > { %1832 = vmatpush1.bf16.msra.mxu1 %v2414_v40  ;;  %1792 = vmatprep.subr.bf16.mxu0 %v2415_v41  ;;  %v2482_v26 = vld [vmem:[%s3056_s5 + $0x300] ss:$8 sps:$4 sm:$0xff]   ;;  %v2487_v27 = vld [vmem:[%s3056_s5 + $0x214] ss:$8 sps:$4 sm:$0xff]   ;;  %v2485_v29 = vld [vmem:[%s3056_s5 + $0x210] ss:$8 sps:$4 sm:$0xff]  }
  0x8f   : > { %1833 = vmatprep.subr.bf16.mxu1 %v2417_v42  ;;  %v2490_v28 = vld [vmem:[%s3056_s5 + $0x314] ss:$8 sps:$4 sm:$0xff]   ;;  %v2488_v30 = vld [vmem:[%s3056_s5 + $0x310] ss:$8 sps:$4 sm:$0xff]   ;;  %v2493_v31 = vld [vmem:[%s3056_s5 + $0x224] ss:$8 sps:$4 sm:$0xff]  }
  0x90   : > { %v2496_v32 = vld [vmem:[%s3056_s5 + $0x324] ss:$8 sps:$4 sm:$0xff]   ;;  %v2491_v33 = vld [vmem:[%s3056_s5 + $0x220] ss:$8 sps:$4 sm:$0xff]   ;;  %v2499_v35 = vld [vmem:[%s3056_s5 + $0x234] ss:$8 sps:$4 sm:$0xff]  }
  0x91   : > { %1793 = vmatpush1.bf16.msra.mxu0 %v2419_v43  ;;  %v2494_v34 = vld [vmem:[%s3056_s5 + $0x320] ss:$8 sps:$4 sm:$0xff]   ;;  %v2502_v36 = vld [vmem:[%s3056_s5 + $0x334] ss:$8 sps:$4 sm:$0xff]   ;;  %v2497_v37 = vld [vmem:[%s3056_s5 + $0x230] ss:$8 sps:$4 sm:$0xff]  }
  0x92   : > { %1834 = vmatpush1.bf16.msra.mxu1 %v2420_v44  ;;  %1794 = vmatprep.subr.bf16.mxu0 %v2421_v45  ;;  %v2500_v38 = vld [vmem:[%s3056_s5 + $0x330] ss:$8 sps:$4 sm:$0xff]   ;;  %v2505_v39 = vld [vmem:[%s3056_s5 + $0x244] ss:$8 sps:$4 sm:$0xff]   ;;  %v2503_v41 = vld [vmem:[%s3056_s5 + $0x240] ss:$8 sps:$4 sm:$0xff]  }
  0x93   : > { %1835 = vmatprep.subr.bf16.mxu1 %v2423_v46  ;;  %v2508_v40 = vld [vmem:[%s3056_s5 + $0x344] ss:$8 sps:$4 sm:$0xff]   ;;  %v2506_v42 = vld [vmem:[%s3056_s5 + $0x340] ss:$8 sps:$4 sm:$0xff]   ;;  %v2511_v43 = vld [vmem:[%s3056_s5 + $0x254] ss:$8 sps:$4 sm:$0xff]  }
  0x94   : > { %v2514_v44 = vld [vmem:[%s3056_s5 + $0x354] ss:$8 sps:$4 sm:$0xff]   ;;  %v2509_v45 = vld [vmem:[%s3056_s5 + $0x250] ss:$8 sps:$4 sm:$0xff]   ;;  %v2544_v4 = vld [vmem:[%s3056_s5 + $0x3a4] ss:$8 sps:$4 sm:$0xff]  }
  0x95   : > { %1795 = vmatpush1.bf16.msra.mxu0 %v2425_v47  ;;  %v2512_v46 = vld [vmem:[%s3056_s5 + $0x350] ss:$8 sps:$4 sm:$0xff]   ;;  %v2517_v47 = vld [vmem:[%s3056_s5 + $0x264] ss:$8 sps:$4 sm:$0xff]   ;;  %v2535_v63 = vld [vmem:[%s3056_s5 + $0x294] ss:$8 sps:$4 sm:$0xff]  }
  0x96   : > { %1836 = vmatpush1.bf16.msra.mxu1 %v2426_v48  ;;  %1796 = vmatprep.subr.bf16.mxu0 %v2427_v49  ;;  %v2520_v48 = vld [vmem:[%s3056_s5 + $0x364] ss:$8 sps:$4 sm:$0xff]   ;;  %v2538_v0 = vld [vmem:[%s3056_s5 + $0x394] ss:$8 sps:$4 sm:$0xff]   ;;  %v2533_v1 = vld [vmem:[%s3056_s5 + $0x290] ss:$8 sps:$4 sm:$0xff]  }
  0x97   : > { %1837 = vmatprep.subr.bf16.mxu1 %v2429_v50  ;;  %v3152_v49 = vld [vmem:[%s3044_s26 + $0x10] sm:$0xff] }
  0x98   : > { %v2515_v50 = vld [vmem:[%s3056_s5 + $0x260] ss:$8 sps:$4 sm:$0xff]  }
  0x99   : > { %1797 = vmatpush1.bf16.msra.mxu0 %v2431_v51  ;;  %v2518_v51 = vld [vmem:[%s3056_s5 + $0x360] ss:$8 sps:$4 sm:$0xff]  }
  0x9a   : > { %1838 = vmatpush1.bf16.msra.mxu1 %v2432_v52  ;;  %1798 = vmatprep.subr.bf16.mxu0 %v2433_v53  ;;  %v2165_v52 = vcombine.high %v3152_v49, %v3152_v49  ;;  %v3159_v53 = vld [vmem:[%s3044_s26 + $0x18] sm:$0xff] }
  0x9b   : > { %1839 = vmatprep.subr.bf16.mxu1 %v2435_v54  ;;  %v2523_v54 = vld [vmem:[%s3056_s5 + $0x274] ss:$8 sps:$4 sm:$0xff]  }
  0x9d   : > { %1799 = vmatpush1.bf16.msra.mxu0 %v2437_v55  ;;  %v2167_v55 = vcombine.high %v3159_v53, %v3159_v53 }
  0x9e   : > { %1840 = vmatpush1.bf16.msra.mxu1 %v2438_v56  ;;  %1800 = vmatprep.subr.bf16.mxu0 %v2439_v57  ;;  %v2526_v56 = vld [vmem:[%s3056_s5 + $0x374] ss:$8 sps:$4 sm:$0xff]   ;;  %v2521_v57 = vld [vmem:[%s3056_s5 + $0x270] ss:$8 sps:$4 sm:$0xff]  }
  0x9f   : > { %1841 = vmatprep.subr.bf16.mxu1 %v2441_v58  ;;  %v2524_v58 = vld [vmem:[%s3056_s5 + $0x370] ss:$8 sps:$4 sm:$0xff]  }
  0xa1   : > { %1801 = vmatpush1.bf16.msra.mxu0 %v2443_v59  ;;  %v2529_v59 = vld [vmem:[%s3056_s5 + $0x284] ss:$8 sps:$4 sm:$0xff]  }
  0xa2   : > { %1842 = vmatpush1.bf16.msra.mxu1 %v2444_v60  ;;  %1802 = vmatprep.subr.bf16.mxu0 %v2445_v61  ;;  %v2532_v60 = vld [vmem:[%s3056_s5 + $0x384] ss:$8 sps:$4 sm:$0xff]   ;;  %v2527_v61 = vld [vmem:[%s3056_s5 + $0x280] ss:$8 sps:$4 sm:$0xff]  }
  0xa3   : > { %1843 = vmatprep.subr.bf16.mxu1 %v2447_v62  ;;  %v2530_v62 = vld [vmem:[%s3056_s5 + $0x380] ss:$8 sps:$4 sm:$0xff]  }
  0xa5   : > { %1803 = vmatpush1.bf16.msra.mxu0 %v2449_v2  ;;  %v2536_v2 = vld [vmem:[%s3056_s5 + $0x390] ss:$8 sps:$4 sm:$0xff]  }
  0xa6   : > { %1844 = vmatpush1.bf16.msra.mxu1 %v2450_v3  ;;  %1804 = vmatprep.subr.bf16.mxu0 %v2451_v5  ;;  %v2541_v3 = vld [vmem:[%s3056_s5 + $0x2a4] ss:$8 sps:$4 sm:$0xff]   ;;  %v2539_v5 = vld [vmem:[%s3056_s5 + $0x2a0] ss:$8 sps:$4 sm:$0xff]  }
  0xa7   : > { %1845 = vmatprep.subr.bf16.mxu1 %v2453_v6  ;;  %v2542_v6 = vld [vmem:[%s3056_s5 + $0x3a0] ss:$8 sps:$4 sm:$0xff]  }
  0xa9   : > { %1805 = vmatpush1.bf16.msra.mxu0 %v2455_v7  ;;  %v2547_v7 = vld [vmem:[%s3056_s5 + $0x2b4] ss:$8 sps:$4 sm:$0xff]  }
  0xaa   : > { %1846 = vmatpush1.bf16.msra.mxu1 %v2456_v8  ;;  %1806 = vmatprep.subr.bf16.mxu0 %v2457_v9  ;;  %v2550_v8 = vld [vmem:[%s3056_s5 + $0x3b4] ss:$8 sps:$4 sm:$0xff]   ;;  %v2545_v9 = vld [vmem:[%s3056_s5 + $0x2b0] ss:$8 sps:$4 sm:$0xff]  }
  0xab   : > { %1847 = vmatprep.subr.bf16.mxu1 %v2459_v10  ;;  %v2548_v10 = vld [vmem:[%s3056_s5 + $0x3b0] ss:$8 sps:$4 sm:$0xff]  }
  0xad   : > { %1807 = vmatpush1.bf16.msra.mxu0 %v2461_v11  ;;  %v2553_v11 = vld [vmem:[%s3056_s5 + $0x2c4] ss:$8 sps:$4 sm:$0xff]  }
  0xae   : > { %1848 = vmatpush1.bf16.msra.mxu1 %v2462_v12  ;;  %1808 = vmatprep.subr.bf16.mxu0 %v2463_v13  ;;  %v2556_v12 = vld [vmem:[%s3056_s5 + $0x3c4] ss:$8 sps:$4 sm:$0xff]   ;;  %v2551_v13 = vld [vmem:[%s3056_s5 + $0x2c0] ss:$8 sps:$4 sm:$0xff]  }
  0xaf   : > { %1849 = vmatprep.subr.bf16.mxu1 %v2465_v14  ;;  %v2554_v14 = vld [vmem:[%s3056_s5 + $0x3c0] ss:$8 sps:$4 sm:$0xff]  }
  0xb1   : > { %1809 = vmatpush1.bf16.msra.mxu0 %v2467_v15  ;;  %v2559_v15 = vld [vmem:[%s3056_s5 + $0x2d4] ss:$8 sps:$4 sm:$0xff]  }
  0xb2   : > { %1850 = vmatpush1.bf16.msra.mxu1 %v2468_v16  ;;  %1810 = vmatprep.subr.bf16.mxu0 %v2469_v17  ;;  %v2562_v16 = vld [vmem:[%s3056_s5 + $0x3d4] ss:$8 sps:$4 sm:$0xff]   ;;  %v2557_v17 = vld [vmem:[%s3056_s5 + $0x2d0] ss:$8 sps:$4 sm:$0xff]  }
  0xb3   : > { %1851 = vmatprep.subr.bf16.mxu1 %v2471_v18  ;;  %v2560_v18 = vld [vmem:[%s3056_s5 + $0x3d0] ss:$8 sps:$4 sm:$0xff]  }
  0xb5   : > { %1811 = vmatpush1.bf16.msra.mxu0 %v2473_v19  ;;  %v2565_v19 = vld [vmem:[%s3056_s5 + $0x2e4] ss:$8 sps:$4 sm:$0xff]  }
  0xb6   : > { %1852 = vmatpush1.bf16.msra.mxu1 %v2474_v20  ;;  %1862 = vmatprep.subr.bf16.mxu0 %v2481_v21  ;;  %v2568_v20 = vld [vmem:[%s3056_s5 + $0x3e4] ss:$8 sps:$4 sm:$0xff]   ;;  %v2563_v21 = vld [vmem:[%s3056_s5 + $0x2e0] ss:$8 sps:$4 sm:$0xff]  }
  0xb7   : > { %1903 = vmatprep.subr.bf16.mxu1 %v2484_v22  ;;  %v2566_v22 = vld [vmem:[%s3056_s5 + $0x3e0] ss:$8 sps:$4 sm:$0xff]  }
  0xb8   : > { %1813 = vmatmul.mubr.bf16.vlgmr.msra.gmra.mrb[0].mxu0 %v2160_v23  ;;  %v2571_v23 = vld [vmem:[%s3056_s5 + $0x2f4] ss:$8 sps:$4 sm:$0xff]  }
  0xb9   : > { %1854 = vmatmul.mubr.bf16.vlgmr.msra.gmra.mrb[0].mxu1 %v2162_v24  ;;  %1863 = vmatpush1.bf16.msra.mxu0 %v2479_v25  ;;  %v2574_v24 = vld [vmem:[%s3056_s5 + $0x3f4] ss:$8 sps:$4 sm:$0xff]   ;;  %v2569_v25 = vld [vmem:[%s3056_s5 + $0x2f0] ss:$8 sps:$4 sm:$0xff]  }
  0xba   : > { %1904 = vmatpush1.bf16.msra.mxu1 %v2482_v26  ;;  %1864 = vmatprep.subr.bf16.mxu0 %v2487_v27  ;;  %v2572_v26 = vld [vmem:[%s3056_s5 + $0x3f0] ss:$8 sps:$4 sm:$0xff]   ;;  %v2579_v27 = vld [vmem:[%s3056_s5 + $0x404] ss:$8 sps:$4 sm:$0xff]  }
  0xbb   : > { %1905 = vmatprep.subr.bf16.mxu1 %v2490_v28  ;;  %1894 = vmatprep.mubr.bf16.mxu0 %v2165_v52  ;;  %v2164_v28 = vcombine.low %v3152_v49, %v3152_v49 }
  0xbc   : > { %1935 = vmatprep.mubr.bf16.mxu1 %v2167_v55 }
  0xbd   : > { %1865 = vmatpush1.bf16.msra.mxu0 %v2485_v29  ;;  %v2166_v29 = vcombine.low %v3159_v53, %v3159_v53 }
  0xbe   : > { %1906 = vmatpush1.bf16.msra.mxu1 %v2488_v30  ;;  %1866 = vmatprep.subr.bf16.mxu0 %v2493_v31  ;;  %v2577_v30 = vld [vmem:[%s3056_s5 + $0x400] ss:$8 sps:$4 sm:$0xff]   ;;  %v2584_v31 = vld [vmem:[%s3056_s5 + $0x414] ss:$8 sps:$4 sm:$0xff]  }
  0xbf   : > { %1907 = vmatprep.subr.bf16.mxu1 %v2496_v32  ;;  %v2582_v32 = vld [vmem:[%s3056_s5 + $0x410] ss:$8 sps:$4 sm:$0xff]  }
  0xc1   : > { %1867 = vmatpush1.bf16.msra.mxu0 %v2491_v33  ;;  %v2661_v33 = vmov 0  }
  0xc2   : > { %1908 = vmatpush1.bf16.msra.mxu1 %v2494_v34  ;;  %1868 = vmatprep.subr.bf16.mxu0 %v2499_v35  ;;  %v2587_v34 = vld [vmem:[%s3056_s5 + $0x424] ss:$8 sps:$4 sm:$0xff]   ;;  %v2585_v35 = vld [vmem:[%s3056_s5 + $0x420] ss:$8 sps:$4 sm:$0xff]  }
  0xc3   : > { %1909 = vmatprep.subr.bf16.mxu1 %v2502_v36  ;;  %v2590_v36 = vld [vmem:[%s3056_s5 + $0x434] ss:$8 sps:$4 sm:$0xff]  }
  0xc5   : > { %1869 = vmatpush1.bf16.msra.mxu0 %v2497_v37  ;;  %v2588_v37 = vld [vmem:[%s3056_s5 + $0x430] ss:$8 sps:$4 sm:$0xff]  }
  0xc6   : > { %1910 = vmatpush1.bf16.msra.mxu1 %v2500_v38  ;;  %1870 = vmatprep.subr.bf16.mxu0 %v2505_v39  ;;  %v2593_v38 = vld [vmem:[%s3056_s5 + $0x444] ss:$8 sps:$4 sm:$0xff]   ;;  %v2591_v39 = vld [vmem:[%s3056_s5 + $0x440] ss:$8 sps:$4 sm:$0xff]  }
  0xc7   : > { %1911 = vmatprep.subr.bf16.mxu1 %v2508_v40  ;;  %v2596_v40 = vld [vmem:[%s3056_s5 + $0x454] ss:$8 sps:$4 sm:$0xff]  }
  0xc9   : > { %1871 = vmatpush1.bf16.msra.mxu0 %v2503_v41  ;;  %v2594_v41 = vld [vmem:[%s3056_s5 + $0x450] ss:$8 sps:$4 sm:$0xff]  }
  0xca   : > { %1912 = vmatpush1.bf16.msra.mxu1 %v2506_v42  ;;  %1872 = vmatprep.subr.bf16.mxu0 %v2511_v43  ;;  %v2599_v42 = vld [vmem:[%s3056_s5 + $0x464] ss:$8 sps:$4 sm:$0xff]   ;;  %v2597_v43 = vld [vmem:[%s3056_s5 + $0x460] ss:$8 sps:$4 sm:$0xff]  }
  0xcb   : > { %1913 = vmatprep.subr.bf16.mxu1 %v2514_v44  ;;  %v2602_v44 = vld [vmem:[%s3056_s5 + $0x474] ss:$8 sps:$4 sm:$0xff]  }
  0xcd   : > { %1873 = vmatpush1.bf16.msra.mxu0 %v2509_v45  ;;  %v2600_v45 = vld [vmem:[%s3056_s5 + $0x470] ss:$8 sps:$4 sm:$0xff]  }
  0xce   : > { %1914 = vmatpush1.bf16.msra.mxu1 %v2512_v46  ;;  %1874 = vmatprep.subr.bf16.mxu0 %v2517_v47  ;;  %v2603_v46 = vld [vmem:[%s3044_s26 + $0x20] ss:$0 sps:$4 sm:$0xff]  }
  0xcf   : > { %1915 = vmatprep.subr.bf16.mxu1 %v2520_v48 }
  0xd1   : > { %1875 = vmatpush1.bf16.msra.mxu0 %v2515_v50 }
  0xd2   : > { %1916 = vmatpush1.bf16.msra.mxu1 %v2518_v51  ;;  %1876 = vmatprep.subr.bf16.mxu0 %v2523_v54 }
  0xd3   : > { %1917 = vmatprep.subr.bf16.mxu1 %v2526_v56 }
  0xd5   : > { %1877 = vmatpush1.bf16.msra.mxu0 %v2521_v57 }
  0xd6   : > { %1918 = vmatpush1.bf16.msra.mxu1 %v2524_v58  ;;  %1878 = vmatprep.subr.bf16.mxu0 %v2529_v59 }
  0xd7   : > { %1919 = vmatprep.subr.bf16.mxu1 %v2532_v60 }
  0xd9   : > { %1879 = vmatpush1.bf16.msra.mxu0 %v2527_v61 }
  0xda   : > { %1920 = vmatpush1.bf16.msra.mxu1 %v2530_v62  ;;  %1880 = vmatprep.subr.bf16.mxu0 %v2535_v63 }
  0xdb   : > { %1921 = vmatprep.subr.bf16.mxu1 %v2538_v0 }
  0xdd   : > { %1881 = vmatpush1.bf16.msra.mxu0 %v2533_v1 }
  0xde   : > { %1922 = vmatpush1.bf16.msra.mxu1 %v2536_v2  ;;  %1882 = vmatprep.subr.bf16.mxu0 %v2541_v3 }
  0xdf   : > { %1923 = vmatprep.subr.bf16.mxu1 %v2544_v4 }
  0xe1   : > { %1883 = vmatpush1.bf16.msra.mxu0 %v2539_v5  ;;  %v877_v5 = vld [vmem:[#allocation2] sm:$0xff] }
  0xe2   : > { %1924 = vmatpush1.bf16.msra.mxu1 %v2542_v6  ;;  %1884 = vmatprep.subr.bf16.mxu0 %v2547_v7 }
  0xe3   : > { %1925 = vmatprep.subr.bf16.mxu1 %v2550_v8  ;;  %v878_v8 = vld [vmem:[#allocation2 + $0x8] sm:$0xff] }
  0xe5   : > { %1885 = vmatpush1.bf16.msra.mxu0 %v2545_v9 }
  0xe6   : > { %1926 = vmatpush1.bf16.msra.mxu1 %v2548_v10  ;;  %1886 = vmatprep.subr.bf16.mxu0 %v2553_v11 }
  0xe7   : > { %1927 = vmatprep.subr.bf16.mxu1 %v2556_v12 }
  0xe9   : > { %1887 = vmatpush1.bf16.msra.mxu0 %v2551_v13 }
  0xea   : > { %1928 = vmatpush1.bf16.msra.mxu1 %v2554_v14  ;;  %1888 = vmatprep.subr.bf16.mxu0 %v2559_v15  ;;  %v1997_v15 = vlaneseq (!%p2313_p13) }
  0xeb   : > { %1929 = vmatprep.subr.bf16.mxu1 %v2562_v16 }
  0xec   : > { %v1998_v16 = vshrl.u32 (!%p2313_p13), %v1997_v15, 7 }
  0xed   : > { %1889 = vmatpush1.bf16.msra.mxu0 %v2557_v17  ;;  %v1995_v17 = vld [vmem:[%s858_s12] sm:$0x3] (!%p2313_p13) }
  0xee   : > { %1930 = vmatpush1.bf16.msra.mxu1 %v2560_v18  ;;  %1890 = vmatprep.subr.bf16.mxu0 %v2565_v19  ;;  %v1999_v18 = vsub.s32 (!%p2313_p13), 0, %v1998_v16  ;;  %v2003_v19 = vsub.s32 (!%p2313_p13), 1, %v1998_v16 }
  0xef   : > { %1931 = vmatprep.subr.bf16.mxu1 %v2568_v20 }
  0xf1   : > { %1891 = vmatpush1.bf16.msra.mxu0 %v2563_v21 }
  0xf2   : > { %1932 = vmatpush1.bf16.msra.mxu1 %v2566_v22  ;;  %1892 = vmatprep.subr.bf16.mxu0 %v2571_v23  ;;  %v2000_v22 = vrot.slane (!%p2313_p13), %v1995_v17, %v1999_v18  ;;  %v2004_v23 = vrot.slane (!%p2313_p13), %v1995_v17, %v2003_v19 }
  0xf3   : > { %1933 = vmatprep.subr.bf16.mxu1 %v2574_v24 }
  0xf5   : > { %1893 = vmatpush1.bf16.msra.mxu0 %v2569_v25 }
  0xf6   : > { %1934 = vmatpush1.bf16.msra.mxu1 %v2572_v26  ;;  %1944 = vmatprep.subr.bf16.mxu0 %v2579_v27 }
  0xf8   : > { %1895 = vmatmul.mubr.bf16.vlgmr.msra.gmra.mrb[4].mxu0 %v2164_v28 }
  0xf9   : > { %1936 = vmatmul.mubr.bf16.vlgmr.msra.gmra.mrb[4].mxu1 %v2166_v29  ;;  %1945 = vmatpush1.bf16.msra.mxu0 %v2577_v30 }
  0xfa   : > { %1976 = vmatprep.mubr.bf16.mxu0 %v2661_v33  ;;  %1946 = vmatprep.subr.bf16.mxu0 %v2584_v31 }
  0xfd   : > { %1947 = vmatpush1.bf16.msra.mxu0 %v2582_v32 }
  0xfe   : > { %1948 = vmatprep.subr.bf16.mxu0 %v2587_v34 }
 0x101   : > { %1949 = vmatpush1.bf16.msra.mxu0 %v2585_v35 }
 0x102   : > { %1950 = vmatprep.subr.bf16.mxu0 %v2590_v36 }
 0x105   : > { %1951 = vmatpush1.bf16.msra.mxu0 %v2588_v37 }
 0x106   : > { %1952 = vmatprep.subr.bf16.mxu0 %v2593_v38 }
 0x109   : > { %1953 = vmatpush1.bf16.msra.mxu0 %v2591_v39 }
 0x10a   : > { %1954 = vmatprep.subr.bf16.mxu0 %v2596_v40 }
 0x10d   : > { %1955 = vmatpush1.bf16.msra.mxu0 %v2594_v41 }
 0x10e   : > { %1956 = vmatprep.subr.bf16.mxu0 %v2599_v42 }
 0x111   : > { %1957 = vmatpush1.bf16.msra.mxu0 %v2597_v43 }
 0x112   : > { %1958 = vmatprep.subr.bf16.mxu0 %v2602_v44 }
 0x115   : > { %1959 = vmatpush1.bf16.msra.mxu0 %v2600_v45 }
 0x118   : > { %1977 = vmatmul.mubr.bf16.vlgmr.msra.gmra.mrb[8].mxu0 %v2603_v46 }
 0x18b   : > { %v1814_v47 = vpop.f32.mrb[0].mxu0 }
 0x18c   : > { %v1855_v48 = vpop.f32.mrb[0].mxu1  ;;  %v1816_v50 = vpop.f32.mrb[1].mxu0 }
 0x18d   : > { %v1856_v49 = vadd.f32 %v1855_v48, %v1814_v47  ;;  %v1857_v51 = vpop.f32.mrb[1].mxu1  ;;  %v1818_v53 = vpop.f32.mrb[2].mxu0 }
 0x18e   : > { %v1858_v52 = vadd.f32 %v1857_v51, %v1816_v50  ;;  %v1859_v54 = vpop.f32.mrb[2].mxu1  ;;  %v1819_v55 = vpop.f32.mrb[3].mxu0 }
 0x18f   : > { %v1860_v56 = vpop.f32.mrb[3].mxu1 }
 0x1cb   : > { %v1896_v57 = vpop.f32.mrb[4].mxu0 }
 0x1cc   : > { %v1937_v58 = vpop.f32.mrb[4].mxu1  ;;  %v1897_v59 = vadd.f32 %v1896_v57, %v1856_v49  ;;  %v1898_v60 = vpop.f32.mrb[5].mxu0 }
 0x1cd   : > { %v1939_v61 = vpop.f32.mrb[5].mxu1  ;;  %v1899_v62 = vadd.f32 %v1898_v60, %v1858_v52  ;;  %v1900_v63 = vpop.f32.mrb[6].mxu0 }
 0x1ce   : > { %v1941_v0 = vpop.f32.mrb[6].mxu1  ;;  %v1938_v1 = vadd.f32 %v1937_v58, %v1897_v59  ;;  %v1901_v2 = vpop.f32.mrb[7].mxu0 }
 0x1cf   : > { %v1942_v3 = vpop.f32.mrb[7].mxu1  ;;  %v1940_v4 = vadd.f32 %v1939_v61, %v1899_v62 }
 0x1eb   : > { %v1978_v6 = vpop.f32.mrb[8].mxu0  ;;  %1992 = sbr.rel (%p2313_p13) target bundleno = 513 (0x201), region = 78 }
 0x1ec   : > { %v1979_v7 = vadd.f32 %v1978_v6, %v1938_v1  ;;  %v1980_v9 = vpop.f32.mrb[9].mxu0 }
 0x1ed   : > { %v1981_v10 = vadd.f32 %v1980_v9, %v1940_v4  ;;  %v1982_v11 = vpop.f32.mrb[10].mxu0 }
 0x1ee   : > { %v1985_v12 = vadd.f32 %v1979_v7, %v877_v5  ;;  %v1983_v13 = vpop.f32.mrb[11].mxu0 }
 0x1ef   : > { %v1986_v14 = vadd.f32 %v1981_v10, %v878_v8 }
 0x1f0   : > { %1987 = vst [vmem:[#allocation2] sm:$0xff] %v1985_v12 }
 0x1f1   : > { %1988 = vst [vmem:[#allocation2 + $0x8] sm:$0xff] %v1986_v14 }
 0x1f7   : > { %v1993_v20 = vld [vmem:[#allocation2] sm:$0xff] }
 0x1f8   : > { %v1994_v21 = vld [vmem:[#allocation2 + $0x8] sm:$0xff]  ;;  %v2007_v24 = vadd.f32 %v2000_v22, %v1993_v20 }
 0x1f9   : > { %v2008_v25 = vadd.f32 %v2004_v23, %v1994_v21 }
 0x1fa   : > { %vm2009_vm0 = vcmp.gt.f32.partialorder %v2007_v24, 0.0  ;;  %v2011_v26 = vmul.f32 0.1, %v2007_v24 }
 0x1fb   : > { %vm2010_vm1 = vcmp.gt.f32.partialorder %v2008_v25, 0.0  ;;  %v2012_v27 = vmul.f32 0.1, %v2008_v25 }
 0x1fc   : > { %v2013_v28 = vsel %vm2009_vm0, %v2007_v24, %v2011_v26 }
 0x1fd   : > { %v2014_v29 = vsel %vm2010_vm1, %v2008_v25, %v2012_v27 }
 0x1fe   : > { %v2318_v30 = vpack.c.bf16 %v2014_v29, %v2013_v28 }
 0x200   : > { %2023 = vst [vmem:[%s3054_s4] sm:$0xff] %v2318_v30 }
 0x201 PF: > { %s13_s18 = sadd.s32 1, %s2658_s18   ;;  %s3252_s12 = smov %s2638_s13 }
 0x202   : > { %p10_p0 = scmp.ge.s32.totalorder %s13_s18, 6   ;;  %s3253_s13 = smov %s2733_s25 }
 0x203   : > { %s3254_s14 = smov %s2650_s16  ;;  %s3255_s15 = smov %s2654_s17 }
 0x204   : > { %s3256_s16 = smov %s3259_s19  ;;  %s3257_s17 = smov %s3263_s20 }
 0x205   :  { %12 = sbr.rel (!%p10_p0) target bundleno = 4 (0x4), region = 119 }

// kernel: flownets_forward.13
= control target key start
LH: loop header
LB: loop body
LE: loop exit
PB: predicated region body
PF: predicated region fallthrough
CT: control target
= control target key end

     0   :  { %s3939_s18 = smov 0   ;;  %s3941_s19 = smov 0   ;;  %s4932_s0 = inlined_call_operand.vmem [shape: bf16[2,6,6,256], index: 0, kind: input, shape index: {}, may-alias: {0,1,2}]   ;;  %s4933_s1 = inlined_call_operand.vmem [shape: bf16[2,6,6,256], index: 1, kind: input, shape index: {}, may-alias: {0,1,2}]   ;;  %s4934_s2 = inlined_call_operand.vmem [shape: bf16[2,6,6,256], index: 2, kind: input, shape index: {}, may-alias: {0,1,2}]   ;;  %s4935_s3 = inlined_call_operand.vmem [shape: bf16[3,3,256,256], index: 3, kind: input, shape index: {}]   ;;  %s4936_s4 = inlined_call_operand.vmem [shape: f32[1,256], index: 4, kind: input, shape index: {}]   ;;  %s4937_s5 = inlined_call_operand.vmem [shape: bf16[2,4,4,256], index: 5, kind: output, shape index: {}]  }
   0x1   :  { %s3943_s20 = smov 0   ;;  %s3945_s21 = smov 0  }
   0x2   :  { %s3947_s22 = smov 0  }
   0x3 LB: > { %s27_s23 = sadd.s32 1, %s3899_s20  ;;  %s30_s24 = sadd.s32 1, %s3903_s21  ;;  %s3907_s22 = sphi %s3947_s22, %s15_s22   ;;  %s3903_s21 = sphi %s3945_s21, %s4941_s21   ;;  %s3899_s20 = sphi %s3943_s20, %s4940_s20   ;;  %s3895_s19 = sphi %s3941_s19, %s4939_s19   ;;  %s3891_s18 = sphi %s3939_s18, %s4938_s18  }
   0x4   : > { %p28_p0 = scmp.ge.s32.totalorder %s27_s23, 4  ;;  %p2826_p1 = scmp.ge.s32.totalorder %s3907_s22, 1 }
   0x5   : > { %p277_p2 = scmp.lt.s32.totalorder %s3907_s22, 9 }
   0x6   : > { %s4943_s23 = smov (%p28_p0, %s27_s23), 0  ;;  %s4945_s24 = smov (!%p28_p0, %s30_s24), %s3903_s21 }
   0x7   : > { %p278_p3 = pnand %p2826_p1, %p277_p2  ;;  %p32_p4 = scmp.ge.s32.totalorder %s4945_s24, 2 }
   0x8   : > { %v3431_v0 = vld [vmem:[%s4935_s3 + $0x104] ss:$8 sps:$4 sm:$0xff] (!%p278_p3)   ;;  %v3435_v2 = vld [vmem:[%s4935_s3 + $0x100] ss:$8 sps:$4 sm:$0xff] (!%p278_p3)   ;;  %v3437_v4 = vld [vmem:[%s4935_s3 + $0x114] ss:$8 sps:$4 sm:$0xff] (!%p278_p3)  }
   0x9   : > { %s4947_s24 = smov (%p32_p4, %s4945_s24), 0  ;;  %281 = sbr.rel (%p278_p3) target bundleno = 553 (0x229), region = 40 }
   0xa   : > { %v3433_v1 = vld [vmem:[%s4935_s3 + $0x4] ss:$8 sps:$4 sm:$0xff] (!%p278_p3)   ;;  %649 = vmatprep.subr.bf16.mxu0 (!%p278_p3), %v3431_v0  ;;  %v3436_v3 = vld [vmem:[%s4935_s3] ss:$8 sps:$4 sm:$0xff] (!%p278_p3)   ;;  %v3439_v5 = vld [vmem:[%s4935_s3 + $0x14] ss:$8 sps:$4 sm:$0xff] (!%p278_p3)  }
   0xb   : > { %852 = vmatprep.subr.bf16.mxu1 (!%p278_p3), %v3433_v1  ;;  %650 = vmatpush1.bf16.msra.mxu0 (!%p278_p3), %v3435_v2  ;;  %v3441_v6 = vld [vmem:[%s4935_s3 + $0x110] ss:$8 sps:$4 sm:$0xff] (!%p278_p3)   ;;  %v3443_v8 = vld [vmem:[%s4935_s3 + $0x124] ss:$8 sps:$4 sm:$0xff] (!%p278_p3)   ;;  %v3447_v10 = vld [vmem:[%s4935_s3 + $0x120] ss:$8 sps:$4 sm:$0xff] (!%p278_p3)  }
   0xc   : > { %853 = vmatpush1.bf16.msra.mxu1 (!%p278_p3), %v3436_v3  ;;  %651 = vmatprep.subr.bf16.mxu0 (!%p278_p3), %v3437_v4  ;;  %v3442_v7 = vld [vmem:[%s4935_s3 + $0x10] ss:$8 sps:$4 sm:$0xff] (!%p278_p3)   ;;  %v3445_v9 = vld [vmem:[%s4935_s3 + $0x24] ss:$8 sps:$4 sm:$0xff] (!%p278_p3)   ;;  %v3448_v11 = vld [vmem:[%s4935_s3 + $0x20] ss:$8 sps:$4 sm:$0xff] (!%p278_p3)  }
   0xd   : > { %854 = vmatprep.subr.bf16.mxu1 (!%p278_p3), %v3439_v5  ;;  %v3449_v12 = vld [vmem:[%s4935_s3 + $0x134] ss:$8 sps:$4 sm:$0xff] (!%p278_p3)   ;;  %v3453_v14 = vld [vmem:[%s4935_s3 + $0x130] ss:$8 sps:$4 sm:$0xff] (!%p278_p3)   ;;  %v3455_v16 = vld [vmem:[%s4935_s3 + $0x144] ss:$8 sps:$4 sm:$0xff] (!%p278_p3)  }
   0xe   : > { %v3451_v13 = vld [vmem:[%s4935_s3 + $0x34] ss:$8 sps:$4 sm:$0xff] (!%p278_p3)   ;;  %v3454_v15 = vld [vmem:[%s4935_s3 + $0x30] ss:$8 sps:$4 sm:$0xff] (!%p278_p3)   ;;  %v3457_v17 = vld [vmem:[%s4935_s3 + $0x44] ss:$8 sps:$4 sm:$0xff] (!%p278_p3)  }
   0xf   : > { %652 = vmatpush1.bf16.msra.mxu0 (!%p278_p3), %v3441_v6  ;;  %v3459_v18 = vld [vmem:[%s4935_s3 + $0x140] ss:$8 sps:$4 sm:$0xff] (!%p278_p3)   ;;  %v3461_v20 = vld [vmem:[%s4935_s3 + $0x154] ss:$8 sps:$4 sm:$0xff] (!%p278_p3)   ;;  %v3465_v22 = vld [vmem:[%s4935_s3 + $0x150] ss:$8 sps:$4 sm:$0xff] (!%p278_p3)  }
  0x10   : > { %855 = vmatpush1.bf16.msra.mxu1 %v3442_v7  ;;  %653 = vmatprep.subr.bf16.mxu0 %v3443_v8  ;;  %v3460_v19 = vld [vmem:[%s4935_s3 + $0x40] ss:$8 sps:$4 sm:$0xff]   ;;  %v3463_v21 = vld [vmem:[%s4935_s3 + $0x54] ss:$8 sps:$4 sm:$0xff]   ;;  %v3466_v23 = vld [vmem:[%s4935_s3 + $0x50] ss:$8 sps:$4 sm:$0xff]  }
  0x11   : > { %856 = vmatprep.subr.bf16.mxu1 %v3445_v9  ;;  %v3467_v24 = vld [vmem:[%s4935_s3 + $0x164] ss:$8 sps:$4 sm:$0xff]   ;;  %p346_p5 = scmp.lt.s32.totalorder %s3895_s19, 1  ;;  %p348_p6 = scmp.lt.s32.totalorder %s3891_s18, 5  ;;  %v3471_v26 = vld [vmem:[%s4935_s3 + $0x160] ss:$8 sps:$4 sm:$0xff]  }
  0x12   : > { %v3469_v25 = vld [vmem:[%s4935_s3 + $0x64] ss:$8 sps:$4 sm:$0xff]   ;;  %v3472_v27 = vld [vmem:[%s4935_s3 + $0x60] ss:$8 sps:$4 sm:$0xff]   ;;  %v3473_v28 = vld [vmem:[%s4935_s3 + $0x174] ss:$8 sps:$4 sm:$0xff]  }
  0x13   : > { %654 = vmatpush1.bf16.msra.mxu0 %v3447_v10  ;;  %v3475_v29 = vld [vmem:[%s4935_s3 + $0x74] ss:$8 sps:$4 sm:$0xff]   ;;  %s4949_s19 = smov (!%p346_p5, %s3895_s19), 1  ;;  %v3477_v30 = vld [vmem:[%s4935_s3 + $0x170] ss:$8 sps:$4 sm:$0xff]   ;;  %s355_s8 = sadd.s32 1, %s3891_s18 }
  0x14   : > { %857 = vmatpush1.bf16.msra.mxu1 %v3448_v11  ;;  %655 = vmatprep.subr.bf16.mxu0 %v3449_v12  ;;  %s349_s6 = scalar_select %p348_p6, %s3891_s18, 5  ;;  %v3478_v31 = vld [vmem:[%s4935_s3 + $0x70] ss:$8 sps:$4 sm:$0xff]   ;;  %v3479_v32 = vld [vmem:[%s4935_s3 + $0x184] ss:$8 sps:$4 sm:$0xff]  }
  0x15   : > { %858 = vmatprep.subr.bf16.mxu1 %v3451_v13  ;;  %v3481_v33 = vld [vmem:[%s4935_s3 + $0x84] ss:$8 sps:$4 sm:$0xff]   ;;  %s4082_s15 = smul.u32 12, %s4949_s19  ;;  %v3483_v34 = vld [vmem:[%s4935_s3 + $0x180] ss:$8 sps:$4 sm:$0xff]   ;;  %p358_p7 = scmp.lt.s32.totalorder %s355_s8, 5 }
  0x16   : > { %s2827_s16 = sshll.u32 %s349_s6, 1  ;;  %v3484_v35 = vld [vmem:[%s4935_s3 + $0x80] ss:$8 sps:$4 sm:$0xff]   ;;  %v3485_v36 = vld [vmem:[%s4935_s3 + $0x194] ss:$8 sps:$4 sm:$0xff]   ;;  %s366_s9 = sadd.s32 2, %s3891_s18 }
  0x17   : > { %656 = vmatpush1.bf16.msra.mxu0 %v3453_v14  ;;  %v3487_v37 = vld [vmem:[%s4935_s3 + $0x94] ss:$8 sps:$4 sm:$0xff]   ;;  %s352_s6 = sadd.s32 %s4082_s15, %s2827_s16  ;;  %v3489_v38 = vld [vmem:[%s4935_s3 + $0x190] ss:$8 sps:$4 sm:$0xff]   ;;  %v3491_v40 = vld [vmem:[%s4935_s3 + $0x1a4] ss:$8 sps:$4 sm:$0xff]  }
  0x18   : > { %859 = vmatpush1.bf16.msra.mxu1 %v3454_v15  ;;  %657 = vmatprep.subr.bf16.mxu0 %v3455_v16  ;;  %v3490_v39 = vld [vmem:[%s4935_s3 + $0x90] ss:$8 sps:$4 sm:$0xff]   ;;  %s2828_s14 = sshll.u32 %s352_s6, 2  ;;  %v3493_v41 = vld [vmem:[%s4935_s3 + $0xa4] ss:$8 sps:$4 sm:$0xff]   ;;  %s4951_s8 = smov (!%p358_p7, %s355_s8), 5 }
  0x19   : > { %860 = vmatprep.subr.bf16.mxu1 %v3457_v17  ;;  %v3495_v42 = vld [vmem:[%s4935_s3 + $0x1a0] ss:$8 sps:$4 sm:$0xff]   ;;  %s354_s7 = scalar_lea.vmem %s4932_s0, %s2828_s14  ;;  %v3497_v44 = vld [vmem:[%s4935_s3 + $0x1b4] ss:$8 sps:$4 sm:$0xff]   ;;  %v3501_v47 = vld [vmem:[%s4935_s3 + $0x1b0] ss:$8 sps:$4 sm:$0xff]  }
  0x1a   : > { %v3496_v43 = vld [vmem:[%s4935_s3 + $0xa0] ss:$8 sps:$4 sm:$0xff]   ;;  %v3499_v45 = vld [vmem:[%s4935_s3 + $0xb4] ss:$8 sps:$4 sm:$0xff]   ;;  %v3502_v49 = vld [vmem:[%s4935_s3 + $0xb0] ss:$8 sps:$4 sm:$0xff]  }
  0x1b   : > { %658 = vmatpush1.bf16.msra.mxu0 %v3459_v18  ;;  %v402_v46 = vld [vmem:[%s354_s7] sm:$0x77]  ;;  %v3509_v57 = vld [vmem:[%s4935_s3 + $0x1d4] ss:$8 sps:$4 sm:$0xff]   ;;  %v3513_v60 = vld [vmem:[%s4935_s3 + $0x1d0] ss:$8 sps:$4 sm:$0xff]  }
  0x1c   : > { %861 = vmatpush1.bf16.msra.mxu1 %v3460_v19  ;;  %659 = vmatprep.subr.bf16.mxu0 %v3461_v20  ;;  %v4127_v48 = vcombine.high %v402_v46, %v402_v46  ;;  %v3503_v50 = vld [vmem:[%s4935_s3 + $0x1c4] ss:$8 sps:$4 sm:$0xff]   ;;  %v3507_v54 = vld [vmem:[%s4935_s3 + $0x1c0] ss:$8 sps:$4 sm:$0xff]   ;;  %v3511_v58 = vld [vmem:[%s4935_s3 + $0xd4] ss:$8 sps:$4 sm:$0xff]   ;;  %v4159_v62 = vcombine.low %v402_v46, %v402_v46 }
  0x1d   : > { %862 = vmatprep.subr.bf16.mxu1 %v3463_v21  ;;  %v3505_v51 = vld [vmem:[%s4935_s3 + $0xc4] ss:$8 sps:$4 sm:$0xff]   ;;  %v3508_v55 = vld [vmem:[%s4935_s3 + $0xc0] ss:$8 sps:$4 sm:$0xff]   ;;  %v3514_v61 = vld [vmem:[%s4935_s3 + $0xd0] ss:$8 sps:$4 sm:$0xff]  }
  0x1e   : > { %v481_v52 = vshrl.u32 %v4127_v48, 16  ;;  %v483_v53 = vshll.u32 %v4127_v48, 16  ;;  %884 = vmatprep.mubr.bf16.mxu1 %v4127_v48  ;;  %v3515_v63 = vld [vmem:[%s4935_s3 + $0x1e4] ss:$8 sps:$4 sm:$0xff]   ;;  %v3519_v1 = vld [vmem:[%s4935_s3 + $0x1e0] ss:$8 sps:$4 sm:$0xff]  }
  0x1f   : > { %660 = vmatpush1.bf16.msra.mxu0 %v3465_v22  ;;  %v3517_v0 = vld [vmem:[%s4935_s3 + $0xe4] ss:$8 sps:$4 sm:$0xff]   ;;  %v3520_v2 = vld [vmem:[%s4935_s3 + $0xe0] ss:$8 sps:$4 sm:$0xff]   ;;  %v476_v3 = vshll.u32 %v4159_v62, 16  ;;  %v474_v8 = vshrl.u32 %v4159_v62, 16 }
  0x20   : > { %863 = vmatpush1.bf16.msra.mxu1 %v3466_v23  ;;  %661 = vmatprep.subr.bf16.mxu0 %v3467_v24  ;;  %v485_v56 = vrot.slane %v483_v53, 1  ;;  %v3521_v4 = vld [vmem:[%s4935_s3 + $0x1f4] ss:$8 sps:$4 sm:$0xff]   ;;  %v3525_v6 = vld [vmem:[%s4935_s3 + $0x1f0] ss:$8 sps:$4 sm:$0xff]   ;;  %v927_v17 = vrot.slane %v4127_v48, 1 }
  0x21   : > { %864 = vmatprep.subr.bf16.mxu1 %v3469_v25  ;;  %v3523_v5 = vld [vmem:[%s4935_s3 + $0xf4] ss:$8 sps:$4 sm:$0xff]   ;;  %v3526_v7 = vld [vmem:[%s4935_s3 + $0xf0] ss:$8 sps:$4 sm:$0xff]   ;;  %v478_v9 = vrot.slane %v476_v3, 1  ;;  %s2829_s17 = sshll.u32 %s4951_s8, 1 }
  0x22   : > { %v486_v59 = vor.u32 %v485_v56, %v481_v52  ;;  %v3531_v10 = vld [vmem:[%s4935_s3 + $0x204] ss:$8 sps:$4 sm:$0xff]   ;;  %v3529_v13 = vld [vmem:[%s4935_s3 + $0x200] ss:$8 sps:$4 sm:$0xff]   ;;  %v3537_v15 = vld [vmem:[%s4935_s3 + $0x214] ss:$8 sps:$4 sm:$0xff]   ;;  %s362_s30 = sadd.s32 %s4082_s15, %s2829_s17 }
  0x23   : > { %662 = vmatpush1.bf16.msra.mxu0 %v3471_v26  ;;  %v3534_v11 = vld [vmem:[%s4935_s3 + $0x304] ss:$8 sps:$4 sm:$0xff]   ;;  %v479_v12 = vor.u32 %v478_v9, %v474_v8  ;;  %v3532_v14 = vld [vmem:[%s4935_s3 + $0x300] ss:$8 sps:$4 sm:$0xff]   ;;  %v3540_v16 = vld [vmem:[%s4935_s3 + $0x314] ss:$8 sps:$4 sm:$0xff]  }
  0x24   : > { %865 = vmatpush1.bf16.msra.mxu1 %v3472_v27  ;;  %663 = vmatprep.subr.bf16.mxu0 %v3473_v28  ;;  %v3535_v18 = vld [vmem:[%s4935_s3 + $0x210] ss:$8 sps:$4 sm:$0xff]   ;;  %v3543_v20 = vld [vmem:[%s4935_s3 + $0x224] ss:$8 sps:$4 sm:$0xff]   ;;  %v3541_v22 = vld [vmem:[%s4935_s3 + $0x220] ss:$8 sps:$4 sm:$0xff]  }
  0x25   : > { %866 = vmatprep.subr.bf16.mxu1 %v3475_v29  ;;  %681 = vmatprep.mubr.bf16.mxu0 %v486_v59  ;;  %v3538_v19 = vld [vmem:[%s4935_s3 + $0x310] ss:$8 sps:$4 sm:$0xff]   ;;  %v3546_v21 = vld [vmem:[%s4935_s3 + $0x324] ss:$8 sps:$4 sm:$0xff]   ;;  %v3544_v23 = vld [vmem:[%s4935_s3 + $0x320] ss:$8 sps:$4 sm:$0xff]  }
  0x26   : > { %v3549_v24 = vld [vmem:[%s4935_s3 + $0x234] ss:$8 sps:$4 sm:$0xff]   ;;  %v3547_v26 = vld [vmem:[%s4935_s3 + $0x230] ss:$8 sps:$4 sm:$0xff]   ;;  %v3555_v28 = vld [vmem:[%s4935_s3 + $0x244] ss:$8 sps:$4 sm:$0xff]  }
  0x27   : > { %664 = vmatpush1.bf16.msra.mxu0 %v3477_v30  ;;  %v3552_v25 = vld [vmem:[%s4935_s3 + $0x334] ss:$8 sps:$4 sm:$0xff]   ;;  %v3550_v27 = vld [vmem:[%s4935_s3 + $0x330] ss:$8 sps:$4 sm:$0xff]   ;;  %v3558_v29 = vld [vmem:[%s4935_s3 + $0x344] ss:$8 sps:$4 sm:$0xff]  }
  0x28   : > { %867 = vmatpush1.bf16.msra.mxu1 %v3478_v31  ;;  %665 = vmatprep.subr.bf16.mxu0 %v3479_v32  ;;  %v3553_v30 = vld [vmem:[%s4935_s3 + $0x240] ss:$8 sps:$4 sm:$0xff]   ;;  %v3561_v32 = vld [vmem:[%s4935_s3 + $0x254] ss:$8 sps:$4 sm:$0xff]   ;;  %s2830_s10 = sshll.u32 %s362_s30, 2  ;;  %p369_p8 = scmp.lt.s32.totalorder %s366_s9, 5 }
  0x29   : > { %868 = vmatprep.subr.bf16.mxu1 %v3481_v33  ;;  %v3556_v31 = vld [vmem:[%s4935_s3 + $0x340] ss:$8 sps:$4 sm:$0xff]   ;;  %v3564_v33 = vld [vmem:[%s4935_s3 + $0x354] ss:$8 sps:$4 sm:$0xff]   ;;  %s364_s29 = scalar_lea.vmem %s4933_s1, %s2830_s10  ;;  %v3579_v46 = vld [vmem:[%s4935_s3 + $0x284] ss:$8 sps:$4 sm:$0xff]  }
  0x2a   : > { %v3577_v48 = vld [vmem:[%s4935_s3 + $0x280] ss:$8 sps:$4 sm:$0xff]   ;;  %v3583_v52 = vld [vmem:[%s4935_s3 + $0x290] ss:$8 sps:$4 sm:$0xff]   ;;  %v3600_v59 = vld [vmem:[%s4935_s3 + $0x3b4] ss:$8 sps:$4 sm:$0xff]  }
  0x2b   : > { %666 = vmatpush1.bf16.msra.mxu0 %v3483_v34  ;;  %v3559_v34 = vld [vmem:[%s4935_s3 + $0x250] ss:$8 sps:$4 sm:$0xff]   ;;  %v3589_v56 = vld [vmem:[%s4935_s3 + $0x2a0] ss:$8 sps:$4 sm:$0xff]   ;;  %v3609_v3 = vld [vmem:[%s4935_s3 + $0x2d4] ss:$8 sps:$4 sm:$0xff]  }
  0x2c   : > { %869 = vmatpush1.bf16.msra.mxu1 %v3484_v35  ;;  %667 = vmatprep.subr.bf16.mxu0 %v3485_v36  ;;  %v3562_v35 = vld [vmem:[%s4935_s3 + $0x350] ss:$8 sps:$4 sm:$0xff]   ;;  %v3567_v36 = vld [vmem:[%s4935_s3 + $0x264] ss:$8 sps:$4 sm:$0xff]   ;;  %v3613_v9 = vld [vmem:[%s4935_s3 + $0x2e0] ss:$8 sps:$4 sm:$0xff]  }
  0x2d   : > { %870 = vmatprep.subr.bf16.mxu1 %v3487_v37  ;;  %v3570_v37 = vld [vmem:[%s4935_s3 + $0x364] ss:$8 sps:$4 sm:$0xff]   ;;  %v3586_v53 = vld [vmem:[%s4935_s3 + $0x390] ss:$8 sps:$4 sm:$0xff]   ;;  %s4953_s9 = smov (!%p369_p8, %s366_s9), 5  ;;  %p391_p9 = scmp.lt.s32.totalorder %s3891_s18, 3 }
  0x2e   : > { %v3618_v8 = vld [vmem:[%s4935_s3 + $0x3e4] ss:$8 sps:$4 sm:$0xff]   ;;  %s2831_s25 = sshll.u32 %s4953_s9, 1  ;;  %s2834_s6 = sshll.u32 %s4949_s19, 3 }
  0x2f   : > { %668 = vmatpush1.bf16.msra.mxu0 %v3489_v38  ;;  %v3565_v38 = vld [vmem:[%s4935_s3 + $0x260] ss:$8 sps:$4 sm:$0xff]   ;;  %s373_s7 = sadd.s32 %s4082_s15, %s2831_s25  ;;  %s4955_s18 = smov (!%p391_p9, %s3891_s18), 3 }
  0x30   : > { %871 = vmatpush1.bf16.msra.mxu1 %v3490_v39  ;;  %669 = vmatprep.subr.bf16.mxu0 %v3491_v40  ;;  %v3568_v39 = vld [vmem:[%s4935_s3 + $0x360] ss:$8 sps:$4 sm:$0xff]   ;;  %s2832_s15 = sshll.u32 %s373_s7, 2  ;;  %s2833_s7 = sshll.u32 %s4955_s18, 1 }
  0x31   : > { %872 = vmatprep.subr.bf16.mxu1 %v3493_v41  ;;  %v4278_v40 = vld [vmem:[%s364_s29] sm:$0x77]  ;;  %v3573_v41 = vld [vmem:[%s4935_s3 + $0x274] ss:$8 sps:$4 sm:$0xff]   ;;  %s375_s9 = scalar_lea.vmem %s4934_s2, %s2832_s15  ;;  %s398_s8 = sadd.s32 %s2834_s6, %s2833_s7 }
  0x32   : > { %s2835_s11 = sshll.u32 %s398_s8, 1 }
  0x33   : > { %670 = vmatpush1.bf16.msra.mxu0 %v3495_v42  ;;  %v3576_v42 = vld [vmem:[%s4935_s3 + $0x374] ss:$8 sps:$4 sm:$0xff]   ;;  %s400_s18 = scalar_lea.vmem %s4937_s5, %s2835_s11 }
  0x34   : > { %873 = vmatpush1.bf16.msra.mxu1 %v3496_v43  ;;  %671 = vmatprep.subr.bf16.mxu0 %v3497_v44  ;;  %v4288_v43 = vcombine.high %v4278_v40, %v4278_v40  ;;  %v3571_v44 = vld [vmem:[%s4935_s3 + $0x270] ss:$8 sps:$4 sm:$0xff]  }
  0x35   : > { %874 = vmatprep.subr.bf16.mxu1 %v3499_v45  ;;  %v3574_v45 = vld [vmem:[%s4935_s3 + $0x370] ss:$8 sps:$4 sm:$0xff]  }
  0x37   : > { %672 = vmatpush1.bf16.msra.mxu0 %v3501_v47  ;;  %v3582_v47 = vld [vmem:[%s4935_s3 + $0x384] ss:$8 sps:$4 sm:$0xff]  }
  0x38   : > { %875 = vmatpush1.bf16.msra.mxu1 %v3502_v49  ;;  %673 = vmatprep.subr.bf16.mxu0 %v3503_v50  ;;  %v3580_v49 = vld [vmem:[%s4935_s3 + $0x380] ss:$8 sps:$4 sm:$0xff]   ;;  %v3585_v50 = vld [vmem:[%s4935_s3 + $0x294] ss:$8 sps:$4 sm:$0xff]  }
  0x39   : > { %876 = vmatprep.subr.bf16.mxu1 %v3505_v51  ;;  %v3588_v51 = vld [vmem:[%s4935_s3 + $0x394] ss:$8 sps:$4 sm:$0xff]  }
  0x3b   : > { %674 = vmatpush1.bf16.msra.mxu0 %v3507_v54  ;;  %v3591_v54 = vld [vmem:[%s4935_s3 + $0x2a4] ss:$8 sps:$4 sm:$0xff]  }
  0x3c   : > { %877 = vmatpush1.bf16.msra.mxu1 %v3508_v55  ;;  %675 = vmatprep.subr.bf16.mxu0 %v3509_v57  ;;  %v3594_v55 = vld [vmem:[%s4935_s3 + $0x3a4] ss:$8 sps:$4 sm:$0xff]   ;;  %v3592_v57 = vld [vmem:[%s4935_s3 + $0x3a0] ss:$8 sps:$4 sm:$0xff]  }
  0x3d   : > { %878 = vmatprep.subr.bf16.mxu1 %v3511_v58  ;;  %v3597_v58 = vld [vmem:[%s4935_s3 + $0x2b4] ss:$8 sps:$4 sm:$0xff]  }
  0x3f   : > { %676 = vmatpush1.bf16.msra.mxu0 %v3513_v60  ;;  %v3595_v60 = vld [vmem:[%s4935_s3 + $0x2b0] ss:$8 sps:$4 sm:$0xff]  }
  0x40   : > { %879 = vmatpush1.bf16.msra.mxu1 %v3514_v61  ;;  %677 = vmatprep.subr.bf16.mxu0 %v3515_v63  ;;  %v3598_v61 = vld [vmem:[%s4935_s3 + $0x3b0] ss:$8 sps:$4 sm:$0xff]   ;;  %v3603_v63 = vld [vmem:[%s4935_s3 + $0x2c4] ss:$8 sps:$4 sm:$0xff]  }
  0x41   : > { %880 = vmatprep.subr.bf16.mxu1 %v3517_v0  ;;  %v3606_v0 = vld [vmem:[%s4935_s3 + $0x3c4] ss:$8 sps:$4 sm:$0xff]  }
  0x43   : > { %678 = vmatpush1.bf16.msra.mxu0 %v3519_v1  ;;  %v3601_v1 = vld [vmem:[%s4935_s3 + $0x2c0] ss:$8 sps:$4 sm:$0xff]  }
  0x44   : > { %881 = vmatpush1.bf16.msra.mxu1 %v3520_v2  ;;  %679 = vmatprep.subr.bf16.mxu0 %v3521_v4  ;;  %v3604_v2 = vld [vmem:[%s4935_s3 + $0x3c0] ss:$8 sps:$4 sm:$0xff]   ;;  %v3612_v4 = vld [vmem:[%s4935_s3 + $0x3d4] ss:$8 sps:$4 sm:$0xff]  }
  0x45   : > { %882 = vmatprep.subr.bf16.mxu1 %v3523_v5  ;;  %v3607_v5 = vld [vmem:[%s4935_s3 + $0x2d0] ss:$8 sps:$4 sm:$0xff]  }
  0x47   : > { %680 = vmatpush1.bf16.msra.mxu0 %v3525_v6  ;;  %v3610_v6 = vld [vmem:[%s4935_s3 + $0x3d0] ss:$8 sps:$4 sm:$0xff]  }
  0x48   : > { %883 = vmatpush1.bf16.msra.mxu1 %v3526_v7  ;;  %1090 = vmatprep.subr.bf16.mxu0 %v3531_v10  ;;  %v3615_v7 = vld [vmem:[%s4935_s3 + $0x2e4] ss:$8 sps:$4 sm:$0xff]   ;;  %v3616_v10 = vld [vmem:[%s4935_s3 + $0x3e0] ss:$8 sps:$4 sm:$0xff]  }
  0x49   : > { %1334 = vmatprep.subr.bf16.mxu1 %v3534_v11  ;;  %v3621_v11 = vld [vmem:[%s4935_s3 + $0x2f4] ss:$8 sps:$4 sm:$0xff]  }
  0x4a   : > { %682 = vmatmul.mubr.bf16.vlgmr.msra.gmra.mrb[0].mxu0 %v479_v12  ;;  %v3624_v12 = vld [vmem:[%s4935_s3 + $0x3f4] ss:$8 sps:$4 sm:$0xff]  }
  0x4b   : > { %885 = vmatmul.mubr.bf16.vlgmr.msra.gmra.mrb[0].mxu1 %v4159_v62  ;;  %1091 = vmatpush1.bf16.msra.mxu0 %v3529_v13  ;;  %v1420_v13 = vshll.u32 %v4288_v43, 16 }
  0x4c   : > { %1335 = vmatpush1.bf16.msra.mxu1 %v3532_v14  ;;  %1092 = vmatprep.subr.bf16.mxu0 %v3537_v15  ;;  %v3619_v14 = vld [vmem:[%s4935_s3 + $0x2f0] ss:$8 sps:$4 sm:$0xff]  }
  0x4d   : > { %1336 = vmatprep.subr.bf16.mxu1 %v3540_v16  ;;  %1122 = vmatprep.mubr.bf16.mxu0 %v927_v17  ;;  %v3622_v15 = vld [vmem:[%s4935_s3 + $0x3f0] ss:$8 sps:$4 sm:$0xff]   ;;  %v3627_v16 = vld [vmem:[%s4935_s3 + $0x404] ss:$8 sps:$4 sm:$0xff]  }
  0x4e   : > { %1366 = vmatprep.mubr.bf16.mxu1 %v4288_v43  ;;  %v3632_v17 = vld [vmem:[%s4935_s3 + $0x504] ss:$8 sps:$4 sm:$0xff]  }
  0x4f   : > { %1093 = vmatpush1.bf16.msra.mxu0 %v3535_v18  ;;  %v1418_v18 = vshrl.u32 %v4288_v43, 16 }
  0x50   : > { %1337 = vmatpush1.bf16.msra.mxu1 %v3538_v19  ;;  %1094 = vmatprep.subr.bf16.mxu0 %v3543_v20  ;;  %v1422_v19 = vrot.slane %v1420_v13, 1  ;;  %v926_v20 = vrot.slane %v4159_v62, 1  ;;  %v3635_v62 = vld [vmem:[%s4935_s3 + $0x414] ss:$8 sps:$4 sm:$0xff]   ;;  %v3708_v13 = vld [vmem:[%s4935_s3 + $0x5d0] ss:$8 sps:$4 sm:$0xff]  }
  0x51   : > { %1338 = vmatprep.subr.bf16.mxu1 %v3546_v21  ;;  %v3625_v21 = vld [vmem:[%s4935_s3 + $0x400] ss:$8 sps:$4 sm:$0xff]  }
  0x53   : > { %1095 = vmatpush1.bf16.msra.mxu0 %v3541_v22  ;;  %v4407_v22 = vcombine.low %v4278_v40, %v4278_v40  ;;  %v3654_v40 = vld [vmem:[%s4935_s3 + $0x540] ss:$8 sps:$4 sm:$0xff]  }
  0x54   : > { %1339 = vmatpush1.bf16.msra.mxu1 %v3544_v23  ;;  %1096 = vmatprep.subr.bf16.mxu0 %v3549_v24  ;;  %v3630_v23 = vld [vmem:[%s4935_s3 + $0x500] ss:$8 sps:$4 sm:$0xff]   ;;  %v3638_v24 = vld [vmem:[%s4935_s3 + $0x514] ss:$8 sps:$4 sm:$0xff]  }
  0x55   : > { %1340 = vmatprep.subr.bf16.mxu1 %v3552_v25  ;;  %v1423_v25 = vor.u32 %v1422_v19, %v1418_v18  ;;  %v3711_v18 = vld [vmem:[%s4935_s3 + $0x4e0] ss:$8 sps:$4 sm:$0xff]  }
  0x56   : > { %v3714_v19 = vld [vmem:[%s4935_s3 + $0x5e0] ss:$8 sps:$4 sm:$0xff]  }
  0x57   : > { %1097 = vmatpush1.bf16.msra.mxu0 %v3547_v26  ;;  %v1663_v26 = vrot.slane %v4288_v43, 1  ;;  %v3657_v43 = vld [vmem:[%s4935_s3 + $0x450] ss:$8 sps:$4 sm:$0xff]  }
  0x58   : > { %1341 = vmatpush1.bf16.msra.mxu1 %v3550_v27  ;;  %1098 = vmatprep.subr.bf16.mxu0 %v3555_v28  ;;  %v3633_v27 = vld [vmem:[%s4935_s3 + $0x410] ss:$8 sps:$4 sm:$0xff]  }
  0x59   : > { %1342 = vmatprep.subr.bf16.mxu1 %v3558_v29  ;;  %v3636_v28 = vld [vmem:[%s4935_s3 + $0x510] ss:$8 sps:$4 sm:$0xff]   ;;  %v3641_v29 = vld [vmem:[%s4935_s3 + $0x424] ss:$8 sps:$4 sm:$0xff]  }
  0x5b   : > { %1099 = vmatpush1.bf16.msra.mxu0 %v3553_v30  ;;  %v3644_v30 = vld [vmem:[%s4935_s3 + $0x524] ss:$8 sps:$4 sm:$0xff]  }
  0x5c   : > { %1343 = vmatpush1.bf16.msra.mxu1 %v3556_v31  ;;  %1100 = vmatprep.subr.bf16.mxu0 %v3561_v32  ;;  %v3639_v31 = vld [vmem:[%s4935_s3 + $0x420] ss:$8 sps:$4 sm:$0xff]  }
  0x5d   : > { %1344 = vmatprep.subr.bf16.mxu1 %v3564_v33  ;;  %v3642_v32 = vld [vmem:[%s4935_s3 + $0x520] ss:$8 sps:$4 sm:$0xff]   ;;  %v3647_v33 = vld [vmem:[%s4935_s3 + $0x434] ss:$8 sps:$4 sm:$0xff]  }
  0x5f   : > { %1101 = vmatpush1.bf16.msra.mxu0 %v3559_v34  ;;  %v3650_v34 = vld [vmem:[%s4935_s3 + $0x534] ss:$8 sps:$4 sm:$0xff]  }
  0x60   : > { %1345 = vmatpush1.bf16.msra.mxu1 %v3562_v35  ;;  %1102 = vmatprep.subr.bf16.mxu0 %v3567_v36  ;;  %v3645_v35 = vld [vmem:[%s4935_s3 + $0x430] ss:$8 sps:$4 sm:$0xff]  }
  0x61   : > { %1346 = vmatprep.subr.bf16.mxu1 %v3570_v37  ;;  %v3648_v36 = vld [vmem:[%s4935_s3 + $0x530] ss:$8 sps:$4 sm:$0xff]   ;;  %v3653_v37 = vld [vmem:[%s4935_s3 + $0x444] ss:$8 sps:$4 sm:$0xff]  }
  0x63   : > { %1103 = vmatpush1.bf16.msra.mxu0 %v3565_v38  ;;  %v3656_v38 = vld [vmem:[%s4935_s3 + $0x544] ss:$8 sps:$4 sm:$0xff]  }
  0x64   : > { %1347 = vmatpush1.bf16.msra.mxu1 %v3568_v39  ;;  %1104 = vmatprep.subr.bf16.mxu0 %v3573_v41  ;;  %v3651_v39 = vld [vmem:[%s4935_s3 + $0x440] ss:$8 sps:$4 sm:$0xff]   ;;  %v3659_v41 = vld [vmem:[%s4935_s3 + $0x454] ss:$8 sps:$4 sm:$0xff]  }
  0x65   : > { %1348 = vmatprep.subr.bf16.mxu1 %v3576_v42  ;;  %v3662_v42 = vld [vmem:[%s4935_s3 + $0x554] ss:$8 sps:$4 sm:$0xff]  }
  0x67   : > { %1105 = vmatpush1.bf16.msra.mxu0 %v3571_v44  ;;  %v3660_v44 = vld [vmem:[%s4935_s3 + $0x550] ss:$8 sps:$4 sm:$0xff]  }
  0x68   : > { %1349 = vmatpush1.bf16.msra.mxu1 %v3574_v45  ;;  %1106 = vmatprep.subr.bf16.mxu0 %v3579_v46  ;;  %v3665_v45 = vld [vmem:[%s4935_s3 + $0x464] ss:$8 sps:$4 sm:$0xff]  }
  0x69   : > { %1350 = vmatprep.subr.bf16.mxu1 %v3582_v47  ;;  %v3668_v46 = vld [vmem:[%s4935_s3 + $0x564] ss:$8 sps:$4 sm:$0xff]   ;;  %v3663_v47 = vld [vmem:[%s4935_s3 + $0x460] ss:$8 sps:$4 sm:$0xff]  }
  0x6b   : > { %1107 = vmatpush1.bf16.msra.mxu0 %v3577_v48  ;;  %v3666_v48 = vld [vmem:[%s4935_s3 + $0x560] ss:$8 sps:$4 sm:$0xff]  }
  0x6c   : > { %1351 = vmatpush1.bf16.msra.mxu1 %v3580_v49  ;;  %1108 = vmatprep.subr.bf16.mxu0 %v3585_v50  ;;  %v3671_v49 = vld [vmem:[%s4935_s3 + $0x474] ss:$8 sps:$4 sm:$0xff]  }
  0x6d   : > { %1352 = vmatprep.subr.bf16.mxu1 %v3588_v51  ;;  %v3674_v50 = vld [vmem:[%s4935_s3 + $0x574] ss:$8 sps:$4 sm:$0xff]   ;;  %v3669_v51 = vld [vmem:[%s4935_s3 + $0x470] ss:$8 sps:$4 sm:$0xff]  }
  0x6f   : > { %1109 = vmatpush1.bf16.msra.mxu0 %v3583_v52  ;;  %v3672_v52 = vld [vmem:[%s4935_s3 + $0x570] ss:$8 sps:$4 sm:$0xff]  }
  0x70   : > { %1353 = vmatpush1.bf16.msra.mxu1 %v3586_v53  ;;  %1110 = vmatprep.subr.bf16.mxu0 %v3591_v54  ;;  %v3677_v53 = vld [vmem:[%s4935_s3 + $0x484] ss:$8 sps:$4 sm:$0xff]  }
  0x71   : > { %1354 = vmatprep.subr.bf16.mxu1 %v3594_v55  ;;  %v3680_v54 = vld [vmem:[%s4935_s3 + $0x584] ss:$8 sps:$4 sm:$0xff]   ;;  %v3675_v55 = vld [vmem:[%s4935_s3 + $0x480] ss:$8 sps:$4 sm:$0xff]  }
  0x73   : > { %1111 = vmatpush1.bf16.msra.mxu0 %v3589_v56  ;;  %v3678_v56 = vld [vmem:[%s4935_s3 + $0x580] ss:$8 sps:$4 sm:$0xff]  }
  0x74   : > { %1355 = vmatpush1.bf16.msra.mxu1 %v3592_v57  ;;  %1112 = vmatprep.subr.bf16.mxu0 %v3597_v58  ;;  %v3683_v57 = vld [vmem:[%s4935_s3 + $0x494] ss:$8 sps:$4 sm:$0xff]  }
  0x75   : > { %1356 = vmatprep.subr.bf16.mxu1 %v3600_v59  ;;  %v3686_v58 = vld [vmem:[%s4935_s3 + $0x594] ss:$8 sps:$4 sm:$0xff]   ;;  %v3681_v59 = vld [vmem:[%s4935_s3 + $0x490] ss:$8 sps:$4 sm:$0xff]  }
  0x77   : > { %1113 = vmatpush1.bf16.msra.mxu0 %v3595_v60  ;;  %v3684_v60 = vld [vmem:[%s4935_s3 + $0x590] ss:$8 sps:$4 sm:$0xff]  }
  0x78   : > { %1357 = vmatpush1.bf16.msra.mxu1 %v3598_v61  ;;  %1114 = vmatprep.subr.bf16.mxu0 %v3603_v63  ;;  %v3689_v61 = vld [vmem:[%s4935_s3 + $0x4a4] ss:$8 sps:$4 sm:$0xff]  }
  0x79   : > { %1358 = vmatprep.subr.bf16.mxu1 %v3606_v0  ;;  %v3692_v63 = vld [vmem:[%s4935_s3 + $0x5a4] ss:$8 sps:$4 sm:$0xff]   ;;  %v3687_v0 = vld [vmem:[%s4935_s3 + $0x4a0] ss:$8 sps:$4 sm:$0xff]  }
  0x7b   : > { %1115 = vmatpush1.bf16.msra.mxu0 %v3601_v1  ;;  %v3690_v1 = vld [vmem:[%s4935_s3 + $0x5a0] ss:$8 sps:$4 sm:$0xff]  }
  0x7c   : > { %1359 = vmatpush1.bf16.msra.mxu1 %v3604_v2  ;;  %1116 = vmatprep.subr.bf16.mxu0 %v3609_v3  ;;  %v3695_v2 = vld [vmem:[%s4935_s3 + $0x4b4] ss:$8 sps:$4 sm:$0xff]  }
  0x7d   : > { %1360 = vmatprep.subr.bf16.mxu1 %v3612_v4  ;;  %v3698_v3 = vld [vmem:[%s4935_s3 + $0x5b4] ss:$8 sps:$4 sm:$0xff]   ;;  %v3693_v4 = vld [vmem:[%s4935_s3 + $0x4b0] ss:$8 sps:$4 sm:$0xff]  }
  0x7f   : > { %1117 = vmatpush1.bf16.msra.mxu0 %v3607_v5  ;;  %v3696_v5 = vld [vmem:[%s4935_s3 + $0x5b0] ss:$8 sps:$4 sm:$0xff]  }
  0x80   : > { %1361 = vmatpush1.bf16.msra.mxu1 %v3610_v6  ;;  %1118 = vmatprep.subr.bf16.mxu0 %v3615_v7  ;;  %v3701_v6 = vld [vmem:[%s4935_s3 + $0x4c4] ss:$8 sps:$4 sm:$0xff]  }
  0x81   : > { %1362 = vmatprep.subr.bf16.mxu1 %v3618_v8  ;;  %v3704_v7 = vld [vmem:[%s4935_s3 + $0x5c4] ss:$8 sps:$4 sm:$0xff]   ;;  %v3699_v8 = vld [vmem:[%s4935_s3 + $0x4c0] ss:$8 sps:$4 sm:$0xff]  }
  0x83   : > { %1119 = vmatpush1.bf16.msra.mxu0 %v3613_v9  ;;  %v3702_v9 = vld [vmem:[%s4935_s3 + $0x5c0] ss:$8 sps:$4 sm:$0xff]  }
  0x84   : > { %1363 = vmatpush1.bf16.msra.mxu1 %v3616_v10  ;;  %1120 = vmatprep.subr.bf16.mxu0 %v3621_v11  ;;  %v3707_v10 = vld [vmem:[%s4935_s3 + $0x4d4] ss:$8 sps:$4 sm:$0xff]  }
  0x85   : > { %1364 = vmatprep.subr.bf16.mxu1 %v3624_v12  ;;  %v3710_v11 = vld [vmem:[%s4935_s3 + $0x5d4] ss:$8 sps:$4 sm:$0xff]   ;;  %v3705_v12 = vld [vmem:[%s4935_s3 + $0x4d0] ss:$8 sps:$4 sm:$0xff]  }
  0x87   : > { %1121 = vmatpush1.bf16.msra.mxu0 %v3619_v14  ;;  %v4575_v14 = vld [vmem:[%s375_s9] sm:$0x77] }
  0x88   : > { %1365 = vmatpush1.bf16.msra.mxu1 %v3622_v15  ;;  %1586 = vmatprep.subr.bf16.mxu0 %v3627_v16  ;;  %v3713_v15 = vld [vmem:[%s4935_s3 + $0x4e4] ss:$8 sps:$4 sm:$0xff]  }
  0x89   : > { %1826 = vmatprep.subr.bf16.mxu1 %v3632_v17  ;;  %v3716_v16 = vld [vmem:[%s4935_s3 + $0x5e4] ss:$8 sps:$4 sm:$0xff]   ;;  %v4585_v17 = vcombine.high %v4575_v14, %v4575_v14 }
  0x8a   : > { %1123 = vmatmul.mubr.bf16.vlgmr.msra.gmra.mrb[4].mxu0 %v926_v20  ;;  %v1413_v20 = vshll.u32 %v4407_v22, 16 }
  0x8b   : > { %1367 = vmatmul.mubr.bf16.vlgmr.msra.gmra.mrb[4].mxu1 %v4407_v22  ;;  %1587 = vmatpush1.bf16.msra.mxu0 %v3625_v21  ;;  %v3719_v21 = vld [vmem:[%s4935_s3 + $0x4f4] ss:$8 sps:$4 sm:$0xff]  }
  0x8c   : > { %1827 = vmatpush1.bf16.msra.mxu1 %v3630_v23  ;;  %1588 = vmatprep.subr.bf16.mxu0 %v3635_v62  ;;  %v3722_v23 = vld [vmem:[%s4935_s3 + $0x5f4] ss:$8 sps:$4 sm:$0xff]   ;;  %v1411_v62 = vshrl.u32 %v4407_v22, 16 }
  0x8d   : > { %1828 = vmatprep.subr.bf16.mxu1 %v3638_v24  ;;  %1618 = vmatprep.mubr.bf16.mxu0 %v1423_v25  ;;  %v2156_v24 = vshll.u32 %v4585_v17, 16  ;;  %v3717_v25 = vld [vmem:[%s4935_s3 + $0x4f0] ss:$8 sps:$4 sm:$0xff]  }
  0x8e   : > { %1858 = vmatprep.mubr.bf16.mxu1 %v1663_v26  ;;  %v3720_v26 = vld [vmem:[%s4935_s3 + $0x5f0] ss:$8 sps:$4 sm:$0xff]  }
  0x8f   : > { %1589 = vmatpush1.bf16.msra.mxu0 %v3633_v27  ;;  %v1415_v27 = vrot.slane %v1413_v20, 1  ;;  %v3800_v20 = vld [vmem:[%s4935_s3 + $0x7c4] ss:$8 sps:$4 sm:$0xff]  }
  0x90   : > { %1829 = vmatpush1.bf16.msra.mxu1 %v3636_v28  ;;  %1590 = vmatprep.subr.bf16.mxu0 %v3641_v29  ;;  %v3725_v28 = vld [vmem:[%s4935_s3 + $0x604] ss:$8 sps:$4 sm:$0xff]  }
  0x91   : > { %1830 = vmatprep.subr.bf16.mxu1 %v3644_v30  ;;  %v3728_v29 = vld [vmem:[%s4935_s3 + $0x704] ss:$8 sps:$4 sm:$0xff]   ;;  %v2154_v30 = vshrl.u32 %v4585_v17, 16 }
  0x93   : > { %1591 = vmatpush1.bf16.msra.mxu0 %v3639_v31  ;;  %v2158_v31 = vrot.slane %v2156_v24, 1  ;;  %v3806_v24 = vld [vmem:[%s4935_s3 + $0x7d4] ss:$8 sps:$4 sm:$0xff]  }
  0x94   : > { %1831 = vmatpush1.bf16.msra.mxu1 %v3642_v32  ;;  %1592 = vmatprep.subr.bf16.mxu0 %v3647_v33  ;;  %v1416_v32 = vor.u32 %v1415_v27, %v1411_v62  ;;  %v3723_v33 = vld [vmem:[%s4935_s3 + $0x600] ss:$8 sps:$4 sm:$0xff]   ;;  %v3803_v62 = vld [vmem:[%s4935_s3 + $0x6d4] ss:$8 sps:$4 sm:$0xff]   ;;  %v3804_v27 = vld [vmem:[%s4935_s3 + $0x7d0] ss:$8 sps:$4 sm:$0xff]  }
  0x95   : > { %1832 = vmatprep.subr.bf16.mxu1 %v3650_v34  ;;  %v1662_v34 = vrot.slane %v4407_v22, 1  ;;  %v3729_v22 = vld [vmem:[%s4935_s3 + $0x610] ss:$8 sps:$4 sm:$0xff]  }
  0x97   : > { %1593 = vmatpush1.bf16.msra.mxu0 %v3645_v35  ;;  %v3726_v35 = vld [vmem:[%s4935_s3 + $0x700] ss:$8 sps:$4 sm:$0xff]  }
  0x98   : > { %1833 = vmatpush1.bf16.msra.mxu1 %v3648_v36  ;;  %1594 = vmatprep.subr.bf16.mxu0 %v3653_v37  ;;  %v3731_v36 = vld [vmem:[%s4935_s3 + $0x614] ss:$8 sps:$4 sm:$0xff]  }
  0x99   : > { %1834 = vmatprep.subr.bf16.mxu1 %v3656_v38  ;;  %v3734_v37 = vld [vmem:[%s4935_s3 + $0x714] ss:$8 sps:$4 sm:$0xff]   ;;  %v2159_v38 = vor.u32 %v2158_v31, %v2154_v30  ;;  %v3807_v30 = vld [vmem:[%s4935_s3 + $0x6e0] ss:$8 sps:$4 sm:$0xff]  }
  0x9a   : > { %v3810_v31 = vld [vmem:[%s4935_s3 + $0x7e0] ss:$8 sps:$4 sm:$0xff]  }
  0x9b   : > { %1595 = vmatpush1.bf16.msra.mxu0 %v3651_v39  ;;  %v3732_v39 = vld [vmem:[%s4935_s3 + $0x710] ss:$8 sps:$4 sm:$0xff]  }
  0x9c   : > { %1835 = vmatpush1.bf16.msra.mxu1 %v3654_v40  ;;  %1596 = vmatprep.subr.bf16.mxu0 %v3659_v41  ;;  %v3737_v40 = vld [vmem:[%s4935_s3 + $0x624] ss:$8 sps:$4 sm:$0xff]  }
  0x9d   : > { %1836 = vmatprep.subr.bf16.mxu1 %v3662_v42  ;;  %v3740_v41 = vld [vmem:[%s4935_s3 + $0x724] ss:$8 sps:$4 sm:$0xff]   ;;  %v3735_v42 = vld [vmem:[%s4935_s3 + $0x620] ss:$8 sps:$4 sm:$0xff]  }
  0x9f   : > { %1597 = vmatpush1.bf16.msra.mxu0 %v3657_v43  ;;  %v3738_v43 = vld [vmem:[%s4935_s3 + $0x720] ss:$8 sps:$4 sm:$0xff]  }
  0xa0   : > { %1837 = vmatpush1.bf16.msra.mxu1 %v3660_v44  ;;  %1598 = vmatprep.subr.bf16.mxu0 %v3665_v45  ;;  %v3743_v44 = vld [vmem:[%s4935_s3 + $0x634] ss:$8 sps:$4 sm:$0xff]  }
  0xa1   : > { %1838 = vmatprep.subr.bf16.mxu1 %v3668_v46  ;;  %v3746_v45 = vld [vmem:[%s4935_s3 + $0x734] ss:$8 sps:$4 sm:$0xff]   ;;  %v3741_v46 = vld [vmem:[%s4935_s3 + $0x630] ss:$8 sps:$4 sm:$0xff]  }
  0xa3   : > { %1599 = vmatpush1.bf16.msra.mxu0 %v3663_v47  ;;  %v3744_v47 = vld [vmem:[%s4935_s3 + $0x730] ss:$8 sps:$4 sm:$0xff]  }
  0xa4   : > { %1839 = vmatpush1.bf16.msra.mxu1 %v3666_v48  ;;  %1600 = vmatprep.subr.bf16.mxu0 %v3671_v49  ;;  %v3749_v48 = vld [vmem:[%s4935_s3 + $0x644] ss:$8 sps:$4 sm:$0xff]  }
  0xa5   : > { %1840 = vmatprep.subr.bf16.mxu1 %v3674_v50  ;;  %v3752_v49 = vld [vmem:[%s4935_s3 + $0x744] ss:$8 sps:$4 sm:$0xff]   ;;  %v3747_v50 = vld [vmem:[%s4935_s3 + $0x640] ss:$8 sps:$4 sm:$0xff]  }
  0xa7   : > { %1601 = vmatpush1.bf16.msra.mxu0 %v3669_v51  ;;  %v3750_v51 = vld [vmem:[%s4935_s3 + $0x740] ss:$8 sps:$4 sm:$0xff]  }
  0xa8   : > { %1841 = vmatpush1.bf16.msra.mxu1 %v3672_v52  ;;  %1602 = vmatprep.subr.bf16.mxu0 %v3677_v53  ;;  %v3755_v52 = vld [vmem:[%s4935_s3 + $0x654] ss:$8 sps:$4 sm:$0xff]  }
  0xa9   : > { %1842 = vmatprep.subr.bf16.mxu1 %v3680_v54  ;;  %v3758_v53 = vld [vmem:[%s4935_s3 + $0x754] ss:$8 sps:$4 sm:$0xff]   ;;  %v3753_v54 = vld [vmem:[%s4935_s3 + $0x650] ss:$8 sps:$4 sm:$0xff]  }
  0xab   : > { %1603 = vmatpush1.bf16.msra.mxu0 %v3675_v55  ;;  %v3756_v55 = vld [vmem:[%s4935_s3 + $0x750] ss:$8 sps:$4 sm:$0xff]  }
  0xac   : > { %1843 = vmatpush1.bf16.msra.mxu1 %v3678_v56  ;;  %1604 = vmatprep.subr.bf16.mxu0 %v3683_v57  ;;  %v3761_v56 = vld [vmem:[%s4935_s3 + $0x664] ss:$8 sps:$4 sm:$0xff]  }
  0xad   : > { %1844 = vmatprep.subr.bf16.mxu1 %v3686_v58  ;;  %v3764_v57 = vld [vmem:[%s4935_s3 + $0x764] ss:$8 sps:$4 sm:$0xff]   ;;  %v3759_v58 = vld [vmem:[%s4935_s3 + $0x660] ss:$8 sps:$4 sm:$0xff]  }
  0xaf   : > { %1605 = vmatpush1.bf16.msra.mxu0 %v3681_v59  ;;  %v3762_v59 = vld [vmem:[%s4935_s3 + $0x760] ss:$8 sps:$4 sm:$0xff]  }
  0xb0   : > { %1845 = vmatpush1.bf16.msra.mxu1 %v3684_v60  ;;  %1606 = vmatprep.subr.bf16.mxu0 %v3689_v61  ;;  %v3767_v60 = vld [vmem:[%s4935_s3 + $0x674] ss:$8 sps:$4 sm:$0xff]  }
  0xb1   : > { %1846 = vmatprep.subr.bf16.mxu1 %v3692_v63  ;;  %v3770_v61 = vld [vmem:[%s4935_s3 + $0x774] ss:$8 sps:$4 sm:$0xff]   ;;  %v3765_v63 = vld [vmem:[%s4935_s3 + $0x670] ss:$8 sps:$4 sm:$0xff]  }
  0xb3   : > { %1607 = vmatpush1.bf16.msra.mxu0 %v3687_v0  ;;  %v3768_v0 = vld [vmem:[%s4935_s3 + $0x770] ss:$8 sps:$4 sm:$0xff]  }
  0xb4   : > { %1847 = vmatpush1.bf16.msra.mxu1 %v3690_v1  ;;  %1608 = vmatprep.subr.bf16.mxu0 %v3695_v2  ;;  %v3773_v1 = vld [vmem:[%s4935_s3 + $0x684] ss:$8 sps:$4 sm:$0xff]  }
  0xb5   : > { %1848 = vmatprep.subr.bf16.mxu1 %v3698_v3  ;;  %v3776_v2 = vld [vmem:[%s4935_s3 + $0x784] ss:$8 sps:$4 sm:$0xff]   ;;  %v3771_v3 = vld [vmem:[%s4935_s3 + $0x680] ss:$8 sps:$4 sm:$0xff]  }
  0xb7   : > { %1609 = vmatpush1.bf16.msra.mxu0 %v3693_v4  ;;  %v3774_v4 = vld [vmem:[%s4935_s3 + $0x780] ss:$8 sps:$4 sm:$0xff]  }
  0xb8   : > { %1849 = vmatpush1.bf16.msra.mxu1 %v3696_v5  ;;  %1610 = vmatprep.subr.bf16.mxu0 %v3701_v6  ;;  %v3779_v5 = vld [vmem:[%s4935_s3 + $0x694] ss:$8 sps:$4 sm:$0xff]  }
  0xb9   : > { %1850 = vmatprep.subr.bf16.mxu1 %v3704_v7  ;;  %v3782_v6 = vld [vmem:[%s4935_s3 + $0x794] ss:$8 sps:$4 sm:$0xff]   ;;  %v3777_v7 = vld [vmem:[%s4935_s3 + $0x690] ss:$8 sps:$4 sm:$0xff]  }
  0xbb   : > { %1611 = vmatpush1.bf16.msra.mxu0 %v3699_v8  ;;  %v3780_v8 = vld [vmem:[%s4935_s3 + $0x790] ss:$8 sps:$4 sm:$0xff]  }
  0xbc   : > { %1851 = vmatpush1.bf16.msra.mxu1 %v3702_v9  ;;  %1612 = vmatprep.subr.bf16.mxu0 %v3707_v10  ;;  %v3785_v9 = vld [vmem:[%s4935_s3 + $0x6a4] ss:$8 sps:$4 sm:$0xff]  }
  0xbd   : > { %1852 = vmatprep.subr.bf16.mxu1 %v3710_v11  ;;  %v3788_v10 = vld [vmem:[%s4935_s3 + $0x7a4] ss:$8 sps:$4 sm:$0xff]   ;;  %v3783_v11 = vld [vmem:[%s4935_s3 + $0x6a0] ss:$8 sps:$4 sm:$0xff]  }
  0xbf   : > { %1613 = vmatpush1.bf16.msra.mxu0 %v3705_v12  ;;  %v3786_v12 = vld [vmem:[%s4935_s3 + $0x7a0] ss:$8 sps:$4 sm:$0xff]  }
  0xc0   : > { %1853 = vmatpush1.bf16.msra.mxu1 %v3708_v13  ;;  %1614 = vmatprep.subr.bf16.mxu0 %v3713_v15  ;;  %v3791_v13 = vld [vmem:[%s4935_s3 + $0x6b4] ss:$8 sps:$4 sm:$0xff]  }
  0xc1   : > { %1854 = vmatprep.subr.bf16.mxu1 %v3716_v16  ;;  %v3794_v15 = vld [vmem:[%s4935_s3 + $0x7b4] ss:$8 sps:$4 sm:$0xff]   ;;  %v3789_v16 = vld [vmem:[%s4935_s3 + $0x6b0] ss:$8 sps:$4 sm:$0xff]  }
  0xc3   : > { %1615 = vmatpush1.bf16.msra.mxu0 %v3711_v18  ;;  %v3792_v18 = vld [vmem:[%s4935_s3 + $0x7b0] ss:$8 sps:$4 sm:$0xff]  }
  0xc4   : > { %1855 = vmatpush1.bf16.msra.mxu1 %v3714_v19  ;;  %1616 = vmatprep.subr.bf16.mxu0 %v3719_v21  ;;  %v3797_v19 = vld [vmem:[%s4935_s3 + $0x6c4] ss:$8 sps:$4 sm:$0xff]   ;;  %v3795_v21 = vld [vmem:[%s4935_s3 + $0x6c0] ss:$8 sps:$4 sm:$0xff]  }
  0xc5   : > { %1856 = vmatprep.subr.bf16.mxu1 %v3722_v23  ;;  %v3798_v23 = vld [vmem:[%s4935_s3 + $0x7c0] ss:$8 sps:$4 sm:$0xff]  }
  0xc7   : > { %1617 = vmatpush1.bf16.msra.mxu0 %v3717_v25  ;;  %v4775_v25 = vcombine.low %v4575_v14, %v4575_v14  ;;  %v3812_v14 = vld [vmem:[%s4935_s3 + $0x7e4] ss:$8 sps:$4 sm:$0xff]  }
  0xc8   : > { %1857 = vmatpush1.bf16.msra.mxu1 %v3720_v26  ;;  %2070 = vmatprep.subr.bf16.mxu0 %v3725_v28  ;;  %v3801_v26 = vld [vmem:[%s4935_s3 + $0x6d0] ss:$8 sps:$4 sm:$0xff]   ;;  %v3809_v28 = vld [vmem:[%s4935_s3 + $0x6e4] ss:$8 sps:$4 sm:$0xff]  }
  0xc9   : > { %2322 = vmatprep.subr.bf16.mxu1 %v3728_v29  ;;  %v2149_v29 = vshll.u32 %v4775_v25, 16 }
  0xca   : > { %1619 = vmatmul.mubr.bf16.vlgmr.msra.gmra.mrb[8].mxu0 %v1416_v32  ;;  %v3815_v32 = vld [vmem:[%s4935_s3 + $0x6f4] ss:$8 sps:$4 sm:$0xff]  }
  0xcb   : > { %1859 = vmatmul.mubr.bf16.vlgmr.msra.gmra.mrb[8].mxu1 %v1662_v34  ;;  %2071 = vmatpush1.bf16.msra.mxu0 %v3723_v33  ;;  %v3818_v33 = vld [vmem:[%s4935_s3 + $0x7f4] ss:$8 sps:$4 sm:$0xff]   ;;  %v2147_v34 = vshrl.u32 %v4775_v25, 16 }
  0xcc   : > { %2323 = vmatpush1.bf16.msra.mxu1 %v3726_v35  ;;  %2072 = vmatprep.subr.bf16.mxu0 %v3731_v36  ;;  %v2151_v35 = vrot.slane %v2149_v29, 1  ;;  %v3813_v36 = vld [vmem:[%s4935_s3 + $0x6f0] ss:$8 sps:$4 sm:$0xff]  }
  0xcd   : > { %2324 = vmatprep.subr.bf16.mxu1 %v3734_v37  ;;  %2102 = vmatprep.mubr.bf16.mxu0 %v4585_v17  ;;  %v3816_v37 = vld [vmem:[%s4935_s3 + $0x7f0] ss:$8 sps:$4 sm:$0xff]  }
  0xce   : > { %2354 = vmatprep.mubr.bf16.mxu1 %v2159_v38  ;;  %v3823_v38 = vld [vmem:[%s4935_s3 + $0x804] ss:$8 sps:$4 sm:$0xff]  }
  0xcf   : > { %2073 = vmatpush1.bf16.msra.mxu0 %v3729_v22  ;;  %v2152_v22 = vor.u32 %v2151_v35, %v2147_v34 }
  0xd0   : > { %2325 = vmatpush1.bf16.msra.mxu1 %v3732_v39  ;;  %2074 = vmatprep.subr.bf16.mxu0 %v3737_v40  ;;  %v3821_v39 = vld [vmem:[%s4935_s3 + $0x800] ss:$8 sps:$4 sm:$0xff]   ;;  %v2399_v40 = vrot.slane %v4585_v17, 1 }
  0xd1   : > { %2326 = vmatprep.subr.bf16.mxu1 %v3740_v41  ;;  %v3826_v41 = vld [vmem:[%s4935_s3 + $0x814] ss:$8 sps:$4 sm:$0xff]   ;;  %v3827_v17 = vld [vmem:[%s4935_s3 + $0x820] ss:$8 sps:$4 sm:$0xff]  }
  0xd3   : > { %2075 = vmatpush1.bf16.msra.mxu0 %v3735_v42  ;;  %v3824_v42 = vld [vmem:[%s4935_s3 + $0x810] ss:$8 sps:$4 sm:$0xff]  }
  0xd4   : > { %2327 = vmatpush1.bf16.msra.mxu1 %v3738_v43  ;;  %2076 = vmatprep.subr.bf16.mxu0 %v3743_v44  ;;  %v3829_v43 = vld [vmem:[%s4935_s3 + $0x824] ss:$8 sps:$4 sm:$0xff]   ;;  %v3832_v44 = vld [vmem:[%s4935_s3 + $0x834] ss:$8 sps:$4 sm:$0xff]  }
  0xd5   : > { %2328 = vmatprep.subr.bf16.mxu1 %v3746_v45  ;;  %v3830_v45 = vld [vmem:[%s4935_s3 + $0x830] ss:$8 sps:$4 sm:$0xff]  }
  0xd7   : > { %2077 = vmatpush1.bf16.msra.mxu0 %v3741_v46  ;;  %v3835_v46 = vld [vmem:[%s4935_s3 + $0x844] ss:$8 sps:$4 sm:$0xff]  }
  0xd8   : > { %2329 = vmatpush1.bf16.msra.mxu1 %v3744_v47  ;;  %2078 = vmatprep.subr.bf16.mxu0 %v3749_v48  ;;  %v3833_v47 = vld [vmem:[%s4935_s3 + $0x840] ss:$8 sps:$4 sm:$0xff]   ;;  %v3838_v48 = vld [vmem:[%s4935_s3 + $0x854] ss:$8 sps:$4 sm:$0xff]  }
  0xd9   : > { %2330 = vmatprep.subr.bf16.mxu1 %v3752_v49  ;;  %v3836_v49 = vld [vmem:[%s4935_s3 + $0x850] ss:$8 sps:$4 sm:$0xff]  }
  0xdb   : > { %2079 = vmatpush1.bf16.msra.mxu0 %v3747_v50  ;;  %v3841_v50 = vld [vmem:[%s4935_s3 + $0x864] ss:$8 sps:$4 sm:$0xff]  }
  0xdc   : > { %2331 = vmatpush1.bf16.msra.mxu1 %v3750_v51  ;;  %2080 = vmatprep.subr.bf16.mxu0 %v3755_v52 }
  0xdd   : > { %2332 = vmatprep.subr.bf16.mxu1 %v3758_v53 }
  0xdf   : > { %2081 = vmatpush1.bf16.msra.mxu0 %v3753_v54 }
  0xe0   : > { %2333 = vmatpush1.bf16.msra.mxu1 %v3756_v55  ;;  %2082 = vmatprep.subr.bf16.mxu0 %v3761_v56 }
  0xe1   : > { %2334 = vmatprep.subr.bf16.mxu1 %v3764_v57 }
  0xe3   : > { %2083 = vmatpush1.bf16.msra.mxu0 %v3759_v58  ;;  %v3839_v58 = vld [vmem:[%s4935_s3 + $0x860] ss:$8 sps:$4 sm:$0xff]  }
  0xe4   : > { %2335 = vmatpush1.bf16.msra.mxu1 %v3762_v59  ;;  %2084 = vmatprep.subr.bf16.mxu0 %v3767_v60 }
  0xe5   : > { %2336 = vmatprep.subr.bf16.mxu1 %v3770_v61  ;;  %v3844_v61 = vld [vmem:[%s4935_s3 + $0x874] ss:$8 sps:$4 sm:$0xff]  }
  0xe7   : > { %2085 = vmatpush1.bf16.msra.mxu0 %v3765_v63 }
  0xe8   : > { %2337 = vmatpush1.bf16.msra.mxu1 %v3768_v0  ;;  %2086 = vmatprep.subr.bf16.mxu0 %v3773_v1  ;;  %v3842_v0 = vld [vmem:[%s4935_s3 + $0x870] ss:$8 sps:$4 sm:$0xff]   ;;  %v3847_v1 = vld [vmem:[%s4935_s3 + $0x884] ss:$8 sps:$4 sm:$0xff]  }
  0xe9   : > { %2338 = vmatprep.subr.bf16.mxu1 %v3776_v2  ;;  %v3845_v2 = vld [vmem:[%s4935_s3 + $0x880] ss:$8 sps:$4 sm:$0xff]  }
  0xeb   : > { %2087 = vmatpush1.bf16.msra.mxu0 %v3771_v3  ;;  %v3850_v3 = vld [vmem:[%s4935_s3 + $0x894] ss:$8 sps:$4 sm:$0xff]  }
  0xec   : > { %2339 = vmatpush1.bf16.msra.mxu1 %v3774_v4  ;;  %2088 = vmatprep.subr.bf16.mxu0 %v3779_v5  ;;  %v3848_v4 = vld [vmem:[%s4935_s3 + $0x890] ss:$8 sps:$4 sm:$0xff]   ;;  %v3853_v5 = vld [vmem:[%s4935_s3 + $0x8a4] ss:$8 sps:$4 sm:$0xff]  }
  0xed   : > { %2340 = vmatprep.subr.bf16.mxu1 %v3782_v6  ;;  %v3851_v6 = vld [vmem:[%s4935_s3 + $0x8a0] ss:$8 sps:$4 sm:$0xff]  }
  0xef   : > { %2089 = vmatpush1.bf16.msra.mxu0 %v3777_v7  ;;  %v3856_v7 = vld [vmem:[%s4935_s3 + $0x8b4] ss:$8 sps:$4 sm:$0xff]  }
  0xf0   : > { %2341 = vmatpush1.bf16.msra.mxu1 %v3780_v8  ;;  %2090 = vmatprep.subr.bf16.mxu0 %v3785_v9  ;;  %v3854_v8 = vld [vmem:[%s4935_s3 + $0x8b0] ss:$8 sps:$4 sm:$0xff]   ;;  %v3859_v9 = vld [vmem:[%s4935_s3 + $0x8c4] ss:$8 sps:$4 sm:$0xff]  }
  0xf1   : > { %2342 = vmatprep.subr.bf16.mxu1 %v3788_v10  ;;  %v3857_v10 = vld [vmem:[%s4935_s3 + $0x8c0] ss:$8 sps:$4 sm:$0xff]  }
  0xf3   : > { %2091 = vmatpush1.bf16.msra.mxu0 %v3783_v11  ;;  %v3862_v11 = vld [vmem:[%s4935_s3 + $0x8d4] ss:$8 sps:$4 sm:$0xff]  }
  0xf4   : > { %2343 = vmatpush1.bf16.msra.mxu1 %v3786_v12  ;;  %2092 = vmatprep.subr.bf16.mxu0 %v3791_v13  ;;  %v3860_v12 = vld [vmem:[%s4935_s3 + $0x8d0] ss:$8 sps:$4 sm:$0xff]   ;;  %v3865_v13 = vld [vmem:[%s4935_s3 + $0x8e4] ss:$8 sps:$4 sm:$0xff]  }
  0xf5   : > { %2344 = vmatprep.subr.bf16.mxu1 %v3794_v15  ;;  %v3863_v15 = vld [vmem:[%s4935_s3 + $0x8e0] ss:$8 sps:$4 sm:$0xff]  }
  0xf7   : > { %2093 = vmatpush1.bf16.msra.mxu0 %v3789_v16  ;;  %v3868_v16 = vld [vmem:[%s4935_s3 + $0x8f4] ss:$8 sps:$4 sm:$0xff]  }
  0xf8   : > { %2345 = vmatpush1.bf16.msra.mxu1 %v3792_v18  ;;  %2094 = vmatprep.subr.bf16.mxu0 %v3797_v19  ;;  %v3866_v18 = vld [vmem:[%s4935_s3 + $0x8f0] ss:$8 sps:$4 sm:$0xff]   ;;  %v2398_v19 = vrot.slane %v4775_v25, 1 }
  0xf9   : > { %2346 = vmatprep.subr.bf16.mxu1 %v3800_v20 }
  0xfb   : > { %2095 = vmatpush1.bf16.msra.mxu0 %v3795_v21 }
  0xfc   : > { %2347 = vmatpush1.bf16.msra.mxu1 %v3798_v23  ;;  %2096 = vmatprep.subr.bf16.mxu0 %v3803_v62 }
  0xfd   : > { %2348 = vmatprep.subr.bf16.mxu1 %v3806_v24 }
  0xff   : > { %2097 = vmatpush1.bf16.msra.mxu0 %v3801_v26 }
 0x100   : > { %2349 = vmatpush1.bf16.msra.mxu1 %v3804_v27  ;;  %2098 = vmatprep.subr.bf16.mxu0 %v3809_v28 }
 0x101   : > { %2350 = vmatprep.subr.bf16.mxu1 %v3812_v14 }
 0x103   : > { %2099 = vmatpush1.bf16.msra.mxu0 %v3807_v30 }
 0x104   : > { %2351 = vmatpush1.bf16.msra.mxu1 %v3810_v31  ;;  %2100 = vmatprep.subr.bf16.mxu0 %v3815_v32 }
 0x105   : > { %2352 = vmatprep.subr.bf16.mxu1 %v3818_v33 }
 0x107   : > { %2101 = vmatpush1.bf16.msra.mxu0 %v3813_v36 }
 0x108   : > { %2353 = vmatpush1.bf16.msra.mxu1 %v3816_v37  ;;  %2562 = vmatprep.subr.bf16.mxu0 %v3823_v38 }
 0x10a   : > { %2103 = vmatmul.mubr.bf16.vlgmr.msra.gmra.mrb[12].mxu0 %v4775_v25 }
 0x10b   : > { %2355 = vmatmul.mubr.bf16.vlgmr.msra.gmra.mrb[12].mxu1 %v2152_v22  ;;  %2563 = vmatpush1.bf16.msra.mxu0 %v3821_v39 }
 0x10c   : > { %2594 = vmatprep.mubr.bf16.mxu0 %v2399_v40  ;;  %2564 = vmatprep.subr.bf16.mxu0 %v3826_v41 }
 0x10f   : > { %2565 = vmatpush1.bf16.msra.mxu0 %v3824_v42 }
 0x110   : > { %2566 = vmatprep.subr.bf16.mxu0 %v3829_v43 }
 0x113   : > { %2567 = vmatpush1.bf16.msra.mxu0 %v3827_v17 }
 0x114   : > { %2568 = vmatprep.subr.bf16.mxu0 %v3832_v44 }
 0x117   : > { %2569 = vmatpush1.bf16.msra.mxu0 %v3830_v45 }
 0x118   : > { %2570 = vmatprep.subr.bf16.mxu0 %v3835_v46 }
 0x11b   : > { %2571 = vmatpush1.bf16.msra.mxu0 %v3833_v47 }
 0x11c   : > { %2572 = vmatprep.subr.bf16.mxu0 %v3838_v48 }
 0x11d   : > { %v683_v51 = vpop.f32.mrb[0].mxu0 }
 0x11e   : > { %v886_v52 = vpop.f32.mrb[0].mxu1  ;;  %v685_v54 = vpop.f32.mrb[1].mxu0 }
 0x11f   : > { %v887_v53 = vadd.f32 %v886_v52, %v683_v51  ;;  %v888_v55 = vpop.f32.mrb[1].mxu1  ;;  %v687_v57 = vpop.f32.mrb[2].mxu0  ;;  %2573 = vmatpush1.bf16.msra.mxu0 %v3836_v49 }
 0x120   : > { %v889_v56 = vadd.f32 %v888_v55, %v685_v54  ;;  %v890_v59 = vpop.f32.mrb[2].mxu1  ;;  %v688_v60 = vpop.f32.mrb[3].mxu0  ;;  %2574 = vmatprep.subr.bf16.mxu0 %v3841_v50 }
 0x121   : > { %v891_v63 = vpop.f32.mrb[3].mxu1 }
 0x123   : > { %2575 = vmatpush1.bf16.msra.mxu0 %v3839_v58 }
 0x124   : > { %2576 = vmatprep.subr.bf16.mxu0 %v3844_v61 }
 0x127   : > { %2577 = vmatpush1.bf16.msra.mxu0 %v3842_v0 }
 0x128   : > { %2578 = vmatprep.subr.bf16.mxu0 %v3847_v1 }
 0x12b   : > { %2579 = vmatpush1.bf16.msra.mxu0 %v3845_v2 }
 0x12c   : > { %2580 = vmatprep.subr.bf16.mxu0 %v3850_v3 }
 0x12f   : > { %2581 = vmatpush1.bf16.msra.mxu0 %v3848_v4 }
 0x130   : > { %2582 = vmatprep.subr.bf16.mxu0 %v3853_v5 }
 0x133   : > { %2583 = vmatpush1.bf16.msra.mxu0 %v3851_v6 }
 0x134   : > { %2584 = vmatprep.subr.bf16.mxu0 %v3856_v7 }
 0x137   : > { %2585 = vmatpush1.bf16.msra.mxu0 %v3854_v8 }
 0x138   : > { %2586 = vmatprep.subr.bf16.mxu0 %v3859_v9 }
 0x13b   : > { %2587 = vmatpush1.bf16.msra.mxu0 %v3857_v10 }
 0x13c   : > { %2588 = vmatprep.subr.bf16.mxu0 %v3862_v11 }
 0x13f   : > { %2589 = vmatpush1.bf16.msra.mxu0 %v3860_v12 }
 0x140   : > { %2590 = vmatprep.subr.bf16.mxu0 %v3865_v13 }
 0x143   : > { %2591 = vmatpush1.bf16.msra.mxu0 %v3863_v15 }
 0x144   : > { %2592 = vmatprep.subr.bf16.mxu0 %v3868_v16 }
 0x147   : > { %2593 = vmatpush1.bf16.msra.mxu0 %v3866_v18 }
 0x14a   : > { %2595 = vmatmul.mubr.bf16.vlgmr.msra.gmra.mrb[16].mxu0 %v2398_v19 }
 0x15d   : > { %v1124_v20 = vpop.f32.mrb[4].mxu0 }
 0x15e   : > { %v1368_v21 = vpop.f32.mrb[4].mxu1  ;;  %v1131_v23 = vadd.f32 %v1124_v20, %v887_v53  ;;  %v1126_v62 = vpop.f32.mrb[5].mxu0  ;;  %v2607_v53 = vlaneseq }
 0x15f   : > { %v1370_v24 = vpop.f32.mrb[5].mxu1  ;;  %v1132_v26 = vadd.f32 %v1126_v62, %v889_v56  ;;  %v1128_v27 = vpop.f32.mrb[6].mxu0  ;;  %v2605_v56 = vld [vmem:[%s4936_s4] sm:$0x3] }
 0x160   : > { %v1372_v28 = vpop.f32.mrb[6].mxu1  ;;  %v1375_v14 = vadd.f32 %v1368_v21, %v1131_v23  ;;  %v1129_v29 = vpop.f32.mrb[7].mxu0  ;;  %v2608_v54 = vshrl.u32 %v2607_v53, 7 }
 0x161   : > { %v1373_v30 = vpop.f32.mrb[7].mxu1  ;;  %v1376_v31 = vadd.f32 %v1370_v24, %v1132_v26 }
 0x162   : > { %v2609_v55 = vsub.s32 0, %v2608_v54  ;;  %v2613_v57 = vsub.s32 1, %v2608_v54 }
 0x164   : > { %v2610_v58 = vrot.slane %v2605_v56, %v2609_v55  ;;  %v2614_v60 = vrot.slane %v2605_v56, %v2613_v57 }
 0x19d   : > { %v1620_v32 = vpop.f32.mrb[8].mxu0 }
 0x19e   : > { %v1860_v33 = vpop.f32.mrb[8].mxu1  ;;  %v1627_v34 = vadd.f32 %v1620_v32, %v1375_v14  ;;  %v1622_v35 = vpop.f32.mrb[9].mxu0 }
 0x19f   : > { %v1862_v36 = vpop.f32.mrb[9].mxu1  ;;  %v1628_v25 = vadd.f32 %v1622_v35, %v1376_v31  ;;  %v1624_v37 = vpop.f32.mrb[10].mxu0 }
 0x1a0   : > { %v1864_v38 = vpop.f32.mrb[10].mxu1  ;;  %v1867_v22 = vadd.f32 %v1860_v33, %v1627_v34  ;;  %v1625_v39 = vpop.f32.mrb[11].mxu0 }
 0x1a1   : > { %v1865_v40 = vpop.f32.mrb[11].mxu1  ;;  %v1868_v41 = vadd.f32 %v1862_v36, %v1628_v25 }
 0x1dd   : > { %v2104_v42 = vpop.f32.mrb[12].mxu0 }
 0x1de   : > { %v2356_v43 = vpop.f32.mrb[12].mxu1  ;;  %v2111_v17 = vadd.f32 %v2104_v42, %v1867_v22  ;;  %v2106_v44 = vpop.f32.mrb[13].mxu0 }
 0x1df   : > { %v2358_v45 = vpop.f32.mrb[13].mxu1  ;;  %v2112_v46 = vadd.f32 %v2106_v44, %v1868_v41  ;;  %v2108_v47 = vpop.f32.mrb[14].mxu0 }
 0x1e0   : > { %v2360_v48 = vpop.f32.mrb[14].mxu1  ;;  %v2363_v49 = vadd.f32 %v2356_v43, %v2111_v17  ;;  %v2109_v50 = vpop.f32.mrb[15].mxu0 }
 0x1e1   : > { %v2361_v51 = vpop.f32.mrb[15].mxu1  ;;  %v2364_v52 = vadd.f32 %v2358_v45, %v2112_v46 }
 0x21d   : > { %v2596_v59 = vpop.f32.mrb[16].mxu0 }
 0x21e   : > { %v2603_v61 = vadd.f32 %v2596_v59, %v2363_v49  ;;  %v2598_v63 = vpop.f32.mrb[17].mxu0 }
 0x21f   : > { %v2604_v0 = vadd.f32 %v2598_v63, %v2364_v52  ;;  %v2600_v1 = vpop.f32.mrb[18].mxu0 }
 0x220   : > { %v2617_v2 = vadd.f32 %v2610_v58, %v2603_v61  ;;  %v2601_v3 = vpop.f32.mrb[19].mxu0 }
 0x221   : > { %v2618_v4 = vadd.f32 %v2614_v60, %v2604_v0 }
 0x222   : > { %vm2619_vm0 = vcmp.gt.f32.partialorder %v2617_v2, 0.0  ;;  %v2621_v5 = vmul.f32 0.1, %v2617_v2 }
 0x223   : > { %vm2620_vm1 = vcmp.gt.f32.partialorder %v2618_v4, 0.0  ;;  %v2622_v6 = vmul.f32 0.1, %v2618_v4 }
 0x224   : > { %v2623_v7 = vsel %vm2619_vm0, %v2617_v2, %v2621_v5 }
 0x225   : > { %v2624_v8 = vsel %vm2620_vm1, %v2618_v4, %v2622_v6 }
 0x226   : > { %v3386_v9 = vpack.c.bf16 %v2624_v8, %v2623_v7 }
 0x228   : > { %3387 = vst.sshfl [vmem:[%s400_s18] sm:$0x33 pattern:$0x76325410] %v3386_v9 }
 0x229 PF: > { %s15_s22 = sadd.s32 1, %s3907_s22   ;;  %s4938_s18 = smov %s3899_s20 }
 0x22a   : > { %p12_p10 = scmp.ge.s32.totalorder %s15_s22, 10   ;;  %s4939_s19 = smov %s3903_s21 }
 0x22b   : > { %s4940_s20 = smov %s4943_s23  ;;  %s4941_s21 = smov %s4947_s24 }
 0x22c   :  { %14 = sbr.rel (!%p12_p10) target bundleno = 3 (0x3), region = 90 }

// kernel: flownets_forward.15
= control target key start
LH: loop header
LB: loop body
LE: loop exit
PB: predicated region body
PF: predicated region fallthrough
CT: control target
= control target key end

     0   :  { %s3337_s12 = smov 0   ;;  %s3339_s13 = smov 0   ;;  %s4060_s0 = inlined_call_operand.vmem [shape: bf16[8,4608], index: 0, kind: input, shape index: {}]   ;;  %s4061_s1 = inlined_call_operand.vmem [shape: bf16[4608,512], index: 1, kind: input, shape index: {}]   ;;  %s4062_s2 = inlined_call_operand.vmem [shape: f32[1,512], index: 2, kind: input, shape index: {}]   ;;  %s4063_s3 = inlined_call_operand.vmem [shape: bf16[8,512], index: 3, kind: output, shape index: {}]  }
   0x1   :  { %s3341_s14 = smov 0   ;;  %s3343_s15 = smov 0  }
   0x2   :  { %s3345_s16 = smov 0   ;;  %s3347_s17 = smov 0  }
   0x3   :  { %s3349_s18 = smov 0  }
   0x4 LB: > { %s25_s19 = sadd.s32 1, %s3306_s16  ;;  %s28_s20 = sadd.s32 1, %s3310_s17  ;;  %s3314_s18 = sphi %s3349_s18, %s13_s18   ;;  %s3310_s17 = sphi %s3347_s17, %s4069_s17   ;;  %s3306_s16 = sphi %s3345_s16, %s4068_s16   ;;  %s3302_s15 = sphi %s3343_s15, %s4067_s15   ;;  %s3298_s14 = sphi %s3341_s14, %s4066_s14   ;;  %s3294_s13 = sphi %s3339_s13, %s4065_s13   ;;  %s3290_s12 = sphi %s3337_s12, %s4064_s12  }
   0x5   : > { %p26_p0 = scmp.ge.s32.totalorder %s25_s19, 3  ;;  %p76_p1 = scmp.ne.s32.totalorder %s3294_s13, %s3290_s12 }
   0x6   : > { %p77_p2 = scmp.eq.s32.totalorder %s3314_s18, 0  ;;  %s69_s24 = sadd.s32 1, %s3294_s13 }
   0x7   : > { %s4071_s19 = smov (%p26_p0, %s25_s19), 0  ;;  %s4073_s20 = smov (!%p26_p0, %s28_s20), %s3310_s17 }
   0x8   : > { %p78_p3 = por %p77_p2, %p76_p1  ;;  %p30_p4 = scmp.ge.s32.totalorder %s4073_s20, 2 }
   0x9   : > { %s64_s21 = ssub.s32 %s3306_s16, %s4071_s19  ;;  %p2681_p6 = scmp.ge.s32.totalorder %s3314_s18, 6 }
   0xa   : > { %s4075_s20 = smov (%p30_p4, %s4073_s20), 0 }
   0xb   : > { %s65_s22 = ssub.s32 %s3310_s17, %s4075_s20  ;;  %156 = sbr.rel (%p2681_p6) target bundleno = 122 (0x7a), region = 16 }
   0xc   : > { %s66_s23 = sor.u32 %s65_s22, %s64_s21 }
   0xd   : > { %p67_p5 = scmp.eq.s32.totalorder %s66_s23, 0 }
   0xf   : > { %s3388_s25 = scalar_select %p67_p5, %s3294_s13, %s69_s24  }
  0x12   : > { %172 = sbr.rel (!%p78_p3) target bundleno = 122 (0x7a), region = 24  ;;  %s174_s26 = sand.u32 (%p78_p3), 1, %s3294_s13  }
  0x13   : > { %s2901_s27 = smul.u32 (%p78_p3), 1536, %s174_s26  ;;  %s2682_s28 = sshll.u32 (%p78_p3), %s3310_s17, 1 }
  0x14   : > { %s2899_s29 = smul.u32 (%p78_p3), 768, %s3306_s16 }
  0x15   : > { %s3402_s8 = scalar_lea.vmem (%p78_p3), [#allocation3], %s2901_s27 }
  0x16   : > { %s180_s30 = sadd.s32 (%p78_p3), %s2899_s29, %s2682_s28 }
  0x17   : > { %s2684_s4 = sshll.u32 (%p78_p3), %s180_s30, 2 }
  0x18   : > { %s3397_s7 = scalar_lea.vmem (%p78_p3), %s4061_s1, %s2684_s4 }
  0x19   : > { %v592_v0 = vld [vmem:[%s3397_s7] sm:$0xff]  ;;  %v594_v1 = vld [vmem:[%s3397_s7 + $0x10] sm:$0xff] }
  0x1a   : > { %v596_v2 = vld [vmem:[%s3397_s7 + $0x20] sm:$0xff]  ;;  %593 = vst [vmem:[%s3402_s8] sm:$0xff] %v592_v0  ;;  %595 = vst [vmem:[%s3402_s8 + $0x8] sm:$0xff] %v594_v1  ;;  %v598_v3 = vld [vmem:[%s3397_s7 + $0x30] sm:$0xff] }
  0x1b   : > { %597 = vst [vmem:[%s3402_s8 + $0x10] sm:$0xff] %v596_v2  ;;  %v600_v4 = vld [vmem:[%s3397_s7 + $0x40] sm:$0xff]  ;;  %v602_v5 = vld [vmem:[%s3397_s7 + $0x50] sm:$0xff]  ;;  %599 = vst [vmem:[%s3402_s8 + $0x18] sm:$0xff] %v598_v3 }
  0x1c   : > { %601 = vst [vmem:[%s3402_s8 + $0x20] sm:$0xff] %v600_v4  ;;  %603 = vst [vmem:[%s3402_s8 + $0x28] sm:$0xff] %v602_v5  ;;  %v604_v6 = vld [vmem:[%s3397_s7 + $0x60] sm:$0xff]  ;;  %v606_v7 = vld [vmem:[%s3397_s7 + $0x70] sm:$0xff] }
  0x1d   : > { %v608_v8 = vld [vmem:[%s3397_s7 + $0x80] sm:$0xff]  ;;  %605 = vst [vmem:[%s3402_s8 + $0x30] sm:$0xff] %v604_v6  ;;  %607 = vst [vmem:[%s3402_s8 + $0x38] sm:$0xff] %v606_v7  ;;  %v610_v9 = vld [vmem:[%s3397_s7 + $0x90] sm:$0xff] }
  0x1e   : > { %609 = vst [vmem:[%s3402_s8 + $0x40] sm:$0xff] %v608_v8  ;;  %v612_v10 = vld [vmem:[%s3397_s7 + $0xa0] sm:$0xff]  ;;  %v614_v11 = vld [vmem:[%s3397_s7 + $0xb0] sm:$0xff]  ;;  %611 = vst [vmem:[%s3402_s8 + $0x48] sm:$0xff] %v610_v9 }
  0x1f   : > { %613 = vst [vmem:[%s3402_s8 + $0x50] sm:$0xff] %v612_v10  ;;  %615 = vst [vmem:[%s3402_s8 + $0x58] sm:$0xff] %v614_v11  ;;  %v616_v12 = vld [vmem:[%s3397_s7 + $0xc0] sm:$0xff]  ;;  %v618_v13 = vld [vmem:[%s3397_s7 + $0xd0] sm:$0xff] }
  0x20   : > { %v620_v14 = vld [vmem:[%s3397_s7 + $0xe0] sm:$0xff]  ;;  %617 = vst [vmem:[%s3402_s8 + $0x60] sm:$0xff] %v616_v12  ;;  %619 = vst [vmem:[%s3402_s8 + $0x68] sm:$0xff] %v618_v13  ;;  %v622_v15 = vld [vmem:[%s3397_s7 + $0xf0] sm:$0xff] }
  0x21   : > { %621 = vst [vmem:[%s3402_s8 + $0x70] sm:$0xff] %v620_v14  ;;  %v624_v16 = vld [vmem:[%s3397_s7 + $0x100] sm:$0xff]  ;;  %v626_v17 = vld [vmem:[%s3397_s7 + $0x110] sm:$0xff]  ;;  %623 = vst [vmem:[%s3402_s8 + $0x78] sm:$0xff] %v622_v15 }
  0x22   : > { %625 = vst [vmem:[%s3402_s8 + $0x80] sm:$0xff] %v624_v16  ;;  %627 = vst [vmem:[%s3402_s8 + $0x88] sm:$0xff] %v626_v17  ;;  %v628_v18 = vld [vmem:[%s3397_s7 + $0x120] sm:$0xff]  ;;  %v630_v19 = vld [vmem:[%s3397_s7 + $0x130] sm:$0xff] }
  0x23   : > { %v632_v20 = vld [vmem:[%s3397_s7 + $0x140] sm:$0xff]  ;;  %629 = vst [vmem:[%s3402_s8 + $0x90] sm:$0xff] %v628_v18  ;;  %631 = vst [vmem:[%s3402_s8 + $0x98] sm:$0xff] %v630_v19  ;;  %v634_v21 = vld [vmem:[%s3397_s7 + $0x150] sm:$0xff] }
  0x24   : > { %633 = vst [vmem:[%s3402_s8 + $0xa0] sm:$0xff] %v632_v20  ;;  %v636_v22 = vld [vmem:[%s3397_s7 + $0x160] sm:$0xff]  ;;  %v638_v23 = vld [vmem:[%s3397_s7 + $0x170] sm:$0xff]  ;;  %635 = vst [vmem:[%s3402_s8 + $0xa8] sm:$0xff] %v634_v21 }
  0x25   : > { %637 = vst [vmem:[%s3402_s8 + $0xb0] sm:$0xff] %v636_v22  ;;  %639 = vst [vmem:[%s3402_s8 + $0xb8] sm:$0xff] %v638_v23  ;;  %v640_v24 = vld [vmem:[%s3397_s7 + $0x180] sm:$0xff]  ;;  %v642_v25 = vld [vmem:[%s3397_s7 + $0x190] sm:$0xff] }
  0x26   : > { %v644_v26 = vld [vmem:[%s3397_s7 + $0x1a0] sm:$0xff]  ;;  %641 = vst [vmem:[%s3402_s8 + $0xc0] sm:$0xff] %v640_v24  ;;  %643 = vst [vmem:[%s3402_s8 + $0xc8] sm:$0xff] %v642_v25  ;;  %v646_v27 = vld [vmem:[%s3397_s7 + $0x1b0] sm:$0xff] }
  0x27   : > { %645 = vst [vmem:[%s3402_s8 + $0xd0] sm:$0xff] %v644_v26  ;;  %v648_v28 = vld [vmem:[%s3397_s7 + $0x1c0] sm:$0xff]  ;;  %v650_v29 = vld [vmem:[%s3397_s7 + $0x1d0] sm:$0xff]  ;;  %647 = vst [vmem:[%s3402_s8 + $0xd8] sm:$0xff] %v646_v27 }
  0x28   : > { %649 = vst [vmem:[%s3402_s8 + $0xe0] sm:$0xff] %v648_v28  ;;  %651 = vst [vmem:[%s3402_s8 + $0xe8] sm:$0xff] %v650_v29  ;;  %v652_v30 = vld [vmem:[%s3397_s7 + $0x1e0] sm:$0xff]  ;;  %v654_v31 = vld [vmem:[%s3397_s7 + $0x1f0] sm:$0xff] }
  0x29   : > { %v656_v32 = vld [vmem:[%s3397_s7 + $0x200] sm:$0xff]  ;;  %653 = vst [vmem:[%s3402_s8 + $0xf0] sm:$0xff] %v652_v30  ;;  %655 = vst [vmem:[%s3402_s8 + $0xf8] sm:$0xff] %v654_v31  ;;  %v658_v33 = vld [vmem:[%s3397_s7 + $0x210] sm:$0xff] }
  0x2a   : > { %657 = vst [vmem:[%s3402_s8 + $0x100] sm:$0xff] %v656_v32  ;;  %v660_v34 = vld [vmem:[%s3397_s7 + $0x220] sm:$0xff]  ;;  %v662_v35 = vld [vmem:[%s3397_s7 + $0x230] sm:$0xff]  ;;  %659 = vst [vmem:[%s3402_s8 + $0x108] sm:$0xff] %v658_v33 }
  0x2b   : > { %661 = vst [vmem:[%s3402_s8 + $0x110] sm:$0xff] %v660_v34  ;;  %663 = vst [vmem:[%s3402_s8 + $0x118] sm:$0xff] %v662_v35  ;;  %v664_v36 = vld [vmem:[%s3397_s7 + $0x240] sm:$0xff]  ;;  %v666_v37 = vld [vmem:[%s3397_s7 + $0x250] sm:$0xff] }
  0x2c   : > { %v668_v38 = vld [vmem:[%s3397_s7 + $0x260] sm:$0xff]  ;;  %665 = vst [vmem:[%s3402_s8 + $0x120] sm:$0xff] %v664_v36  ;;  %667 = vst [vmem:[%s3402_s8 + $0x128] sm:$0xff] %v666_v37  ;;  %v670_v39 = vld [vmem:[%s3397_s7 + $0x270] sm:$0xff] }
  0x2d   : > { %669 = vst [vmem:[%s3402_s8 + $0x130] sm:$0xff] %v668_v38  ;;  %v672_v40 = vld [vmem:[%s3397_s7 + $0x280] sm:$0xff]  ;;  %v674_v41 = vld [vmem:[%s3397_s7 + $0x290] sm:$0xff]  ;;  %671 = vst [vmem:[%s3402_s8 + $0x138] sm:$0xff] %v670_v39 }
  0x2e   : > { %673 = vst [vmem:[%s3402_s8 + $0x140] sm:$0xff] %v672_v40  ;;  %675 = vst [vmem:[%s3402_s8 + $0x148] sm:$0xff] %v674_v41  ;;  %v676_v42 = vld [vmem:[%s3397_s7 + $0x2a0] sm:$0xff]  ;;  %v678_v43 = vld [vmem:[%s3397_s7 + $0x2b0] sm:$0xff] }
  0x2f   : > { %v680_v44 = vld [vmem:[%s3397_s7 + $0x2c0] sm:$0xff]  ;;  %677 = vst [vmem:[%s3402_s8 + $0x150] sm:$0xff] %v676_v42  ;;  %679 = vst [vmem:[%s3402_s8 + $0x158] sm:$0xff] %v678_v43  ;;  %v682_v45 = vld [vmem:[%s3397_s7 + $0x2d0] sm:$0xff] }
  0x30   : > { %681 = vst [vmem:[%s3402_s8 + $0x160] sm:$0xff] %v680_v44  ;;  %v684_v46 = vld [vmem:[%s3397_s7 + $0x2e0] sm:$0xff]  ;;  %v686_v47 = vld [vmem:[%s3397_s7 + $0x2f0] sm:$0xff]  ;;  %683 = vst [vmem:[%s3402_s8 + $0x168] sm:$0xff] %v682_v45 }
  0x31   : > { %685 = vst [vmem:[%s3402_s8 + $0x170] sm:$0xff] %v684_v46  ;;  %687 = vst [vmem:[%s3402_s8 + $0x178] sm:$0xff] %v686_v47  ;;  %v688_v48 = vld [vmem:[%s3397_s7 + $0x300] sm:$0xff]  ;;  %v690_v49 = vld [vmem:[%s3397_s7 + $0x310] sm:$0xff] }
  0x32   : > { %v692_v50 = vld [vmem:[%s3397_s7 + $0x320] sm:$0xff]  ;;  %689 = vst [vmem:[%s3402_s8 + $0x180] sm:$0xff] %v688_v48  ;;  %691 = vst [vmem:[%s3402_s8 + $0x188] sm:$0xff] %v690_v49  ;;  %v694_v51 = vld [vmem:[%s3397_s7 + $0x330] sm:$0xff] }
  0x33   : > { %693 = vst [vmem:[%s3402_s8 + $0x190] sm:$0xff] %v692_v50  ;;  %v696_v52 = vld [vmem:[%s3397_s7 + $0x340] sm:$0xff]  ;;  %v698_v53 = vld [vmem:[%s3397_s7 + $0x350] sm:$0xff]  ;;  %695 = vst [vmem:[%s3402_s8 + $0x198] sm:$0xff] %v694_v51 }
  0x34   : > { %697 = vst [vmem:[%s3402_s8 + $0x1a0] sm:$0xff] %v696_v52  ;;  %699 = vst [vmem:[%s3402_s8 + $0x1a8] sm:$0xff] %v698_v53  ;;  %v700_v54 = vld [vmem:[%s3397_s7 + $0x360] sm:$0xff]  ;;  %v702_v55 = vld [vmem:[%s3397_s7 + $0x370] sm:$0xff] }
  0x35   : > { %v704_v56 = vld [vmem:[%s3397_s7 + $0x380] sm:$0xff]  ;;  %701 = vst [vmem:[%s3402_s8 + $0x1b0] sm:$0xff] %v700_v54  ;;  %703 = vst [vmem:[%s3402_s8 + $0x1b8] sm:$0xff] %v702_v55  ;;  %v706_v57 = vld [vmem:[%s3397_s7 + $0x390] sm:$0xff] }
  0x36   : > { %705 = vst [vmem:[%s3402_s8 + $0x1c0] sm:$0xff] %v704_v56  ;;  %v708_v58 = vld [vmem:[%s3397_s7 + $0x3a0] sm:$0xff]  ;;  %v710_v59 = vld [vmem:[%s3397_s7 + $0x3b0] sm:$0xff]  ;;  %707 = vst [vmem:[%s3402_s8 + $0x1c8] sm:$0xff] %v706_v57 }
  0x37   : > { %709 = vst [vmem:[%s3402_s8 + $0x1d0] sm:$0xff] %v708_v58  ;;  %711 = vst [vmem:[%s3402_s8 + $0x1d8] sm:$0xff] %v710_v59  ;;  %v712_v60 = vld [vmem:[%s3397_s7 + $0x3c0] sm:$0xff]  ;;  %v714_v61 = vld [vmem:[%s3397_s7 + $0x3d0] sm:$0xff] }
  0x38   : > { %v716_v62 = vld [vmem:[%s3397_s7 + $0x3e0] sm:$0xff]  ;;  %713 = vst [vmem:[%s3402_s8 + $0x1e0] sm:$0xff] %v712_v60  ;;  %715 = vst [vmem:[%s3402_s8 + $0x1e8] sm:$0xff] %v714_v61  ;;  %v718_v63 = vld [vmem:[%s3397_s7 + $0x3f0] sm:$0xff] }
  0x39   : > { %717 = vst [vmem:[%s3402_s8 + $0x1f0] sm:$0xff] %v716_v62  ;;  %v720_v0 = vld [vmem:[%s3397_s7 + $0x400] sm:$0xff]  ;;  %v722_v1 = vld [vmem:[%s3397_s7 + $0x410] sm:$0xff]  ;;  %719 = vst [vmem:[%s3402_s8 + $0x1f8] sm:$0xff] %v718_v63 }
  0x3a   : > { %721 = vst [vmem:[%s3402_s8 + $0x200] sm:$0xff] %v720_v0  ;;  %723 = vst [vmem:[%s3402_s8 + $0x208] sm:$0xff] %v722_v1  ;;  %v724_v2 = vld [vmem:[%s3397_s7 + $0x420] sm:$0xff]  ;;  %v726_v3 = vld [vmem:[%s3397_s7 + $0x430] sm:$0xff] }
  0x3b   : > { %v728_v4 = vld [vmem:[%s3397_s7 + $0x440] sm:$0xff]  ;;  %725 = vst [vmem:[%s3402_s8 + $0x210] sm:$0xff] %v724_v2  ;;  %727 = vst [vmem:[%s3402_s8 + $0x218] sm:$0xff] %v726_v3  ;;  %v730_v5 = vld [vmem:[%s3397_s7 + $0x450] sm:$0xff] }
  0x3c   : > { %729 = vst [vmem:[%s3402_s8 + $0x220] sm:$0xff] %v728_v4  ;;  %v732_v6 = vld [vmem:[%s3397_s7 + $0x460] sm:$0xff]  ;;  %v734_v7 = vld [vmem:[%s3397_s7 + $0x470] sm:$0xff]  ;;  %731 = vst [vmem:[%s3402_s8 + $0x228] sm:$0xff] %v730_v5 }
  0x3d   : > { %733 = vst [vmem:[%s3402_s8 + $0x230] sm:$0xff] %v732_v6  ;;  %735 = vst [vmem:[%s3402_s8 + $0x238] sm:$0xff] %v734_v7  ;;  %v736_v8 = vld [vmem:[%s3397_s7 + $0x480] sm:$0xff]  ;;  %v738_v9 = vld [vmem:[%s3397_s7 + $0x490] sm:$0xff] }
  0x3e   : > { %v740_v10 = vld [vmem:[%s3397_s7 + $0x4a0] sm:$0xff]  ;;  %737 = vst [vmem:[%s3402_s8 + $0x240] sm:$0xff] %v736_v8  ;;  %739 = vst [vmem:[%s3402_s8 + $0x248] sm:$0xff] %v738_v9  ;;  %v742_v11 = vld [vmem:[%s3397_s7 + $0x4b0] sm:$0xff] }
  0x3f   : > { %741 = vst [vmem:[%s3402_s8 + $0x250] sm:$0xff] %v740_v10  ;;  %v744_v12 = vld [vmem:[%s3397_s7 + $0x4c0] sm:$0xff]  ;;  %v746_v13 = vld [vmem:[%s3397_s7 + $0x4d0] sm:$0xff]  ;;  %743 = vst [vmem:[%s3402_s8 + $0x258] sm:$0xff] %v742_v11 }
  0x40   : > { %745 = vst [vmem:[%s3402_s8 + $0x260] sm:$0xff] %v744_v12  ;;  %747 = vst [vmem:[%s3402_s8 + $0x268] sm:$0xff] %v746_v13  ;;  %v748_v14 = vld [vmem:[%s3397_s7 + $0x4e0] sm:$0xff]  ;;  %v750_v15 = vld [vmem:[%s3397_s7 + $0x4f0] sm:$0xff] }
  0x41   : > { %v752_v16 = vld [vmem:[%s3397_s7 + $0x500] sm:$0xff]  ;;  %749 = vst [vmem:[%s3402_s8 + $0x270] sm:$0xff] %v748_v14  ;;  %751 = vst [vmem:[%s3402_s8 + $0x278] sm:$0xff] %v750_v15  ;;  %v754_v17 = vld [vmem:[%s3397_s7 + $0x510] sm:$0xff] }
  0x42   : > { %753 = vst [vmem:[%s3402_s8 + $0x280] sm:$0xff] %v752_v16  ;;  %v756_v18 = vld [vmem:[%s3397_s7 + $0x520] sm:$0xff]  ;;  %v758_v19 = vld [vmem:[%s3397_s7 + $0x530] sm:$0xff]  ;;  %755 = vst [vmem:[%s3402_s8 + $0x288] sm:$0xff] %v754_v17 }
  0x43   : > { %757 = vst [vmem:[%s3402_s8 + $0x290] sm:$0xff] %v756_v18  ;;  %759 = vst [vmem:[%s3402_s8 + $0x298] sm:$0xff] %v758_v19  ;;  %v760_v20 = vld [vmem:[%s3397_s7 + $0x540] sm:$0xff]  ;;  %v762_v21 = vld [vmem:[%s3397_s7 + $0x550] sm:$0xff] }
  0x44   : > { %v764_v22 = vld [vmem:[%s3397_s7 + $0x560] sm:$0xff]  ;;  %761 = vst [vmem:[%s3402_s8 + $0x2a0] sm:$0xff] %v760_v20  ;;  %763 = vst [vmem:[%s3402_s8 + $0x2a8] sm:$0xff] %v762_v21  ;;  %v766_v23 = vld [vmem:[%s3397_s7 + $0x570] sm:$0xff] }
  0x45   : > { %765 = vst [vmem:[%s3402_s8 + $0x2b0] sm:$0xff] %v764_v22  ;;  %v768_v24 = vld [vmem:[%s3397_s7 + $0x580] sm:$0xff]  ;;  %v770_v25 = vld [vmem:[%s3397_s7 + $0x590] sm:$0xff]  ;;  %767 = vst [vmem:[%s3402_s8 + $0x2b8] sm:$0xff] %v766_v23 }
  0x46   : > { %769 = vst [vmem:[%s3402_s8 + $0x2c0] sm:$0xff] %v768_v24  ;;  %771 = vst [vmem:[%s3402_s8 + $0x2c8] sm:$0xff] %v770_v25  ;;  %v772_v26 = vld [vmem:[%s3397_s7 + $0x5a0] sm:$0xff]  ;;  %v774_v27 = vld [vmem:[%s3397_s7 + $0x5b0] sm:$0xff] }
  0x47   : > { %v776_v28 = vld [vmem:[%s3397_s7 + $0x5c0] sm:$0xff]  ;;  %773 = vst [vmem:[%s3402_s8 + $0x2d0] sm:$0xff] %v772_v26  ;;  %775 = vst [vmem:[%s3402_s8 + $0x2d8] sm:$0xff] %v774_v27  ;;  %v778_v29 = vld [vmem:[%s3397_s7 + $0x5d0] sm:$0xff] }
  0x48   : > { %777 = vst [vmem:[%s3402_s8 + $0x2e0] sm:$0xff] %v776_v28  ;;  %v780_v30 = vld [vmem:[%s3397_s7 + $0x5e0] sm:$0xff]  ;;  %v782_v31 = vld [vmem:[%s3397_s7 + $0x5f0] sm:$0xff]  ;;  %779 = vst [vmem:[%s3402_s8 + $0x2e8] sm:$0xff] %v778_v29 }
  0x49   : > { %781 = vst [vmem:[%s3402_s8 + $0x2f0] sm:$0xff] %v780_v30  ;;  %783 = vst [vmem:[%s3402_s8 + $0x2f8] sm:$0xff] %v782_v31  ;;  %v784_v32 = vld [vmem:[%s3397_s7 + $0x600] sm:$0xff]  ;;  %v786_v33 = vld [vmem:[%s3397_s7 + $0x610] sm:$0xff] }
  0x4a   : > { %v788_v34 = vld [vmem:[%s3397_s7 + $0x620] sm:$0xff]  ;;  %785 = vst [vmem:[%s3402_s8 + $0x300] sm:$0xff] %v784_v32  ;;  %787 = vst [vmem:[%s3402_s8 + $0x308] sm:$0xff] %v786_v33  ;;  %v790_v35 = vld [vmem:[%s3397_s7 + $0x630] sm:$0xff] }
  0x4b   : > { %789 = vst [vmem:[%s3402_s8 + $0x310] sm:$0xff] %v788_v34  ;;  %v792_v36 = vld [vmem:[%s3397_s7 + $0x640] sm:$0xff]  ;;  %v794_v37 = vld [vmem:[%s3397_s7 + $0x650] sm:$0xff]  ;;  %791 = vst [vmem:[%s3402_s8 + $0x318] sm:$0xff] %v790_v35 }
  0x4c   : > { %793 = vst [vmem:[%s3402_s8 + $0x320] sm:$0xff] %v792_v36  ;;  %795 = vst [vmem:[%s3402_s8 + $0x328] sm:$0xff] %v794_v37  ;;  %v796_v38 = vld [vmem:[%s3397_s7 + $0x660] sm:$0xff]  ;;  %v798_v39 = vld [vmem:[%s3397_s7 + $0x670] sm:$0xff] }
  0x4d   : > { %v800_v40 = vld [vmem:[%s3397_s7 + $0x680] sm:$0xff]  ;;  %797 = vst [vmem:[%s3402_s8 + $0x330] sm:$0xff] %v796_v38  ;;  %799 = vst [vmem:[%s3402_s8 + $0x338] sm:$0xff] %v798_v39  ;;  %v802_v41 = vld [vmem:[%s3397_s7 + $0x690] sm:$0xff] }
  0x4e   : > { %801 = vst [vmem:[%s3402_s8 + $0x340] sm:$0xff] %v800_v40  ;;  %v804_v42 = vld [vmem:[%s3397_s7 + $0x6a0] sm:$0xff]  ;;  %v806_v43 = vld [vmem:[%s3397_s7 + $0x6b0] sm:$0xff]  ;;  %803 = vst [vmem:[%s3402_s8 + $0x348] sm:$0xff] %v802_v41 }
  0x4f   : > { %805 = vst [vmem:[%s3402_s8 + $0x350] sm:$0xff] %v804_v42  ;;  %807 = vst [vmem:[%s3402_s8 + $0x358] sm:$0xff] %v806_v43  ;;  %v808_v44 = vld [vmem:[%s3397_s7 + $0x6c0] sm:$0xff]  ;;  %v810_v45 = vld [vmem:[%s3397_s7 + $0x6d0] sm:$0xff] }
  0x50   : > { %v812_v46 = vld [vmem:[%s3397_s7 + $0x6e0] sm:$0xff]  ;;  %809 = vst [vmem:[%s3402_s8 + $0x360] sm:$0xff] %v808_v44  ;;  %811 = vst [vmem:[%s3402_s8 + $0x368] sm:$0xff] %v810_v45  ;;  %v814_v47 = vld [vmem:[%s3397_s7 + $0x6f0] sm:$0xff] }
  0x51   : > { %813 = vst [vmem:[%s3402_s8 + $0x370] sm:$0xff] %v812_v46  ;;  %v816_v48 = vld [vmem:[%s3397_s7 + $0x700] sm:$0xff]  ;;  %v818_v49 = vld [vmem:[%s3397_s7 + $0x710] sm:$0xff]  ;;  %815 = vst [vmem:[%s3402_s8 + $0x378] sm:$0xff] %v814_v47 }
  0x52   : > { %817 = vst [vmem:[%s3402_s8 + $0x380] sm:$0xff] %v816_v48  ;;  %819 = vst [vmem:[%s3402_s8 + $0x388] sm:$0xff] %v818_v49  ;;  %v820_v50 = vld [vmem:[%s3397_s7 + $0x720] sm:$0xff]  ;;  %v822_v51 = vld [vmem:[%s3397_s7 + $0x730] sm:$0xff] }
  0x53   : > { %v824_v52 = vld [vmem:[%s3397_s7 + $0x740] sm:$0xff]  ;;  %821 = vst [vmem:[%s3402_s8 + $0x390] sm:$0xff] %v820_v50  ;;  %823 = vst [vmem:[%s3402_s8 + $0x398] sm:$0xff] %v822_v51  ;;  %v826_v53 = vld [vmem:[%s3397_s7 + $0x750] sm:$0xff] }
  0x54   : > { %825 = vst [vmem:[%s3402_s8 + $0x3a0] sm:$0xff] %v824_v52  ;;  %v828_v54 = vld [vmem:[%s3397_s7 + $0x760] sm:$0xff]  ;;  %v830_v55 = vld [vmem:[%s3397_s7 + $0x770] sm:$0xff]  ;;  %827 = vst [vmem:[%s3402_s8 + $0x3a8] sm:$0xff] %v826_v53 }
  0x55   : > { %829 = vst [vmem:[%s3402_s8 + $0x3b0] sm:$0xff] %v828_v54  ;;  %831 = vst [vmem:[%s3402_s8 + $0x3b8] sm:$0xff] %v830_v55  ;;  %v832_v56 = vld [vmem:[%s3397_s7 + $0x780] sm:$0xff]  ;;  %v834_v57 = vld [vmem:[%s3397_s7 + $0x790] sm:$0xff] }
  0x56   : > { %v836_v58 = vld [vmem:[%s3397_s7 + $0x7a0] sm:$0xff]  ;;  %833 = vst [vmem:[%s3402_s8 + $0x3c0] sm:$0xff] %v832_v56  ;;  %835 = vst [vmem:[%s3402_s8 + $0x3c8] sm:$0xff] %v834_v57  ;;  %v838_v59 = vld [vmem:[%s3397_s7 + $0x7b0] sm:$0xff] }
  0x57   : > { %837 = vst [vmem:[%s3402_s8 + $0x3d0] sm:$0xff] %v836_v58  ;;  %v840_v60 = vld [vmem:[%s3397_s7 + $0x7c0] sm:$0xff]  ;;  %v842_v61 = vld [vmem:[%s3397_s7 + $0x7d0] sm:$0xff]  ;;  %839 = vst [vmem:[%s3402_s8 + $0x3d8] sm:$0xff] %v838_v59 }
  0x58   : > { %841 = vst [vmem:[%s3402_s8 + $0x3e0] sm:$0xff] %v840_v60  ;;  %843 = vst [vmem:[%s3402_s8 + $0x3e8] sm:$0xff] %v842_v61  ;;  %v844_v62 = vld [vmem:[%s3397_s7 + $0x7e0] sm:$0xff]  ;;  %v846_v63 = vld [vmem:[%s3397_s7 + $0x7f0] sm:$0xff] }
  0x59   : > { %v848_v0 = vld [vmem:[%s3397_s7 + $0x800] sm:$0xff]  ;;  %845 = vst [vmem:[%s3402_s8 + $0x3f0] sm:$0xff] %v844_v62  ;;  %847 = vst [vmem:[%s3402_s8 + $0x3f8] sm:$0xff] %v846_v63  ;;  %v850_v1 = vld [vmem:[%s3397_s7 + $0x810] sm:$0xff] }
  0x5a   : > { %849 = vst [vmem:[%s3402_s8 + $0x400] sm:$0xff] %v848_v0  ;;  %v852_v2 = vld [vmem:[%s3397_s7 + $0x820] sm:$0xff]  ;;  %v854_v3 = vld [vmem:[%s3397_s7 + $0x830] sm:$0xff]  ;;  %851 = vst [vmem:[%s3402_s8 + $0x408] sm:$0xff] %v850_v1 }
  0x5b   : > { %853 = vst [vmem:[%s3402_s8 + $0x410] sm:$0xff] %v852_v2  ;;  %855 = vst [vmem:[%s3402_s8 + $0x418] sm:$0xff] %v854_v3  ;;  %v856_v4 = vld [vmem:[%s3397_s7 + $0x840] sm:$0xff]  ;;  %v858_v5 = vld [vmem:[%s3397_s7 + $0x850] sm:$0xff] }
  0x5c   : > { %v860_v6 = vld [vmem:[%s3397_s7 + $0x860] sm:$0xff]  ;;  %857 = vst [vmem:[%s3402_s8 + $0x420] sm:$0xff] %v856_v4  ;;  %859 = vst [vmem:[%s3402_s8 + $0x428] sm:$0xff] %v858_v5  ;;  %v862_v7 = vld [vmem:[%s3397_s7 + $0x870] sm:$0xff] }
  0x5d   : > { %861 = vst [vmem:[%s3402_s8 + $0x430] sm:$0xff] %v860_v6  ;;  %v864_v8 = vld [vmem:[%s3397_s7 + $0x880] sm:$0xff]  ;;  %v866_v9 = vld [vmem:[%s3397_s7 + $0x890] sm:$0xff]  ;;  %863 = vst [vmem:[%s3402_s8 + $0x438] sm:$0xff] %v862_v7 }
  0x5e   : > { %865 = vst [vmem:[%s3402_s8 + $0x440] sm:$0xff] %v864_v8  ;;  %867 = vst [vmem:[%s3402_s8 + $0x448] sm:$0xff] %v866_v9  ;;  %v868_v10 = vld [vmem:[%s3397_s7 + $0x8a0] sm:$0xff]  ;;  %v870_v11 = vld [vmem:[%s3397_s7 + $0x8b0] sm:$0xff] }
  0x5f   : > { %v872_v12 = vld [vmem:[%s3397_s7 + $0x8c0] sm:$0xff]  ;;  %869 = vst [vmem:[%s3402_s8 + $0x450] sm:$0xff] %v868_v10  ;;  %871 = vst [vmem:[%s3402_s8 + $0x458] sm:$0xff] %v870_v11  ;;  %v874_v13 = vld [vmem:[%s3397_s7 + $0x8d0] sm:$0xff] }
  0x60   : > { %873 = vst [vmem:[%s3402_s8 + $0x460] sm:$0xff] %v872_v12  ;;  %v876_v14 = vld [vmem:[%s3397_s7 + $0x8e0] sm:$0xff]  ;;  %v878_v15 = vld [vmem:[%s3397_s7 + $0x8f0] sm:$0xff]  ;;  %875 = vst [vmem:[%s3402_s8 + $0x468] sm:$0xff] %v874_v13 }
  0x61   : > { %877 = vst [vmem:[%s3402_s8 + $0x470] sm:$0xff] %v876_v14  ;;  %879 = vst [vmem:[%s3402_s8 + $0x478] sm:$0xff] %v878_v15  ;;  %v880_v16 = vld [vmem:[%s3397_s7 + $0x900] sm:$0xff]  ;;  %v882_v17 = vld [vmem:[%s3397_s7 + $0x910] sm:$0xff] }
  0x62   : > { %v884_v18 = vld [vmem:[%s3397_s7 + $0x920] sm:$0xff]  ;;  %881 = vst [vmem:[%s3402_s8 + $0x480] sm:$0xff] %v880_v16  ;;  %883 = vst [vmem:[%s3402_s8 + $0x488] sm:$0xff] %v882_v17  ;;  %v886_v19 = vld [vmem:[%s3397_s7 + $0x930] sm:$0xff] }
  0x63   : > { %885 = vst [vmem:[%s3402_s8 + $0x490] sm:$0xff] %v884_v18  ;;  %v888_v20 = vld [vmem:[%s3397_s7 + $0x940] sm:$0xff]  ;;  %v890_v21 = vld [vmem:[%s3397_s7 + $0x950] sm:$0xff]  ;;  %887 = vst [vmem:[%s3402_s8 + $0x498] sm:$0xff] %v886_v19 }
  0x64   : > { %889 = vst [vmem:[%s3402_s8 + $0x4a0] sm:$0xff] %v888_v20  ;;  %891 = vst [vmem:[%s3402_s8 + $0x4a8] sm:$0xff] %v890_v21  ;;  %v892_v22 = vld [vmem:[%s3397_s7 + $0x960] sm:$0xff]  ;;  %v894_v23 = vld [vmem:[%s3397_s7 + $0x970] sm:$0xff] }
  0x65   : > { %v896_v24 = vld [vmem:[%s3397_s7 + $0x980] sm:$0xff]  ;;  %893 = vst [vmem:[%s3402_s8 + $0x4b0] sm:$0xff] %v892_v22  ;;  %895 = vst [vmem:[%s3402_s8 + $0x4b8] sm:$0xff] %v894_v23  ;;  %v898_v25 = vld [vmem:[%s3397_s7 + $0x990] sm:$0xff] }
  0x66   : > { %897 = vst [vmem:[%s3402_s8 + $0x4c0] sm:$0xff] %v896_v24  ;;  %v900_v26 = vld [vmem:[%s3397_s7 + $0x9a0] sm:$0xff]  ;;  %v902_v27 = vld [vmem:[%s3397_s7 + $0x9b0] sm:$0xff]  ;;  %899 = vst [vmem:[%s3402_s8 + $0x4c8] sm:$0xff] %v898_v25 }
  0x67   : > { %901 = vst [vmem:[%s3402_s8 + $0x4d0] sm:$0xff] %v900_v26  ;;  %903 = vst [vmem:[%s3402_s8 + $0x4d8] sm:$0xff] %v902_v27  ;;  %v904_v28 = vld [vmem:[%s3397_s7 + $0x9c0] sm:$0xff]  ;;  %v906_v29 = vld [vmem:[%s3397_s7 + $0x9d0] sm:$0xff] }
  0x68   : > { %v908_v30 = vld [vmem:[%s3397_s7 + $0x9e0] sm:$0xff]  ;;  %905 = vst [vmem:[%s3402_s8 + $0x4e0] sm:$0xff] %v904_v28  ;;  %907 = vst [vmem:[%s3402_s8 + $0x4e8] sm:$0xff] %v906_v29  ;;  %v910_v31 = vld [vmem:[%s3397_s7 + $0x9f0] sm:$0xff] }
  0x69   : > { %909 = vst [vmem:[%s3402_s8 + $0x4f0] sm:$0xff] %v908_v30  ;;  %v912_v32 = vld [vmem:[%s3397_s7 + $0xa00] sm:$0xff]  ;;  %v914_v33 = vld [vmem:[%s3397_s7 + $0xa10] sm:$0xff]  ;;  %911 = vst [vmem:[%s3402_s8 + $0x4f8] sm:$0xff] %v910_v31 }
  0x6a   : > { %913 = vst [vmem:[%s3402_s8 + $0x500] sm:$0xff] %v912_v32  ;;  %915 = vst [vmem:[%s3402_s8 + $0x508] sm:$0xff] %v914_v33  ;;  %v916_v34 = vld [vmem:[%s3397_s7 + $0xa20] sm:$0xff]  ;;  %v918_v35 = vld [vmem:[%s3397_s7 + $0xa30] sm:$0xff] }
  0x6b   : > { %v920_v36 = vld [vmem:[%s3397_s7 + $0xa40] sm:$0xff]  ;;  %917 = vst [vmem:[%s3402_s8 + $0x510] sm:$0xff] %v916_v34  ;;  %919 = vst [vmem:[%s3402_s8 + $0x518] sm:$0xff] %v918_v35  ;;  %v922_v37 = vld [vmem:[%s3397_s7 + $0xa50] sm:$0xff] }
  0x6c   : > { %921 = vst [vmem:[%s3402_s8 + $0x520] sm:$0xff] %v920_v36  ;;  %v924_v38 = vld [vmem:[%s3397_s7 + $0xa60] sm:$0xff]  ;;  %v926_v39 = vld [vmem:[%s3397_s7 + $0xa70] sm:$0xff]  ;;  %923 = vst [vmem:[%s3402_s8 + $0x528] sm:$0xff] %v922_v37 }
  0x6d   : > { %925 = vst [vmem:[%s3402_s8 + $0x530] sm:$0xff] %v924_v38  ;;  %927 = vst [vmem:[%s3402_s8 + $0x538] sm:$0xff] %v926_v39  ;;  %v928_v40 = vld [vmem:[%s3397_s7 + $0xa80] sm:$0xff]  ;;  %v930_v41 = vld [vmem:[%s3397_s7 + $0xa90] sm:$0xff] }
  0x6e   : > { %v932_v42 = vld [vmem:[%s3397_s7 + $0xaa0] sm:$0xff]  ;;  %929 = vst [vmem:[%s3402_s8 + $0x540] sm:$0xff] %v928_v40  ;;  %931 = vst [vmem:[%s3402_s8 + $0x548] sm:$0xff] %v930_v41  ;;  %v934_v43 = vld [vmem:[%s3397_s7 + $0xab0] sm:$0xff] }
  0x6f   : > { %933 = vst [vmem:[%s3402_s8 + $0x550] sm:$0xff] %v932_v42  ;;  %v936_v44 = vld [vmem:[%s3397_s7 + $0xac0] sm:$0xff]  ;;  %v938_v45 = vld [vmem:[%s3397_s7 + $0xad0] sm:$0xff]  ;;  %935 = vst [vmem:[%s3402_s8 + $0x558] sm:$0xff] %v934_v43 }
  0x70   : > { %937 = vst [vmem:[%s3402_s8 + $0x560] sm:$0xff] %v936_v44  ;;  %939 = vst [vmem:[%s3402_s8 + $0x568] sm:$0xff] %v938_v45  ;;  %v940_v46 = vld [vmem:[%s3397_s7 + $0xae0] sm:$0xff]  ;;  %v942_v47 = vld [vmem:[%s3397_s7 + $0xaf0] sm:$0xff] }
  0x71   : > { %v944_v48 = vld [vmem:[%s3397_s7 + $0xb00] sm:$0xff]  ;;  %941 = vst [vmem:[%s3402_s8 + $0x570] sm:$0xff] %v940_v46  ;;  %943 = vst [vmem:[%s3402_s8 + $0x578] sm:$0xff] %v942_v47  ;;  %v946_v49 = vld [vmem:[%s3397_s7 + $0xb10] sm:$0xff] }
  0x72   : > { %945 = vst [vmem:[%s3402_s8 + $0x580] sm:$0xff] %v944_v48  ;;  %v948_v50 = vld [vmem:[%s3397_s7 + $0xb20] sm:$0xff]  ;;  %v950_v51 = vld [vmem:[%s3397_s7 + $0xb30] sm:$0xff]  ;;  %947 = vst [vmem:[%s3402_s8 + $0x588] sm:$0xff] %v946_v49 }
  0x73   : > { %949 = vst [vmem:[%s3402_s8 + $0x590] sm:$0xff] %v948_v50  ;;  %951 = vst [vmem:[%s3402_s8 + $0x598] sm:$0xff] %v950_v51  ;;  %v952_v52 = vld [vmem:[%s3397_s7 + $0xb40] sm:$0xff]  ;;  %v954_v53 = vld [vmem:[%s3397_s7 + $0xb50] sm:$0xff] }
  0x74   : > { %v956_v54 = vld [vmem:[%s3397_s7 + $0xb60] sm:$0xff]  ;;  %953 = vst [vmem:[%s3402_s8 + $0x5a0] sm:$0xff] %v952_v52  ;;  %955 = vst [vmem:[%s3402_s8 + $0x5a8] sm:$0xff] %v954_v53  ;;  %v958_v55 = vld [vmem:[%s3397_s7 + $0xb70] sm:$0xff] }
  0x75   : > { %957 = vst [vmem:[%s3402_s8 + $0x5b0] sm:$0xff] %v956_v54  ;;  %v960_v56 = vld [vmem:[%s3397_s7 + $0xb80] sm:$0xff]  ;;  %v962_v57 = vld [vmem:[%s3397_s7 + $0xb90] sm:$0xff]  ;;  %959 = vst [vmem:[%s3402_s8 + $0x5b8] sm:$0xff] %v958_v55 }
  0x76   : > { %961 = vst [vmem:[%s3402_s8 + $0x5c0] sm:$0xff] %v960_v56  ;;  %963 = vst [vmem:[%s3402_s8 + $0x5c8] sm:$0xff] %v962_v57  ;;  %v964_v58 = vld [vmem:[%s3397_s7 + $0xba0] sm:$0xff]  ;;  %v966_v59 = vld [vmem:[%s3397_s7 + $0xbb0] sm:$0xff] }
  0x77   : > { %v968_v60 = vld [vmem:[%s3397_s7 + $0xbc0] sm:$0xff]  ;;  %965 = vst [vmem:[%s3402_s8 + $0x5d0] sm:$0xff] %v964_v58  ;;  %967 = vst [vmem:[%s3402_s8 + $0x5d8] sm:$0xff] %v966_v59  ;;  %v970_v61 = vld [vmem:[%s3397_s7 + $0xbd0] sm:$0xff] }
  0x78   : > { %969 = vst [vmem:[%s3402_s8 + $0x5e0] sm:$0xff] %v968_v60  ;;  %v972_v62 = vld [vmem:[%s3397_s7 + $0xbe0] sm:$0xff]  ;;  %v974_v63 = vld [vmem:[%s3397_s7 + $0xbf0] sm:$0xff]  ;;  %971 = vst [vmem:[%s3402_s8 + $0x5e8] sm:$0xff] %v970_v61 }
  0x79   : > { %973 = vst [vmem:[%s3402_s8 + $0x5f0] sm:$0xff] %v972_v62  ;;  %975 = vst [vmem:[%s3402_s8 + $0x5f8] sm:$0xff] %v974_v63 }
  0x7a PF: > { %p2685_p7 = scmp.ge.s32.totalorder %s3314_s18, 1  ;;  %p988_p8 = scmp.lt.s32.totalorder %s3314_s18, 7 }
  0x7c   : > { %p989_p9 = pnand %p2685_p7, %p988_p8 }
  0x7d   : > { %s995_s9 = sand.u32 (!%p989_p9), 1, %s3290_s12   ;;  %s1035_s10 = smul.u32 (!%p989_p9), 12, %s3298_s14 }
  0x7e   : > { %992 = sbr.rel (%p989_p9) target bundleno = 571 (0x23b), region = 66  ;;  %s2687_s21 = sshll.u32 (!%p989_p9), %s3302_s15, 1 }
  0x7f   : > { %s2902_s11 = smul.u32 (!%p989_p9), 1536, %s995_s9  ;;  %p1038_p10 = scmp.lt.s32.totalorder (!%p989_p9), %s1035_s10, 35 }
  0x80   : > { %p1048_p11 = scmp.lt.s32.totalorder (!%p989_p9), %s2687_s21, 3  ;;  %p2690_p12 = scmp.ne.s32.totalorder (!%p989_p9), %s3298_s14, 0 }
  0x81   : > { %s3807_s5 = scalar_lea.vmem (!%p989_p9), [#allocation3], %s2902_s11 }
  0x85   : > { %s4077_s10 = smov (!%p1038_p10, %s1035_s10), 35  ;;  %s4079_s21 = smov (!%p1048_p11, %s2687_s21), 3 }
  0x86   : > { %s2686_s22 = sshll.u32 %s4077_s10, 2  ;;  %s1050_s12 = scalar_lea.vmem %s4062_s2, %s4079_s21  ;;  %v3316_v0 = vmov (!%p2690_p12), 0.0  }
  0x87   : > { %s3795_s26 = scalar_lea.vmem %s4060_s0, %s2686_s22  ;;  %s2689_s29 = sshll.u32 %s4079_s21, 2  ;;  %1066 = vst [vmem:[#allocation2] sm:$0xff] (!%p2690_p12), %v3316_v0  ;;  %1067 = vst [vmem:[#allocation2 + $0x8] sm:$0xff] (!%p2690_p12), %v3316_v0 }
  0x88   : > { %s3805_s4 = scalar_lea.vmem %s4063_s3, %s2689_s29  ;;  %1065 = sbr.rel (%p2690_p12) target bundleno = 143 (0x8f), region = 74 }
  0x8f PF: > { %v2960_v1 = vld [vmem:[%s3807_s5 + $0x4] ss:$8 sps:$4 sm:$0xff]   ;;  %v2964_v3 = vld [vmem:[%s3807_s5] ss:$8 sps:$4 sm:$0xff]   ;;  %v2966_v5 = vld [vmem:[%s3807_s5 + $0x14] ss:$8 sps:$4 sm:$0xff]  }
  0x90   : > { %v2962_v2 = vld [vmem:[%s3807_s5 + $0x104] ss:$8 sps:$4 sm:$0xff]   ;;  %2270 = vmatprep.subr.bf16.mxu0 %v2960_v1  ;;  %v2965_v4 = vld [vmem:[%s3807_s5 + $0x100] ss:$8 sps:$4 sm:$0xff]   ;;  %v2968_v6 = vld [vmem:[%s3807_s5 + $0x114] ss:$8 sps:$4 sm:$0xff]  }
  0x91   : > { %2311 = vmatprep.subr.bf16.mxu1 %v2962_v2  ;;  %2271 = vmatpush1.bf16.msra.mxu0 %v2964_v3  ;;  %v2970_v7 = vld [vmem:[%s3807_s5 + $0x10] ss:$8 sps:$4 sm:$0xff]   ;;  %v2972_v9 = vld [vmem:[%s3807_s5 + $0x24] ss:$8 sps:$4 sm:$0xff]   ;;  %v2976_v11 = vld [vmem:[%s3807_s5 + $0x20] ss:$8 sps:$4 sm:$0xff]  }
  0x92   : > { %2312 = vmatpush1.bf16.msra.mxu1 %v2965_v4  ;;  %2272 = vmatprep.subr.bf16.mxu0 %v2966_v5  ;;  %v2971_v8 = vld [vmem:[%s3807_s5 + $0x110] ss:$8 sps:$4 sm:$0xff]   ;;  %v2974_v10 = vld [vmem:[%s3807_s5 + $0x124] ss:$8 sps:$4 sm:$0xff]   ;;  %v2977_v12 = vld [vmem:[%s3807_s5 + $0x120] ss:$8 sps:$4 sm:$0xff]  }
  0x93   : > { %2313 = vmatprep.subr.bf16.mxu1 %v2968_v6  ;;  %v2978_v13 = vld [vmem:[%s3807_s5 + $0x34] ss:$8 sps:$4 sm:$0xff]   ;;  %v2982_v15 = vld [vmem:[%s3807_s5 + $0x30] ss:$8 sps:$4 sm:$0xff]   ;;  %v2984_v17 = vld [vmem:[%s3807_s5 + $0x44] ss:$8 sps:$4 sm:$0xff]  }
  0x94   : > { %v2980_v14 = vld [vmem:[%s3807_s5 + $0x134] ss:$8 sps:$4 sm:$0xff]   ;;  %v2983_v16 = vld [vmem:[%s3807_s5 + $0x130] ss:$8 sps:$4 sm:$0xff]   ;;  %v2986_v18 = vld [vmem:[%s3807_s5 + $0x144] ss:$8 sps:$4 sm:$0xff]  }
  0x95   : > { %2273 = vmatpush1.bf16.msra.mxu0 %v2970_v7  ;;  %v2988_v19 = vld [vmem:[%s3807_s5 + $0x40] ss:$8 sps:$4 sm:$0xff]   ;;  %v2990_v21 = vld [vmem:[%s3807_s5 + $0x54] ss:$8 sps:$4 sm:$0xff]   ;;  %v2994_v23 = vld [vmem:[%s3807_s5 + $0x50] ss:$8 sps:$4 sm:$0xff]  }
  0x96   : > { %2314 = vmatpush1.bf16.msra.mxu1 %v2971_v8  ;;  %2274 = vmatprep.subr.bf16.mxu0 %v2972_v9  ;;  %v2989_v20 = vld [vmem:[%s3807_s5 + $0x140] ss:$8 sps:$4 sm:$0xff]   ;;  %v2992_v22 = vld [vmem:[%s3807_s5 + $0x154] ss:$8 sps:$4 sm:$0xff]   ;;  %v2995_v24 = vld [vmem:[%s3807_s5 + $0x150] ss:$8 sps:$4 sm:$0xff]  }
  0x97   : > { %2315 = vmatprep.subr.bf16.mxu1 %v2974_v10  ;;  %v2996_v25 = vld [vmem:[%s3807_s5 + $0x64] ss:$8 sps:$4 sm:$0xff]   ;;  %v3000_v27 = vld [vmem:[%s3807_s5 + $0x60] ss:$8 sps:$4 sm:$0xff]   ;;  %v3002_v29 = vld [vmem:[%s3807_s5 + $0x74] ss:$8 sps:$4 sm:$0xff]  }
  0x98   : > { %v2998_v26 = vld [vmem:[%s3807_s5 + $0x164] ss:$8 sps:$4 sm:$0xff]   ;;  %v3001_v28 = vld [vmem:[%s3807_s5 + $0x160] ss:$8 sps:$4 sm:$0xff]   ;;  %v3004_v30 = vld [vmem:[%s3807_s5 + $0x174] ss:$8 sps:$4 sm:$0xff]  }
  0x99   : > { %2275 = vmatpush1.bf16.msra.mxu0 %v2976_v11  ;;  %v3006_v31 = vld [vmem:[%s3807_s5 + $0x70] ss:$8 sps:$4 sm:$0xff]   ;;  %v3008_v33 = vld [vmem:[%s3807_s5 + $0x84] ss:$8 sps:$4 sm:$0xff]   ;;  %v3012_v35 = vld [vmem:[%s3807_s5 + $0x80] ss:$8 sps:$4 sm:$0xff]  }
  0x9a   : > { %2316 = vmatpush1.bf16.msra.mxu1 %v2977_v12  ;;  %2276 = vmatprep.subr.bf16.mxu0 %v2978_v13  ;;  %v3007_v32 = vld [vmem:[%s3807_s5 + $0x170] ss:$8 sps:$4 sm:$0xff]   ;;  %v3010_v34 = vld [vmem:[%s3807_s5 + $0x184] ss:$8 sps:$4 sm:$0xff]   ;;  %v3013_v36 = vld [vmem:[%s3807_s5 + $0x180] ss:$8 sps:$4 sm:$0xff]  }
  0x9b   : > { %2317 = vmatprep.subr.bf16.mxu1 %v2980_v14  ;;  %v3014_v37 = vld [vmem:[%s3807_s5 + $0x94] ss:$8 sps:$4 sm:$0xff]   ;;  %v3018_v39 = vld [vmem:[%s3807_s5 + $0x90] ss:$8 sps:$4 sm:$0xff]   ;;  %v3020_v41 = vld [vmem:[%s3807_s5 + $0xa4] ss:$8 sps:$4 sm:$0xff]  }
  0x9c   : > { %v3016_v38 = vld [vmem:[%s3807_s5 + $0x194] ss:$8 sps:$4 sm:$0xff]   ;;  %v3019_v40 = vld [vmem:[%s3807_s5 + $0x190] ss:$8 sps:$4 sm:$0xff]   ;;  %v3022_v42 = vld [vmem:[%s3807_s5 + $0x1a4] ss:$8 sps:$4 sm:$0xff]  }
  0x9d   : > { %2277 = vmatpush1.bf16.msra.mxu0 %v2982_v15  ;;  %v3024_v43 = vld [vmem:[%s3807_s5 + $0xa0] ss:$8 sps:$4 sm:$0xff]   ;;  %v3026_v45 = vld [vmem:[%s3807_s5 + $0xb4] ss:$8 sps:$4 sm:$0xff]   ;;  %v3030_v50 = vld [vmem:[%s3807_s5 + $0xb0] ss:$8 sps:$4 sm:$0xff]  }
  0x9e   : > { %2318 = vmatpush1.bf16.msra.mxu1 %v2983_v16  ;;  %2278 = vmatprep.subr.bf16.mxu0 %v2984_v17  ;;  %v3025_v44 = vld [vmem:[%s3807_s5 + $0x1a0] ss:$8 sps:$4 sm:$0xff]   ;;  %v3028_v46 = vld [vmem:[%s3807_s5 + $0x1b4] ss:$8 sps:$4 sm:$0xff]   ;;  %v3031_v51 = vld [vmem:[%s3807_s5 + $0x1b0] ss:$8 sps:$4 sm:$0xff]  }
  0x9f   : > { %2319 = vmatprep.subr.bf16.mxu1 %v2986_v18  ;;  %v1070_v47 = vld [vmem:[%s3795_s26] sm:$0xff]  ;;  %v1071_v49 = vld [vmem:[%s3795_s26 + $0x8] sm:$0xff]  ;;  %v3032_v53 = vld [vmem:[%s3807_s5 + $0xc4] ss:$8 sps:$4 sm:$0xff]   ;;  %p2895_p13 = scmp.ne.s32.totalorder %s3298_s14, 2 }
  0xa0   : > { %v2692_v48 = vcombine.high %v1070_v47, %v1070_v47  ;;  %v2694_v52 = vcombine.high %v1071_v49, %v1071_v49  ;;  %v3034_v54 = vld [vmem:[%s3807_s5 + $0x1c4] ss:$8 sps:$4 sm:$0xff]   ;;  %v3036_v55 = vld [vmem:[%s3807_s5 + $0xc0] ss:$8 sps:$4 sm:$0xff]   ;;  %v3038_v57 = vld [vmem:[%s3807_s5 + $0xd4] ss:$8 sps:$4 sm:$0xff]   ;;  %v2691_v7 = vcombine.low %v1070_v47, %v1070_v47  ;;  %v2693_v8 = vcombine.low %v1071_v49, %v1071_v49 }
  0xa1   : > { %2279 = vmatpush1.bf16.msra.mxu0 %v2988_v19  ;;  %v3037_v56 = vld [vmem:[%s3807_s5 + $0x1c0] ss:$8 sps:$4 sm:$0xff]   ;;  %v3040_v58 = vld [vmem:[%s3807_s5 + $0x1d4] ss:$8 sps:$4 sm:$0xff]   ;;  %v3042_v59 = vld [vmem:[%s3807_s5 + $0xd0] ss:$8 sps:$4 sm:$0xff]  }
  0xa2   : > { %2320 = vmatpush1.bf16.msra.mxu1 %v2989_v20  ;;  %2280 = vmatprep.subr.bf16.mxu0 %v2990_v21  ;;  %v3043_v60 = vld [vmem:[%s3807_s5 + $0x1d0] ss:$8 sps:$4 sm:$0xff]   ;;  %v3044_v61 = vld [vmem:[%s3807_s5 + $0xe4] ss:$8 sps:$4 sm:$0xff]   ;;  %v3048_v63 = vld [vmem:[%s3807_s5 + $0xe0] ss:$8 sps:$4 sm:$0xff]  }
  0xa3   : > { %2321 = vmatprep.subr.bf16.mxu1 %v2992_v22  ;;  %2302 = vmatprep.mubr.bf16.mxu0 %v2692_v48  ;;  %v3046_v62 = vld [vmem:[%s3807_s5 + $0x1e4] ss:$8 sps:$4 sm:$0xff]   ;;  %v3049_v0 = vld [vmem:[%s3807_s5 + $0x1e0] ss:$8 sps:$4 sm:$0xff]   ;;  %v3050_v1 = vld [vmem:[%s3807_s5 + $0xf4] ss:$8 sps:$4 sm:$0xff]  }
  0xa4   : > { %2343 = vmatprep.mubr.bf16.mxu1 %v2694_v52  ;;  %v3052_v2 = vld [vmem:[%s3807_s5 + $0x1f4] ss:$8 sps:$4 sm:$0xff]   ;;  %v3054_v3 = vld [vmem:[%s3807_s5 + $0xf0] ss:$8 sps:$4 sm:$0xff]   ;;  %v3062_v5 = vld [vmem:[%s3807_s5 + $0x204] ss:$8 sps:$4 sm:$0xff]  }
  0xa5   : > { %2281 = vmatpush1.bf16.msra.mxu0 %v2994_v23  ;;  %v3055_v4 = vld [vmem:[%s3807_s5 + $0x1f0] ss:$8 sps:$4 sm:$0xff]   ;;  %v3065_v6 = vld [vmem:[%s3807_s5 + $0x304] ss:$8 sps:$4 sm:$0xff]   ;;  %v3060_v9 = vld [vmem:[%s3807_s5 + $0x200] ss:$8 sps:$4 sm:$0xff]  }
  0xa6   : > { %2322 = vmatpush1.bf16.msra.mxu1 %v2995_v24  ;;  %2282 = vmatprep.subr.bf16.mxu0 %v2996_v25  ;;  %v3063_v10 = vld [vmem:[%s3807_s5 + $0x300] ss:$8 sps:$4 sm:$0xff]   ;;  %v3068_v11 = vld [vmem:[%s3807_s5 + $0x214] ss:$8 sps:$4 sm:$0xff]   ;;  %v3066_v13 = vld [vmem:[%s3807_s5 + $0x210] ss:$8 sps:$4 sm:$0xff]  }
  0xa7   : > { %2323 = vmatprep.subr.bf16.mxu1 %v2998_v26  ;;  %v3071_v12 = vld [vmem:[%s3807_s5 + $0x314] ss:$8 sps:$4 sm:$0xff]   ;;  %v3069_v14 = vld [vmem:[%s3807_s5 + $0x310] ss:$8 sps:$4 sm:$0xff]   ;;  %v3074_v15 = vld [vmem:[%s3807_s5 + $0x224] ss:$8 sps:$4 sm:$0xff]  }
  0xa8   : > { %v3077_v16 = vld [vmem:[%s3807_s5 + $0x324] ss:$8 sps:$4 sm:$0xff]   ;;  %v3072_v17 = vld [vmem:[%s3807_s5 + $0x220] ss:$8 sps:$4 sm:$0xff]   ;;  %v3080_v19 = vld [vmem:[%s3807_s5 + $0x234] ss:$8 sps:$4 sm:$0xff]  }
  0xa9   : > { %2283 = vmatpush1.bf16.msra.mxu0 %v3000_v27  ;;  %v3075_v18 = vld [vmem:[%s3807_s5 + $0x320] ss:$8 sps:$4 sm:$0xff]   ;;  %v3083_v20 = vld [vmem:[%s3807_s5 + $0x334] ss:$8 sps:$4 sm:$0xff]   ;;  %v3078_v21 = vld [vmem:[%s3807_s5 + $0x230] ss:$8 sps:$4 sm:$0xff]  }
  0xaa   : > { %2324 = vmatpush1.bf16.msra.mxu1 %v3001_v28  ;;  %2284 = vmatprep.subr.bf16.mxu0 %v3002_v29  ;;  %v3081_v22 = vld [vmem:[%s3807_s5 + $0x330] ss:$8 sps:$4 sm:$0xff]   ;;  %v3086_v23 = vld [vmem:[%s3807_s5 + $0x244] ss:$8 sps:$4 sm:$0xff]   ;;  %v3084_v25 = vld [vmem:[%s3807_s5 + $0x240] ss:$8 sps:$4 sm:$0xff]  }
  0xab   : > { %2325 = vmatprep.subr.bf16.mxu1 %v3004_v30  ;;  %v3089_v24 = vld [vmem:[%s3807_s5 + $0x344] ss:$8 sps:$4 sm:$0xff]   ;;  %v3087_v26 = vld [vmem:[%s3807_s5 + $0x340] ss:$8 sps:$4 sm:$0xff]   ;;  %v3092_v27 = vld [vmem:[%s3807_s5 + $0x254] ss:$8 sps:$4 sm:$0xff]  }
  0xac   : > { %v3095_v28 = vld [vmem:[%s3807_s5 + $0x354] ss:$8 sps:$4 sm:$0xff]   ;;  %v3090_v29 = vld [vmem:[%s3807_s5 + $0x250] ss:$8 sps:$4 sm:$0xff]   ;;  %v3125_v52 = vld [vmem:[%s3807_s5 + $0x3a4] ss:$8 sps:$4 sm:$0xff]  }
  0xad   : > { %2285 = vmatpush1.bf16.msra.mxu0 %v3006_v31  ;;  %v3093_v30 = vld [vmem:[%s3807_s5 + $0x350] ss:$8 sps:$4 sm:$0xff]   ;;  %v3098_v31 = vld [vmem:[%s3807_s5 + $0x264] ss:$8 sps:$4 sm:$0xff]   ;;  %v3116_v47 = vld [vmem:[%s3807_s5 + $0x294] ss:$8 sps:$4 sm:$0xff]  }
  0xae   : > { %2326 = vmatpush1.bf16.msra.mxu1 %v3007_v32  ;;  %2286 = vmatprep.subr.bf16.mxu0 %v3008_v33  ;;  %v3101_v32 = vld [vmem:[%s3807_s5 + $0x364] ss:$8 sps:$4 sm:$0xff]   ;;  %v3119_v48 = vld [vmem:[%s3807_s5 + $0x394] ss:$8 sps:$4 sm:$0xff]   ;;  %v3114_v49 = vld [vmem:[%s3807_s5 + $0x290] ss:$8 sps:$4 sm:$0xff]  }
  0xaf   : > { %2327 = vmatprep.subr.bf16.mxu1 %v3010_v34  ;;  %v3903_v33 = vld [vmem:[%s3795_s26 + $0x10] sm:$0xff]  ;;  %v3906_v34 = vld [vmem:[%s3795_s26 + $0x18] sm:$0xff] }
  0xb1   : > { %2287 = vmatpush1.bf16.msra.mxu0 %v3012_v35  ;;  %v3096_v35 = vld [vmem:[%s3807_s5 + $0x260] ss:$8 sps:$4 sm:$0xff]  }
  0xb2   : > { %2328 = vmatpush1.bf16.msra.mxu1 %v3013_v36  ;;  %2288 = vmatprep.subr.bf16.mxu0 %v3014_v37  ;;  %v3099_v36 = vld [vmem:[%s3807_s5 + $0x360] ss:$8 sps:$4 sm:$0xff]   ;;  %v2696_v37 = vcombine.high %v3903_v33, %v3903_v33 }
  0xb3   : > { %2329 = vmatprep.subr.bf16.mxu1 %v3016_v38  ;;  %v2698_v38 = vcombine.high %v3906_v34, %v3906_v34 }
  0xb5   : > { %2289 = vmatpush1.bf16.msra.mxu0 %v3018_v39  ;;  %v3104_v39 = vld [vmem:[%s3807_s5 + $0x274] ss:$8 sps:$4 sm:$0xff]  }
  0xb6   : > { %2330 = vmatpush1.bf16.msra.mxu1 %v3019_v40  ;;  %2290 = vmatprep.subr.bf16.mxu0 %v3020_v41  ;;  %v3107_v40 = vld [vmem:[%s3807_s5 + $0x374] ss:$8 sps:$4 sm:$0xff]   ;;  %v3102_v41 = vld [vmem:[%s3807_s5 + $0x270] ss:$8 sps:$4 sm:$0xff]  }
  0xb7   : > { %2331 = vmatprep.subr.bf16.mxu1 %v3022_v42  ;;  %v3105_v42 = vld [vmem:[%s3807_s5 + $0x370] ss:$8 sps:$4 sm:$0xff]  }
  0xb9   : > { %2291 = vmatpush1.bf16.msra.mxu0 %v3024_v43  ;;  %v3110_v43 = vld [vmem:[%s3807_s5 + $0x284] ss:$8 sps:$4 sm:$0xff]  }
  0xba   : > { %2332 = vmatpush1.bf16.msra.mxu1 %v3025_v44  ;;  %2292 = vmatprep.subr.bf16.mxu0 %v3026_v45  ;;  %v3113_v44 = vld [vmem:[%s3807_s5 + $0x384] ss:$8 sps:$4 sm:$0xff]   ;;  %v3108_v45 = vld [vmem:[%s3807_s5 + $0x280] ss:$8 sps:$4 sm:$0xff]  }
  0xbb   : > { %2333 = vmatprep.subr.bf16.mxu1 %v3028_v46  ;;  %v3111_v46 = vld [vmem:[%s3807_s5 + $0x380] ss:$8 sps:$4 sm:$0xff]  }
  0xbd   : > { %2293 = vmatpush1.bf16.msra.mxu0 %v3030_v50  ;;  %v3117_v50 = vld [vmem:[%s3807_s5 + $0x390] ss:$8 sps:$4 sm:$0xff]  }
  0xbe   : > { %2334 = vmatpush1.bf16.msra.mxu1 %v3031_v51  ;;  %2294 = vmatprep.subr.bf16.mxu0 %v3032_v53  ;;  %v3122_v51 = vld [vmem:[%s3807_s5 + $0x2a4] ss:$8 sps:$4 sm:$0xff]   ;;  %v3120_v53 = vld [vmem:[%s3807_s5 + $0x2a0] ss:$8 sps:$4 sm:$0xff]  }
  0xbf   : > { %2335 = vmatprep.subr.bf16.mxu1 %v3034_v54  ;;  %v3123_v54 = vld [vmem:[%s3807_s5 + $0x3a0] ss:$8 sps:$4 sm:$0xff]  }
  0xc1   : > { %2295 = vmatpush1.bf16.msra.mxu0 %v3036_v55  ;;  %v3128_v55 = vld [vmem:[%s3807_s5 + $0x2b4] ss:$8 sps:$4 sm:$0xff]  }
  0xc2   : > { %2336 = vmatpush1.bf16.msra.mxu1 %v3037_v56  ;;  %2296 = vmatprep.subr.bf16.mxu0 %v3038_v57  ;;  %v3131_v56 = vld [vmem:[%s3807_s5 + $0x3b4] ss:$8 sps:$4 sm:$0xff]   ;;  %v3126_v57 = vld [vmem:[%s3807_s5 + $0x2b0] ss:$8 sps:$4 sm:$0xff]  }
  0xc3   : > { %2337 = vmatprep.subr.bf16.mxu1 %v3040_v58  ;;  %v3129_v58 = vld [vmem:[%s3807_s5 + $0x3b0] ss:$8 sps:$4 sm:$0xff]  }
  0xc5   : > { %2297 = vmatpush1.bf16.msra.mxu0 %v3042_v59  ;;  %v3134_v59 = vld [vmem:[%s3807_s5 + $0x2c4] ss:$8 sps:$4 sm:$0xff]  }
  0xc6   : > { %2338 = vmatpush1.bf16.msra.mxu1 %v3043_v60  ;;  %2298 = vmatprep.subr.bf16.mxu0 %v3044_v61  ;;  %v3137_v60 = vld [vmem:[%s3807_s5 + $0x3c4] ss:$8 sps:$4 sm:$0xff]   ;;  %v3132_v61 = vld [vmem:[%s3807_s5 + $0x2c0] ss:$8 sps:$4 sm:$0xff]  }
  0xc7   : > { %2339 = vmatprep.subr.bf16.mxu1 %v3046_v62  ;;  %v3135_v62 = vld [vmem:[%s3807_s5 + $0x3c0] ss:$8 sps:$4 sm:$0xff]  }
  0xc9   : > { %2299 = vmatpush1.bf16.msra.mxu0 %v3048_v63  ;;  %v3140_v63 = vld [vmem:[%s3807_s5 + $0x2d4] ss:$8 sps:$4 sm:$0xff]  }
  0xca   : > { %2340 = vmatpush1.bf16.msra.mxu1 %v3049_v0  ;;  %2300 = vmatprep.subr.bf16.mxu0 %v3050_v1  ;;  %v3143_v0 = vld [vmem:[%s3807_s5 + $0x3d4] ss:$8 sps:$4 sm:$0xff]   ;;  %v3138_v1 = vld [vmem:[%s3807_s5 + $0x2d0] ss:$8 sps:$4 sm:$0xff]  }
  0xcb   : > { %2341 = vmatprep.subr.bf16.mxu1 %v3052_v2  ;;  %v3141_v2 = vld [vmem:[%s3807_s5 + $0x3d0] ss:$8 sps:$4 sm:$0xff]  }
  0xcd   : > { %2301 = vmatpush1.bf16.msra.mxu0 %v3054_v3  ;;  %v3146_v3 = vld [vmem:[%s3807_s5 + $0x2e4] ss:$8 sps:$4 sm:$0xff]  }
  0xce   : > { %2342 = vmatpush1.bf16.msra.mxu1 %v3055_v4  ;;  %2352 = vmatprep.subr.bf16.mxu0 %v3062_v5  ;;  %v3149_v4 = vld [vmem:[%s3807_s5 + $0x3e4] ss:$8 sps:$4 sm:$0xff]   ;;  %v3144_v5 = vld [vmem:[%s3807_s5 + $0x2e0] ss:$8 sps:$4 sm:$0xff]  }
  0xcf   : > { %2393 = vmatprep.subr.bf16.mxu1 %v3065_v6  ;;  %v3147_v6 = vld [vmem:[%s3807_s5 + $0x3e0] ss:$8 sps:$4 sm:$0xff]  }
  0xd0   : > { %2303 = vmatmul.mubr.bf16.vlgmr.msra.gmra.mrb[0].mxu0 %v2691_v7  ;;  %v3152_v7 = vld [vmem:[%s3807_s5 + $0x2f4] ss:$8 sps:$4 sm:$0xff]  }
  0xd1   : > { %2344 = vmatmul.mubr.bf16.vlgmr.msra.gmra.mrb[0].mxu1 %v2693_v8  ;;  %2353 = vmatpush1.bf16.msra.mxu0 %v3060_v9  ;;  %v3155_v8 = vld [vmem:[%s3807_s5 + $0x3f4] ss:$8 sps:$4 sm:$0xff]   ;;  %v3150_v9 = vld [vmem:[%s3807_s5 + $0x2f0] ss:$8 sps:$4 sm:$0xff]  }
  0xd2   : > { %2394 = vmatpush1.bf16.msra.mxu1 %v3063_v10  ;;  %2354 = vmatprep.subr.bf16.mxu0 %v3068_v11  ;;  %v3153_v10 = vld [vmem:[%s3807_s5 + $0x3f0] ss:$8 sps:$4 sm:$0xff]   ;;  %v3162_v11 = vld [vmem:[%s3807_s5 + $0x404] ss:$8 sps:$4 sm:$0xff]  }
  0xd3   : > { %2395 = vmatprep.subr.bf16.mxu1 %v3071_v12  ;;  %2384 = vmatprep.mubr.bf16.mxu0 %v2696_v37  ;;  %v3165_v12 = vld [vmem:[%s3807_s5 + $0x504] ss:$8 sps:$4 sm:$0xff]   ;;  %v3192_v37 = vld [vmem:[%s3807_s5 + $0x454] ss:$8 sps:$4 sm:$0xff]  }
  0xd4   : > { %2425 = vmatprep.mubr.bf16.mxu1 %v2698_v38  ;;  %v3195_v38 = vld [vmem:[%s3807_s5 + $0x554] ss:$8 sps:$4 sm:$0xff]  }
  0xd5   : > { %2355 = vmatpush1.bf16.msra.mxu0 %v3066_v13  ;;  %v2695_v13 = vcombine.low %v3903_v33, %v3903_v33  ;;  %v3186_v33 = vld [vmem:[%s3807_s5 + $0x444] ss:$8 sps:$4 sm:$0xff]  }
  0xd6   : > { %2396 = vmatpush1.bf16.msra.mxu1 %v3069_v14  ;;  %2356 = vmatprep.subr.bf16.mxu0 %v3074_v15  ;;  %v2697_v14 = vcombine.low %v3906_v34, %v3906_v34  ;;  %v3160_v15 = vld [vmem:[%s3807_s5 + $0x400] ss:$8 sps:$4 sm:$0xff]   ;;  %v3189_v34 = vld [vmem:[%s3807_s5 + $0x544] ss:$8 sps:$4 sm:$0xff]  }
  0xd7   : > { %2397 = vmatprep.subr.bf16.mxu1 %v3077_v16  ;;  %v3163_v16 = vld [vmem:[%s3807_s5 + $0x500] ss:$8 sps:$4 sm:$0xff]  }
  0xd9   : > { %2357 = vmatpush1.bf16.msra.mxu0 %v3072_v17  ;;  %v3168_v17 = vld [vmem:[%s3807_s5 + $0x414] ss:$8 sps:$4 sm:$0xff]  }
  0xda   : > { %2398 = vmatpush1.bf16.msra.mxu1 %v3075_v18  ;;  %2358 = vmatprep.subr.bf16.mxu0 %v3080_v19  ;;  %v3171_v18 = vld [vmem:[%s3807_s5 + $0x514] ss:$8 sps:$4 sm:$0xff]  }
  0xdb   : > { %2399 = vmatprep.subr.bf16.mxu1 %v3083_v20  ;;  %v3961_v19 = vld [vmem:[%s3795_s26 + $0x20] sm:$0xff]  ;;  %v3964_v20 = vld [vmem:[%s3795_s26 + $0x28] sm:$0xff] }
  0xdd   : > { %2359 = vmatpush1.bf16.msra.mxu0 %v3078_v21  ;;  %v2700_v21 = vcombine.high %v3961_v19, %v3961_v19 }
  0xde   : > { %2400 = vmatpush1.bf16.msra.mxu1 %v3081_v22  ;;  %2360 = vmatprep.subr.bf16.mxu0 %v3086_v23  ;;  %v2702_v22 = vcombine.high %v3964_v20, %v3964_v20  ;;  %v3166_v23 = vld [vmem:[%s3807_s5 + $0x410] ss:$8 sps:$4 sm:$0xff]  }
  0xdf   : > { %2401 = vmatprep.subr.bf16.mxu1 %v3089_v24  ;;  %v3169_v24 = vld [vmem:[%s3807_s5 + $0x510] ss:$8 sps:$4 sm:$0xff]  }
  0xe1   : > { %2361 = vmatpush1.bf16.msra.mxu0 %v3084_v25  ;;  %v3174_v25 = vld [vmem:[%s3807_s5 + $0x424] ss:$8 sps:$4 sm:$0xff]  }
  0xe2   : > { %2402 = vmatpush1.bf16.msra.mxu1 %v3087_v26  ;;  %2362 = vmatprep.subr.bf16.mxu0 %v3092_v27  ;;  %v3177_v26 = vld [vmem:[%s3807_s5 + $0x524] ss:$8 sps:$4 sm:$0xff]   ;;  %v3172_v27 = vld [vmem:[%s3807_s5 + $0x420] ss:$8 sps:$4 sm:$0xff]  }
  0xe3   : > { %2403 = vmatprep.subr.bf16.mxu1 %v3095_v28  ;;  %v3175_v28 = vld [vmem:[%s3807_s5 + $0x520] ss:$8 sps:$4 sm:$0xff]  }
  0xe5   : > { %2363 = vmatpush1.bf16.msra.mxu0 %v3090_v29  ;;  %v3180_v29 = vld [vmem:[%s3807_s5 + $0x434] ss:$8 sps:$4 sm:$0xff]  }
  0xe6   : > { %2404 = vmatpush1.bf16.msra.mxu1 %v3093_v30  ;;  %2364 = vmatprep.subr.bf16.mxu0 %v3098_v31  ;;  %v3183_v30 = vld [vmem:[%s3807_s5 + $0x534] ss:$8 sps:$4 sm:$0xff]   ;;  %v3178_v31 = vld [vmem:[%s3807_s5 + $0x430] ss:$8 sps:$4 sm:$0xff]  }
  0xe7   : > { %2405 = vmatprep.subr.bf16.mxu1 %v3101_v32  ;;  %v3181_v32 = vld [vmem:[%s3807_s5 + $0x530] ss:$8 sps:$4 sm:$0xff]  }
  0xe9   : > { %2365 = vmatpush1.bf16.msra.mxu0 %v3096_v35  ;;  %v3184_v35 = vld [vmem:[%s3807_s5 + $0x440] ss:$8 sps:$4 sm:$0xff]  }
  0xea   : > { %2406 = vmatpush1.bf16.msra.mxu1 %v3099_v36  ;;  %2366 = vmatprep.subr.bf16.mxu0 %v3104_v39  ;;  %v3187_v36 = vld [vmem:[%s3807_s5 + $0x540] ss:$8 sps:$4 sm:$0xff]   ;;  %v3190_v39 = vld [vmem:[%s3807_s5 + $0x450] ss:$8 sps:$4 sm:$0xff]  }
  0xeb   : > { %2407 = vmatprep.subr.bf16.mxu1 %v3107_v40  ;;  %v3193_v40 = vld [vmem:[%s3807_s5 + $0x550] ss:$8 sps:$4 sm:$0xff]  }
  0xed   : > { %2367 = vmatpush1.bf16.msra.mxu0 %v3102_v41  ;;  %v3198_v41 = vld [vmem:[%s3807_s5 + $0x464] ss:$8 sps:$4 sm:$0xff]  }
  0xee   : > { %2408 = vmatpush1.bf16.msra.mxu1 %v3105_v42  ;;  %2368 = vmatprep.subr.bf16.mxu0 %v3110_v43  ;;  %v3201_v42 = vld [vmem:[%s3807_s5 + $0x564] ss:$8 sps:$4 sm:$0xff]   ;;  %v3196_v43 = vld [vmem:[%s3807_s5 + $0x460] ss:$8 sps:$4 sm:$0xff]  }
  0xef   : > { %2409 = vmatprep.subr.bf16.mxu1 %v3113_v44  ;;  %v3199_v44 = vld [vmem:[%s3807_s5 + $0x560] ss:$8 sps:$4 sm:$0xff]  }
  0xf1   : > { %2369 = vmatpush1.bf16.msra.mxu0 %v3108_v45  ;;  %v3204_v45 = vld [vmem:[%s3807_s5 + $0x474] ss:$8 sps:$4 sm:$0xff]  }
  0xf2   : > { %2410 = vmatpush1.bf16.msra.mxu1 %v3111_v46  ;;  %2370 = vmatprep.subr.bf16.mxu0 %v3116_v47  ;;  %v3207_v46 = vld [vmem:[%s3807_s5 + $0x574] ss:$8 sps:$4 sm:$0xff]   ;;  %v3202_v47 = vld [vmem:[%s3807_s5 + $0x470] ss:$8 sps:$4 sm:$0xff]  }
  0xf3   : > { %2411 = vmatprep.subr.bf16.mxu1 %v3119_v48  ;;  %v3205_v48 = vld [vmem:[%s3807_s5 + $0x570] ss:$8 sps:$4 sm:$0xff]  }
  0xf5   : > { %2371 = vmatpush1.bf16.msra.mxu0 %v3114_v49  ;;  %v3210_v49 = vld [vmem:[%s3807_s5 + $0x484] ss:$8 sps:$4 sm:$0xff]  }
  0xf6   : > { %2412 = vmatpush1.bf16.msra.mxu1 %v3117_v50  ;;  %2372 = vmatprep.subr.bf16.mxu0 %v3122_v51  ;;  %v3213_v50 = vld [vmem:[%s3807_s5 + $0x584] ss:$8 sps:$4 sm:$0xff]   ;;  %v3208_v51 = vld [vmem:[%s3807_s5 + $0x480] ss:$8 sps:$4 sm:$0xff]  }
  0xf7   : > { %2413 = vmatprep.subr.bf16.mxu1 %v3125_v52  ;;  %v3211_v52 = vld [vmem:[%s3807_s5 + $0x580] ss:$8 sps:$4 sm:$0xff]  }
  0xf9   : > { %2373 = vmatpush1.bf16.msra.mxu0 %v3120_v53  ;;  %v3216_v53 = vld [vmem:[%s3807_s5 + $0x494] ss:$8 sps:$4 sm:$0xff]  }
  0xfa   : > { %2414 = vmatpush1.bf16.msra.mxu1 %v3123_v54  ;;  %2374 = vmatprep.subr.bf16.mxu0 %v3128_v55  ;;  %v3219_v54 = vld [vmem:[%s3807_s5 + $0x594] ss:$8 sps:$4 sm:$0xff]   ;;  %v3214_v55 = vld [vmem:[%s3807_s5 + $0x490] ss:$8 sps:$4 sm:$0xff]  }
  0xfb   : > { %2415 = vmatprep.subr.bf16.mxu1 %v3131_v56  ;;  %v3217_v56 = vld [vmem:[%s3807_s5 + $0x590] ss:$8 sps:$4 sm:$0xff]  }
  0xfd   : > { %2375 = vmatpush1.bf16.msra.mxu0 %v3126_v57  ;;  %v3222_v57 = vld [vmem:[%s3807_s5 + $0x4a4] ss:$8 sps:$4 sm:$0xff]  }
  0xfe   : > { %2416 = vmatpush1.bf16.msra.mxu1 %v3129_v58  ;;  %2376 = vmatprep.subr.bf16.mxu0 %v3134_v59  ;;  %v3225_v58 = vld [vmem:[%s3807_s5 + $0x5a4] ss:$8 sps:$4 sm:$0xff]   ;;  %v3220_v59 = vld [vmem:[%s3807_s5 + $0x4a0] ss:$8 sps:$4 sm:$0xff]  }
  0xff   : > { %2417 = vmatprep.subr.bf16.mxu1 %v3137_v60  ;;  %v3223_v60 = vld [vmem:[%s3807_s5 + $0x5a0] ss:$8 sps:$4 sm:$0xff]  }
 0x101   : > { %2377 = vmatpush1.bf16.msra.mxu0 %v3132_v61  ;;  %v3228_v61 = vld [vmem:[%s3807_s5 + $0x4b4] ss:$8 sps:$4 sm:$0xff]  }
 0x102   : > { %2418 = vmatpush1.bf16.msra.mxu1 %v3135_v62  ;;  %2378 = vmatprep.subr.bf16.mxu0 %v3140_v63  ;;  %v3231_v62 = vld [vmem:[%s3807_s5 + $0x5b4] ss:$8 sps:$4 sm:$0xff]   ;;  %v3226_v63 = vld [vmem:[%s3807_s5 + $0x4b0] ss:$8 sps:$4 sm:$0xff]  }
 0x103   : > { %2419 = vmatprep.subr.bf16.mxu1 %v3143_v0  ;;  %v3229_v0 = vld [vmem:[%s3807_s5 + $0x5b0] ss:$8 sps:$4 sm:$0xff]  }
 0x105   : > { %2379 = vmatpush1.bf16.msra.mxu0 %v3138_v1  ;;  %v3234_v1 = vld [vmem:[%s3807_s5 + $0x4c4] ss:$8 sps:$4 sm:$0xff]  }
 0x106   : > { %2420 = vmatpush1.bf16.msra.mxu1 %v3141_v2  ;;  %2380 = vmatprep.subr.bf16.mxu0 %v3146_v3  ;;  %v3237_v2 = vld [vmem:[%s3807_s5 + $0x5c4] ss:$8 sps:$4 sm:$0xff]   ;;  %v3232_v3 = vld [vmem:[%s3807_s5 + $0x4c0] ss:$8 sps:$4 sm:$0xff]  }
 0x107   : > { %2421 = vmatprep.subr.bf16.mxu1 %v3149_v4  ;;  %v3235_v4 = vld [vmem:[%s3807_s5 + $0x5c0] ss:$8 sps:$4 sm:$0xff]  }
 0x109   : > { %2381 = vmatpush1.bf16.msra.mxu0 %v3144_v5  ;;  %v3240_v5 = vld [vmem:[%s3807_s5 + $0x4d4] ss:$8 sps:$4 sm:$0xff]  }
 0x10a   : > { %2422 = vmatpush1.bf16.msra.mxu1 %v3147_v6  ;;  %2382 = vmatprep.subr.bf16.mxu0 %v3152_v7  ;;  %v3243_v6 = vld [vmem:[%s3807_s5 + $0x5d4] ss:$8 sps:$4 sm:$0xff]   ;;  %v3238_v7 = vld [vmem:[%s3807_s5 + $0x4d0] ss:$8 sps:$4 sm:$0xff]  }
 0x10b   : > { %2423 = vmatprep.subr.bf16.mxu1 %v3155_v8  ;;  %v3241_v8 = vld [vmem:[%s3807_s5 + $0x5d0] ss:$8 sps:$4 sm:$0xff]  }
 0x10d   : > { %2383 = vmatpush1.bf16.msra.mxu0 %v3150_v9  ;;  %v3246_v9 = vld [vmem:[%s3807_s5 + $0x4e4] ss:$8 sps:$4 sm:$0xff]  }
 0x10e   : > { %2424 = vmatpush1.bf16.msra.mxu1 %v3153_v10  ;;  %2434 = vmatprep.subr.bf16.mxu0 %v3162_v11  ;;  %v3249_v10 = vld [vmem:[%s3807_s5 + $0x5e4] ss:$8 sps:$4 sm:$0xff]   ;;  %v3244_v11 = vld [vmem:[%s3807_s5 + $0x4e0] ss:$8 sps:$4 sm:$0xff]  }
 0x10f   : > { %2475 = vmatprep.subr.bf16.mxu1 %v3165_v12  ;;  %v3247_v12 = vld [vmem:[%s3807_s5 + $0x5e0] ss:$8 sps:$4 sm:$0xff]  }
 0x110   : > { %2385 = vmatmul.mubr.bf16.vlgmr.msra.gmra.mrb[4].mxu0 %v2695_v13  ;;  %v3252_v13 = vld [vmem:[%s3807_s5 + $0x4f4] ss:$8 sps:$4 sm:$0xff]  }
 0x111   : > { %2426 = vmatmul.mubr.bf16.vlgmr.msra.gmra.mrb[4].mxu1 %v2697_v14  ;;  %2435 = vmatpush1.bf16.msra.mxu0 %v3160_v15  ;;  %v3255_v14 = vld [vmem:[%s3807_s5 + $0x5f4] ss:$8 sps:$4 sm:$0xff]   ;;  %v3250_v15 = vld [vmem:[%s3807_s5 + $0x4f0] ss:$8 sps:$4 sm:$0xff]  }
 0x112   : > { %2476 = vmatpush1.bf16.msra.mxu1 %v3163_v16  ;;  %2436 = vmatprep.subr.bf16.mxu0 %v3168_v17  ;;  %v3253_v16 = vld [vmem:[%s3807_s5 + $0x5f0] ss:$8 sps:$4 sm:$0xff]   ;;  %v2699_v17 = vcombine.low %v3961_v19, %v3961_v19 }
 0x113   : > { %2477 = vmatprep.subr.bf16.mxu1 %v3171_v18  ;;  %2466 = vmatprep.mubr.bf16.mxu0 %v2700_v21  ;;  %v2701_v18 = vcombine.low %v3964_v20, %v3964_v20 }
 0x114   : > { %2507 = vmatprep.mubr.bf16.mxu1 %v2702_v22 }
 0x115   : > { %2437 = vmatpush1.bf16.msra.mxu0 %v3166_v23 }
 0x116   : > { %2478 = vmatpush1.bf16.msra.mxu1 %v3169_v24  ;;  %2438 = vmatprep.subr.bf16.mxu0 %v3174_v25 }
 0x117   : > { %2479 = vmatprep.subr.bf16.mxu1 %v3177_v26 }
 0x119   : > { %2439 = vmatpush1.bf16.msra.mxu0 %v3172_v27 }
 0x11a   : > { %2480 = vmatpush1.bf16.msra.mxu1 %v3175_v28  ;;  %2440 = vmatprep.subr.bf16.mxu0 %v3180_v29 }
 0x11b   : > { %2481 = vmatprep.subr.bf16.mxu1 %v3183_v30 }
 0x11d   : > { %2441 = vmatpush1.bf16.msra.mxu0 %v3178_v31 }
 0x11e   : > { %2482 = vmatpush1.bf16.msra.mxu1 %v3181_v32  ;;  %2442 = vmatprep.subr.bf16.mxu0 %v3186_v33 }
 0x11f   : > { %2483 = vmatprep.subr.bf16.mxu1 %v3189_v34 }
 0x121   : > { %2443 = vmatpush1.bf16.msra.mxu0 %v3184_v35 }
 0x122   : > { %2484 = vmatpush1.bf16.msra.mxu1 %v3187_v36  ;;  %2444 = vmatprep.subr.bf16.mxu0 %v3192_v37 }
 0x123   : > { %2485 = vmatprep.subr.bf16.mxu1 %v3195_v38 }
 0x125   : > { %2445 = vmatpush1.bf16.msra.mxu0 %v3190_v39 }
 0x126   : > { %2486 = vmatpush1.bf16.msra.mxu1 %v3193_v40  ;;  %2446 = vmatprep.subr.bf16.mxu0 %v3198_v41 }
 0x127   : > { %2487 = vmatprep.subr.bf16.mxu1 %v3201_v42 }
 0x129   : > { %2447 = vmatpush1.bf16.msra.mxu0 %v3196_v43 }
 0x12a   : > { %2488 = vmatpush1.bf16.msra.mxu1 %v3199_v44  ;;  %2448 = vmatprep.subr.bf16.mxu0 %v3204_v45 }
 0x12b   : > { %2489 = vmatprep.subr.bf16.mxu1 %v3207_v46  ;;  %v1068_v46 = vld [vmem:[#allocation2] sm:$0xff] }
 0x12d   : > { %2449 = vmatpush1.bf16.msra.mxu0 %v3202_v47 }
 0x12e   : > { %2490 = vmatpush1.bf16.msra.mxu1 %v3205_v48  ;;  %2450 = vmatprep.subr.bf16.mxu0 %v3210_v49 }
 0x12f   : > { %2491 = vmatprep.subr.bf16.mxu1 %v3213_v50 }
 0x131   : > { %2451 = vmatpush1.bf16.msra.mxu0 %v3208_v51  ;;  %v1069_v51 = vld [vmem:[#allocation2 + $0x8] sm:$0xff] }
 0x132   : > { %2492 = vmatpush1.bf16.msra.mxu1 %v3211_v52  ;;  %2452 = vmatprep.subr.bf16.mxu0 %v3216_v53 }
 0x133   : > { %2493 = vmatprep.subr.bf16.mxu1 %v3219_v54 }
 0x135   : > { %2453 = vmatpush1.bf16.msra.mxu0 %v3214_v55 }
 0x136   : > { %2494 = vmatpush1.bf16.msra.mxu1 %v3217_v56  ;;  %2454 = vmatprep.subr.bf16.mxu0 %v3222_v57  ;;  %v2528_v57 = vlaneseq (!%p2895_p13) }
 0x137   : > { %2495 = vmatprep.subr.bf16.mxu1 %v3225_v58 }
 0x138   : > { %v2529_v58 = vshrl.u32 (!%p2895_p13), %v2528_v57, 7 }
 0x139   : > { %2455 = vmatpush1.bf16.msra.mxu0 %v3220_v59  ;;  %v2526_v59 = vld [vmem:[%s1050_s12] sm:$0x3] (!%p2895_p13) }
 0x13a   : > { %2496 = vmatpush1.bf16.msra.mxu1 %v3223_v60  ;;  %2456 = vmatprep.subr.bf16.mxu0 %v3228_v61  ;;  %v2530_v60 = vsub.s32 (!%p2895_p13), 0, %v2529_v58  ;;  %v2534_v61 = vsub.s32 (!%p2895_p13), 1, %v2529_v58 }
 0x13b   : > { %2497 = vmatprep.subr.bf16.mxu1 %v3231_v62 }
 0x13d   : > { %2457 = vmatpush1.bf16.msra.mxu0 %v3226_v63 }
 0x13e   : > { %2498 = vmatpush1.bf16.msra.mxu1 %v3229_v0  ;;  %2458 = vmatprep.subr.bf16.mxu0 %v3234_v1  ;;  %v2531_v0 = vrot.slane (!%p2895_p13), %v2526_v59, %v2530_v60  ;;  %v2535_v1 = vrot.slane (!%p2895_p13), %v2526_v59, %v2534_v61 }
 0x13f   : > { %2499 = vmatprep.subr.bf16.mxu1 %v3237_v2 }
 0x141   : > { %2459 = vmatpush1.bf16.msra.mxu0 %v3232_v3 }
 0x142   : > { %2500 = vmatpush1.bf16.msra.mxu1 %v3235_v4  ;;  %2460 = vmatprep.subr.bf16.mxu0 %v3240_v5 }
 0x143   : > { %2501 = vmatprep.subr.bf16.mxu1 %v3243_v6 }
 0x145   : > { %2461 = vmatpush1.bf16.msra.mxu0 %v3238_v7 }
 0x146   : > { %2502 = vmatpush1.bf16.msra.mxu1 %v3241_v8  ;;  %2462 = vmatprep.subr.bf16.mxu0 %v3246_v9 }
 0x147   : > { %2503 = vmatprep.subr.bf16.mxu1 %v3249_v10 }
 0x149   : > { %2463 = vmatpush1.bf16.msra.mxu0 %v3244_v11 }
 0x14a   : > { %2504 = vmatpush1.bf16.msra.mxu1 %v3247_v12  ;;  %2464 = vmatprep.subr.bf16.mxu0 %v3252_v13 }
 0x14b   : > { %2505 = vmatprep.subr.bf16.mxu1 %v3255_v14 }
 0x14d   : > { %2465 = vmatpush1.bf16.msra.mxu0 %v3250_v15 }
 0x14e   : > { %2506 = vmatpush1.bf16.msra.mxu1 %v3253_v16 }
 0x150   : > { %2467 = vmatmul.mubr.bf16.vlgmr.msra.gmra.mrb[8].mxu0 %v2699_v17 }
 0x151   : > { %2508 = vmatmul.mubr.bf16.vlgmr.msra.gmra.mrb[8].mxu1 %v2701_v18 }
 0x1a3   : > { %v2304_v21 = vpop.f32.mrb[0].mxu0 }
 0x1a4   : > { %v2345_v22 = vpop.f32.mrb[0].mxu1  ;;  %v2306_v24 = vpop.f32.mrb[1].mxu0 }
 0x1a5   : > { %v2346_v23 = vadd.f32 %v2345_v22, %v2304_v21  ;;  %v2347_v25 = vpop.f32.mrb[1].mxu1  ;;  %v2308_v27 = vpop.f32.mrb[2].mxu0 }
 0x1a6   : > { %v2348_v26 = vadd.f32 %v2347_v25, %v2306_v24  ;;  %v2349_v28 = vpop.f32.mrb[2].mxu1  ;;  %v2309_v29 = vpop.f32.mrb[3].mxu0 }
 0x1a7   : > { %v2350_v30 = vpop.f32.mrb[3].mxu1 }
 0x1e3   : > { %v2386_v31 = vpop.f32.mrb[4].mxu0 }
 0x1e4   : > { %v2427_v32 = vpop.f32.mrb[4].mxu1  ;;  %v2387_v19 = vadd.f32 %v2386_v31, %v2346_v23  ;;  %v2388_v33 = vpop.f32.mrb[5].mxu0 }
 0x1e5   : > { %v2429_v34 = vpop.f32.mrb[5].mxu1  ;;  %v2389_v20 = vadd.f32 %v2388_v33, %v2348_v26  ;;  %v2390_v35 = vpop.f32.mrb[6].mxu0 }
 0x1e6   : > { %v2431_v36 = vpop.f32.mrb[6].mxu1  ;;  %v2428_v37 = vadd.f32 %v2427_v32, %v2387_v19  ;;  %v2391_v38 = vpop.f32.mrb[7].mxu0 }
 0x1e7   : > { %v2432_v39 = vpop.f32.mrb[7].mxu1  ;;  %v2430_v40 = vadd.f32 %v2429_v34, %v2389_v20 }
 0x223   : > { %v2468_v41 = vpop.f32.mrb[8].mxu0 }
 0x224   : > { %v2509_v42 = vpop.f32.mrb[8].mxu1  ;;  %v2469_v43 = vadd.f32 %v2468_v41, %v2428_v37  ;;  %v2470_v44 = vpop.f32.mrb[9].mxu0 }
 0x225   : > { %v2511_v45 = vpop.f32.mrb[9].mxu1  ;;  %v2471_v47 = vadd.f32 %v2470_v44, %v2430_v40  ;;  %v2472_v48 = vpop.f32.mrb[10].mxu0  ;;  %2523 = sbr.rel (%p2895_p13) target bundleno = 571 (0x23b), region = 78 }
 0x226   : > { %v2513_v49 = vpop.f32.mrb[10].mxu1  ;;  %v2510_v50 = vadd.f32 %v2509_v42, %v2469_v43  ;;  %v2473_v52 = vpop.f32.mrb[11].mxu0 }
 0x227   : > { %v2514_v53 = vpop.f32.mrb[11].mxu1  ;;  %v2512_v54 = vadd.f32 %v2511_v45, %v2471_v47 }
 0x228   : > { %v2516_v55 = vadd.f32 %v2510_v50, %v1068_v46 }
 0x229   : > { %v2517_v56 = vadd.f32 %v2512_v54, %v1069_v51 }
 0x22a   : > { %2518 = vst [vmem:[#allocation2] sm:$0xff] %v2516_v55 }
 0x22b   : > { %2519 = vst [vmem:[#allocation2 + $0x8] sm:$0xff] %v2517_v56 }
 0x231   : > { %v2524_v62 = vld [vmem:[#allocation2] sm:$0xff] }
 0x232   : > { %v2525_v63 = vld [vmem:[#allocation2 + $0x8] sm:$0xff]  ;;  %v2538_v2 = vadd.f32 %v2531_v0, %v2524_v62 }
 0x233   : > { %v2539_v3 = vadd.f32 %v2535_v1, %v2525_v63 }
 0x234   : > { %vm2540_vm0 = vcmp.gt.f32.partialorder %v2538_v2, 0.0  ;;  %v2542_v4 = vmul.f32 0.1, %v2538_v2 }
 0x235   : > { %vm2541_vm1 = vcmp.gt.f32.partialorder %v2539_v3, 0.0  ;;  %v2543_v5 = vmul.f32 0.1, %v2539_v3 }
 0x236   : > { %v2544_v6 = vsel %vm2540_vm0, %v2538_v2, %v2542_v4 }
 0x237   : > { %v2545_v7 = vsel %vm2541_vm1, %v2539_v3, %v2543_v5 }
 0x238   : > { %v2900_v8 = vpack.c.bf16 %v2545_v7, %v2544_v6 }
 0x23a   : > { %2554 = vst [vmem:[%s3805_s4] sm:$0xff] %v2900_v8 }
 0x23b PF: > { %s13_s18 = sadd.s32 1, %s3314_s18   ;;  %s4064_s12 = smov %s3294_s13 }
 0x23c   : > { %p10_p0 = scmp.ge.s32.totalorder %s13_s18, 8   ;;  %s4065_s13 = smov %s3388_s25 }
 0x23d   : > { %s4066_s14 = smov %s3306_s16  ;;  %s4067_s15 = smov %s3310_s17 }
 0x23e   : > { %s4068_s16 = smov %s4071_s19  ;;  %s4069_s17 = smov %s4075_s20 }
 0x23f   :  { %12 = sbr.rel (!%p10_p0) target bundleno = 4 (0x4), region = 119 }

// kernel: flownets_forward.18
= control target key start
LH: loop header
LB: loop body
LE: loop exit
PB: predicated region body
PF: predicated region fallthrough
CT: control target
= control target key end

     0   :  { %s3337_s12 = smov 0   ;;  %s3339_s13 = smov 0   ;;  %s4060_s0 = inlined_call_operand.vmem [shape: bf16[8,4608], index: 0, kind: input, shape index: {}]   ;;  %s4061_s1 = inlined_call_operand.vmem [shape: bf16[4608,1024], index: 1, kind: input, shape index: {}]   ;;  %s4062_s2 = inlined_call_operand.vmem [shape: f32[1,1024], index: 2, kind: input, shape index: {}]   ;;  %s4063_s3 = inlined_call_operand.vmem [shape: bf16[8,1024], index: 3, kind: output, shape index: {}]  }
   0x1   :  { %s3341_s14 = smov 0   ;;  %s3343_s15 = smov 0  }
   0x2   :  { %s3345_s16 = smov 0   ;;  %s3347_s17 = smov 0  }
   0x3   :  { %s3349_s18 = smov 0  }
   0x4 LB: > { %s25_s19 = sadd.s32 1, %s3306_s16  ;;  %s28_s20 = sadd.s32 1, %s3310_s17  ;;  %s3314_s18 = sphi %s3349_s18, %s13_s18   ;;  %s3310_s17 = sphi %s3347_s17, %s4069_s17   ;;  %s3306_s16 = sphi %s3345_s16, %s4068_s16   ;;  %s3302_s15 = sphi %s3343_s15, %s4067_s15   ;;  %s3298_s14 = sphi %s3341_s14, %s4066_s14   ;;  %s3294_s13 = sphi %s3339_s13, %s4065_s13   ;;  %s3290_s12 = sphi %s3337_s12, %s4064_s12  }
   0x5   : > { %p26_p0 = scmp.ge.s32.totalorder %s25_s19, 3  ;;  %p76_p1 = scmp.ne.s32.totalorder %s3294_s13, %s3290_s12 }
   0x6   : > { %p77_p2 = scmp.eq.s32.totalorder %s3314_s18, 0  ;;  %s69_s24 = sadd.s32 1, %s3294_s13 }
   0x7   : > { %s4071_s19 = smov (%p26_p0, %s25_s19), 0  ;;  %s4073_s20 = smov (!%p26_p0, %s28_s20), %s3310_s17 }
   0x8   : > { %p78_p3 = por %p77_p2, %p76_p1  ;;  %p30_p4 = scmp.ge.s32.totalorder %s4073_s20, 4 }
   0x9   : > { %s64_s21 = ssub.s32 %s3306_s16, %s4071_s19  ;;  %p2681_p6 = scmp.ge.s32.totalorder %s3314_s18, 12 }
   0xa   : > { %s4075_s20 = smov (%p30_p4, %s4073_s20), 0 }
   0xb   : > { %s65_s22 = ssub.s32 %s3310_s17, %s4075_s20  ;;  %156 = sbr.rel (%p2681_p6) target bundleno = 218 (0xda), region = 16 }
   0xc   : > { %s66_s23 = sor.u32 %s65_s22, %s64_s21 }
   0xd   : > { %p67_p5 = scmp.eq.s32.totalorder %s66_s23, 0 }
   0xf   : > { %s3388_s25 = scalar_select %p67_p5, %s3294_s13, %s69_s24  }
  0x12   : > { %172 = sbr.rel (!%p78_p3) target bundleno = 218 (0xda), region = 24  ;;  %s174_s26 = sand.u32 (%p78_p3), 1, %s3294_s13  }
  0x13   : > { %s2901_s27 = smul.u32 (%p78_p3), 1536, %s174_s26  ;;  %s2682_s28 = sshll.u32 (%p78_p3), %s3310_s17, 1 }
  0x14   : > { %s2899_s29 = smul.u32 (%p78_p3), 1536, %s3306_s16 }
  0x15   : > { %s3402_s8 = scalar_lea.vmem (%p78_p3), [#allocation3], %s2901_s27 }
  0x16   : > { %s180_s30 = sadd.s32 (%p78_p3), %s2899_s29, %s2682_s28 }
  0x17   : > { %s2684_s4 = sshll.u32 (%p78_p3), %s180_s30, 2 }
  0x18   : > { %s3397_s7 = scalar_lea.vmem (%p78_p3), %s4061_s1, %s2684_s4 }
  0x19   : > { %v592_v0 = vld [vmem:[%s3397_s7] sm:$0xff] }
  0x1a   : > { %v594_v1 = vld [vmem:[%s3397_s7 + $0x20] sm:$0xff]  ;;  %593 = vst [vmem:[%s3402_s8] sm:$0xff] %v592_v0 }
  0x1b   : > { %v596_v2 = vld [vmem:[%s3397_s7 + $0x40] sm:$0xff]  ;;  %595 = vst [vmem:[%s3402_s8 + $0x8] sm:$0xff] %v594_v1 }
  0x1c   : > { %597 = vst [vmem:[%s3402_s8 + $0x10] sm:$0xff] %v596_v2  ;;  %v598_v3 = vld [vmem:[%s3397_s7 + $0x60] sm:$0xff] }
  0x1d   : > { %v600_v4 = vld [vmem:[%s3397_s7 + $0x80] sm:$0xff]  ;;  %599 = vst [vmem:[%s3402_s8 + $0x18] sm:$0xff] %v598_v3 }
  0x1e   : > { %v602_v5 = vld [vmem:[%s3397_s7 + $0xa0] sm:$0xff]  ;;  %601 = vst [vmem:[%s3402_s8 + $0x20] sm:$0xff] %v600_v4 }
  0x1f   : > { %603 = vst [vmem:[%s3402_s8 + $0x28] sm:$0xff] %v602_v5  ;;  %v604_v6 = vld [vmem:[%s3397_s7 + $0xc0] sm:$0xff] }
  0x20   : > { %v606_v7 = vld [vmem:[%s3397_s7 + $0xe0] sm:$0xff]  ;;  %605 = vst [vmem:[%s3402_s8 + $0x30] sm:$0xff] %v604_v6 }
  0x21   : > { %v608_v8 = vld [vmem:[%s3397_s7 + $0x100] sm:$0xff]  ;;  %607 = vst [vmem:[%s3402_s8 + $0x38] sm:$0xff] %v606_v7 }
  0x22   : > { %609 = vst [vmem:[%s3402_s8 + $0x40] sm:$0xff] %v608_v8  ;;  %v610_v9 = vld [vmem:[%s3397_s7 + $0x120] sm:$0xff] }
  0x23   : > { %v612_v10 = vld [vmem:[%s3397_s7 + $0x140] sm:$0xff]  ;;  %611 = vst [vmem:[%s3402_s8 + $0x48] sm:$0xff] %v610_v9 }
  0x24   : > { %v614_v11 = vld [vmem:[%s3397_s7 + $0x160] sm:$0xff]  ;;  %613 = vst [vmem:[%s3402_s8 + $0x50] sm:$0xff] %v612_v10 }
  0x25   : > { %615 = vst [vmem:[%s3402_s8 + $0x58] sm:$0xff] %v614_v11  ;;  %v616_v12 = vld [vmem:[%s3397_s7 + $0x180] sm:$0xff] }
  0x26   : > { %v618_v13 = vld [vmem:[%s3397_s7 + $0x1a0] sm:$0xff]  ;;  %617 = vst [vmem:[%s3402_s8 + $0x60] sm:$0xff] %v616_v12 }
  0x27   : > { %v620_v14 = vld [vmem:[%s3397_s7 + $0x1c0] sm:$0xff]  ;;  %619 = vst [vmem:[%s3402_s8 + $0x68] sm:$0xff] %v618_v13 }
  0x28   : > { %621 = vst [vmem:[%s3402_s8 + $0x70] sm:$0xff] %v620_v14  ;;  %v622_v15 = vld [vmem:[%s3397_s7 + $0x1e0] sm:$0xff] }
  0x29   : > { %v624_v16 = vld [vmem:[%s3397_s7 + $0x200] sm:$0xff]  ;;  %623 = vst [vmem:[%s3402_s8 + $0x78] sm:$0xff] %v622_v15 }
  0x2a   : > { %v626_v17 = vld [vmem:[%s3397_s7 + $0x220] sm:$0xff]  ;;  %625 = vst [vmem:[%s3402_s8 + $0x80] sm:$0xff] %v624_v16 }
  0x2b   : > { %627 = vst [vmem:[%s3402_s8 + $0x88] sm:$0xff] %v626_v17  ;;  %v628_v18 = vld [vmem:[%s3397_s7 + $0x240] sm:$0xff] }
  0x2c   : > { %v630_v19 = vld [vmem:[%s3397_s7 + $0x260] sm:$0xff]  ;;  %629 = vst [vmem:[%s3402_s8 + $0x90] sm:$0xff] %v628_v18 }
  0x2d   : > { %v632_v20 = vld [vmem:[%s3397_s7 + $0x280] sm:$0xff]  ;;  %631 = vst [vmem:[%s3402_s8 + $0x98] sm:$0xff] %v630_v19 }
  0x2e   : > { %633 = vst [vmem:[%s3402_s8 + $0xa0] sm:$0xff] %v632_v20  ;;  %v634_v21 = vld [vmem:[%s3397_s7 + $0x2a0] sm:$0xff] }
  0x2f   : > { %v636_v22 = vld [vmem:[%s3397_s7 + $0x2c0] sm:$0xff]  ;;  %635 = vst [vmem:[%s3402_s8 + $0xa8] sm:$0xff] %v634_v21 }
  0x30   : > { %v638_v23 = vld [vmem:[%s3397_s7 + $0x2e0] sm:$0xff]  ;;  %637 = vst [vmem:[%s3402_s8 + $0xb0] sm:$0xff] %v636_v22 }
  0x31   : > { %639 = vst [vmem:[%s3402_s8 + $0xb8] sm:$0xff] %v638_v23  ;;  %v640_v24 = vld [vmem:[%s3397_s7 + $0x300] sm:$0xff] }
  0x32   : > { %v642_v25 = vld [vmem:[%s3397_s7 + $0x320] sm:$0xff]  ;;  %641 = vst [vmem:[%s3402_s8 + $0xc0] sm:$0xff] %v640_v24 }
  0x33   : > { %v644_v26 = vld [vmem:[%s3397_s7 + $0x340] sm:$0xff]  ;;  %643 = vst [vmem:[%s3402_s8 + $0xc8] sm:$0xff] %v642_v25 }
  0x34   : > { %645 = vst [vmem:[%s3402_s8 + $0xd0] sm:$0xff] %v644_v26  ;;  %v646_v27 = vld [vmem:[%s3397_s7 + $0x360] sm:$0xff] }
  0x35   : > { %v648_v28 = vld [vmem:[%s3397_s7 + $0x380] sm:$0xff]  ;;  %647 = vst [vmem:[%s3402_s8 + $0xd8] sm:$0xff] %v646_v27 }
  0x36   : > { %v650_v29 = vld [vmem:[%s3397_s7 + $0x3a0] sm:$0xff]  ;;  %649 = vst [vmem:[%s3402_s8 + $0xe0] sm:$0xff] %v648_v28 }
  0x37   : > { %651 = vst [vmem:[%s3402_s8 + $0xe8] sm:$0xff] %v650_v29  ;;  %v652_v30 = vld [vmem:[%s3397_s7 + $0x3c0] sm:$0xff] }
  0x38   : > { %v654_v31 = vld [vmem:[%s3397_s7 + $0x3e0] sm:$0xff]  ;;  %653 = vst [vmem:[%s3402_s8 + $0xf0] sm:$0xff] %v652_v30 }
  0x39   : > { %v656_v32 = vld [vmem:[%s3397_s7 + $0x400] sm:$0xff]  ;;  %655 = vst [vmem:[%s3402_s8 + $0xf8] sm:$0xff] %v654_v31 }
  0x3a   : > { %657 = vst [vmem:[%s3402_s8 + $0x100] sm:$0xff] %v656_v32  ;;  %v658_v33 = vld [vmem:[%s3397_s7 + $0x420] sm:$0xff] }
  0x3b   : > { %v660_v34 = vld [vmem:[%s3397_s7 + $0x440] sm:$0xff]  ;;  %659 = vst [vmem:[%s3402_s8 + $0x108] sm:$0xff] %v658_v33 }
  0x3c   : > { %v662_v35 = vld [vmem:[%s3397_s7 + $0x460] sm:$0xff]  ;;  %661 = vst [vmem:[%s3402_s8 + $0x110] sm:$0xff] %v660_v34 }
  0x3d   : > { %663 = vst [vmem:[%s3402_s8 + $0x118] sm:$0xff] %v662_v35  ;;  %v664_v36 = vld [vmem:[%s3397_s7 + $0x480] sm:$0xff] }
  0x3e   : > { %v666_v37 = vld [vmem:[%s3397_s7 + $0x4a0] sm:$0xff]  ;;  %665 = vst [vmem:[%s3402_s8 + $0x120] sm:$0xff] %v664_v36 }
  0x3f   : > { %v668_v38 = vld [vmem:[%s3397_s7 + $0x4c0] sm:$0xff]  ;;  %667 = vst [vmem:[%s3402_s8 + $0x128] sm:$0xff] %v666_v37 }
  0x40   : > { %669 = vst [vmem:[%s3402_s8 + $0x130] sm:$0xff] %v668_v38  ;;  %v670_v39 = vld [vmem:[%s3397_s7 + $0x4e0] sm:$0xff] }
  0x41   : > { %v672_v40 = vld [vmem:[%s3397_s7 + $0x500] sm:$0xff]  ;;  %671 = vst [vmem:[%s3402_s8 + $0x138] sm:$0xff] %v670_v39 }
  0x42   : > { %v674_v41 = vld [vmem:[%s3397_s7 + $0x520] sm:$0xff]  ;;  %673 = vst [vmem:[%s3402_s8 + $0x140] sm:$0xff] %v672_v40 }
  0x43   : > { %675 = vst [vmem:[%s3402_s8 + $0x148] sm:$0xff] %v674_v41  ;;  %v676_v42 = vld [vmem:[%s3397_s7 + $0x540] sm:$0xff] }
  0x44   : > { %v678_v43 = vld [vmem:[%s3397_s7 + $0x560] sm:$0xff]  ;;  %677 = vst [vmem:[%s3402_s8 + $0x150] sm:$0xff] %v676_v42 }
  0x45   : > { %v680_v44 = vld [vmem:[%s3397_s7 + $0x580] sm:$0xff]  ;;  %679 = vst [vmem:[%s3402_s8 + $0x158] sm:$0xff] %v678_v43 }
  0x46   : > { %681 = vst [vmem:[%s3402_s8 + $0x160] sm:$0xff] %v680_v44  ;;  %v682_v45 = vld [vmem:[%s3397_s7 + $0x5a0] sm:$0xff] }
  0x47   : > { %v684_v46 = vld [vmem:[%s3397_s7 + $0x5c0] sm:$0xff]  ;;  %683 = vst [vmem:[%s3402_s8 + $0x168] sm:$0xff] %v682_v45 }
  0x48   : > { %v686_v47 = vld [vmem:[%s3397_s7 + $0x5e0] sm:$0xff]  ;;  %685 = vst [vmem:[%s3402_s8 + $0x170] sm:$0xff] %v684_v46 }
  0x49   : > { %687 = vst [vmem:[%s3402_s8 + $0x178] sm:$0xff] %v686_v47  ;;  %v688_v48 = vld [vmem:[%s3397_s7 + $0x600] sm:$0xff] }
  0x4a   : > { %v690_v49 = vld [vmem:[%s3397_s7 + $0x620] sm:$0xff]  ;;  %689 = vst [vmem:[%s3402_s8 + $0x180] sm:$0xff] %v688_v48 }
  0x4b   : > { %v692_v50 = vld [vmem:[%s3397_s7 + $0x640] sm:$0xff]  ;;  %691 = vst [vmem:[%s3402_s8 + $0x188] sm:$0xff] %v690_v49 }
  0x4c   : > { %693 = vst [vmem:[%s3402_s8 + $0x190] sm:$0xff] %v692_v50  ;;  %v694_v51 = vld [vmem:[%s3397_s7 + $0x660] sm:$0xff] }
  0x4d   : > { %v696_v52 = vld [vmem:[%s3397_s7 + $0x680] sm:$0xff]  ;;  %695 = vst [vmem:[%s3402_s8 + $0x198] sm:$0xff] %v694_v51 }
  0x4e   : > { %v698_v53 = vld [vmem:[%s3397_s7 + $0x6a0] sm:$0xff]  ;;  %697 = vst [vmem:[%s3402_s8 + $0x1a0] sm:$0xff] %v696_v52 }
  0x4f   : > { %699 = vst [vmem:[%s3402_s8 + $0x1a8] sm:$0xff] %v698_v53  ;;  %v700_v54 = vld [vmem:[%s3397_s7 + $0x6c0] sm:$0xff] }
  0x50   : > { %v702_v55 = vld [vmem:[%s3397_s7 + $0x6e0] sm:$0xff]  ;;  %701 = vst [vmem:[%s3402_s8 + $0x1b0] sm:$0xff] %v700_v54 }
  0x51   : > { %v704_v56 = vld [vmem:[%s3397_s7 + $0x700] sm:$0xff]  ;;  %703 = vst [vmem:[%s3402_s8 + $0x1b8] sm:$0xff] %v702_v55 }
  0x52   : > { %705 = vst [vmem:[%s3402_s8 + $0x1c0] sm:$0xff] %v704_v56  ;;  %v706_v57 = vld [vmem:[%s3397_s7 + $0x720] sm:$0xff] }
  0x53   : > { %v708_v58 = vld [vmem:[%s3397_s7 + $0x740] sm:$0xff]  ;;  %707 = vst [vmem:[%s3402_s8 + $0x1c8] sm:$0xff] %v706_v57 }
  0x54   : > { %v710_v59 = vld [vmem:[%s3397_s7 + $0x760] sm:$0xff]  ;;  %709 = vst [vmem:[%s3402_s8 + $0x1d0] sm:$0xff] %v708_v58 }
  0x55   : > { %711 = vst [vmem:[%s3402_s8 + $0x1d8] sm:$0xff] %v710_v59  ;;  %v712_v60 = vld [vmem:[%s3397_s7 + $0x780] sm:$0xff] }
  0x56   : > { %v714_v61 = vld [vmem:[%s3397_s7 + $0x7a0] sm:$0xff]  ;;  %713 = vst [vmem:[%s3402_s8 + $0x1e0] sm:$0xff] %v712_v60 }
  0x57   : > { %v716_v62 = vld [vmem:[%s3397_s7 + $0x7c0] sm:$0xff]  ;;  %715 = vst [vmem:[%s3402_s8 + $0x1e8] sm:$0xff] %v714_v61 }
  0x58   : > { %717 = vst [vmem:[%s3402_s8 + $0x1f0] sm:$0xff] %v716_v62  ;;  %v718_v63 = vld [vmem:[%s3397_s7 + $0x7e0] sm:$0xff] }
  0x59   : > { %v720_v0 = vld [vmem:[%s3397_s7 + $0x800] sm:$0xff]  ;;  %719 = vst [vmem:[%s3402_s8 + $0x1f8] sm:$0xff] %v718_v63 }
  0x5a   : > { %v722_v1 = vld [vmem:[%s3397_s7 + $0x820] sm:$0xff]  ;;  %721 = vst [vmem:[%s3402_s8 + $0x200] sm:$0xff] %v720_v0 }
  0x5b   : > { %723 = vst [vmem:[%s3402_s8 + $0x208] sm:$0xff] %v722_v1  ;;  %v724_v2 = vld [vmem:[%s3397_s7 + $0x840] sm:$0xff] }
  0x5c   : > { %v726_v3 = vld [vmem:[%s3397_s7 + $0x860] sm:$0xff]  ;;  %725 = vst [vmem:[%s3402_s8 + $0x210] sm:$0xff] %v724_v2 }
  0x5d   : > { %v728_v4 = vld [vmem:[%s3397_s7 + $0x880] sm:$0xff]  ;;  %727 = vst [vmem:[%s3402_s8 + $0x218] sm:$0xff] %v726_v3 }
  0x5e   : > { %729 = vst [vmem:[%s3402_s8 + $0x220] sm:$0xff] %v728_v4  ;;  %v730_v5 = vld [vmem:[%s3397_s7 + $0x8a0] sm:$0xff] }
  0x5f   : > { %v732_v6 = vld [vmem:[%s3397_s7 + $0x8c0] sm:$0xff]  ;;  %731 = vst [vmem:[%s3402_s8 + $0x228] sm:$0xff] %v730_v5 }
  0x60   : > { %v734_v7 = vld [vmem:[%s3397_s7 + $0x8e0] sm:$0xff]  ;;  %733 = vst [vmem:[%s3402_s8 + $0x230] sm:$0xff] %v732_v6 }
  0x61   : > { %735 = vst [vmem:[%s3402_s8 + $0x238] sm:$0xff] %v734_v7  ;;  %v736_v8 = vld [vmem:[%s3397_s7 + $0x900] sm:$0xff] }
  0x62   : > { %v738_v9 = vld [vmem:[%s3397_s7 + $0x920] sm:$0xff]  ;;  %737 = vst [vmem:[%s3402_s8 + $0x240] sm:$0xff] %v736_v8 }
  0x63   : > { %v740_v10 = vld [vmem:[%s3397_s7 + $0x940] sm:$0xff]  ;;  %739 = vst [vmem:[%s3402_s8 + $0x248] sm:$0xff] %v738_v9 }
  0x64   : > { %741 = vst [vmem:[%s3402_s8 + $0x250] sm:$0xff] %v740_v10  ;;  %v742_v11 = vld [vmem:[%s3397_s7 + $0x960] sm:$0xff] }
  0x65   : > { %v744_v12 = vld [vmem:[%s3397_s7 + $0x980] sm:$0xff]  ;;  %743 = vst [vmem:[%s3402_s8 + $0x258] sm:$0xff] %v742_v11 }
  0x66   : > { %v746_v13 = vld [vmem:[%s3397_s7 + $0x9a0] sm:$0xff]  ;;  %745 = vst [vmem:[%s3402_s8 + $0x260] sm:$0xff] %v744_v12 }
  0x67   : > { %747 = vst [vmem:[%s3402_s8 + $0x268] sm:$0xff] %v746_v13  ;;  %v748_v14 = vld [vmem:[%s3397_s7 + $0x9c0] sm:$0xff] }
  0x68   : > { %v750_v15 = vld [vmem:[%s3397_s7 + $0x9e0] sm:$0xff]  ;;  %749 = vst [vmem:[%s3402_s8 + $0x270] sm:$0xff] %v748_v14 }
  0x69   : > { %v752_v16 = vld [vmem:[%s3397_s7 + $0xa00] sm:$0xff]  ;;  %751 = vst [vmem:[%s3402_s8 + $0x278] sm:$0xff] %v750_v15 }
  0x6a   : > { %753 = vst [vmem:[%s3402_s8 + $0x280] sm:$0xff] %v752_v16  ;;  %v754_v17 = vld [vmem:[%s3397_s7 + $0xa20] sm:$0xff] }
  0x6b   : > { %v756_v18 = vld [vmem:[%s3397_s7 + $0xa40] sm:$0xff]  ;;  %755 = vst [vmem:[%s3402_s8 + $0x288] sm:$0xff] %v754_v17 }
  0x6c   : > { %v758_v19 = vld [vmem:[%s3397_s7 + $0xa60] sm:$0xff]  ;;  %757 = vst [vmem:[%s3402_s8 + $0x290] sm:$0xff] %v756_v18 }
  0x6d   : > { %759 = vst [vmem:[%s3402_s8 + $0x298] sm:$0xff] %v758_v19  ;;  %v760_v20 = vld [vmem:[%s3397_s7 + $0xa80] sm:$0xff] }
  0x6e   : > { %v762_v21 = vld [vmem:[%s3397_s7 + $0xaa0] sm:$0xff]  ;;  %761 = vst [vmem:[%s3402_s8 + $0x2a0] sm:$0xff] %v760_v20 }
  0x6f   : > { %v764_v22 = vld [vmem:[%s3397_s7 + $0xac0] sm:$0xff]  ;;  %763 = vst [vmem:[%s3402_s8 + $0x2a8] sm:$0xff] %v762_v21 }
  0x70   : > { %765 = vst [vmem:[%s3402_s8 + $0x2b0] sm:$0xff] %v764_v22  ;;  %v766_v23 = vld [vmem:[%s3397_s7 + $0xae0] sm:$0xff] }
  0x71   : > { %v768_v24 = vld [vmem:[%s3397_s7 + $0xb00] sm:$0xff]  ;;  %767 = vst [vmem:[%s3402_s8 + $0x2b8] sm:$0xff] %v766_v23 }
  0x72   : > { %v770_v25 = vld [vmem:[%s3397_s7 + $0xb20] sm:$0xff]  ;;  %769 = vst [vmem:[%s3402_s8 + $0x2c0] sm:$0xff] %v768_v24 }
  0x73   : > { %771 = vst [vmem:[%s3402_s8 + $0x2c8] sm:$0xff] %v770_v25  ;;  %v772_v26 = vld [vmem:[%s3397_s7 + $0xb40] sm:$0xff] }
  0x74   : > { %v774_v27 = vld [vmem:[%s3397_s7 + $0xb60] sm:$0xff]  ;;  %773 = vst [vmem:[%s3402_s8 + $0x2d0] sm:$0xff] %v772_v26 }
  0x75   : > { %v776_v28 = vld [vmem:[%s3397_s7 + $0xb80] sm:$0xff]  ;;  %775 = vst [vmem:[%s3402_s8 + $0x2d8] sm:$0xff] %v774_v27 }
  0x76   : > { %777 = vst [vmem:[%s3402_s8 + $0x2e0] sm:$0xff] %v776_v28  ;;  %v778_v29 = vld [vmem:[%s3397_s7 + $0xba0] sm:$0xff] }
  0x77   : > { %v780_v30 = vld [vmem:[%s3397_s7 + $0xbc0] sm:$0xff]  ;;  %779 = vst [vmem:[%s3402_s8 + $0x2e8] sm:$0xff] %v778_v29 }
  0x78   : > { %v782_v31 = vld [vmem:[%s3397_s7 + $0xbe0] sm:$0xff]  ;;  %781 = vst [vmem:[%s3402_s8 + $0x2f0] sm:$0xff] %v780_v30 }
  0x79   : > { %783 = vst [vmem:[%s3402_s8 + $0x2f8] sm:$0xff] %v782_v31  ;;  %v784_v32 = vld [vmem:[%s3397_s7 + $0xc00] sm:$0xff] }
  0x7a   : > { %v786_v33 = vld [vmem:[%s3397_s7 + $0xc20] sm:$0xff]  ;;  %785 = vst [vmem:[%s3402_s8 + $0x300] sm:$0xff] %v784_v32 }
  0x7b   : > { %v788_v34 = vld [vmem:[%s3397_s7 + $0xc40] sm:$0xff]  ;;  %787 = vst [vmem:[%s3402_s8 + $0x308] sm:$0xff] %v786_v33 }
  0x7c   : > { %789 = vst [vmem:[%s3402_s8 + $0x310] sm:$0xff] %v788_v34  ;;  %v790_v35 = vld [vmem:[%s3397_s7 + $0xc60] sm:$0xff] }
  0x7d   : > { %v792_v36 = vld [vmem:[%s3397_s7 + $0xc80] sm:$0xff]  ;;  %791 = vst [vmem:[%s3402_s8 + $0x318] sm:$0xff] %v790_v35 }
  0x7e   : > { %v794_v37 = vld [vmem:[%s3397_s7 + $0xca0] sm:$0xff]  ;;  %793 = vst [vmem:[%s3402_s8 + $0x320] sm:$0xff] %v792_v36 }
  0x7f   : > { %795 = vst [vmem:[%s3402_s8 + $0x328] sm:$0xff] %v794_v37  ;;  %v796_v38 = vld [vmem:[%s3397_s7 + $0xcc0] sm:$0xff] }
  0x80   : > { %v798_v39 = vld [vmem:[%s3397_s7 + $0xce0] sm:$0xff]  ;;  %797 = vst [vmem:[%s3402_s8 + $0x330] sm:$0xff] %v796_v38 }
  0x81   : > { %v800_v40 = vld [vmem:[%s3397_s7 + $0xd00] sm:$0xff]  ;;  %799 = vst [vmem:[%s3402_s8 + $0x338] sm:$0xff] %v798_v39 }
  0x82   : > { %801 = vst [vmem:[%s3402_s8 + $0x340] sm:$0xff] %v800_v40  ;;  %v802_v41 = vld [vmem:[%s3397_s7 + $0xd20] sm:$0xff] }
  0x83   : > { %v804_v42 = vld [vmem:[%s3397_s7 + $0xd40] sm:$0xff]  ;;  %803 = vst [vmem:[%s3402_s8 + $0x348] sm:$0xff] %v802_v41 }
  0x84   : > { %v806_v43 = vld [vmem:[%s3397_s7 + $0xd60] sm:$0xff]  ;;  %805 = vst [vmem:[%s3402_s8 + $0x350] sm:$0xff] %v804_v42 }
  0x85   : > { %807 = vst [vmem:[%s3402_s8 + $0x358] sm:$0xff] %v806_v43  ;;  %v808_v44 = vld [vmem:[%s3397_s7 + $0xd80] sm:$0xff] }
  0x86   : > { %v810_v45 = vld [vmem:[%s3397_s7 + $0xda0] sm:$0xff]  ;;  %809 = vst [vmem:[%s3402_s8 + $0x360] sm:$0xff] %v808_v44 }
  0x87   : > { %v812_v46 = vld [vmem:[%s3397_s7 + $0xdc0] sm:$0xff]  ;;  %811 = vst [vmem:[%s3402_s8 + $0x368] sm:$0xff] %v810_v45 }
  0x88   : > { %813 = vst [vmem:[%s3402_s8 + $0x370] sm:$0xff] %v812_v46  ;;  %v814_v47 = vld [vmem:[%s3397_s7 + $0xde0] sm:$0xff] }
  0x89   : > { %v816_v48 = vld [vmem:[%s3397_s7 + $0xe00] sm:$0xff]  ;;  %815 = vst [vmem:[%s3402_s8 + $0x378] sm:$0xff] %v814_v47 }
  0x8a   : > { %v818_v49 = vld [vmem:[%s3397_s7 + $0xe20] sm:$0xff]  ;;  %817 = vst [vmem:[%s3402_s8 + $0x380] sm:$0xff] %v816_v48 }
  0x8b   : > { %819 = vst [vmem:[%s3402_s8 + $0x388] sm:$0xff] %v818_v49  ;;  %v820_v50 = vld [vmem:[%s3397_s7 + $0xe40] sm:$0xff] }
  0x8c   : > { %v822_v51 = vld [vmem:[%s3397_s7 + $0xe60] sm:$0xff]  ;;  %821 = vst [vmem:[%s3402_s8 + $0x390] sm:$0xff] %v820_v50 }
  0x8d   : > { %v824_v52 = vld [vmem:[%s3397_s7 + $0xe80] sm:$0xff]  ;;  %823 = vst [vmem:[%s3402_s8 + $0x398] sm:$0xff] %v822_v51 }
  0x8e   : > { %825 = vst [vmem:[%s3402_s8 + $0x3a0] sm:$0xff] %v824_v52  ;;  %v826_v53 = vld [vmem:[%s3397_s7 + $0xea0] sm:$0xff] }
  0x8f   : > { %v828_v54 = vld [vmem:[%s3397_s7 + $0xec0] sm:$0xff]  ;;  %827 = vst [vmem:[%s3402_s8 + $0x3a8] sm:$0xff] %v826_v53 }
  0x90   : > { %v830_v55 = vld [vmem:[%s3397_s7 + $0xee0] sm:$0xff]  ;;  %829 = vst [vmem:[%s3402_s8 + $0x3b0] sm:$0xff] %v828_v54 }
  0x91   : > { %831 = vst [vmem:[%s3402_s8 + $0x3b8] sm:$0xff] %v830_v55  ;;  %v832_v56 = vld [vmem:[%s3397_s7 + $0xf00] sm:$0xff] }
  0x92   : > { %v834_v57 = vld [vmem:[%s3397_s7 + $0xf20] sm:$0xff]  ;;  %833 = vst [vmem:[%s3402_s8 + $0x3c0] sm:$0xff] %v832_v56 }
  0x93   : > { %v836_v58 = vld [vmem:[%s3397_s7 + $0xf40] sm:$0xff]  ;;  %835 = vst [vmem:[%s3402_s8 + $0x3c8] sm:$0xff] %v834_v57 }
  0x94   : > { %837 = vst [vmem:[%s3402_s8 + $0x3d0] sm:$0xff] %v836_v58  ;;  %v838_v59 = vld [vmem:[%s3397_s7 + $0xf60] sm:$0xff] }
  0x95   : > { %v840_v60 = vld [vmem:[%s3397_s7 + $0xf80] sm:$0xff]  ;;  %839 = vst [vmem:[%s3402_s8 + $0x3d8] sm:$0xff] %v838_v59 }
  0x96   : > { %v842_v61 = vld [vmem:[%s3397_s7 + $0xfa0] sm:$0xff]  ;;  %841 = vst [vmem:[%s3402_s8 + $0x3e0] sm:$0xff] %v840_v60 }
  0x97   : > { %843 = vst [vmem:[%s3402_s8 + $0x3e8] sm:$0xff] %v842_v61  ;;  %v844_v62 = vld [vmem:[%s3397_s7 + $0xfc0] sm:$0xff] }
  0x98   : > { %v846_v63 = vld [vmem:[%s3397_s7 + $0xfe0] sm:$0xff]  ;;  %845 = vst [vmem:[%s3402_s8 + $0x3f0] sm:$0xff] %v844_v62 }
  0x99   : > { %v848_v0 = vld [vmem:[%s3397_s7 + $0x1000] sm:$0xff]  ;;  %847 = vst [vmem:[%s3402_s8 + $0x3f8] sm:$0xff] %v846_v63 }
  0x9a   : > { %849 = vst [vmem:[%s3402_s8 + $0x400] sm:$0xff] %v848_v0  ;;  %v850_v1 = vld [vmem:[%s3397_s7 + $0x1020] sm:$0xff] }
  0x9b   : > { %v852_v2 = vld [vmem:[%s3397_s7 + $0x1040] sm:$0xff]  ;;  %851 = vst [vmem:[%s3402_s8 + $0x408] sm:$0xff] %v850_v1 }
  0x9c   : > { %v854_v3 = vld [vmem:[%s3397_s7 + $0x1060] sm:$0xff]  ;;  %853 = vst [vmem:[%s3402_s8 + $0x410] sm:$0xff] %v852_v2 }
  0x9d   : > { %855 = vst [vmem:[%s3402_s8 + $0x418] sm:$0xff] %v854_v3  ;;  %v856_v4 = vld [vmem:[%s3397_s7 + $0x1080] sm:$0xff] }
  0x9e   : > { %v858_v5 = vld [vmem:[%s3397_s7 + $0x10a0] sm:$0xff]  ;;  %857 = vst [vmem:[%s3402_s8 + $0x420] sm:$0xff] %v856_v4 }
  0x9f   : > { %v860_v6 = vld [vmem:[%s3397_s7 + $0x10c0] sm:$0xff]  ;;  %859 = vst [vmem:[%s3402_s8 + $0x428] sm:$0xff] %v858_v5 }
  0xa0   : > { %861 = vst [vmem:[%s3402_s8 + $0x430] sm:$0xff] %v860_v6  ;;  %v862_v7 = vld [vmem:[%s3397_s7 + $0x10e0] sm:$0xff] }
  0xa1   : > { %v864_v8 = vld [vmem:[%s3397_s7 + $0x1100] sm:$0xff]  ;;  %863 = vst [vmem:[%s3402_s8 + $0x438] sm:$0xff] %v862_v7 }
  0xa2   : > { %v866_v9 = vld [vmem:[%s3397_s7 + $0x1120] sm:$0xff]  ;;  %865 = vst [vmem:[%s3402_s8 + $0x440] sm:$0xff] %v864_v8 }
  0xa3   : > { %867 = vst [vmem:[%s3402_s8 + $0x448] sm:$0xff] %v866_v9  ;;  %v868_v10 = vld [vmem:[%s3397_s7 + $0x1140] sm:$0xff] }
  0xa4   : > { %v870_v11 = vld [vmem:[%s3397_s7 + $0x1160] sm:$0xff]  ;;  %869 = vst [vmem:[%s3402_s8 + $0x450] sm:$0xff] %v868_v10 }
  0xa5   : > { %v872_v12 = vld [vmem:[%s3397_s7 + $0x1180] sm:$0xff]  ;;  %871 = vst [vmem:[%s3402_s8 + $0x458] sm:$0xff] %v870_v11 }
  0xa6   : > { %873 = vst [vmem:[%s3402_s8 + $0x460] sm:$0xff] %v872_v12  ;;  %v874_v13 = vld [vmem:[%s3397_s7 + $0x11a0] sm:$0xff] }
  0xa7   : > { %v876_v14 = vld [vmem:[%s3397_s7 + $0x11c0] sm:$0xff]  ;;  %875 = vst [vmem:[%s3402_s8 + $0x468] sm:$0xff] %v874_v13 }
  0xa8   : > { %v878_v15 = vld [vmem:[%s3397_s7 + $0x11e0] sm:$0xff]  ;;  %877 = vst [vmem:[%s3402_s8 + $0x470] sm:$0xff] %v876_v14 }
  0xa9   : > { %879 = vst [vmem:[%s3402_s8 + $0x478] sm:$0xff] %v878_v15  ;;  %v880_v16 = vld [vmem:[%s3397_s7 + $0x1200] sm:$0xff] }
  0xaa   : > { %v882_v17 = vld [vmem:[%s3397_s7 + $0x1220] sm:$0xff]  ;;  %881 = vst [vmem:[%s3402_s8 + $0x480] sm:$0xff] %v880_v16 }
  0xab   : > { %v884_v18 = vld [vmem:[%s3397_s7 + $0x1240] sm:$0xff]  ;;  %883 = vst [vmem:[%s3402_s8 + $0x488] sm:$0xff] %v882_v17 }
  0xac   : > { %885 = vst [vmem:[%s3402_s8 + $0x490] sm:$0xff] %v884_v18  ;;  %v886_v19 = vld [vmem:[%s3397_s7 + $0x1260] sm:$0xff] }
  0xad   : > { %v888_v20 = vld [vmem:[%s3397_s7 + $0x1280] sm:$0xff]  ;;  %887 = vst [vmem:[%s3402_s8 + $0x498] sm:$0xff] %v886_v19 }
  0xae   : > { %v890_v21 = vld [vmem:[%s3397_s7 + $0x12a0] sm:$0xff]  ;;  %889 = vst [vmem:[%s3402_s8 + $0x4a0] sm:$0xff] %v888_v20 }
  0xaf   : > { %891 = vst [vmem:[%s3402_s8 + $0x4a8] sm:$0xff] %v890_v21  ;;  %v892_v22 = vld [vmem:[%s3397_s7 + $0x12c0] sm:$0xff] }
  0xb0   : > { %v894_v23 = vld [vmem:[%s3397_s7 + $0x12e0] sm:$0xff]  ;;  %893 = vst [vmem:[%s3402_s8 + $0x4b0] sm:$0xff] %v892_v22 }
  0xb1   : > { %v896_v24 = vld [vmem:[%s3397_s7 + $0x1300] sm:$0xff]  ;;  %895 = vst [vmem:[%s3402_s8 + $0x4b8] sm:$0xff] %v894_v23 }
  0xb2   : > { %897 = vst [vmem:[%s3402_s8 + $0x4c0] sm:$0xff] %v896_v24  ;;  %v898_v25 = vld [vmem:[%s3397_s7 + $0x1320] sm:$0xff] }
  0xb3   : > { %v900_v26 = vld [vmem:[%s3397_s7 + $0x1340] sm:$0xff]  ;;  %899 = vst [vmem:[%s3402_s8 + $0x4c8] sm:$0xff] %v898_v25 }
  0xb4   : > { %v902_v27 = vld [vmem:[%s3397_s7 + $0x1360] sm:$0xff]  ;;  %901 = vst [vmem:[%s3402_s8 + $0x4d0] sm:$0xff] %v900_v26 }
  0xb5   : > { %903 = vst [vmem:[%s3402_s8 + $0x4d8] sm:$0xff] %v902_v27  ;;  %v904_v28 = vld [vmem:[%s3397_s7 + $0x1380] sm:$0xff] }
  0xb6   : > { %v906_v29 = vld [vmem:[%s3397_s7 + $0x13a0] sm:$0xff]  ;;  %905 = vst [vmem:[%s3402_s8 + $0x4e0] sm:$0xff] %v904_v28 }
  0xb7   : > { %v908_v30 = vld [vmem:[%s3397_s7 + $0x13c0] sm:$0xff]  ;;  %907 = vst [vmem:[%s3402_s8 + $0x4e8] sm:$0xff] %v906_v29 }
  0xb8   : > { %909 = vst [vmem:[%s3402_s8 + $0x4f0] sm:$0xff] %v908_v30  ;;  %v910_v31 = vld [vmem:[%s3397_s7 + $0x13e0] sm:$0xff] }
  0xb9   : > { %v912_v32 = vld [vmem:[%s3397_s7 + $0x1400] sm:$0xff]  ;;  %911 = vst [vmem:[%s3402_s8 + $0x4f8] sm:$0xff] %v910_v31 }
  0xba   : > { %v914_v33 = vld [vmem:[%s3397_s7 + $0x1420] sm:$0xff]  ;;  %913 = vst [vmem:[%s3402_s8 + $0x500] sm:$0xff] %v912_v32 }
  0xbb   : > { %915 = vst [vmem:[%s3402_s8 + $0x508] sm:$0xff] %v914_v33  ;;  %v916_v34 = vld [vmem:[%s3397_s7 + $0x1440] sm:$0xff] }
  0xbc   : > { %v918_v35 = vld [vmem:[%s3397_s7 + $0x1460] sm:$0xff]  ;;  %917 = vst [vmem:[%s3402_s8 + $0x510] sm:$0xff] %v916_v34 }
  0xbd   : > { %v920_v36 = vld [vmem:[%s3397_s7 + $0x1480] sm:$0xff]  ;;  %919 = vst [vmem:[%s3402_s8 + $0x518] sm:$0xff] %v918_v35 }
  0xbe   : > { %921 = vst [vmem:[%s3402_s8 + $0x520] sm:$0xff] %v920_v36  ;;  %v922_v37 = vld [vmem:[%s3397_s7 + $0x14a0] sm:$0xff] }
  0xbf   : > { %v924_v38 = vld [vmem:[%s3397_s7 + $0x14c0] sm:$0xff]  ;;  %923 = vst [vmem:[%s3402_s8 + $0x528] sm:$0xff] %v922_v37 }
  0xc0   : > { %v926_v39 = vld [vmem:[%s3397_s7 + $0x14e0] sm:$0xff]  ;;  %925 = vst [vmem:[%s3402_s8 + $0x530] sm:$0xff] %v924_v38 }
  0xc1   : > { %927 = vst [vmem:[%s3402_s8 + $0x538] sm:$0xff] %v926_v39  ;;  %v928_v40 = vld [vmem:[%s3397_s7 + $0x1500] sm:$0xff] }
  0xc2   : > { %v930_v41 = vld [vmem:[%s3397_s7 + $0x1520] sm:$0xff]  ;;  %929 = vst [vmem:[%s3402_s8 + $0x540] sm:$0xff] %v928_v40 }
  0xc3   : > { %v932_v42 = vld [vmem:[%s3397_s7 + $0x1540] sm:$0xff]  ;;  %931 = vst [vmem:[%s3402_s8 + $0x548] sm:$0xff] %v930_v41 }
  0xc4   : > { %933 = vst [vmem:[%s3402_s8 + $0x550] sm:$0xff] %v932_v42  ;;  %v934_v43 = vld [vmem:[%s3397_s7 + $0x1560] sm:$0xff] }
  0xc5   : > { %v936_v44 = vld [vmem:[%s3397_s7 + $0x1580] sm:$0xff]  ;;  %935 = vst [vmem:[%s3402_s8 + $0x558] sm:$0xff] %v934_v43 }
  0xc6   : > { %v938_v45 = vld [vmem:[%s3397_s7 + $0x15a0] sm:$0xff]  ;;  %937 = vst [vmem:[%s3402_s8 + $0x560] sm:$0xff] %v936_v44 }
  0xc7   : > { %939 = vst [vmem:[%s3402_s8 + $0x568] sm:$0xff] %v938_v45  ;;  %v940_v46 = vld [vmem:[%s3397_s7 + $0x15c0] sm:$0xff] }
  0xc8   : > { %v942_v47 = vld [vmem:[%s3397_s7 + $0x15e0] sm:$0xff]  ;;  %941 = vst [vmem:[%s3402_s8 + $0x570] sm:$0xff] %v940_v46 }
  0xc9   : > { %v944_v48 = vld [vmem:[%s3397_s7 + $0x1600] sm:$0xff]  ;;  %943 = vst [vmem:[%s3402_s8 + $0x578] sm:$0xff] %v942_v47 }
  0xca   : > { %945 = vst [vmem:[%s3402_s8 + $0x580] sm:$0xff] %v944_v48  ;;  %v946_v49 = vld [vmem:[%s3397_s7 + $0x1620] sm:$0xff] }
  0xcb   : > { %v948_v50 = vld [vmem:[%s3397_s7 + $0x1640] sm:$0xff]  ;;  %947 = vst [vmem:[%s3402_s8 + $0x588] sm:$0xff] %v946_v49 }
  0xcc   : > { %v950_v51 = vld [vmem:[%s3397_s7 + $0x1660] sm:$0xff]  ;;  %949 = vst [vmem:[%s3402_s8 + $0x590] sm:$0xff] %v948_v50 }
  0xcd   : > { %951 = vst [vmem:[%s3402_s8 + $0x598] sm:$0xff] %v950_v51  ;;  %v952_v52 = vld [vmem:[%s3397_s7 + $0x1680] sm:$0xff] }
  0xce   : > { %v954_v53 = vld [vmem:[%s3397_s7 + $0x16a0] sm:$0xff]  ;;  %953 = vst [vmem:[%s3402_s8 + $0x5a0] sm:$0xff] %v952_v52 }
  0xcf   : > { %v956_v54 = vld [vmem:[%s3397_s7 + $0x16c0] sm:$0xff]  ;;  %955 = vst [vmem:[%s3402_s8 + $0x5a8] sm:$0xff] %v954_v53 }
  0xd0   : > { %957 = vst [vmem:[%s3402_s8 + $0x5b0] sm:$0xff] %v956_v54  ;;  %v958_v55 = vld [vmem:[%s3397_s7 + $0x16e0] sm:$0xff] }
  0xd1   : > { %v960_v56 = vld [vmem:[%s3397_s7 + $0x1700] sm:$0xff]  ;;  %959 = vst [vmem:[%s3402_s8 + $0x5b8] sm:$0xff] %v958_v55 }
  0xd2   : > { %v962_v57 = vld [vmem:[%s3397_s7 + $0x1720] sm:$0xff]  ;;  %961 = vst [vmem:[%s3402_s8 + $0x5c0] sm:$0xff] %v960_v56 }
  0xd3   : > { %963 = vst [vmem:[%s3402_s8 + $0x5c8] sm:$0xff] %v962_v57  ;;  %v964_v58 = vld [vmem:[%s3397_s7 + $0x1740] sm:$0xff] }
  0xd4   : > { %v966_v59 = vld [vmem:[%s3397_s7 + $0x1760] sm:$0xff]  ;;  %965 = vst [vmem:[%s3402_s8 + $0x5d0] sm:$0xff] %v964_v58 }
  0xd5   : > { %v968_v60 = vld [vmem:[%s3397_s7 + $0x1780] sm:$0xff]  ;;  %967 = vst [vmem:[%s3402_s8 + $0x5d8] sm:$0xff] %v966_v59 }
  0xd6   : > { %969 = vst [vmem:[%s3402_s8 + $0x5e0] sm:$0xff] %v968_v60  ;;  %v970_v61 = vld [vmem:[%s3397_s7 + $0x17a0] sm:$0xff] }
  0xd7   : > { %v972_v62 = vld [vmem:[%s3397_s7 + $0x17c0] sm:$0xff]  ;;  %971 = vst [vmem:[%s3402_s8 + $0x5e8] sm:$0xff] %v970_v61 }
  0xd8   : > { %v974_v63 = vld [vmem:[%s3397_s7 + $0x17e0] sm:$0xff]  ;;  %973 = vst [vmem:[%s3402_s8 + $0x5f0] sm:$0xff] %v972_v62 }
  0xd9   : > { %975 = vst [vmem:[%s3402_s8 + $0x5f8] sm:$0xff] %v974_v63 }
  0xda PF: > { %p2685_p7 = scmp.ge.s32.totalorder %s3314_s18, 1  ;;  %p988_p8 = scmp.lt.s32.totalorder %s3314_s18, 13 }
  0xdc   : > { %p989_p9 = pnand %p2685_p7, %p988_p8 }
  0xdd   : > { %s995_s9 = sand.u32 (!%p989_p9), 1, %s3290_s12   ;;  %s1035_s10 = smul.u32 (!%p989_p9), 12, %s3298_s14 }
  0xde   : > { %992 = sbr.rel (%p989_p9) target bundleno = 667 (0x29b), region = 66  ;;  %s2687_s21 = sshll.u32 (!%p989_p9), %s3302_s15, 1 }
  0xdf   : > { %s2902_s11 = smul.u32 (!%p989_p9), 1536, %s995_s9  ;;  %p1038_p10 = scmp.lt.s32.totalorder (!%p989_p9), %s1035_s10, 35 }
  0xe0   : > { %p1048_p11 = scmp.lt.s32.totalorder (!%p989_p9), %s2687_s21, 7  ;;  %p2690_p12 = scmp.ne.s32.totalorder (!%p989_p9), %s3298_s14, 0 }
  0xe1   : > { %s3807_s5 = scalar_lea.vmem (!%p989_p9), [#allocation3], %s2902_s11 }
  0xe5   : > { %s4077_s10 = smov (!%p1038_p10, %s1035_s10), 35  ;;  %s4079_s21 = smov (!%p1048_p11, %s2687_s21), 7 }
  0xe6   : > { %s2686_s22 = sshll.u32 %s4077_s10, 2  ;;  %s1050_s12 = scalar_lea.vmem %s4062_s2, %s4079_s21  ;;  %v3316_v0 = vmov (!%p2690_p12), 0.0  }
  0xe7   : > { %s3795_s26 = scalar_lea.vmem %s4060_s0, %s2686_s22  ;;  %s2689_s29 = sshll.u32 %s4079_s21, 2  ;;  %1066 = vst [vmem:[#allocation2] sm:$0xff] (!%p2690_p12), %v3316_v0  ;;  %1067 = vst [vmem:[#allocation2 + $0x8] sm:$0xff] (!%p2690_p12), %v3316_v0 }
  0xe8   : > { %s3805_s4 = scalar_lea.vmem %s4063_s3, %s2689_s29  ;;  %1065 = sbr.rel (%p2690_p12) target bundleno = 239 (0xef), region = 74 }
  0xef PF: > { %v2960_v1 = vld [vmem:[%s3807_s5 + $0x4] ss:$8 sps:$4 sm:$0xff]   ;;  %v2964_v3 = vld [vmem:[%s3807_s5] ss:$8 sps:$4 sm:$0xff]   ;;  %v2966_v5 = vld [vmem:[%s3807_s5 + $0x14] ss:$8 sps:$4 sm:$0xff]  }
  0xf0   : > { %v2962_v2 = vld [vmem:[%s3807_s5 + $0x104] ss:$8 sps:$4 sm:$0xff]   ;;  %2270 = vmatprep.subr.bf16.mxu0 %v2960_v1  ;;  %v2965_v4 = vld [vmem:[%s3807_s5 + $0x100] ss:$8 sps:$4 sm:$0xff]   ;;  %v2968_v6 = vld [vmem:[%s3807_s5 + $0x114] ss:$8 sps:$4 sm:$0xff]  }
  0xf1   : > { %2311 = vmatprep.subr.bf16.mxu1 %v2962_v2  ;;  %2271 = vmatpush1.bf16.msra.mxu0 %v2964_v3  ;;  %v2970_v7 = vld [vmem:[%s3807_s5 + $0x10] ss:$8 sps:$4 sm:$0xff]   ;;  %v2972_v9 = vld [vmem:[%s3807_s5 + $0x24] ss:$8 sps:$4 sm:$0xff]   ;;  %v2976_v11 = vld [vmem:[%s3807_s5 + $0x20] ss:$8 sps:$4 sm:$0xff]  }
  0xf2   : > { %2312 = vmatpush1.bf16.msra.mxu1 %v2965_v4  ;;  %2272 = vmatprep.subr.bf16.mxu0 %v2966_v5  ;;  %v2971_v8 = vld [vmem:[%s3807_s5 + $0x110] ss:$8 sps:$4 sm:$0xff]   ;;  %v2974_v10 = vld [vmem:[%s3807_s5 + $0x124] ss:$8 sps:$4 sm:$0xff]   ;;  %v2977_v12 = vld [vmem:[%s3807_s5 + $0x120] ss:$8 sps:$4 sm:$0xff]  }
  0xf3   : > { %2313 = vmatprep.subr.bf16.mxu1 %v2968_v6  ;;  %v2978_v13 = vld [vmem:[%s3807_s5 + $0x34] ss:$8 sps:$4 sm:$0xff]   ;;  %v2982_v15 = vld [vmem:[%s3807_s5 + $0x30] ss:$8 sps:$4 sm:$0xff]   ;;  %v2984_v17 = vld [vmem:[%s3807_s5 + $0x44] ss:$8 sps:$4 sm:$0xff]  }
  0xf4   : > { %v2980_v14 = vld [vmem:[%s3807_s5 + $0x134] ss:$8 sps:$4 sm:$0xff]   ;;  %v2983_v16 = vld [vmem:[%s3807_s5 + $0x130] ss:$8 sps:$4 sm:$0xff]   ;;  %v2986_v18 = vld [vmem:[%s3807_s5 + $0x144] ss:$8 sps:$4 sm:$0xff]  }
  0xf5   : > { %2273 = vmatpush1.bf16.msra.mxu0 %v2970_v7  ;;  %v2988_v19 = vld [vmem:[%s3807_s5 + $0x40] ss:$8 sps:$4 sm:$0xff]   ;;  %v2990_v21 = vld [vmem:[%s3807_s5 + $0x54] ss:$8 sps:$4 sm:$0xff]   ;;  %v2994_v23 = vld [vmem:[%s3807_s5 + $0x50] ss:$8 sps:$4 sm:$0xff]  }
  0xf6   : > { %2314 = vmatpush1.bf16.msra.mxu1 %v2971_v8  ;;  %2274 = vmatprep.subr.bf16.mxu0 %v2972_v9  ;;  %v2989_v20 = vld [vmem:[%s3807_s5 + $0x140] ss:$8 sps:$4 sm:$0xff]   ;;  %v2992_v22 = vld [vmem:[%s3807_s5 + $0x154] ss:$8 sps:$4 sm:$0xff]   ;;  %v2995_v24 = vld [vmem:[%s3807_s5 + $0x150] ss:$8 sps:$4 sm:$0xff]  }
  0xf7   : > { %2315 = vmatprep.subr.bf16.mxu1 %v2974_v10  ;;  %v2996_v25 = vld [vmem:[%s3807_s5 + $0x64] ss:$8 sps:$4 sm:$0xff]   ;;  %v3000_v27 = vld [vmem:[%s3807_s5 + $0x60] ss:$8 sps:$4 sm:$0xff]   ;;  %v3002_v29 = vld [vmem:[%s3807_s5 + $0x74] ss:$8 sps:$4 sm:$0xff]  }
  0xf8   : > { %v2998_v26 = vld [vmem:[%s3807_s5 + $0x164] ss:$8 sps:$4 sm:$0xff]   ;;  %v3001_v28 = vld [vmem:[%s3807_s5 + $0x160] ss:$8 sps:$4 sm:$0xff]   ;;  %v3004_v30 = vld [vmem:[%s3807_s5 + $0x174] ss:$8 sps:$4 sm:$0xff]  }
  0xf9   : > { %2275 = vmatpush1.bf16.msra.mxu0 %v2976_v11  ;;  %v3006_v31 = vld [vmem:[%s3807_s5 + $0x70] ss:$8 sps:$4 sm:$0xff]   ;;  %v3008_v33 = vld [vmem:[%s3807_s5 + $0x84] ss:$8 sps:$4 sm:$0xff]   ;;  %v3012_v35 = vld [vmem:[%s3807_s5 + $0x80] ss:$8 sps:$4 sm:$0xff]  }
  0xfa   : > { %2316 = vmatpush1.bf16.msra.mxu1 %v2977_v12  ;;  %2276 = vmatprep.subr.bf16.mxu0 %v2978_v13  ;;  %v3007_v32 = vld [vmem:[%s3807_s5 + $0x170] ss:$8 sps:$4 sm:$0xff]   ;;  %v3010_v34 = vld [vmem:[%s3807_s5 + $0x184] ss:$8 sps:$4 sm:$0xff]   ;;  %v3013_v36 = vld [vmem:[%s3807_s5 + $0x180] ss:$8 sps:$4 sm:$0xff]  }
  0xfb   : > { %2317 = vmatprep.subr.bf16.mxu1 %v2980_v14  ;;  %v3014_v37 = vld [vmem:[%s3807_s5 + $0x94] ss:$8 sps:$4 sm:$0xff]   ;;  %v3018_v39 = vld [vmem:[%s3807_s5 + $0x90] ss:$8 sps:$4 sm:$0xff]   ;;  %v3020_v41 = vld [vmem:[%s3807_s5 + $0xa4] ss:$8 sps:$4 sm:$0xff]  }
  0xfc   : > { %v3016_v38 = vld [vmem:[%s3807_s5 + $0x194] ss:$8 sps:$4 sm:$0xff]   ;;  %v3019_v40 = vld [vmem:[%s3807_s5 + $0x190] ss:$8 sps:$4 sm:$0xff]   ;;  %v3022_v42 = vld [vmem:[%s3807_s5 + $0x1a4] ss:$8 sps:$4 sm:$0xff]  }
  0xfd   : > { %2277 = vmatpush1.bf16.msra.mxu0 %v2982_v15  ;;  %v3024_v43 = vld [vmem:[%s3807_s5 + $0xa0] ss:$8 sps:$4 sm:$0xff]   ;;  %v3026_v45 = vld [vmem:[%s3807_s5 + $0xb4] ss:$8 sps:$4 sm:$0xff]   ;;  %v3030_v50 = vld [vmem:[%s3807_s5 + $0xb0] ss:$8 sps:$4 sm:$0xff]  }
  0xfe   : > { %2318 = vmatpush1.bf16.msra.mxu1 %v2983_v16  ;;  %2278 = vmatprep.subr.bf16.mxu0 %v2984_v17  ;;  %v3025_v44 = vld [vmem:[%s3807_s5 + $0x1a0] ss:$8 sps:$4 sm:$0xff]   ;;  %v3028_v46 = vld [vmem:[%s3807_s5 + $0x1b4] ss:$8 sps:$4 sm:$0xff]   ;;  %v3031_v51 = vld [vmem:[%s3807_s5 + $0x1b0] ss:$8 sps:$4 sm:$0xff]  }
  0xff   : > { %2319 = vmatprep.subr.bf16.mxu1 %v2986_v18  ;;  %v1070_v47 = vld [vmem:[%s3795_s26] sm:$0xff]  ;;  %v1071_v49 = vld [vmem:[%s3795_s26 + $0x8] sm:$0xff]  ;;  %v3032_v53 = vld [vmem:[%s3807_s5 + $0xc4] ss:$8 sps:$4 sm:$0xff]   ;;  %p2895_p13 = scmp.ne.s32.totalorder %s3298_s14, 2 }
 0x100   : > { %v2692_v48 = vcombine.high %v1070_v47, %v1070_v47  ;;  %v2694_v52 = vcombine.high %v1071_v49, %v1071_v49  ;;  %v3034_v54 = vld [vmem:[%s3807_s5 + $0x1c4] ss:$8 sps:$4 sm:$0xff]   ;;  %v3036_v55 = vld [vmem:[%s3807_s5 + $0xc0] ss:$8 sps:$4 sm:$0xff]   ;;  %v3038_v57 = vld [vmem:[%s3807_s5 + $0xd4] ss:$8 sps:$4 sm:$0xff]   ;;  %v2691_v7 = vcombine.low %v1070_v47, %v1070_v47  ;;  %v2693_v8 = vcombine.low %v1071_v49, %v1071_v49 }
 0x101   : > { %2279 = vmatpush1.bf16.msra.mxu0 %v2988_v19  ;;  %v3037_v56 = vld [vmem:[%s3807_s5 + $0x1c0] ss:$8 sps:$4 sm:$0xff]   ;;  %v3040_v58 = vld [vmem:[%s3807_s5 + $0x1d4] ss:$8 sps:$4 sm:$0xff]   ;;  %v3042_v59 = vld [vmem:[%s3807_s5 + $0xd0] ss:$8 sps:$4 sm:$0xff]  }
 0x102   : > { %2320 = vmatpush1.bf16.msra.mxu1 %v2989_v20  ;;  %2280 = vmatprep.subr.bf16.mxu0 %v2990_v21  ;;  %v3043_v60 = vld [vmem:[%s3807_s5 + $0x1d0] ss:$8 sps:$4 sm:$0xff]   ;;  %v3044_v61 = vld [vmem:[%s3807_s5 + $0xe4] ss:$8 sps:$4 sm:$0xff]   ;;  %v3048_v63 = vld [vmem:[%s3807_s5 + $0xe0] ss:$8 sps:$4 sm:$0xff]  }
 0x103   : > { %2321 = vmatprep.subr.bf16.mxu1 %v2992_v22  ;;  %2302 = vmatprep.mubr.bf16.mxu0 %v2692_v48  ;;  %v3046_v62 = vld [vmem:[%s3807_s5 + $0x1e4] ss:$8 sps:$4 sm:$0xff]   ;;  %v3049_v0 = vld [vmem:[%s3807_s5 + $0x1e0] ss:$8 sps:$4 sm:$0xff]   ;;  %v3050_v1 = vld [vmem:[%s3807_s5 + $0xf4] ss:$8 sps:$4 sm:$0xff]  }
 0x104   : > { %2343 = vmatprep.mubr.bf16.mxu1 %v2694_v52  ;;  %v3052_v2 = vld [vmem:[%s3807_s5 + $0x1f4] ss:$8 sps:$4 sm:$0xff]   ;;  %v3054_v3 = vld [vmem:[%s3807_s5 + $0xf0] ss:$8 sps:$4 sm:$0xff]   ;;  %v3062_v5 = vld [vmem:[%s3807_s5 + $0x204] ss:$8 sps:$4 sm:$0xff]  }
 0x105   : > { %2281 = vmatpush1.bf16.msra.mxu0 %v2994_v23  ;;  %v3055_v4 = vld [vmem:[%s3807_s5 + $0x1f0] ss:$8 sps:$4 sm:$0xff]   ;;  %v3065_v6 = vld [vmem:[%s3807_s5 + $0x304] ss:$8 sps:$4 sm:$0xff]   ;;  %v3060_v9 = vld [vmem:[%s3807_s5 + $0x200] ss:$8 sps:$4 sm:$0xff]  }
 0x106   : > { %2322 = vmatpush1.bf16.msra.mxu1 %v2995_v24  ;;  %2282 = vmatprep.subr.bf16.mxu0 %v2996_v25  ;;  %v3063_v10 = vld [vmem:[%s3807_s5 + $0x300] ss:$8 sps:$4 sm:$0xff]   ;;  %v3068_v11 = vld [vmem:[%s3807_s5 + $0x214] ss:$8 sps:$4 sm:$0xff]   ;;  %v3066_v13 = vld [vmem:[%s3807_s5 + $0x210] ss:$8 sps:$4 sm:$0xff]  }
 0x107   : > { %2323 = vmatprep.subr.bf16.mxu1 %v2998_v26  ;;  %v3071_v12 = vld [vmem:[%s3807_s5 + $0x314] ss:$8 sps:$4 sm:$0xff]   ;;  %v3069_v14 = vld [vmem:[%s3807_s5 + $0x310] ss:$8 sps:$4 sm:$0xff]   ;;  %v3074_v15 = vld [vmem:[%s3807_s5 + $0x224] ss:$8 sps:$4 sm:$0xff]  }
 0x108   : > { %v3077_v16 = vld [vmem:[%s3807_s5 + $0x324] ss:$8 sps:$4 sm:$0xff]   ;;  %v3072_v17 = vld [vmem:[%s3807_s5 + $0x220] ss:$8 sps:$4 sm:$0xff]   ;;  %v3080_v19 = vld [vmem:[%s3807_s5 + $0x234] ss:$8 sps:$4 sm:$0xff]  }
 0x109   : > { %2283 = vmatpush1.bf16.msra.mxu0 %v3000_v27  ;;  %v3075_v18 = vld [vmem:[%s3807_s5 + $0x320] ss:$8 sps:$4 sm:$0xff]   ;;  %v3083_v20 = vld [vmem:[%s3807_s5 + $0x334] ss:$8 sps:$4 sm:$0xff]   ;;  %v3078_v21 = vld [vmem:[%s3807_s5 + $0x230] ss:$8 sps:$4 sm:$0xff]  }
 0x10a   : > { %2324 = vmatpush1.bf16.msra.mxu1 %v3001_v28  ;;  %2284 = vmatprep.subr.bf16.mxu0 %v3002_v29  ;;  %v3081_v22 = vld [vmem:[%s3807_s5 + $0x330] ss:$8 sps:$4 sm:$0xff]   ;;  %v3086_v23 = vld [vmem:[%s3807_s5 + $0x244] ss:$8 sps:$4 sm:$0xff]   ;;  %v3084_v25 = vld [vmem:[%s3807_s5 + $0x240] ss:$8 sps:$4 sm:$0xff]  }
 0x10b   : > { %2325 = vmatprep.subr.bf16.mxu1 %v3004_v30  ;;  %v3089_v24 = vld [vmem:[%s3807_s5 + $0x344] ss:$8 sps:$4 sm:$0xff]   ;;  %v3087_v26 = vld [vmem:[%s3807_s5 + $0x340] ss:$8 sps:$4 sm:$0xff]   ;;  %v3092_v27 = vld [vmem:[%s3807_s5 + $0x254] ss:$8 sps:$4 sm:$0xff]  }
 0x10c   : > { %v3095_v28 = vld [vmem:[%s3807_s5 + $0x354] ss:$8 sps:$4 sm:$0xff]   ;;  %v3090_v29 = vld [vmem:[%s3807_s5 + $0x250] ss:$8 sps:$4 sm:$0xff]   ;;  %v3125_v52 = vld [vmem:[%s3807_s5 + $0x3a4] ss:$8 sps:$4 sm:$0xff]  }
 0x10d   : > { %2285 = vmatpush1.bf16.msra.mxu0 %v3006_v31  ;;  %v3093_v30 = vld [vmem:[%s3807_s5 + $0x350] ss:$8 sps:$4 sm:$0xff]   ;;  %v3098_v31 = vld [vmem:[%s3807_s5 + $0x264] ss:$8 sps:$4 sm:$0xff]   ;;  %v3116_v47 = vld [vmem:[%s3807_s5 + $0x294] ss:$8 sps:$4 sm:$0xff]  }
 0x10e   : > { %2326 = vmatpush1.bf16.msra.mxu1 %v3007_v32  ;;  %2286 = vmatprep.subr.bf16.mxu0 %v3008_v33  ;;  %v3101_v32 = vld [vmem:[%s3807_s5 + $0x364] ss:$8 sps:$4 sm:$0xff]   ;;  %v3119_v48 = vld [vmem:[%s3807_s5 + $0x394] ss:$8 sps:$4 sm:$0xff]   ;;  %v3114_v49 = vld [vmem:[%s3807_s5 + $0x290] ss:$8 sps:$4 sm:$0xff]  }
 0x10f   : > { %2327 = vmatprep.subr.bf16.mxu1 %v3010_v34  ;;  %v3903_v33 = vld [vmem:[%s3795_s26 + $0x10] sm:$0xff]  ;;  %v3906_v34 = vld [vmem:[%s3795_s26 + $0x18] sm:$0xff] }
 0x111   : > { %2287 = vmatpush1.bf16.msra.mxu0 %v3012_v35  ;;  %v3096_v35 = vld [vmem:[%s3807_s5 + $0x260] ss:$8 sps:$4 sm:$0xff]  }
 0x112   : > { %2328 = vmatpush1.bf16.msra.mxu1 %v3013_v36  ;;  %2288 = vmatprep.subr.bf16.mxu0 %v3014_v37  ;;  %v3099_v36 = vld [vmem:[%s3807_s5 + $0x360] ss:$8 sps:$4 sm:$0xff]   ;;  %v2696_v37 = vcombine.high %v3903_v33, %v3903_v33 }
 0x113   : > { %2329 = vmatprep.subr.bf16.mxu1 %v3016_v38  ;;  %v2698_v38 = vcombine.high %v3906_v34, %v3906_v34 }
 0x115   : > { %2289 = vmatpush1.bf16.msra.mxu0 %v3018_v39  ;;  %v3104_v39 = vld [vmem:[%s3807_s5 + $0x274] ss:$8 sps:$4 sm:$0xff]  }
 0x116   : > { %2330 = vmatpush1.bf16.msra.mxu1 %v3019_v40  ;;  %2290 = vmatprep.subr.bf16.mxu0 %v3020_v41  ;;  %v3107_v40 = vld [vmem:[%s3807_s5 + $0x374] ss:$8 sps:$4 sm:$0xff]   ;;  %v3102_v41 = vld [vmem:[%s3807_s5 + $0x270] ss:$8 sps:$4 sm:$0xff]  }
 0x117   : > { %2331 = vmatprep.subr.bf16.mxu1 %v3022_v42  ;;  %v3105_v42 = vld [vmem:[%s3807_s5 + $0x370] ss:$8 sps:$4 sm:$0xff]  }
 0x119   : > { %2291 = vmatpush1.bf16.msra.mxu0 %v3024_v43  ;;  %v3110_v43 = vld [vmem:[%s3807_s5 + $0x284] ss:$8 sps:$4 sm:$0xff]  }
 0x11a   : > { %2332 = vmatpush1.bf16.msra.mxu1 %v3025_v44  ;;  %2292 = vmatprep.subr.bf16.mxu0 %v3026_v45  ;;  %v3113_v44 = vld [vmem:[%s3807_s5 + $0x384] ss:$8 sps:$4 sm:$0xff]   ;;  %v3108_v45 = vld [vmem:[%s3807_s5 + $0x280] ss:$8 sps:$4 sm:$0xff]  }
 0x11b   : > { %2333 = vmatprep.subr.bf16.mxu1 %v3028_v46  ;;  %v3111_v46 = vld [vmem:[%s3807_s5 + $0x380] ss:$8 sps:$4 sm:$0xff]  }
 0x11d   : > { %2293 = vmatpush1.bf16.msra.mxu0 %v3030_v50  ;;  %v3117_v50 = vld [vmem:[%s3807_s5 + $0x390] ss:$8 sps:$4 sm:$0xff]  }
 0x11e   : > { %2334 = vmatpush1.bf16.msra.mxu1 %v3031_v51  ;;  %2294 = vmatprep.subr.bf16.mxu0 %v3032_v53  ;;  %v3122_v51 = vld [vmem:[%s3807_s5 + $0x2a4] ss:$8 sps:$4 sm:$0xff]   ;;  %v3120_v53 = vld [vmem:[%s3807_s5 + $0x2a0] ss:$8 sps:$4 sm:$0xff]  }
 0x11f   : > { %2335 = vmatprep.subr.bf16.mxu1 %v3034_v54  ;;  %v3123_v54 = vld [vmem:[%s3807_s5 + $0x3a0] ss:$8 sps:$4 sm:$0xff]  }
 0x121   : > { %2295 = vmatpush1.bf16.msra.mxu0 %v3036_v55  ;;  %v3128_v55 = vld [vmem:[%s3807_s5 + $0x2b4] ss:$8 sps:$4 sm:$0xff]  }
 0x122   : > { %2336 = vmatpush1.bf16.msra.mxu1 %v3037_v56  ;;  %2296 = vmatprep.subr.bf16.mxu0 %v3038_v57  ;;  %v3131_v56 = vld [vmem:[%s3807_s5 + $0x3b4] ss:$8 sps:$4 sm:$0xff]   ;;  %v3126_v57 = vld [vmem:[%s3807_s5 + $0x2b0] ss:$8 sps:$4 sm:$0xff]  }
 0x123   : > { %2337 = vmatprep.subr.bf16.mxu1 %v3040_v58  ;;  %v3129_v58 = vld [vmem:[%s3807_s5 + $0x3b0] ss:$8 sps:$4 sm:$0xff]  }
 0x125   : > { %2297 = vmatpush1.bf16.msra.mxu0 %v3042_v59  ;;  %v3134_v59 = vld [vmem:[%s3807_s5 + $0x2c4] ss:$8 sps:$4 sm:$0xff]  }
 0x126   : > { %2338 = vmatpush1.bf16.msra.mxu1 %v3043_v60  ;;  %2298 = vmatprep.subr.bf16.mxu0 %v3044_v61  ;;  %v3137_v60 = vld [vmem:[%s3807_s5 + $0x3c4] ss:$8 sps:$4 sm:$0xff]   ;;  %v3132_v61 = vld [vmem:[%s3807_s5 + $0x2c0] ss:$8 sps:$4 sm:$0xff]  }
 0x127   : > { %2339 = vmatprep.subr.bf16.mxu1 %v3046_v62  ;;  %v3135_v62 = vld [vmem:[%s3807_s5 + $0x3c0] ss:$8 sps:$4 sm:$0xff]  }
 0x129   : > { %2299 = vmatpush1.bf16.msra.mxu0 %v3048_v63  ;;  %v3140_v63 = vld [vmem:[%s3807_s5 + $0x2d4] ss:$8 sps:$4 sm:$0xff]  }
 0x12a   : > { %2340 = vmatpush1.bf16.msra.mxu1 %v3049_v0  ;;  %2300 = vmatprep.subr.bf16.mxu0 %v3050_v1  ;;  %v3143_v0 = vld [vmem:[%s3807_s5 + $0x3d4] ss:$8 sps:$4 sm:$0xff]   ;;  %v3138_v1 = vld [vmem:[%s3807_s5 + $0x2d0] ss:$8 sps:$4 sm:$0xff]  }
 0x12b   : > { %2341 = vmatprep.subr.bf16.mxu1 %v3052_v2  ;;  %v3141_v2 = vld [vmem:[%s3807_s5 + $0x3d0] ss:$8 sps:$4 sm:$0xff]  }
 0x12d   : > { %2301 = vmatpush1.bf16.msra.mxu0 %v3054_v3  ;;  %v3146_v3 = vld [vmem:[%s3807_s5 + $0x2e4] ss:$8 sps:$4 sm:$0xff]  }
 0x12e   : > { %2342 = vmatpush1.bf16.msra.mxu1 %v3055_v4  ;;  %2352 = vmatprep.subr.bf16.mxu0 %v3062_v5  ;;  %v3149_v4 = vld [vmem:[%s3807_s5 + $0x3e4] ss:$8 sps:$4 sm:$0xff]   ;;  %v3144_v5 = vld [vmem:[%s3807_s5 + $0x2e0] ss:$8 sps:$4 sm:$0xff]  }
 0x12f   : > { %2393 = vmatprep.subr.bf16.mxu1 %v3065_v6  ;;  %v3147_v6 = vld [vmem:[%s3807_s5 + $0x3e0] ss:$8 sps:$4 sm:$0xff]  }
 0x130   : > { %2303 = vmatmul.mubr.bf16.vlgmr.msra.gmra.mrb[0].mxu0 %v2691_v7  ;;  %v3152_v7 = vld [vmem:[%s3807_s5 + $0x2f4] ss:$8 sps:$4 sm:$0xff]  }
 0x131   : > { %2344 = vmatmul.mubr.bf16.vlgmr.msra.gmra.mrb[0].mxu1 %v2693_v8  ;;  %2353 = vmatpush1.bf16.msra.mxu0 %v3060_v9  ;;  %v3155_v8 = vld [vmem:[%s3807_s5 + $0x3f4] ss:$8 sps:$4 sm:$0xff]   ;;  %v3150_v9 = vld [vmem:[%s3807_s5 + $0x2f0] ss:$8 sps:$4 sm:$0xff]  }
 0x132   : > { %2394 = vmatpush1.bf16.msra.mxu1 %v3063_v10  ;;  %2354 = vmatprep.subr.bf16.mxu0 %v3068_v11  ;;  %v3153_v10 = vld [vmem:[%s3807_s5 + $0x3f0] ss:$8 sps:$4 sm:$0xff]   ;;  %v3162_v11 = vld [vmem:[%s3807_s5 + $0x404] ss:$8 sps:$4 sm:$0xff]  }
 0x133   : > { %2395 = vmatprep.subr.bf16.mxu1 %v3071_v12  ;;  %2384 = vmatprep.mubr.bf16.mxu0 %v2696_v37  ;;  %v3165_v12 = vld [vmem:[%s3807_s5 + $0x504] ss:$8 sps:$4 sm:$0xff]   ;;  %v3192_v37 = vld [vmem:[%s3807_s5 + $0x454] ss:$8 sps:$4 sm:$0xff]  }
 0x134   : > { %2425 = vmatprep.mubr.bf16.mxu1 %v2698_v38  ;;  %v3195_v38 = vld [vmem:[%s3807_s5 + $0x554] ss:$8 sps:$4 sm:$0xff]  }
 0x135   : > { %2355 = vmatpush1.bf16.msra.mxu0 %v3066_v13  ;;  %v2695_v13 = vcombine.low %v3903_v33, %v3903_v33  ;;  %v3186_v33 = vld [vmem:[%s3807_s5 + $0x444] ss:$8 sps:$4 sm:$0xff]  }
 0x136   : > { %2396 = vmatpush1.bf16.msra.mxu1 %v3069_v14  ;;  %2356 = vmatprep.subr.bf16.mxu0 %v3074_v15  ;;  %v2697_v14 = vcombine.low %v3906_v34, %v3906_v34  ;;  %v3160_v15 = vld [vmem:[%s3807_s5 + $0x400] ss:$8 sps:$4 sm:$0xff]   ;;  %v3189_v34 = vld [vmem:[%s3807_s5 + $0x544] ss:$8 sps:$4 sm:$0xff]  }
 0x137   : > { %2397 = vmatprep.subr.bf16.mxu1 %v3077_v16  ;;  %v3163_v16 = vld [vmem:[%s3807_s5 + $0x500] ss:$8 sps:$4 sm:$0xff]  }
 0x139   : > { %2357 = vmatpush1.bf16.msra.mxu0 %v3072_v17  ;;  %v3168_v17 = vld [vmem:[%s3807_s5 + $0x414] ss:$8 sps:$4 sm:$0xff]  }
 0x13a   : > { %2398 = vmatpush1.bf16.msra.mxu1 %v3075_v18  ;;  %2358 = vmatprep.subr.bf16.mxu0 %v3080_v19  ;;  %v3171_v18 = vld [vmem:[%s3807_s5 + $0x514] ss:$8 sps:$4 sm:$0xff]  }
 0x13b   : > { %2399 = vmatprep.subr.bf16.mxu1 %v3083_v20  ;;  %v3961_v19 = vld [vmem:[%s3795_s26 + $0x20] sm:$0xff]  ;;  %v3964_v20 = vld [vmem:[%s3795_s26 + $0x28] sm:$0xff] }
 0x13d   : > { %2359 = vmatpush1.bf16.msra.mxu0 %v3078_v21  ;;  %v2700_v21 = vcombine.high %v3961_v19, %v3961_v19 }
 0x13e   : > { %2400 = vmatpush1.bf16.msra.mxu1 %v3081_v22  ;;  %2360 = vmatprep.subr.bf16.mxu0 %v3086_v23  ;;  %v2702_v22 = vcombine.high %v3964_v20, %v3964_v20  ;;  %v3166_v23 = vld [vmem:[%s3807_s5 + $0x410] ss:$8 sps:$4 sm:$0xff]  }
 0x13f   : > { %2401 = vmatprep.subr.bf16.mxu1 %v3089_v24  ;;  %v3169_v24 = vld [vmem:[%s3807_s5 + $0x510] ss:$8 sps:$4 sm:$0xff]  }
 0x141   : > { %2361 = vmatpush1.bf16.msra.mxu0 %v3084_v25  ;;  %v3174_v25 = vld [vmem:[%s3807_s5 + $0x424] ss:$8 sps:$4 sm:$0xff]  }
 0x142   : > { %2402 = vmatpush1.bf16.msra.mxu1 %v3087_v26  ;;  %2362 = vmatprep.subr.bf16.mxu0 %v3092_v27  ;;  %v3177_v26 = vld [vmem:[%s3807_s5 + $0x524] ss:$8 sps:$4 sm:$0xff]   ;;  %v3172_v27 = vld [vmem:[%s3807_s5 + $0x420] ss:$8 sps:$4 sm:$0xff]  }
 0x143   : > { %2403 = vmatprep.subr.bf16.mxu1 %v3095_v28  ;;  %v3175_v28 = vld [vmem:[%s3807_s5 + $0x520] ss:$8 sps:$4 sm:$0xff]  }
 0x145   : > { %2363 = vmatpush1.bf16.msra.mxu0 %v3090_v29  ;;  %v3180_v29 = vld [vmem:[%s3807_s5 + $0x434] ss:$8 sps:$4 sm:$0xff]  }
 0x146   : > { %2404 = vmatpush1.bf16.msra.mxu1 %v3093_v30  ;;  %2364 = vmatprep.subr.bf16.mxu0 %v3098_v31  ;;  %v3183_v30 = vld [vmem:[%s3807_s5 + $0x534] ss:$8 sps:$4 sm:$0xff]   ;;  %v3178_v31 = vld [vmem:[%s3807_s5 + $0x430] ss:$8 sps:$4 sm:$0xff]  }
 0x147   : > { %2405 = vmatprep.subr.bf16.mxu1 %v3101_v32  ;;  %v3181_v32 = vld [vmem:[%s3807_s5 + $0x530] ss:$8 sps:$4 sm:$0xff]  }
 0x149   : > { %2365 = vmatpush1.bf16.msra.mxu0 %v3096_v35  ;;  %v3184_v35 = vld [vmem:[%s3807_s5 + $0x440] ss:$8 sps:$4 sm:$0xff]  }
 0x14a   : > { %2406 = vmatpush1.bf16.msra.mxu1 %v3099_v36  ;;  %2366 = vmatprep.subr.bf16.mxu0 %v3104_v39  ;;  %v3187_v36 = vld [vmem:[%s3807_s5 + $0x540] ss:$8 sps:$4 sm:$0xff]   ;;  %v3190_v39 = vld [vmem:[%s3807_s5 + $0x450] ss:$8 sps:$4 sm:$0xff]  }
 0x14b   : > { %2407 = vmatprep.subr.bf16.mxu1 %v3107_v40  ;;  %v3193_v40 = vld [vmem:[%s3807_s5 + $0x550] ss:$8 sps:$4 sm:$0xff]  }
 0x14d   : > { %2367 = vmatpush1.bf16.msra.mxu0 %v3102_v41  ;;  %v3198_v41 = vld [vmem:[%s3807_s5 + $0x464] ss:$8 sps:$4 sm:$0xff]  }
 0x14e   : > { %2408 = vmatpush1.bf16.msra.mxu1 %v3105_v42  ;;  %2368 = vmatprep.subr.bf16.mxu0 %v3110_v43  ;;  %v3201_v42 = vld [vmem:[%s3807_s5 + $0x564] ss:$8 sps:$4 sm:$0xff]   ;;  %v3196_v43 = vld [vmem:[%s3807_s5 + $0x460] ss:$8 sps:$4 sm:$0xff]  }
 0x14f   : > { %2409 = vmatprep.subr.bf16.mxu1 %v3113_v44  ;;  %v3199_v44 = vld [vmem:[%s3807_s5 + $0x560] ss:$8 sps:$4 sm:$0xff]  }
 0x151   : > { %2369 = vmatpush1.bf16.msra.mxu0 %v3108_v45  ;;  %v3204_v45 = vld [vmem:[%s3807_s5 + $0x474] ss:$8 sps:$4 sm:$0xff]  }
 0x152   : > { %2410 = vmatpush1.bf16.msra.mxu1 %v3111_v46  ;;  %2370 = vmatprep.subr.bf16.mxu0 %v3116_v47  ;;  %v3207_v46 = vld [vmem:[%s3807_s5 + $0x574] ss:$8 sps:$4 sm:$0xff]   ;;  %v3202_v47 = vld [vmem:[%s3807_s5 + $0x470] ss:$8 sps:$4 sm:$0xff]  }
 0x153   : > { %2411 = vmatprep.subr.bf16.mxu1 %v3119_v48  ;;  %v3205_v48 = vld [vmem:[%s3807_s5 + $0x570] ss:$8 sps:$4 sm:$0xff]  }
 0x155   : > { %2371 = vmatpush1.bf16.msra.mxu0 %v3114_v49  ;;  %v3210_v49 = vld [vmem:[%s3807_s5 + $0x484] ss:$8 sps:$4 sm:$0xff]  }
 0x156   : > { %2412 = vmatpush1.bf16.msra.mxu1 %v3117_v50  ;;  %2372 = vmatprep.subr.bf16.mxu0 %v3122_v51  ;;  %v3213_v50 = vld [vmem:[%s3807_s5 + $0x584] ss:$8 sps:$4 sm:$0xff]   ;;  %v3208_v51 = vld [vmem:[%s3807_s5 + $0x480] ss:$8 sps:$4 sm:$0xff]  }
 0x157   : > { %2413 = vmatprep.subr.bf16.mxu1 %v3125_v52  ;;  %v3211_v52 = vld [vmem:[%s3807_s5 + $0x580] ss:$8 sps:$4 sm:$0xff]  }
 0x159   : > { %2373 = vmatpush1.bf16.msra.mxu0 %v3120_v53  ;;  %v3216_v53 = vld [vmem:[%s3807_s5 + $0x494] ss:$8 sps:$4 sm:$0xff]  }
 0x15a   : > { %2414 = vmatpush1.bf16.msra.mxu1 %v3123_v54  ;;  %2374 = vmatprep.subr.bf16.mxu0 %v3128_v55  ;;  %v3219_v54 = vld [vmem:[%s3807_s5 + $0x594] ss:$8 sps:$4 sm:$0xff]   ;;  %v3214_v55 = vld [vmem:[%s3807_s5 + $0x490] ss:$8 sps:$4 sm:$0xff]  }
 0x15b   : > { %2415 = vmatprep.subr.bf16.mxu1 %v3131_v56  ;;  %v3217_v56 = vld [vmem:[%s3807_s5 + $0x590] ss:$8 sps:$4 sm:$0xff]  }
 0x15d   : > { %2375 = vmatpush1.bf16.msra.mxu0 %v3126_v57  ;;  %v3222_v57 = vld [vmem:[%s3807_s5 + $0x4a4] ss:$8 sps:$4 sm:$0xff]  }
 0x15e   : > { %2416 = vmatpush1.bf16.msra.mxu1 %v3129_v58  ;;  %2376 = vmatprep.subr.bf16.mxu0 %v3134_v59  ;;  %v3225_v58 = vld [vmem:[%s3807_s5 + $0x5a4] ss:$8 sps:$4 sm:$0xff]   ;;  %v3220_v59 = vld [vmem:[%s3807_s5 + $0x4a0] ss:$8 sps:$4 sm:$0xff]  }
 0x15f   : > { %2417 = vmatprep.subr.bf16.mxu1 %v3137_v60  ;;  %v3223_v60 = vld [vmem:[%s3807_s5 + $0x5a0] ss:$8 sps:$4 sm:$0xff]  }
 0x161   : > { %2377 = vmatpush1.bf16.msra.mxu0 %v3132_v61  ;;  %v3228_v61 = vld [vmem:[%s3807_s5 + $0x4b4] ss:$8 sps:$4 sm:$0xff]  }
 0x162   : > { %2418 = vmatpush1.bf16.msra.mxu1 %v3135_v62  ;;  %2378 = vmatprep.subr.bf16.mxu0 %v3140_v63  ;;  %v3231_v62 = vld [vmem:[%s3807_s5 + $0x5b4] ss:$8 sps:$4 sm:$0xff]   ;;  %v3226_v63 = vld [vmem:[%s3807_s5 + $0x4b0] ss:$8 sps:$4 sm:$0xff]  }
 0x163   : > { %2419 = vmatprep.subr.bf16.mxu1 %v3143_v0  ;;  %v3229_v0 = vld [vmem:[%s3807_s5 + $0x5b0] ss:$8 sps:$4 sm:$0xff]  }
 0x165   : > { %2379 = vmatpush1.bf16.msra.mxu0 %v3138_v1  ;;  %v3234_v1 = vld [vmem:[%s3807_s5 + $0x4c4] ss:$8 sps:$4 sm:$0xff]  }
 0x166   : > { %2420 = vmatpush1.bf16.msra.mxu1 %v3141_v2  ;;  %2380 = vmatprep.subr.bf16.mxu0 %v3146_v3  ;;  %v3237_v2 = vld [vmem:[%s3807_s5 + $0x5c4] ss:$8 sps:$4 sm:$0xff]   ;;  %v3232_v3 = vld [vmem:[%s3807_s5 + $0x4c0] ss:$8 sps:$4 sm:$0xff]  }
 0x167   : > { %2421 = vmatprep.subr.bf16.mxu1 %v3149_v4  ;;  %v3235_v4 = vld [vmem:[%s3807_s5 + $0x5c0] ss:$8 sps:$4 sm:$0xff]  }
 0x169   : > { %2381 = vmatpush1.bf16.msra.mxu0 %v3144_v5  ;;  %v3240_v5 = vld [vmem:[%s3807_s5 + $0x4d4] ss:$8 sps:$4 sm:$0xff]  }
 0x16a   : > { %2422 = vmatpush1.bf16.msra.mxu1 %v3147_v6  ;;  %2382 = vmatprep.subr.bf16.mxu0 %v3152_v7  ;;  %v3243_v6 = vld [vmem:[%s3807_s5 + $0x5d4] ss:$8 sps:$4 sm:$0xff]   ;;  %v3238_v7 = vld [vmem:[%s3807_s5 + $0x4d0] ss:$8 sps:$4 sm:$0xff]  }
 0x16b   : > { %2423 = vmatprep.subr.bf16.mxu1 %v3155_v8  ;;  %v3241_v8 = vld [vmem:[%s3807_s5 + $0x5d0] ss:$8 sps:$4 sm:$0xff]  }
 0x16d   : > { %2383 = vmatpush1.bf16.msra.mxu0 %v3150_v9  ;;  %v3246_v9 = vld [vmem:[%s3807_s5 + $0x4e4] ss:$8 sps:$4 sm:$0xff]  }
 0x16e   : > { %2424 = vmatpush1.bf16.msra.mxu1 %v3153_v10  ;;  %2434 = vmatprep.subr.bf16.mxu0 %v3162_v11  ;;  %v3249_v10 = vld [vmem:[%s3807_s5 + $0x5e4] ss:$8 sps:$4 sm:$0xff]   ;;  %v3244_v11 = vld [vmem:[%s3807_s5 + $0x4e0] ss:$8 sps:$4 sm:$0xff]  }
 0x16f   : > { %2475 = vmatprep.subr.bf16.mxu1 %v3165_v12  ;;  %v3247_v12 = vld [vmem:[%s3807_s5 + $0x5e0] ss:$8 sps:$4 sm:$0xff]  }
 0x170   : > { %2385 = vmatmul.mubr.bf16.vlgmr.msra.gmra.mrb[4].mxu0 %v2695_v13  ;;  %v3252_v13 = vld [vmem:[%s3807_s5 + $0x4f4] ss:$8 sps:$4 sm:$0xff]  }
 0x171   : > { %2426 = vmatmul.mubr.bf16.vlgmr.msra.gmra.mrb[4].mxu1 %v2697_v14  ;;  %2435 = vmatpush1.bf16.msra.mxu0 %v3160_v15  ;;  %v3255_v14 = vld [vmem:[%s3807_s5 + $0x5f4] ss:$8 sps:$4 sm:$0xff]   ;;  %v3250_v15 = vld [vmem:[%s3807_s5 + $0x4f0] ss:$8 sps:$4 sm:$0xff]  }
 0x172   : > { %2476 = vmatpush1.bf16.msra.mxu1 %v3163_v16  ;;  %2436 = vmatprep.subr.bf16.mxu0 %v3168_v17  ;;  %v3253_v16 = vld [vmem:[%s3807_s5 + $0x5f0] ss:$8 sps:$4 sm:$0xff]   ;;  %v2699_v17 = vcombine.low %v3961_v19, %v3961_v19 }
 0x173   : > { %2477 = vmatprep.subr.bf16.mxu1 %v3171_v18  ;;  %2466 = vmatprep.mubr.bf16.mxu0 %v2700_v21  ;;  %v2701_v18 = vcombine.low %v3964_v20, %v3964_v20 }
 0x174   : > { %2507 = vmatprep.mubr.bf16.mxu1 %v2702_v22 }
 0x175   : > { %2437 = vmatpush1.bf16.msra.mxu0 %v3166_v23 }
 0x176   : > { %2478 = vmatpush1.bf16.msra.mxu1 %v3169_v24  ;;  %2438 = vmatprep.subr.bf16.mxu0 %v3174_v25 }
 0x177   : > { %2479 = vmatprep.subr.bf16.mxu1 %v3177_v26 }
 0x179   : > { %2439 = vmatpush1.bf16.msra.mxu0 %v3172_v27 }
 0x17a   : > { %2480 = vmatpush1.bf16.msra.mxu1 %v3175_v28  ;;  %2440 = vmatprep.subr.bf16.mxu0 %v3180_v29 }
 0x17b   : > { %2481 = vmatprep.subr.bf16.mxu1 %v3183_v30 }
 0x17d   : > { %2441 = vmatpush1.bf16.msra.mxu0 %v3178_v31 }
 0x17e   : > { %2482 = vmatpush1.bf16.msra.mxu1 %v3181_v32  ;;  %2442 = vmatprep.subr.bf16.mxu0 %v3186_v33 }
 0x17f   : > { %2483 = vmatprep.subr.bf16.mxu1 %v3189_v34 }
 0x181   : > { %2443 = vmatpush1.bf16.msra.mxu0 %v3184_v35 }
 0x182   : > { %2484 = vmatpush1.bf16.msra.mxu1 %v3187_v36  ;;  %2444 = vmatprep.subr.bf16.mxu0 %v3192_v37 }
 0x183   : > { %2485 = vmatprep.subr.bf16.mxu1 %v3195_v38 }
 0x185   : > { %2445 = vmatpush1.bf16.msra.mxu0 %v3190_v39 }
 0x186   : > { %2486 = vmatpush1.bf16.msra.mxu1 %v3193_v40  ;;  %2446 = vmatprep.subr.bf16.mxu0 %v3198_v41 }
 0x187   : > { %2487 = vmatprep.subr.bf16.mxu1 %v3201_v42 }
 0x189   : > { %2447 = vmatpush1.bf16.msra.mxu0 %v3196_v43 }
 0x18a   : > { %2488 = vmatpush1.bf16.msra.mxu1 %v3199_v44  ;;  %2448 = vmatprep.subr.bf16.mxu0 %v3204_v45 }
 0x18b   : > { %2489 = vmatprep.subr.bf16.mxu1 %v3207_v46  ;;  %v1068_v46 = vld [vmem:[#allocation2] sm:$0xff] }
 0x18d   : > { %2449 = vmatpush1.bf16.msra.mxu0 %v3202_v47 }
 0x18e   : > { %2490 = vmatpush1.bf16.msra.mxu1 %v3205_v48  ;;  %2450 = vmatprep.subr.bf16.mxu0 %v3210_v49 }
 0x18f   : > { %2491 = vmatprep.subr.bf16.mxu1 %v3213_v50 }
 0x191   : > { %2451 = vmatpush1.bf16.msra.mxu0 %v3208_v51  ;;  %v1069_v51 = vld [vmem:[#allocation2 + $0x8] sm:$0xff] }
 0x192   : > { %2492 = vmatpush1.bf16.msra.mxu1 %v3211_v52  ;;  %2452 = vmatprep.subr.bf16.mxu0 %v3216_v53 }
 0x193   : > { %2493 = vmatprep.subr.bf16.mxu1 %v3219_v54 }
 0x195   : > { %2453 = vmatpush1.bf16.msra.mxu0 %v3214_v55 }
 0x196   : > { %2494 = vmatpush1.bf16.msra.mxu1 %v3217_v56  ;;  %2454 = vmatprep.subr.bf16.mxu0 %v3222_v57  ;;  %v2528_v57 = vlaneseq (!%p2895_p13) }
 0x197   : > { %2495 = vmatprep.subr.bf16.mxu1 %v3225_v58 }
 0x198   : > { %v2529_v58 = vshrl.u32 (!%p2895_p13), %v2528_v57, 7 }
 0x199   : > { %2455 = vmatpush1.bf16.msra.mxu0 %v3220_v59  ;;  %v2526_v59 = vld [vmem:[%s1050_s12] sm:$0x3] (!%p2895_p13) }
 0x19a   : > { %2496 = vmatpush1.bf16.msra.mxu1 %v3223_v60  ;;  %2456 = vmatprep.subr.bf16.mxu0 %v3228_v61  ;;  %v2530_v60 = vsub.s32 (!%p2895_p13), 0, %v2529_v58  ;;  %v2534_v61 = vsub.s32 (!%p2895_p13), 1, %v2529_v58 }
 0x19b   : > { %2497 = vmatprep.subr.bf16.mxu1 %v3231_v62 }
 0x19d   : > { %2457 = vmatpush1.bf16.msra.mxu0 %v3226_v63 }
 0x19e   : > { %2498 = vmatpush1.bf16.msra.mxu1 %v3229_v0  ;;  %2458 = vmatprep.subr.bf16.mxu0 %v3234_v1  ;;  %v2531_v0 = vrot.slane (!%p2895_p13), %v2526_v59, %v2530_v60  ;;  %v2535_v1 = vrot.slane (!%p2895_p13), %v2526_v59, %v2534_v61 }
 0x19f   : > { %2499 = vmatprep.subr.bf16.mxu1 %v3237_v2 }
 0x1a1   : > { %2459 = vmatpush1.bf16.msra.mxu0 %v3232_v3 }
 0x1a2   : > { %2500 = vmatpush1.bf16.msra.mxu1 %v3235_v4  ;;  %2460 = vmatprep.subr.bf16.mxu0 %v3240_v5 }
 0x1a3   : > { %2501 = vmatprep.subr.bf16.mxu1 %v3243_v6 }
 0x1a5   : > { %2461 = vmatpush1.bf16.msra.mxu0 %v3238_v7 }
 0x1a6   : > { %2502 = vmatpush1.bf16.msra.mxu1 %v3241_v8  ;;  %2462 = vmatprep.subr.bf16.mxu0 %v3246_v9 }
 0x1a7   : > { %2503 = vmatprep.subr.bf16.mxu1 %v3249_v10 }
 0x1a9   : > { %2463 = vmatpush1.bf16.msra.mxu0 %v3244_v11 }
 0x1aa   : > { %2504 = vmatpush1.bf16.msra.mxu1 %v3247_v12  ;;  %2464 = vmatprep.subr.bf16.mxu0 %v3252_v13 }
 0x1ab   : > { %2505 = vmatprep.subr.bf16.mxu1 %v3255_v14 }
 0x1ad   : > { %2465 = vmatpush1.bf16.msra.mxu0 %v3250_v15 }
 0x1ae   : > { %2506 = vmatpush1.bf16.msra.mxu1 %v3253_v16 }
 0x1b0   : > { %2467 = vmatmul.mubr.bf16.vlgmr.msra.gmra.mrb[8].mxu0 %v2699_v17 }
 0x1b1   : > { %2508 = vmatmul.mubr.bf16.vlgmr.msra.gmra.mrb[8].mxu1 %v2701_v18 }
 0x203   : > { %v2304_v21 = vpop.f32.mrb[0].mxu0 }
 0x204   : > { %v2345_v22 = vpop.f32.mrb[0].mxu1  ;;  %v2306_v24 = vpop.f32.mrb[1].mxu0 }
 0x205   : > { %v2346_v23 = vadd.f32 %v2345_v22, %v2304_v21  ;;  %v2347_v25 = vpop.f32.mrb[1].mxu1  ;;  %v2308_v27 = vpop.f32.mrb[2].mxu0 }
 0x206   : > { %v2348_v26 = vadd.f32 %v2347_v25, %v2306_v24  ;;  %v2349_v28 = vpop.f32.mrb[2].mxu1  ;;  %v2309_v29 = vpop.f32.mrb[3].mxu0 }
 0x207   : > { %v2350_v30 = vpop.f32.mrb[3].mxu1 }
 0x243   : > { %v2386_v31 = vpop.f32.mrb[4].mxu0 }
 0x244   : > { %v2427_v32 = vpop.f32.mrb[4].mxu1  ;;  %v2387_v19 = vadd.f32 %v2386_v31, %v2346_v23  ;;  %v2388_v33 = vpop.f32.mrb[5].mxu0 }
 0x245   : > { %v2429_v34 = vpop.f32.mrb[5].mxu1  ;;  %v2389_v20 = vadd.f32 %v2388_v33, %v2348_v26  ;;  %v2390_v35 = vpop.f32.mrb[6].mxu0 }
 0x246   : > { %v2431_v36 = vpop.f32.mrb[6].mxu1  ;;  %v2428_v37 = vadd.f32 %v2427_v32, %v2387_v19  ;;  %v2391_v38 = vpop.f32.mrb[7].mxu0 }
 0x247   : > { %v2432_v39 = vpop.f32.mrb[7].mxu1  ;;  %v2430_v40 = vadd.f32 %v2429_v34, %v2389_v20 }
 0x283   : > { %v2468_v41 = vpop.f32.mrb[8].mxu0 }
 0x284   : > { %v2509_v42 = vpop.f32.mrb[8].mxu1  ;;  %v2469_v43 = vadd.f32 %v2468_v41, %v2428_v37  ;;  %v2470_v44 = vpop.f32.mrb[9].mxu0 }
 0x285   : > { %v2511_v45 = vpop.f32.mrb[9].mxu1  ;;  %v2471_v47 = vadd.f32 %v2470_v44, %v2430_v40  ;;  %v2472_v48 = vpop.f32.mrb[10].mxu0  ;;  %2523 = sbr.rel (%p2895_p13) target bundleno = 667 (0x29b), region = 78 }
 0x286   : > { %v2513_v49 = vpop.f32.mrb[10].mxu1  ;;  %v2510_v50 = vadd.f32 %v2509_v42, %v2469_v43  ;;  %v2473_v52 = vpop.f32.mrb[11].mxu0 }
 0x287   : > { %v2514_v53 = vpop.f32.mrb[11].mxu1  ;;  %v2512_v54 = vadd.f32 %v2511_v45, %v2471_v47 }
 0x288   : > { %v2516_v55 = vadd.f32 %v2510_v50, %v1068_v46 }
 0x289   : > { %v2517_v56 = vadd.f32 %v2512_v54, %v1069_v51 }
 0x28a   : > { %2518 = vst [vmem:[#allocation2] sm:$0xff] %v2516_v55 }
 0x28b   : > { %2519 = vst [vmem:[#allocation2 + $0x8] sm:$0xff] %v2517_v56 }
 0x291   : > { %v2524_v62 = vld [vmem:[#allocation2] sm:$0xff] }
 0x292   : > { %v2525_v63 = vld [vmem:[#allocation2 + $0x8] sm:$0xff]  ;;  %v2538_v2 = vadd.f32 %v2531_v0, %v2524_v62 }
 0x293   : > { %v2539_v3 = vadd.f32 %v2535_v1, %v2525_v63 }
 0x294   : > { %vm2540_vm0 = vcmp.gt.f32.partialorder %v2538_v2, 0.0  ;;  %v2542_v4 = vmul.f32 0.1, %v2538_v2 }
 0x295   : > { %vm2541_vm1 = vcmp.gt.f32.partialorder %v2539_v3, 0.0  ;;  %v2543_v5 = vmul.f32 0.1, %v2539_v3 }
 0x296   : > { %v2544_v6 = vsel %vm2540_vm0, %v2538_v2, %v2542_v4 }
 0x297   : > { %v2545_v7 = vsel %vm2541_vm1, %v2539_v3, %v2543_v5 }
 0x298   : > { %v2900_v8 = vpack.c.bf16 %v2545_v7, %v2544_v6 }
 0x29a   : > { %2554 = vst [vmem:[%s3805_s4] sm:$0xff] %v2900_v8 }
 0x29b PF: > { %s13_s18 = sadd.s32 1, %s3314_s18   ;;  %s4064_s12 = smov %s3294_s13 }
 0x29c   : > { %p10_p0 = scmp.ge.s32.totalorder %s13_s18, 14   ;;  %s4065_s13 = smov %s3388_s25 }
 0x29d   : > { %s4066_s14 = smov %s3306_s16  ;;  %s4067_s15 = smov %s3310_s17 }
 0x29e   : > { %s4068_s16 = smov %s4071_s19  ;;  %s4069_s17 = smov %s4075_s20 }
 0x29f   :  { %12 = sbr.rel (!%p10_p0) target bundleno = 4 (0x4), region = 119 }

// kernel: flownets_forward.19
= control target key start
LH: loop header
LB: loop body
LE: loop exit
PB: predicated region body
PF: predicated region fallthrough
CT: control target
= control target key end

     0   :  { %s3337_s12 = smov 0   ;;  %s3339_s13 = smov 0   ;;  %s4060_s0 = inlined_call_operand.vmem [shape: bf16[8,9216], index: 0, kind: input, shape index: {}]   ;;  %s4061_s1 = inlined_call_operand.vmem [shape: bf16[9216,1024], index: 1, kind: input, shape index: {}]   ;;  %s4062_s2 = inlined_call_operand.vmem [shape: f32[1,1024], index: 2, kind: input, shape index: {}]   ;;  %s4063_s3 = inlined_call_operand.vmem [shape: bf16[8,1024], index: 3, kind: output, shape index: {}]  }
   0x1   :  { %s3341_s14 = smov 0   ;;  %s3343_s15 = smov 0  }
   0x2   :  { %s3345_s16 = smov 0   ;;  %s3347_s17 = smov 0  }
   0x3   :  { %s3349_s18 = smov 0  }
   0x4 LB: > { %s25_s19 = sadd.s32 1, %s3306_s16  ;;  %s28_s20 = sadd.s32 1, %s3310_s17  ;;  %s3314_s18 = sphi %s3349_s18, %s13_s18   ;;  %s3310_s17 = sphi %s3347_s17, %s4069_s17   ;;  %s3306_s16 = sphi %s3345_s16, %s4068_s16   ;;  %s3302_s15 = sphi %s3343_s15, %s4067_s15   ;;  %s3298_s14 = sphi %s3341_s14, %s4066_s14   ;;  %s3294_s13 = sphi %s3339_s13, %s4065_s13   ;;  %s3290_s12 = sphi %s3337_s12, %s4064_s12  }
   0x5   : > { %p26_p0 = scmp.ge.s32.totalorder %s25_s19, 6  ;;  %p76_p1 = scmp.ne.s32.totalorder %s3294_s13, %s3290_s12 }
   0x6   : > { %p77_p2 = scmp.eq.s32.totalorder %s3314_s18, 0  ;;  %s69_s24 = sadd.s32 1, %s3294_s13 }
   0x7   : > { %s4071_s19 = smov (%p26_p0, %s25_s19), 0  ;;  %s4073_s20 = smov (!%p26_p0, %s28_s20), %s3310_s17 }
   0x8   : > { %p78_p3 = por %p77_p2, %p76_p1  ;;  %p30_p4 = scmp.ge.s32.totalorder %s4073_s20, 4 }
   0x9   : > { %s64_s21 = ssub.s32 %s3306_s16, %s4071_s19  ;;  %p2681_p6 = scmp.ge.s32.totalorder %s3314_s18, 24 }
   0xa   : > { %s4075_s20 = smov (%p30_p4, %s4073_s20), 0 }
   0xb   : > { %s65_s22 = ssub.s32 %s3310_s17, %s4075_s20  ;;  %156 = sbr.rel (%p2681_p6) target bundleno = 218 (0xda), region = 16 }
   0xc   : > { %s66_s23 = sor.u32 %s65_s22, %s64_s21 }
   0xd   : > { %p67_p5 = scmp.eq.s32.totalorder %s66_s23, 0 }
   0xf   : > { %s3388_s25 = scalar_select %p67_p5, %s3294_s13, %s69_s24  }
  0x12   : > { %172 = sbr.rel (!%p78_p3) target bundleno = 218 (0xda), region = 24  ;;  %s174_s26 = sand.u32 (%p78_p3), 1, %s3294_s13  }
  0x13   : > { %s2901_s27 = smul.u32 (%p78_p3), 1536, %s174_s26  ;;  %s2682_s28 = sshll.u32 (%p78_p3), %s3310_s17, 1 }
  0x14   : > { %s2899_s29 = smul.u32 (%p78_p3), 1536, %s3306_s16 }
  0x15   : > { %s3402_s8 = scalar_lea.vmem (%p78_p3), [#allocation3], %s2901_s27 }
  0x16   : > { %s180_s30 = sadd.s32 (%p78_p3), %s2899_s29, %s2682_s28 }
  0x17   : > { %s2684_s4 = sshll.u32 (%p78_p3), %s180_s30, 2 }
  0x18   : > { %s3397_s7 = scalar_lea.vmem (%p78_p3), %s4061_s1, %s2684_s4 }
  0x19   : > { %v592_v0 = vld [vmem:[%s3397_s7] sm:$0xff] }
  0x1a   : > { %v594_v1 = vld [vmem:[%s3397_s7 + $0x20] sm:$0xff]  ;;  %593 = vst [vmem:[%s3402_s8] sm:$0xff] %v592_v0 }
  0x1b   : > { %v596_v2 = vld [vmem:[%s3397_s7 + $0x40] sm:$0xff]  ;;  %595 = vst [vmem:[%s3402_s8 + $0x8] sm:$0xff] %v594_v1 }
  0x1c   : > { %597 = vst [vmem:[%s3402_s8 + $0x10] sm:$0xff] %v596_v2  ;;  %v598_v3 = vld [vmem:[%s3397_s7 + $0x60] sm:$0xff] }
  0x1d   : > { %v600_v4 = vld [vmem:[%s3397_s7 + $0x80] sm:$0xff]  ;;  %599 = vst [vmem:[%s3402_s8 + $0x18] sm:$0xff] %v598_v3 }
  0x1e   : > { %v602_v5 = vld [vmem:[%s3397_s7 + $0xa0] sm:$0xff]  ;;  %601 = vst [vmem:[%s3402_s8 + $0x20] sm:$0xff] %v600_v4 }
  0x1f   : > { %603 = vst [vmem:[%s3402_s8 + $0x28] sm:$0xff] %v602_v5  ;;  %v604_v6 = vld [vmem:[%s3397_s7 + $0xc0] sm:$0xff] }
  0x20   : > { %v606_v7 = vld [vmem:[%s3397_s7 + $0xe0] sm:$0xff]  ;;  %605 = vst [vmem:[%s3402_s8 + $0x30] sm:$0xff] %v604_v6 }
  0x21   : > { %v608_v8 = vld [vmem:[%s3397_s7 + $0x100] sm:$0xff]  ;;  %607 = vst [vmem:[%s3402_s8 + $0x38] sm:$0xff] %v606_v7 }
  0x22   : > { %609 = vst [vmem:[%s3402_s8 + $0x40] sm:$0xff] %v608_v8  ;;  %v610_v9 = vld [vmem:[%s3397_s7 + $0x120] sm:$0xff] }
  0x23   : > { %v612_v10 = vld [vmem:[%s3397_s7 + $0x140] sm:$0xff]  ;;  %611 = vst [vmem:[%s3402_s8 + $0x48] sm:$0xff] %v610_v9 }
  0x24   : > { %v614_v11 = vld [vmem:[%s3397_s7 + $0x160] sm:$0xff]  ;;  %613 = vst [vmem:[%s3402_s8 + $0x50] sm:$0xff] %v612_v10 }
  0x25   : > { %615 = vst [vmem:[%s3402_s8 + $0x58] sm:$0xff] %v614_v11  ;;  %v616_v12 = vld [vmem:[%s3397_s7 + $0x180] sm:$0xff] }
  0x26   : > { %v618_v13 = vld [vmem:[%s3397_s7 + $0x1a0] sm:$0xff]  ;;  %617 = vst [vmem:[%s3402_s8 + $0x60] sm:$0xff] %v616_v12 }
  0x27   : > { %v620_v14 = vld [vmem:[%s3397_s7 + $0x1c0] sm:$0xff]  ;;  %619 = vst [vmem:[%s3402_s8 + $0x68] sm:$0xff] %v618_v13 }
  0x28   : > { %621 = vst [vmem:[%s3402_s8 + $0x70] sm:$0xff] %v620_v14  ;;  %v622_v15 = vld [vmem:[%s3397_s7 + $0x1e0] sm:$0xff] }
  0x29   : > { %v624_v16 = vld [vmem:[%s3397_s7 + $0x200] sm:$0xff]  ;;  %623 = vst [vmem:[%s3402_s8 + $0x78] sm:$0xff] %v622_v15 }
  0x2a   : > { %v626_v17 = vld [vmem:[%s3397_s7 + $0x220] sm:$0xff]  ;;  %625 = vst [vmem:[%s3402_s8 + $0x80] sm:$0xff] %v624_v16 }
  0x2b   : > { %627 = vst [vmem:[%s3402_s8 + $0x88] sm:$0xff] %v626_v17  ;;  %v628_v18 = vld [vmem:[%s3397_s7 + $0x240] sm:$0xff] }
  0x2c   : > { %v630_v19 = vld [vmem:[%s3397_s7 + $0x260] sm:$0xff]  ;;  %629 = vst [vmem:[%s3402_s8 + $0x90] sm:$0xff] %v628_v18 }
  0x2d   : > { %v632_v20 = vld [vmem:[%s3397_s7 + $0x280] sm:$0xff]  ;;  %631 = vst [vmem:[%s3402_s8 + $0x98] sm:$0xff] %v630_v19 }
  0x2e   : > { %633 = vst [vmem:[%s3402_s8 + $0xa0] sm:$0xff] %v632_v20  ;;  %v634_v21 = vld [vmem:[%s3397_s7 + $0x2a0] sm:$0xff] }
  0x2f   : > { %v636_v22 = vld [vmem:[%s3397_s7 + $0x2c0] sm:$0xff]  ;;  %635 = vst [vmem:[%s3402_s8 + $0xa8] sm:$0xff] %v634_v21 }
  0x30   : > { %v638_v23 = vld [vmem:[%s3397_s7 + $0x2e0] sm:$0xff]  ;;  %637 = vst [vmem:[%s3402_s8 + $0xb0] sm:$0xff] %v636_v22 }
  0x31   : > { %639 = vst [vmem:[%s3402_s8 + $0xb8] sm:$0xff] %v638_v23  ;;  %v640_v24 = vld [vmem:[%s3397_s7 + $0x300] sm:$0xff] }
  0x32   : > { %v642_v25 = vld [vmem:[%s3397_s7 + $0x320] sm:$0xff]  ;;  %641 = vst [vmem:[%s3402_s8 + $0xc0] sm:$0xff] %v640_v24 }
  0x33   : > { %v644_v26 = vld [vmem:[%s3397_s7 + $0x340] sm:$0xff]  ;;  %643 = vst [vmem:[%s3402_s8 + $0xc8] sm:$0xff] %v642_v25 }
  0x34   : > { %645 = vst [vmem:[%s3402_s8 + $0xd0] sm:$0xff] %v644_v26  ;;  %v646_v27 = vld [vmem:[%s3397_s7 + $0x360] sm:$0xff] }
  0x35   : > { %v648_v28 = vld [vmem:[%s3397_s7 + $0x380] sm:$0xff]  ;;  %647 = vst [vmem:[%s3402_s8 + $0xd8] sm:$0xff] %v646_v27 }
  0x36   : > { %v650_v29 = vld [vmem:[%s3397_s7 + $0x3a0] sm:$0xff]  ;;  %649 = vst [vmem:[%s3402_s8 + $0xe0] sm:$0xff] %v648_v28 }
  0x37   : > { %651 = vst [vmem:[%s3402_s8 + $0xe8] sm:$0xff] %v650_v29  ;;  %v652_v30 = vld [vmem:[%s3397_s7 + $0x3c0] sm:$0xff] }
  0x38   : > { %v654_v31 = vld [vmem:[%s3397_s7 + $0x3e0] sm:$0xff]  ;;  %653 = vst [vmem:[%s3402_s8 + $0xf0] sm:$0xff] %v652_v30 }
  0x39   : > { %v656_v32 = vld [vmem:[%s3397_s7 + $0x400] sm:$0xff]  ;;  %655 = vst [vmem:[%s3402_s8 + $0xf8] sm:$0xff] %v654_v31 }
  0x3a   : > { %657 = vst [vmem:[%s3402_s8 + $0x100] sm:$0xff] %v656_v32  ;;  %v658_v33 = vld [vmem:[%s3397_s7 + $0x420] sm:$0xff] }
  0x3b   : > { %v660_v34 = vld [vmem:[%s3397_s7 + $0x440] sm:$0xff]  ;;  %659 = vst [vmem:[%s3402_s8 + $0x108] sm:$0xff] %v658_v33 }
  0x3c   : > { %v662_v35 = vld [vmem:[%s3397_s7 + $0x460] sm:$0xff]  ;;  %661 = vst [vmem:[%s3402_s8 + $0x110] sm:$0xff] %v660_v34 }
  0x3d   : > { %663 = vst [vmem:[%s3402_s8 + $0x118] sm:$0xff] %v662_v35  ;;  %v664_v36 = vld [vmem:[%s3397_s7 + $0x480] sm:$0xff] }
  0x3e   : > { %v666_v37 = vld [vmem:[%s3397_s7 + $0x4a0] sm:$0xff]  ;;  %665 = vst [vmem:[%s3402_s8 + $0x120] sm:$0xff] %v664_v36 }
  0x3f   : > { %v668_v38 = vld [vmem:[%s3397_s7 + $0x4c0] sm:$0xff]  ;;  %667 = vst [vmem:[%s3402_s8 + $0x128] sm:$0xff] %v666_v37 }
  0x40   : > { %669 = vst [vmem:[%s3402_s8 + $0x130] sm:$0xff] %v668_v38  ;;  %v670_v39 = vld [vmem:[%s3397_s7 + $0x4e0] sm:$0xff] }
  0x41   : > { %v672_v40 = vld [vmem:[%s3397_s7 + $0x500] sm:$0xff]  ;;  %671 = vst [vmem:[%s3402_s8 + $0x138] sm:$0xff] %v670_v39 }
  0x42   : > { %v674_v41 = vld [vmem:[%s3397_s7 + $0x520] sm:$0xff]  ;;  %673 = vst [vmem:[%s3402_s8 + $0x140] sm:$0xff] %v672_v40 }
  0x43   : > { %675 = vst [vmem:[%s3402_s8 + $0x148] sm:$0xff] %v674_v41  ;;  %v676_v42 = vld [vmem:[%s3397_s7 + $0x540] sm:$0xff] }
  0x44   : > { %v678_v43 = vld [vmem:[%s3397_s7 + $0x560] sm:$0xff]  ;;  %677 = vst [vmem:[%s3402_s8 + $0x150] sm:$0xff] %v676_v42 }
  0x45   : > { %v680_v44 = vld [vmem:[%s3397_s7 + $0x580] sm:$0xff]  ;;  %679 = vst [vmem:[%s3402_s8 + $0x158] sm:$0xff] %v678_v43 }
  0x46   : > { %681 = vst [vmem:[%s3402_s8 + $0x160] sm:$0xff] %v680_v44  ;;  %v682_v45 = vld [vmem:[%s3397_s7 + $0x5a0] sm:$0xff] }
  0x47   : > { %v684_v46 = vld [vmem:[%s3397_s7 + $0x5c0] sm:$0xff]  ;;  %683 = vst [vmem:[%s3402_s8 + $0x168] sm:$0xff] %v682_v45 }
  0x48   : > { %v686_v47 = vld [vmem:[%s3397_s7 + $0x5e0] sm:$0xff]  ;;  %685 = vst [vmem:[%s3402_s8 + $0x170] sm:$0xff] %v684_v46 }
  0x49   : > { %687 = vst [vmem:[%s3402_s8 + $0x178] sm:$0xff] %v686_v47  ;;  %v688_v48 = vld [vmem:[%s3397_s7 + $0x600] sm:$0xff] }
  0x4a   : > { %v690_v49 = vld [vmem:[%s3397_s7 + $0x620] sm:$0xff]  ;;  %689 = vst [vmem:[%s3402_s8 + $0x180] sm:$0xff] %v688_v48 }
  0x4b   : > { %v692_v50 = vld [vmem:[%s3397_s7 + $0x640] sm:$0xff]  ;;  %691 = vst [vmem:[%s3402_s8 + $0x188] sm:$0xff] %v690_v49 }
  0x4c   : > { %693 = vst [vmem:[%s3402_s8 + $0x190] sm:$0xff] %v692_v50  ;;  %v694_v51 = vld [vmem:[%s3397_s7 + $0x660] sm:$0xff] }
  0x4d   : > { %v696_v52 = vld [vmem:[%s3397_s7 + $0x680] sm:$0xff]  ;;  %695 = vst [vmem:[%s3402_s8 + $0x198] sm:$0xff] %v694_v51 }
  0x4e   : > { %v698_v53 = vld [vmem:[%s3397_s7 + $0x6a0] sm:$0xff]  ;;  %697 = vst [vmem:[%s3402_s8 + $0x1a0] sm:$0xff] %v696_v52 }
  0x4f   : > { %699 = vst [vmem:[%s3402_s8 + $0x1a8] sm:$0xff] %v698_v53  ;;  %v700_v54 = vld [vmem:[%s3397_s7 + $0x6c0] sm:$0xff] }
  0x50   : > { %v702_v55 = vld [vmem:[%s3397_s7 + $0x6e0] sm:$0xff]  ;;  %701 = vst [vmem:[%s3402_s8 + $0x1b0] sm:$0xff] %v700_v54 }
  0x51   : > { %v704_v56 = vld [vmem:[%s3397_s7 + $0x700] sm:$0xff]  ;;  %703 = vst [vmem:[%s3402_s8 + $0x1b8] sm:$0xff] %v702_v55 }
  0x52   : > { %705 = vst [vmem:[%s3402_s8 + $0x1c0] sm:$0xff] %v704_v56  ;;  %v706_v57 = vld [vmem:[%s3397_s7 + $0x720] sm:$0xff] }
  0x53   : > { %v708_v58 = vld [vmem:[%s3397_s7 + $0x740] sm:$0xff]  ;;  %707 = vst [vmem:[%s3402_s8 + $0x1c8] sm:$0xff] %v706_v57 }
  0x54   : > { %v710_v59 = vld [vmem:[%s3397_s7 + $0x760] sm:$0xff]  ;;  %709 = vst [vmem:[%s3402_s8 + $0x1d0] sm:$0xff] %v708_v58 }
  0x55   : > { %711 = vst [vmem:[%s3402_s8 + $0x1d8] sm:$0xff] %v710_v59  ;;  %v712_v60 = vld [vmem:[%s3397_s7 + $0x780] sm:$0xff] }
  0x56   : > { %v714_v61 = vld [vmem:[%s3397_s7 + $0x7a0] sm:$0xff]  ;;  %713 = vst [vmem:[%s3402_s8 + $0x1e0] sm:$0xff] %v712_v60 }
  0x57   : > { %v716_v62 = vld [vmem:[%s3397_s7 + $0x7c0] sm:$0xff]  ;;  %715 = vst [vmem:[%s3402_s8 + $0x1e8] sm:$0xff] %v714_v61 }
  0x58   : > { %717 = vst [vmem:[%s3402_s8 + $0x1f0] sm:$0xff] %v716_v62  ;;  %v718_v63 = vld [vmem:[%s3397_s7 + $0x7e0] sm:$0xff] }
  0x59   : > { %v720_v0 = vld [vmem:[%s3397_s7 + $0x800] sm:$0xff]  ;;  %719 = vst [vmem:[%s3402_s8 + $0x1f8] sm:$0xff] %v718_v63 }
  0x5a   : > { %v722_v1 = vld [vmem:[%s3397_s7 + $0x820] sm:$0xff]  ;;  %721 = vst [vmem:[%s3402_s8 + $0x200] sm:$0xff] %v720_v0 }
  0x5b   : > { %723 = vst [vmem:[%s3402_s8 + $0x208] sm:$0xff] %v722_v1  ;;  %v724_v2 = vld [vmem:[%s3397_s7 + $0x840] sm:$0xff] }
  0x5c   : > { %v726_v3 = vld [vmem:[%s3397_s7 + $0x860] sm:$0xff]  ;;  %725 = vst [vmem:[%s3402_s8 + $0x210] sm:$0xff] %v724_v2 }
  0x5d   : > { %v728_v4 = vld [vmem:[%s3397_s7 + $0x880] sm:$0xff]  ;;  %727 = vst [vmem:[%s3402_s8 + $0x218] sm:$0xff] %v726_v3 }
  0x5e   : > { %729 = vst [vmem:[%s3402_s8 + $0x220] sm:$0xff] %v728_v4  ;;  %v730_v5 = vld [vmem:[%s3397_s7 + $0x8a0] sm:$0xff] }
  0x5f   : > { %v732_v6 = vld [vmem:[%s3397_s7 + $0x8c0] sm:$0xff]  ;;  %731 = vst [vmem:[%s3402_s8 + $0x228] sm:$0xff] %v730_v5 }
  0x60   : > { %v734_v7 = vld [vmem:[%s3397_s7 + $0x8e0] sm:$0xff]  ;;  %733 = vst [vmem:[%s3402_s8 + $0x230] sm:$0xff] %v732_v6 }
  0x61   : > { %735 = vst [vmem:[%s3402_s8 + $0x238] sm:$0xff] %v734_v7  ;;  %v736_v8 = vld [vmem:[%s3397_s7 + $0x900] sm:$0xff] }
  0x62   : > { %v738_v9 = vld [vmem:[%s3397_s7 + $0x920] sm:$0xff]  ;;  %737 = vst [vmem:[%s3402_s8 + $0x240] sm:$0xff] %v736_v8 }
  0x63   : > { %v740_v10 = vld [vmem:[%s3397_s7 + $0x940] sm:$0xff]  ;;  %739 = vst [vmem:[%s3402_s8 + $0x248] sm:$0xff] %v738_v9 }
  0x64   : > { %741 = vst [vmem:[%s3402_s8 + $0x250] sm:$0xff] %v740_v10  ;;  %v742_v11 = vld [vmem:[%s3397_s7 + $0x960] sm:$0xff] }
  0x65   : > { %v744_v12 = vld [vmem:[%s3397_s7 + $0x980] sm:$0xff]  ;;  %743 = vst [vmem:[%s3402_s8 + $0x258] sm:$0xff] %v742_v11 }
  0x66   : > { %v746_v13 = vld [vmem:[%s3397_s7 + $0x9a0] sm:$0xff]  ;;  %745 = vst [vmem:[%s3402_s8 + $0x260] sm:$0xff] %v744_v12 }
  0x67   : > { %747 = vst [vmem:[%s3402_s8 + $0x268] sm:$0xff] %v746_v13  ;;  %v748_v14 = vld [vmem:[%s3397_s7 + $0x9c0] sm:$0xff] }
  0x68   : > { %v750_v15 = vld [vmem:[%s3397_s7 + $0x9e0] sm:$0xff]  ;;  %749 = vst [vmem:[%s3402_s8 + $0x270] sm:$0xff] %v748_v14 }
  0x69   : > { %v752_v16 = vld [vmem:[%s3397_s7 + $0xa00] sm:$0xff]  ;;  %751 = vst [vmem:[%s3402_s8 + $0x278] sm:$0xff] %v750_v15 }
  0x6a   : > { %753 = vst [vmem:[%s3402_s8 + $0x280] sm:$0xff] %v752_v16  ;;  %v754_v17 = vld [vmem:[%s3397_s7 + $0xa20] sm:$0xff] }
  0x6b   : > { %v756_v18 = vld [vmem:[%s3397_s7 + $0xa40] sm:$0xff]  ;;  %755 = vst [vmem:[%s3402_s8 + $0x288] sm:$0xff] %v754_v17 }
  0x6c   : > { %v758_v19 = vld [vmem:[%s3397_s7 + $0xa60] sm:$0xff]  ;;  %757 = vst [vmem:[%s3402_s8 + $0x290] sm:$0xff] %v756_v18 }
  0x6d   : > { %759 = vst [vmem:[%s3402_s8 + $0x298] sm:$0xff] %v758_v19  ;;  %v760_v20 = vld [vmem:[%s3397_s7 + $0xa80] sm:$0xff] }
  0x6e   : > { %v762_v21 = vld [vmem:[%s3397_s7 + $0xaa0] sm:$0xff]  ;;  %761 = vst [vmem:[%s3402_s8 + $0x2a0] sm:$0xff] %v760_v20 }
  0x6f   : > { %v764_v22 = vld [vmem:[%s3397_s7 + $0xac0] sm:$0xff]  ;;  %763 = vst [vmem:[%s3402_s8 + $0x2a8] sm:$0xff] %v762_v21 }
  0x70   : > { %765 = vst [vmem:[%s3402_s8 + $0x2b0] sm:$0xff] %v764_v22  ;;  %v766_v23 = vld [vmem:[%s3397_s7 + $0xae0] sm:$0xff] }
  0x71   : > { %v768_v24 = vld [vmem:[%s3397_s7 + $0xb00] sm:$0xff]  ;;  %767 = vst [vmem:[%s3402_s8 + $0x2b8] sm:$0xff] %v766_v23 }
  0x72   : > { %v770_v25 = vld [vmem:[%s3397_s7 + $0xb20] sm:$0xff]  ;;  %769 = vst [vmem:[%s3402_s8 + $0x2c0] sm:$0xff] %v768_v24 }
  0x73   : > { %771 = vst [vmem:[%s3402_s8 + $0x2c8] sm:$0xff] %v770_v25  ;;  %v772_v26 = vld [vmem:[%s3397_s7 + $0xb40] sm:$0xff] }
  0x74   : > { %v774_v27 = vld [vmem:[%s3397_s7 + $0xb60] sm:$0xff]  ;;  %773 = vst [vmem:[%s3402_s8 + $0x2d0] sm:$0xff] %v772_v26 }
  0x75   : > { %v776_v28 = vld [vmem:[%s3397_s7 + $0xb80] sm:$0xff]  ;;  %775 = vst [vmem:[%s3402_s8 + $0x2d8] sm:$0xff] %v774_v27 }
  0x76   : > { %777 = vst [vmem:[%s3402_s8 + $0x2e0] sm:$0xff] %v776_v28  ;;  %v778_v29 = vld [vmem:[%s3397_s7 + $0xba0] sm:$0xff] }
  0x77   : > { %v780_v30 = vld [vmem:[%s3397_s7 + $0xbc0] sm:$0xff]  ;;  %779 = vst [vmem:[%s3402_s8 + $0x2e8] sm:$0xff] %v778_v29 }
  0x78   : > { %v782_v31 = vld [vmem:[%s3397_s7 + $0xbe0] sm:$0xff]  ;;  %781 = vst [vmem:[%s3402_s8 + $0x2f0] sm:$0xff] %v780_v30 }
  0x79   : > { %783 = vst [vmem:[%s3402_s8 + $0x2f8] sm:$0xff] %v782_v31  ;;  %v784_v32 = vld [vmem:[%s3397_s7 + $0xc00] sm:$0xff] }
  0x7a   : > { %v786_v33 = vld [vmem:[%s3397_s7 + $0xc20] sm:$0xff]  ;;  %785 = vst [vmem:[%s3402_s8 + $0x300] sm:$0xff] %v784_v32 }
  0x7b   : > { %v788_v34 = vld [vmem:[%s3397_s7 + $0xc40] sm:$0xff]  ;;  %787 = vst [vmem:[%s3402_s8 + $0x308] sm:$0xff] %v786_v33 }
  0x7c   : > { %789 = vst [vmem:[%s3402_s8 + $0x310] sm:$0xff] %v788_v34  ;;  %v790_v35 = vld [vmem:[%s3397_s7 + $0xc60] sm:$0xff] }
  0x7d   : > { %v792_v36 = vld [vmem:[%s3397_s7 + $0xc80] sm:$0xff]  ;;  %791 = vst [vmem:[%s3402_s8 + $0x318] sm:$0xff] %v790_v35 }
  0x7e   : > { %v794_v37 = vld [vmem:[%s3397_s7 + $0xca0] sm:$0xff]  ;;  %793 = vst [vmem:[%s3402_s8 + $0x320] sm:$0xff] %v792_v36 }
  0x7f   : > { %795 = vst [vmem:[%s3402_s8 + $0x328] sm:$0xff] %v794_v37  ;;  %v796_v38 = vld [vmem:[%s3397_s7 + $0xcc0] sm:$0xff] }
  0x80   : > { %v798_v39 = vld [vmem:[%s3397_s7 + $0xce0] sm:$0xff]  ;;  %797 = vst [vmem:[%s3402_s8 + $0x330] sm:$0xff] %v796_v38 }
  0x81   : > { %v800_v40 = vld [vmem:[%s3397_s7 + $0xd00] sm:$0xff]  ;;  %799 = vst [vmem:[%s3402_s8 + $0x338] sm:$0xff] %v798_v39 }
  0x82   : > { %801 = vst [vmem:[%s3402_s8 + $0x340] sm:$0xff] %v800_v40  ;;  %v802_v41 = vld [vmem:[%s3397_s7 + $0xd20] sm:$0xff] }
  0x83   : > { %v804_v42 = vld [vmem:[%s3397_s7 + $0xd40] sm:$0xff]  ;;  %803 = vst [vmem:[%s3402_s8 + $0x348] sm:$0xff] %v802_v41 }
  0x84   : > { %v806_v43 = vld [vmem:[%s3397_s7 + $0xd60] sm:$0xff]  ;;  %805 = vst [vmem:[%s3402_s8 + $0x350] sm:$0xff] %v804_v42 }
  0x85   : > { %807 = vst [vmem:[%s3402_s8 + $0x358] sm:$0xff] %v806_v43  ;;  %v808_v44 = vld [vmem:[%s3397_s7 + $0xd80] sm:$0xff] }
  0x86   : > { %v810_v45 = vld [vmem:[%s3397_s7 + $0xda0] sm:$0xff]  ;;  %809 = vst [vmem:[%s3402_s8 + $0x360] sm:$0xff] %v808_v44 }
  0x87   : > { %v812_v46 = vld [vmem:[%s3397_s7 + $0xdc0] sm:$0xff]  ;;  %811 = vst [vmem:[%s3402_s8 + $0x368] sm:$0xff] %v810_v45 }
  0x88   : > { %813 = vst [vmem:[%s3402_s8 + $0x370] sm:$0xff] %v812_v46  ;;  %v814_v47 = vld [vmem:[%s3397_s7 + $0xde0] sm:$0xff] }
  0x89   : > { %v816_v48 = vld [vmem:[%s3397_s7 + $0xe00] sm:$0xff]  ;;  %815 = vst [vmem:[%s3402_s8 + $0x378] sm:$0xff] %v814_v47 }
  0x8a   : > { %v818_v49 = vld [vmem:[%s3397_s7 + $0xe20] sm:$0xff]  ;;  %817 = vst [vmem:[%s3402_s8 + $0x380] sm:$0xff] %v816_v48 }
  0x8b   : > { %819 = vst [vmem:[%s3402_s8 + $0x388] sm:$0xff] %v818_v49  ;;  %v820_v50 = vld [vmem:[%s3397_s7 + $0xe40] sm:$0xff] }
  0x8c   : > { %v822_v51 = vld [vmem:[%s3397_s7 + $0xe60] sm:$0xff]  ;;  %821 = vst [vmem:[%s3402_s8 + $0x390] sm:$0xff] %v820_v50 }
  0x8d   : > { %v824_v52 = vld [vmem:[%s3397_s7 + $0xe80] sm:$0xff]  ;;  %823 = vst [vmem:[%s3402_s8 + $0x398] sm:$0xff] %v822_v51 }
  0x8e   : > { %825 = vst [vmem:[%s3402_s8 + $0x3a0] sm:$0xff] %v824_v52  ;;  %v826_v53 = vld [vmem:[%s3397_s7 + $0xea0] sm:$0xff] }
  0x8f   : > { %v828_v54 = vld [vmem:[%s3397_s7 + $0xec0] sm:$0xff]  ;;  %827 = vst [vmem:[%s3402_s8 + $0x3a8] sm:$0xff] %v826_v53 }
  0x90   : > { %v830_v55 = vld [vmem:[%s3397_s7 + $0xee0] sm:$0xff]  ;;  %829 = vst [vmem:[%s3402_s8 + $0x3b0] sm:$0xff] %v828_v54 }
  0x91   : > { %831 = vst [vmem:[%s3402_s8 + $0x3b8] sm:$0xff] %v830_v55  ;;  %v832_v56 = vld [vmem:[%s3397_s7 + $0xf00] sm:$0xff] }
  0x92   : > { %v834_v57 = vld [vmem:[%s3397_s7 + $0xf20] sm:$0xff]  ;;  %833 = vst [vmem:[%s3402_s8 + $0x3c0] sm:$0xff] %v832_v56 }
  0x93   : > { %v836_v58 = vld [vmem:[%s3397_s7 + $0xf40] sm:$0xff]  ;;  %835 = vst [vmem:[%s3402_s8 + $0x3c8] sm:$0xff] %v834_v57 }
  0x94   : > { %837 = vst [vmem:[%s3402_s8 + $0x3d0] sm:$0xff] %v836_v58  ;;  %v838_v59 = vld [vmem:[%s3397_s7 + $0xf60] sm:$0xff] }
  0x95   : > { %v840_v60 = vld [vmem:[%s3397_s7 + $0xf80] sm:$0xff]  ;;  %839 = vst [vmem:[%s3402_s8 + $0x3d8] sm:$0xff] %v838_v59 }
  0x96   : > { %v842_v61 = vld [vmem:[%s3397_s7 + $0xfa0] sm:$0xff]  ;;  %841 = vst [vmem:[%s3402_s8 + $0x3e0] sm:$0xff] %v840_v60 }
  0x97   : > { %843 = vst [vmem:[%s3402_s8 + $0x3e8] sm:$0xff] %v842_v61  ;;  %v844_v62 = vld [vmem:[%s3397_s7 + $0xfc0] sm:$0xff] }
  0x98   : > { %v846_v63 = vld [vmem:[%s3397_s7 + $0xfe0] sm:$0xff]  ;;  %845 = vst [vmem:[%s3402_s8 + $0x3f0] sm:$0xff] %v844_v62 }
  0x99   : > { %v848_v0 = vld [vmem:[%s3397_s7 + $0x1000] sm:$0xff]  ;;  %847 = vst [vmem:[%s3402_s8 + $0x3f8] sm:$0xff] %v846_v63 }
  0x9a   : > { %849 = vst [vmem:[%s3402_s8 + $0x400] sm:$0xff] %v848_v0  ;;  %v850_v1 = vld [vmem:[%s3397_s7 + $0x1020] sm:$0xff] }
  0x9b   : > { %v852_v2 = vld [vmem:[%s3397_s7 + $0x1040] sm:$0xff]  ;;  %851 = vst [vmem:[%s3402_s8 + $0x408] sm:$0xff] %v850_v1 }
  0x9c   : > { %v854_v3 = vld [vmem:[%s3397_s7 + $0x1060] sm:$0xff]  ;;  %853 = vst [vmem:[%s3402_s8 + $0x410] sm:$0xff] %v852_v2 }
  0x9d   : > { %855 = vst [vmem:[%s3402_s8 + $0x418] sm:$0xff] %v854_v3  ;;  %v856_v4 = vld [vmem:[%s3397_s7 + $0x1080] sm:$0xff] }
  0x9e   : > { %v858_v5 = vld [vmem:[%s3397_s7 + $0x10a0] sm:$0xff]  ;;  %857 = vst [vmem:[%s3402_s8 + $0x420] sm:$0xff] %v856_v4 }
  0x9f   : > { %v860_v6 = vld [vmem:[%s3397_s7 + $0x10c0] sm:$0xff]  ;;  %859 = vst [vmem:[%s3402_s8 + $0x428] sm:$0xff] %v858_v5 }
  0xa0   : > { %861 = vst [vmem:[%s3402_s8 + $0x430] sm:$0xff] %v860_v6  ;;  %v862_v7 = vld [vmem:[%s3397_s7 + $0x10e0] sm:$0xff] }
  0xa1   : > { %v864_v8 = vld [vmem:[%s3397_s7 + $0x1100] sm:$0xff]  ;;  %863 = vst [vmem:[%s3402_s8 + $0x438] sm:$0xff] %v862_v7 }
  0xa2   : > { %v866_v9 = vld [vmem:[%s3397_s7 + $0x1120] sm:$0xff]  ;;  %865 = vst [vmem:[%s3402_s8 + $0x440] sm:$0xff] %v864_v8 }
  0xa3   : > { %867 = vst [vmem:[%s3402_s8 + $0x448] sm:$0xff] %v866_v9  ;;  %v868_v10 = vld [vmem:[%s3397_s7 + $0x1140] sm:$0xff] }
  0xa4   : > { %v870_v11 = vld [vmem:[%s3397_s7 + $0x1160] sm:$0xff]  ;;  %869 = vst [vmem:[%s3402_s8 + $0x450] sm:$0xff] %v868_v10 }
  0xa5   : > { %v872_v12 = vld [vmem:[%s3397_s7 + $0x1180] sm:$0xff]  ;;  %871 = vst [vmem:[%s3402_s8 + $0x458] sm:$0xff] %v870_v11 }
  0xa6   : > { %873 = vst [vmem:[%s3402_s8 + $0x460] sm:$0xff] %v872_v12  ;;  %v874_v13 = vld [vmem:[%s3397_s7 + $0x11a0] sm:$0xff] }
  0xa7   : > { %v876_v14 = vld [vmem:[%s3397_s7 + $0x11c0] sm:$0xff]  ;;  %875 = vst [vmem:[%s3402_s8 + $0x468] sm:$0xff] %v874_v13 }
  0xa8   : > { %v878_v15 = vld [vmem:[%s3397_s7 + $0x11e0] sm:$0xff]  ;;  %877 = vst [vmem:[%s3402_s8 + $0x470] sm:$0xff] %v876_v14 }
  0xa9   : > { %879 = vst [vmem:[%s3402_s8 + $0x478] sm:$0xff] %v878_v15  ;;  %v880_v16 = vld [vmem:[%s3397_s7 + $0x1200] sm:$0xff] }
  0xaa   : > { %v882_v17 = vld [vmem:[%s3397_s7 + $0x1220] sm:$0xff]  ;;  %881 = vst [vmem:[%s3402_s8 + $0x480] sm:$0xff] %v880_v16 }
  0xab   : > { %v884_v18 = vld [vmem:[%s3397_s7 + $0x1240] sm:$0xff]  ;;  %883 = vst [vmem:[%s3402_s8 + $0x488] sm:$0xff] %v882_v17 }
  0xac   : > { %885 = vst [vmem:[%s3402_s8 + $0x490] sm:$0xff] %v884_v18  ;;  %v886_v19 = vld [vmem:[%s3397_s7 + $0x1260] sm:$0xff] }
  0xad   : > { %v888_v20 = vld [vmem:[%s3397_s7 + $0x1280] sm:$0xff]  ;;  %887 = vst [vmem:[%s3402_s8 + $0x498] sm:$0xff] %v886_v19 }
  0xae   : > { %v890_v21 = vld [vmem:[%s3397_s7 + $0x12a0] sm:$0xff]  ;;  %889 = vst [vmem:[%s3402_s8 + $0x4a0] sm:$0xff] %v888_v20 }
  0xaf   : > { %891 = vst [vmem:[%s3402_s8 + $0x4a8] sm:$0xff] %v890_v21  ;;  %v892_v22 = vld [vmem:[%s3397_s7 + $0x12c0] sm:$0xff] }
  0xb0   : > { %v894_v23 = vld [vmem:[%s3397_s7 + $0x12e0] sm:$0xff]  ;;  %893 = vst [vmem:[%s3402_s8 + $0x4b0] sm:$0xff] %v892_v22 }
  0xb1   : > { %v896_v24 = vld [vmem:[%s3397_s7 + $0x1300] sm:$0xff]  ;;  %895 = vst [vmem:[%s3402_s8 + $0x4b8] sm:$0xff] %v894_v23 }
  0xb2   : > { %897 = vst [vmem:[%s3402_s8 + $0x4c0] sm:$0xff] %v896_v24  ;;  %v898_v25 = vld [vmem:[%s3397_s7 + $0x1320] sm:$0xff] }
  0xb3   : > { %v900_v26 = vld [vmem:[%s3397_s7 + $0x1340] sm:$0xff]  ;;  %899 = vst [vmem:[%s3402_s8 + $0x4c8] sm:$0xff] %v898_v25 }
  0xb4   : > { %v902_v27 = vld [vmem:[%s3397_s7 + $0x1360] sm:$0xff]  ;;  %901 = vst [vmem:[%s3402_s8 + $0x4d0] sm:$0xff] %v900_v26 }
  0xb5   : > { %903 = vst [vmem:[%s3402_s8 + $0x4d8] sm:$0xff] %v902_v27  ;;  %v904_v28 = vld [vmem:[%s3397_s7 + $0x1380] sm:$0xff] }
  0xb6   : > { %v906_v29 = vld [vmem:[%s3397_s7 + $0x13a0] sm:$0xff]  ;;  %905 = vst [vmem:[%s3402_s8 + $0x4e0] sm:$0xff] %v904_v28 }
  0xb7   : > { %v908_v30 = vld [vmem:[%s3397_s7 + $0x13c0] sm:$0xff]  ;;  %907 = vst [vmem:[%s3402_s8 + $0x4e8] sm:$0xff] %v906_v29 }
  0xb8   : > { %909 = vst [vmem:[%s3402_s8 + $0x4f0] sm:$0xff] %v908_v30  ;;  %v910_v31 = vld [vmem:[%s3397_s7 + $0x13e0] sm:$0xff] }
  0xb9   : > { %v912_v32 = vld [vmem:[%s3397_s7 + $0x1400] sm:$0xff]  ;;  %911 = vst [vmem:[%s3402_s8 + $0x4f8] sm:$0xff] %v910_v31 }
  0xba   : > { %v914_v33 = vld [vmem:[%s3397_s7 + $0x1420] sm:$0xff]  ;;  %913 = vst [vmem:[%s3402_s8 + $0x500] sm:$0xff] %v912_v32 }
  0xbb   : > { %915 = vst [vmem:[%s3402_s8 + $0x508] sm:$0xff] %v914_v33  ;;  %v916_v34 = vld [vmem:[%s3397_s7 + $0x1440] sm:$0xff] }
  0xbc   : > { %v918_v35 = vld [vmem:[%s3397_s7 + $0x1460] sm:$0xff]  ;;  %917 = vst [vmem:[%s3402_s8 + $0x510] sm:$0xff] %v916_v34 }
  0xbd   : > { %v920_v36 = vld [vmem:[%s3397_s7 + $0x1480] sm:$0xff]  ;;  %919 = vst [vmem:[%s3402_s8 + $0x518] sm:$0xff] %v918_v35 }
  0xbe   : > { %921 = vst [vmem:[%s3402_s8 + $0x520] sm:$0xff] %v920_v36  ;;  %v922_v37 = vld [vmem:[%s3397_s7 + $0x14a0] sm:$0xff] }
  0xbf   : > { %v924_v38 = vld [vmem:[%s3397_s7 + $0x14c0] sm:$0xff]  ;;  %923 = vst [vmem:[%s3402_s8 + $0x528] sm:$0xff] %v922_v37 }
  0xc0   : > { %v926_v39 = vld [vmem:[%s3397_s7 + $0x14e0] sm:$0xff]  ;;  %925 = vst [vmem:[%s3402_s8 + $0x530] sm:$0xff] %v924_v38 }
  0xc1   : > { %927 = vst [vmem:[%s3402_s8 + $0x538] sm:$0xff] %v926_v39  ;;  %v928_v40 = vld [vmem:[%s3397_s7 + $0x1500] sm:$0xff] }
  0xc2   : > { %v930_v41 = vld [vmem:[%s3397_s7 + $0x1520] sm:$0xff]  ;;  %929 = vst [vmem:[%s3402_s8 + $0x540] sm:$0xff] %v928_v40 }
  0xc3   : > { %v932_v42 = vld [vmem:[%s3397_s7 + $0x1540] sm:$0xff]  ;;  %931 = vst [vmem:[%s3402_s8 + $0x548] sm:$0xff] %v930_v41 }
  0xc4   : > { %933 = vst [vmem:[%s3402_s8 + $0x550] sm:$0xff] %v932_v42  ;;  %v934_v43 = vld [vmem:[%s3397_s7 + $0x1560] sm:$0xff] }
  0xc5   : > { %v936_v44 = vld [vmem:[%s3397_s7 + $0x1580] sm:$0xff]  ;;  %935 = vst [vmem:[%s3402_s8 + $0x558] sm:$0xff] %v934_v43 }
  0xc6   : > { %v938_v45 = vld [vmem:[%s3397_s7 + $0x15a0] sm:$0xff]  ;;  %937 = vst [vmem:[%s3402_s8 + $0x560] sm:$0xff] %v936_v44 }
  0xc7   : > { %939 = vst [vmem:[%s3402_s8 + $0x568] sm:$0xff] %v938_v45  ;;  %v940_v46 = vld [vmem:[%s3397_s7 + $0x15c0] sm:$0xff] }
  0xc8   : > { %v942_v47 = vld [vmem:[%s3397_s7 + $0x15e0] sm:$0xff]  ;;  %941 = vst [vmem:[%s3402_s8 + $0x570] sm:$0xff] %v940_v46 }
  0xc9   : > { %v944_v48 = vld [vmem:[%s3397_s7 + $0x1600] sm:$0xff]  ;;  %943 = vst [vmem:[%s3402_s8 + $0x578] sm:$0xff] %v942_v47 }
  0xca   : > { %945 = vst [vmem:[%s3402_s8 + $0x580] sm:$0xff] %v944_v48  ;;  %v946_v49 = vld [vmem:[%s3397_s7 + $0x1620] sm:$0xff] }
  0xcb   : > { %v948_v50 = vld [vmem:[%s3397_s7 + $0x1640] sm:$0xff]  ;;  %947 = vst [vmem:[%s3402_s8 + $0x588] sm:$0xff] %v946_v49 }
  0xcc   : > { %v950_v51 = vld [vmem:[%s3397_s7 + $0x1660] sm:$0xff]  ;;  %949 = vst [vmem:[%s3402_s8 + $0x590] sm:$0xff] %v948_v50 }
  0xcd   : > { %951 = vst [vmem:[%s3402_s8 + $0x598] sm:$0xff] %v950_v51  ;;  %v952_v52 = vld [vmem:[%s3397_s7 + $0x1680] sm:$0xff] }
  0xce   : > { %v954_v53 = vld [vmem:[%s3397_s7 + $0x16a0] sm:$0xff]  ;;  %953 = vst [vmem:[%s3402_s8 + $0x5a0] sm:$0xff] %v952_v52 }
  0xcf   : > { %v956_v54 = vld [vmem:[%s3397_s7 + $0x16c0] sm:$0xff]  ;;  %955 = vst [vmem:[%s3402_s8 + $0x5a8] sm:$0xff] %v954_v53 }
  0xd0   : > { %957 = vst [vmem:[%s3402_s8 + $0x5b0] sm:$0xff] %v956_v54  ;;  %v958_v55 = vld [vmem:[%s3397_s7 + $0x16e0] sm:$0xff] }
  0xd1   : > { %v960_v56 = vld [vmem:[%s3397_s7 + $0x1700] sm:$0xff]  ;;  %959 = vst [vmem:[%s3402_s8 + $0x5b8] sm:$0xff] %v958_v55 }
  0xd2   : > { %v962_v57 = vld [vmem:[%s3397_s7 + $0x1720] sm:$0xff]  ;;  %961 = vst [vmem:[%s3402_s8 + $0x5c0] sm:$0xff] %v960_v56 }
  0xd3   : > { %963 = vst [vmem:[%s3402_s8 + $0x5c8] sm:$0xff] %v962_v57  ;;  %v964_v58 = vld [vmem:[%s3397_s7 + $0x1740] sm:$0xff] }
  0xd4   : > { %v966_v59 = vld [vmem:[%s3397_s7 + $0x1760] sm:$0xff]  ;;  %965 = vst [vmem:[%s3402_s8 + $0x5d0] sm:$0xff] %v964_v58 }
  0xd5   : > { %v968_v60 = vld [vmem:[%s3397_s7 + $0x1780] sm:$0xff]  ;;  %967 = vst [vmem:[%s3402_s8 + $0x5d8] sm:$0xff] %v966_v59 }
  0xd6   : > { %969 = vst [vmem:[%s3402_s8 + $0x5e0] sm:$0xff] %v968_v60  ;;  %v970_v61 = vld [vmem:[%s3397_s7 + $0x17a0] sm:$0xff] }
  0xd7   : > { %v972_v62 = vld [vmem:[%s3397_s7 + $0x17c0] sm:$0xff]  ;;  %971 = vst [vmem:[%s3402_s8 + $0x5e8] sm:$0xff] %v970_v61 }
  0xd8   : > { %v974_v63 = vld [vmem:[%s3397_s7 + $0x17e0] sm:$0xff]  ;;  %973 = vst [vmem:[%s3402_s8 + $0x5f0] sm:$0xff] %v972_v62 }
  0xd9   : > { %975 = vst [vmem:[%s3402_s8 + $0x5f8] sm:$0xff] %v974_v63 }
  0xda PF: > { %p2685_p7 = scmp.ge.s32.totalorder %s3314_s18, 1  ;;  %p988_p8 = scmp.lt.s32.totalorder %s3314_s18, 25 }
  0xdc   : > { %p989_p9 = pnand %p2685_p7, %p988_p8 }
  0xdd   : > { %s995_s9 = sand.u32 (!%p989_p9), 1, %s3290_s12   ;;  %s1035_s10 = smul.u32 (!%p989_p9), 12, %s3298_s14 }
  0xde   : > { %992 = sbr.rel (%p989_p9) target bundleno = 667 (0x29b), region = 66  ;;  %s2687_s21 = sshll.u32 (!%p989_p9), %s3302_s15, 1 }
  0xdf   : > { %s2902_s11 = smul.u32 (!%p989_p9), 1536, %s995_s9  ;;  %p1038_p10 = scmp.lt.s32.totalorder (!%p989_p9), %s1035_s10, 71 }
  0xe0   : > { %p1048_p11 = scmp.lt.s32.totalorder (!%p989_p9), %s2687_s21, 7  ;;  %p2690_p12 = scmp.ne.s32.totalorder (!%p989_p9), %s3298_s14, 0 }
  0xe1   : > { %s3807_s5 = scalar_lea.vmem (!%p989_p9), [#allocation3], %s2902_s11 }
  0xe5   : > { %s4077_s10 = smov (!%p1038_p10, %s1035_s10), 71  ;;  %s4079_s21 = smov (!%p1048_p11, %s2687_s21), 7 }
  0xe6   : > { %s2686_s22 = sshll.u32 %s4077_s10, 2  ;;  %s1050_s12 = scalar_lea.vmem %s4062_s2, %s4079_s21  ;;  %v3316_v0 = vmov (!%p2690_p12), 0.0  }
  0xe7   : > { %s3795_s26 = scalar_lea.vmem %s4060_s0, %s2686_s22  ;;  %s2689_s29 = sshll.u32 %s4079_s21, 2  ;;  %1066 = vst [vmem:[#allocation2] sm:$0xff] (!%p2690_p12), %v3316_v0  ;;  %1067 = vst [vmem:[#allocation2 + $0x8] sm:$0xff] (!%p2690_p12), %v3316_v0 }
  0xe8   : > { %s3805_s4 = scalar_lea.vmem %s4063_s3, %s2689_s29  ;;  %1065 = sbr.rel (%p2690_p12) target bundleno = 239 (0xef), region = 74 }
  0xef PF: > { %v2960_v1 = vld [vmem:[%s3807_s5 + $0x4] ss:$8 sps:$4 sm:$0xff]   ;;  %v2964_v3 = vld [vmem:[%s3807_s5] ss:$8 sps:$4 sm:$0xff]   ;;  %v2966_v5 = vld [vmem:[%s3807_s5 + $0x14] ss:$8 sps:$4 sm:$0xff]  }
  0xf0   : > { %v2962_v2 = vld [vmem:[%s3807_s5 + $0x104] ss:$8 sps:$4 sm:$0xff]   ;;  %2270 = vmatprep.subr.bf16.mxu0 %v2960_v1  ;;  %v2965_v4 = vld [vmem:[%s3807_s5 + $0x100] ss:$8 sps:$4 sm:$0xff]   ;;  %v2968_v6 = vld [vmem:[%s3807_s5 + $0x114] ss:$8 sps:$4 sm:$0xff]  }
  0xf1   : > { %2311 = vmatprep.subr.bf16.mxu1 %v2962_v2  ;;  %2271 = vmatpush1.bf16.msra.mxu0 %v2964_v3  ;;  %v2970_v7 = vld [vmem:[%s3807_s5 + $0x10] ss:$8 sps:$4 sm:$0xff]   ;;  %v2972_v9 = vld [vmem:[%s3807_s5 + $0x24] ss:$8 sps:$4 sm:$0xff]   ;;  %v2976_v11 = vld [vmem:[%s3807_s5 + $0x20] ss:$8 sps:$4 sm:$0xff]  }
  0xf2   : > { %2312 = vmatpush1.bf16.msra.mxu1 %v2965_v4  ;;  %2272 = vmatprep.subr.bf16.mxu0 %v2966_v5  ;;  %v2971_v8 = vld [vmem:[%s3807_s5 + $0x110] ss:$8 sps:$4 sm:$0xff]   ;;  %v2974_v10 = vld [vmem:[%s3807_s5 + $0x124] ss:$8 sps:$4 sm:$0xff]   ;;  %v2977_v12 = vld [vmem:[%s3807_s5 + $0x120] ss:$8 sps:$4 sm:$0xff]  }
  0xf3   : > { %2313 = vmatprep.subr.bf16.mxu1 %v2968_v6  ;;  %v2978_v13 = vld [vmem:[%s3807_s5 + $0x34] ss:$8 sps:$4 sm:$0xff]   ;;  %v2982_v15 = vld [vmem:[%s3807_s5 + $0x30] ss:$8 sps:$4 sm:$0xff]   ;;  %v2984_v17 = vld [vmem:[%s3807_s5 + $0x44] ss:$8 sps:$4 sm:$0xff]  }
  0xf4   : > { %v2980_v14 = vld [vmem:[%s3807_s5 + $0x134] ss:$8 sps:$4 sm:$0xff]   ;;  %v2983_v16 = vld [vmem:[%s3807_s5 + $0x130] ss:$8 sps:$4 sm:$0xff]   ;;  %v2986_v18 = vld [vmem:[%s3807_s5 + $0x144] ss:$8 sps:$4 sm:$0xff]  }
  0xf5   : > { %2273 = vmatpush1.bf16.msra.mxu0 %v2970_v7  ;;  %v2988_v19 = vld [vmem:[%s3807_s5 + $0x40] ss:$8 sps:$4 sm:$0xff]   ;;  %v2990_v21 = vld [vmem:[%s3807_s5 + $0x54] ss:$8 sps:$4 sm:$0xff]   ;;  %v2994_v23 = vld [vmem:[%s3807_s5 + $0x50] ss:$8 sps:$4 sm:$0xff]  }
  0xf6   : > { %2314 = vmatpush1.bf16.msra.mxu1 %v2971_v8  ;;  %2274 = vmatprep.subr.bf16.mxu0 %v2972_v9  ;;  %v2989_v20 = vld [vmem:[%s3807_s5 + $0x140] ss:$8 sps:$4 sm:$0xff]   ;;  %v2992_v22 = vld [vmem:[%s3807_s5 + $0x154] ss:$8 sps:$4 sm:$0xff]   ;;  %v2995_v24 = vld [vmem:[%s3807_s5 + $0x150] ss:$8 sps:$4 sm:$0xff]  }
  0xf7   : > { %2315 = vmatprep.subr.bf16.mxu1 %v2974_v10  ;;  %v2996_v25 = vld [vmem:[%s3807_s5 + $0x64] ss:$8 sps:$4 sm:$0xff]   ;;  %v3000_v27 = vld [vmem:[%s3807_s5 + $0x60] ss:$8 sps:$4 sm:$0xff]   ;;  %v3002_v29 = vld [vmem:[%s3807_s5 + $0x74] ss:$8 sps:$4 sm:$0xff]  }
  0xf8   : > { %v2998_v26 = vld [vmem:[%s3807_s5 + $0x164] ss:$8 sps:$4 sm:$0xff]   ;;  %v3001_v28 = vld [vmem:[%s3807_s5 + $0x160] ss:$8 sps:$4 sm:$0xff]   ;;  %v3004_v30 = vld [vmem:[%s3807_s5 + $0x174] ss:$8 sps:$4 sm:$0xff]  }
  0xf9   : > { %2275 = vmatpush1.bf16.msra.mxu0 %v2976_v11  ;;  %v3006_v31 = vld [vmem:[%s3807_s5 + $0x70] ss:$8 sps:$4 sm:$0xff]   ;;  %v3008_v33 = vld [vmem:[%s3807_s5 + $0x84] ss:$8 sps:$4 sm:$0xff]   ;;  %v3012_v35 = vld [vmem:[%s3807_s5 + $0x80] ss:$8 sps:$4 sm:$0xff]  }
  0xfa   : > { %2316 = vmatpush1.bf16.msra.mxu1 %v2977_v12  ;;  %2276 = vmatprep.subr.bf16.mxu0 %v2978_v13  ;;  %v3007_v32 = vld [vmem:[%s3807_s5 + $0x170] ss:$8 sps:$4 sm:$0xff]   ;;  %v3010_v34 = vld [vmem:[%s3807_s5 + $0x184] ss:$8 sps:$4 sm:$0xff]   ;;  %v3013_v36 = vld [vmem:[%s3807_s5 + $0x180] ss:$8 sps:$4 sm:$0xff]  }
  0xfb   : > { %2317 = vmatprep.subr.bf16.mxu1 %v2980_v14  ;;  %v3014_v37 = vld [vmem:[%s3807_s5 + $0x94] ss:$8 sps:$4 sm:$0xff]   ;;  %v3018_v39 = vld [vmem:[%s3807_s5 + $0x90] ss:$8 sps:$4 sm:$0xff]   ;;  %v3020_v41 = vld [vmem:[%s3807_s5 + $0xa4] ss:$8 sps:$4 sm:$0xff]  }
  0xfc   : > { %v3016_v38 = vld [vmem:[%s3807_s5 + $0x194] ss:$8 sps:$4 sm:$0xff]   ;;  %v3019_v40 = vld [vmem:[%s3807_s5 + $0x190] ss:$8 sps:$4 sm:$0xff]   ;;  %v3022_v42 = vld [vmem:[%s3807_s5 + $0x1a4] ss:$8 sps:$4 sm:$0xff]  }
  0xfd   : > { %2277 = vmatpush1.bf16.msra.mxu0 %v2982_v15  ;;  %v3024_v43 = vld [vmem:[%s3807_s5 + $0xa0] ss:$8 sps:$4 sm:$0xff]   ;;  %v3026_v45 = vld [vmem:[%s3807_s5 + $0xb4] ss:$8 sps:$4 sm:$0xff]   ;;  %v3030_v50 = vld [vmem:[%s3807_s5 + $0xb0] ss:$8 sps:$4 sm:$0xff]  }
  0xfe   : > { %2318 = vmatpush1.bf16.msra.mxu1 %v2983_v16  ;;  %2278 = vmatprep.subr.bf16.mxu0 %v2984_v17  ;;  %v3025_v44 = vld [vmem:[%s3807_s5 + $0x1a0] ss:$8 sps:$4 sm:$0xff]   ;;  %v3028_v46 = vld [vmem:[%s3807_s5 + $0x1b4] ss:$8 sps:$4 sm:$0xff]   ;;  %v3031_v51 = vld [vmem:[%s3807_s5 + $0x1b0] ss:$8 sps:$4 sm:$0xff]  }
  0xff   : > { %2319 = vmatprep.subr.bf16.mxu1 %v2986_v18  ;;  %v1070_v47 = vld [vmem:[%s3795_s26] sm:$0xff]  ;;  %v1071_v49 = vld [vmem:[%s3795_s26 + $0x8] sm:$0xff]  ;;  %v3032_v53 = vld [vmem:[%s3807_s5 + $0xc4] ss:$8 sps:$4 sm:$0xff]   ;;  %p2895_p13 = scmp.ne.s32.totalorder %s3298_s14, 5 }
 0x100   : > { %v2692_v48 = vcombine.high %v1070_v47, %v1070_v47  ;;  %v2694_v52 = vcombine.high %v1071_v49, %v1071_v49  ;;  %v3034_v54 = vld [vmem:[%s3807_s5 + $0x1c4] ss:$8 sps:$4 sm:$0xff]   ;;  %v3036_v55 = vld [vmem:[%s3807_s5 + $0xc0] ss:$8 sps:$4 sm:$0xff]   ;;  %v3038_v57 = vld [vmem:[%s3807_s5 + $0xd4] ss:$8 sps:$4 sm:$0xff]   ;;  %v2691_v7 = vcombine.low %v1070_v47, %v1070_v47  ;;  %v2693_v8 = vcombine.low %v1071_v49, %v1071_v49 }
 0x101   : > { %2279 = vmatpush1.bf16.msra.mxu0 %v2988_v19  ;;  %v3037_v56 = vld [vmem:[%s3807_s5 + $0x1c0] ss:$8 sps:$4 sm:$0xff]   ;;  %v3040_v58 = vld [vmem:[%s3807_s5 + $0x1d4] ss:$8 sps:$4 sm:$0xff]   ;;  %v3042_v59 = vld [vmem:[%s3807_s5 + $0xd0] ss:$8 sps:$4 sm:$0xff]  }
 0x102   : > { %2320 = vmatpush1.bf16.msra.mxu1 %v2989_v20  ;;  %2280 = vmatprep.subr.bf16.mxu0 %v2990_v21  ;;  %v3043_v60 = vld [vmem:[%s3807_s5 + $0x1d0] ss:$8 sps:$4 sm:$0xff]   ;;  %v3044_v61 = vld [vmem:[%s3807_s5 + $0xe4] ss:$8 sps:$4 sm:$0xff]   ;;  %v3048_v63 = vld [vmem:[%s3807_s5 + $0xe0] ss:$8 sps:$4 sm:$0xff]  }
 0x103   : > { %2321 = vmatprep.subr.bf16.mxu1 %v2992_v22  ;;  %2302 = vmatprep.mubr.bf16.mxu0 %v2692_v48  ;;  %v3046_v62 = vld [vmem:[%s3807_s5 + $0x1e4] ss:$8 sps:$4 sm:$0xff]   ;;  %v3049_v0 = vld [vmem:[%s3807_s5 + $0x1e0] ss:$8 sps:$4 sm:$0xff]   ;;  %v3050_v1 = vld [vmem:[%s3807_s5 + $0xf4] ss:$8 sps:$4 sm:$0xff]  }
 0x104   : > { %2343 = vmatprep.mubr.bf16.mxu1 %v2694_v52  ;;  %v3052_v2 = vld [vmem:[%s3807_s5 + $0x1f4] ss:$8 sps:$4 sm:$0xff]   ;;  %v3054_v3 = vld [vmem:[%s3807_s5 + $0xf0] ss:$8 sps:$4 sm:$0xff]   ;;  %v3062_v5 = vld [vmem:[%s3807_s5 + $0x204] ss:$8 sps:$4 sm:$0xff]  }
 0x105   : > { %2281 = vmatpush1.bf16.msra.mxu0 %v2994_v23  ;;  %v3055_v4 = vld [vmem:[%s3807_s5 + $0x1f0] ss:$8 sps:$4 sm:$0xff]   ;;  %v3065_v6 = vld [vmem:[%s3807_s5 + $0x304] ss:$8 sps:$4 sm:$0xff]   ;;  %v3060_v9 = vld [vmem:[%s3807_s5 + $0x200] ss:$8 sps:$4 sm:$0xff]  }
 0x106   : > { %2322 = vmatpush1.bf16.msra.mxu1 %v2995_v24  ;;  %2282 = vmatprep.subr.bf16.mxu0 %v2996_v25  ;;  %v3063_v10 = vld [vmem:[%s3807_s5 + $0x300] ss:$8 sps:$4 sm:$0xff]   ;;  %v3068_v11 = vld [vmem:[%s3807_s5 + $0x214] ss:$8 sps:$4 sm:$0xff]   ;;  %v3066_v13 = vld [vmem:[%s3807_s5 + $0x210] ss:$8 sps:$4 sm:$0xff]  }
 0x107   : > { %2323 = vmatprep.subr.bf16.mxu1 %v2998_v26  ;;  %v3071_v12 = vld [vmem:[%s3807_s5 + $0x314] ss:$8 sps:$4 sm:$0xff]   ;;  %v3069_v14 = vld [vmem:[%s3807_s5 + $0x310] ss:$8 sps:$4 sm:$0xff]   ;;  %v3074_v15 = vld [vmem:[%s3807_s5 + $0x224] ss:$8 sps:$4 sm:$0xff]  }
 0x108   : > { %v3077_v16 = vld [vmem:[%s3807_s5 + $0x324] ss:$8 sps:$4 sm:$0xff]   ;;  %v3072_v17 = vld [vmem:[%s3807_s5 + $0x220] ss:$8 sps:$4 sm:$0xff]   ;;  %v3080_v19 = vld [vmem:[%s3807_s5 + $0x234] ss:$8 sps:$4 sm:$0xff]  }
 0x109   : > { %2283 = vmatpush1.bf16.msra.mxu0 %v3000_v27  ;;  %v3075_v18 = vld [vmem:[%s3807_s5 + $0x320] ss:$8 sps:$4 sm:$0xff]   ;;  %v3083_v20 = vld [vmem:[%s3807_s5 + $0x334] ss:$8 sps:$4 sm:$0xff]   ;;  %v3078_v21 = vld [vmem:[%s3807_s5 + $0x230] ss:$8 sps:$4 sm:$0xff]  }
 0x10a   : > { %2324 = vmatpush1.bf16.msra.mxu1 %v3001_v28  ;;  %2284 = vmatprep.subr.bf16.mxu0 %v3002_v29  ;;  %v3081_v22 = vld [vmem:[%s3807_s5 + $0x330] ss:$8 sps:$4 sm:$0xff]   ;;  %v3086_v23 = vld [vmem:[%s3807_s5 + $0x244] ss:$8 sps:$4 sm:$0xff]   ;;  %v3084_v25 = vld [vmem:[%s3807_s5 + $0x240] ss:$8 sps:$4 sm:$0xff]  }
 0x10b   : > { %2325 = vmatprep.subr.bf16.mxu1 %v3004_v30  ;;  %v3089_v24 = vld [vmem:[%s3807_s5 + $0x344] ss:$8 sps:$4 sm:$0xff]   ;;  %v3087_v26 = vld [vmem:[%s3807_s5 + $0x340] ss:$8 sps:$4 sm:$0xff]   ;;  %v3092_v27 = vld [vmem:[%s3807_s5 + $0x254] ss:$8 sps:$4 sm:$0xff]  }
 0x10c   : > { %v3095_v28 = vld [vmem:[%s3807_s5 + $0x354] ss:$8 sps:$4 sm:$0xff]   ;;  %v3090_v29 = vld [vmem:[%s3807_s5 + $0x250] ss:$8 sps:$4 sm:$0xff]   ;;  %v3125_v52 = vld [vmem:[%s3807_s5 + $0x3a4] ss:$8 sps:$4 sm:$0xff]  }
 0x10d   : > { %2285 = vmatpush1.bf16.msra.mxu0 %v3006_v31  ;;  %v3093_v30 = vld [vmem:[%s3807_s5 + $0x350] ss:$8 sps:$4 sm:$0xff]   ;;  %v3098_v31 = vld [vmem:[%s3807_s5 + $0x264] ss:$8 sps:$4 sm:$0xff]   ;;  %v3116_v47 = vld [vmem:[%s3807_s5 + $0x294] ss:$8 sps:$4 sm:$0xff]  }
 0x10e   : > { %2326 = vmatpush1.bf16.msra.mxu1 %v3007_v32  ;;  %2286 = vmatprep.subr.bf16.mxu0 %v3008_v33  ;;  %v3101_v32 = vld [vmem:[%s3807_s5 + $0x364] ss:$8 sps:$4 sm:$0xff]   ;;  %v3119_v48 = vld [vmem:[%s3807_s5 + $0x394] ss:$8 sps:$4 sm:$0xff]   ;;  %v3114_v49 = vld [vmem:[%s3807_s5 + $0x290] ss:$8 sps:$4 sm:$0xff]  }
 0x10f   : > { %2327 = vmatprep.subr.bf16.mxu1 %v3010_v34  ;;  %v3903_v33 = vld [vmem:[%s3795_s26 + $0x10] sm:$0xff]  ;;  %v3906_v34 = vld [vmem:[%s3795_s26 + $0x18] sm:$0xff] }
 0x111   : > { %2287 = vmatpush1.bf16.msra.mxu0 %v3012_v35  ;;  %v3096_v35 = vld [vmem:[%s3807_s5 + $0x260] ss:$8 sps:$4 sm:$0xff]  }
 0x112   : > { %2328 = vmatpush1.bf16.msra.mxu1 %v3013_v36  ;;  %2288 = vmatprep.subr.bf16.mxu0 %v3014_v37  ;;  %v3099_v36 = vld [vmem:[%s3807_s5 + $0x360] ss:$8 sps:$4 sm:$0xff]   ;;  %v2696_v37 = vcombine.high %v3903_v33, %v3903_v33 }
 0x113   : > { %2329 = vmatprep.subr.bf16.mxu1 %v3016_v38  ;;  %v2698_v38 = vcombine.high %v3906_v34, %v3906_v34 }
 0x115   : > { %2289 = vmatpush1.bf16.msra.mxu0 %v3018_v39  ;;  %v3104_v39 = vld [vmem:[%s3807_s5 + $0x274] ss:$8 sps:$4 sm:$0xff]  }
 0x116   : > { %2330 = vmatpush1.bf16.msra.mxu1 %v3019_v40  ;;  %2290 = vmatprep.subr.bf16.mxu0 %v3020_v41  ;;  %v3107_v40 = vld [vmem:[%s3807_s5 + $0x374] ss:$8 sps:$4 sm:$0xff]   ;;  %v3102_v41 = vld [vmem:[%s3807_s5 + $0x270] ss:$8 sps:$4 sm:$0xff]  }
 0x117   : > { %2331 = vmatprep.subr.bf16.mxu1 %v3022_v42  ;;  %v3105_v42 = vld [vmem:[%s3807_s5 + $0x370] ss:$8 sps:$4 sm:$0xff]  }
 0x119   : > { %2291 = vmatpush1.bf16.msra.mxu0 %v3024_v43  ;;  %v3110_v43 = vld [vmem:[%s3807_s5 + $0x284] ss:$8 sps:$4 sm:$0xff]  }
 0x11a   : > { %2332 = vmatpush1.bf16.msra.mxu1 %v3025_v44  ;;  %2292 = vmatprep.subr.bf16.mxu0 %v3026_v45  ;;  %v3113_v44 = vld [vmem:[%s3807_s5 + $0x384] ss:$8 sps:$4 sm:$0xff]   ;;  %v3108_v45 = vld [vmem:[%s3807_s5 + $0x280] ss:$8 sps:$4 sm:$0xff]  }
 0x11b   : > { %2333 = vmatprep.subr.bf16.mxu1 %v3028_v46  ;;  %v3111_v46 = vld [vmem:[%s3807_s5 + $0x380] ss:$8 sps:$4 sm:$0xff]  }
 0x11d   : > { %2293 = vmatpush1.bf16.msra.mxu0 %v3030_v50  ;;  %v3117_v50 = vld [vmem:[%s3807_s5 + $0x390] ss:$8 sps:$4 sm:$0xff]  }
 0x11e   : > { %2334 = vmatpush1.bf16.msra.mxu1 %v3031_v51  ;;  %2294 = vmatprep.subr.bf16.mxu0 %v3032_v53  ;;  %v3122_v51 = vld [vmem:[%s3807_s5 + $0x2a4] ss:$8 sps:$4 sm:$0xff]   ;;  %v3120_v53 = vld [vmem:[%s3807_s5 + $0x2a0] ss:$8 sps:$4 sm:$0xff]  }
 0x11f   : > { %2335 = vmatprep.subr.bf16.mxu1 %v3034_v54  ;;  %v3123_v54 = vld [vmem:[%s3807_s5 + $0x3a0] ss:$8 sps:$4 sm:$0xff]  }
 0x121   : > { %2295 = vmatpush1.bf16.msra.mxu0 %v3036_v55  ;;  %v3128_v55 = vld [vmem:[%s3807_s5 + $0x2b4] ss:$8 sps:$4 sm:$0xff]  }
 0x122   : > { %2336 = vmatpush1.bf16.msra.mxu1 %v3037_v56  ;;  %2296 = vmatprep.subr.bf16.mxu0 %v3038_v57  ;;  %v3131_v56 = vld [vmem:[%s3807_s5 + $0x3b4] ss:$8 sps:$4 sm:$0xff]   ;;  %v3126_v57 = vld [vmem:[%s3807_s5 + $0x2b0] ss:$8 sps:$4 sm:$0xff]  }
 0x123   : > { %2337 = vmatprep.subr.bf16.mxu1 %v3040_v58  ;;  %v3129_v58 = vld [vmem:[%s3807_s5 + $0x3b0] ss:$8 sps:$4 sm:$0xff]  }
 0x125   : > { %2297 = vmatpush1.bf16.msra.mxu0 %v3042_v59  ;;  %v3134_v59 = vld [vmem:[%s3807_s5 + $0x2c4] ss:$8 sps:$4 sm:$0xff]  }
 0x126   : > { %2338 = vmatpush1.bf16.msra.mxu1 %v3043_v60  ;;  %2298 = vmatprep.subr.bf16.mxu0 %v3044_v61  ;;  %v3137_v60 = vld [vmem:[%s3807_s5 + $0x3c4] ss:$8 sps:$4 sm:$0xff]   ;;  %v3132_v61 = vld [vmem:[%s3807_s5 + $0x2c0] ss:$8 sps:$4 sm:$0xff]  }
 0x127   : > { %2339 = vmatprep.subr.bf16.mxu1 %v3046_v62  ;;  %v3135_v62 = vld [vmem:[%s3807_s5 + $0x3c0] ss:$8 sps:$4 sm:$0xff]  }
 0x129   : > { %2299 = vmatpush1.bf16.msra.mxu0 %v3048_v63  ;;  %v3140_v63 = vld [vmem:[%s3807_s5 + $0x2d4] ss:$8 sps:$4 sm:$0xff]  }
 0x12a   : > { %2340 = vmatpush1.bf16.msra.mxu1 %v3049_v0  ;;  %2300 = vmatprep.subr.bf16.mxu0 %v3050_v1  ;;  %v3143_v0 = vld [vmem:[%s3807_s5 + $0x3d4] ss:$8 sps:$4 sm:$0xff]   ;;  %v3138_v1 = vld [vmem:[%s3807_s5 + $0x2d0] ss:$8 sps:$4 sm:$0xff]  }
 0x12b   : > { %2341 = vmatprep.subr.bf16.mxu1 %v3052_v2  ;;  %v3141_v2 = vld [vmem:[%s3807_s5 + $0x3d0] ss:$8 sps:$4 sm:$0xff]  }
 0x12d   : > { %2301 = vmatpush1.bf16.msra.mxu0 %v3054_v3  ;;  %v3146_v3 = vld [vmem:[%s3807_s5 + $0x2e4] ss:$8 sps:$4 sm:$0xff]  }
 0x12e   : > { %2342 = vmatpush1.bf16.msra.mxu1 %v3055_v4  ;;  %2352 = vmatprep.subr.bf16.mxu0 %v3062_v5  ;;  %v3149_v4 = vld [vmem:[%s3807_s5 + $0x3e4] ss:$8 sps:$4 sm:$0xff]   ;;  %v3144_v5 = vld [vmem:[%s3807_s5 + $0x2e0] ss:$8 sps:$4 sm:$0xff]  }
 0x12f   : > { %2393 = vmatprep.subr.bf16.mxu1 %v3065_v6  ;;  %v3147_v6 = vld [vmem:[%s3807_s5 + $0x3e0] ss:$8 sps:$4 sm:$0xff]  }
 0x130   : > { %2303 = vmatmul.mubr.bf16.vlgmr.msra.gmra.mrb[0].mxu0 %v2691_v7  ;;  %v3152_v7 = vld [vmem:[%s3807_s5 + $0x2f4] ss:$8 sps:$4 sm:$0xff]  }
 0x131   : > { %2344 = vmatmul.mubr.bf16.vlgmr.msra.gmra.mrb[0].mxu1 %v2693_v8  ;;  %2353 = vmatpush1.bf16.msra.mxu0 %v3060_v9  ;;  %v3155_v8 = vld [vmem:[%s3807_s5 + $0x3f4] ss:$8 sps:$4 sm:$0xff]   ;;  %v3150_v9 = vld [vmem:[%s3807_s5 + $0x2f0] ss:$8 sps:$4 sm:$0xff]  }
 0x132   : > { %2394 = vmatpush1.bf16.msra.mxu1 %v3063_v10  ;;  %2354 = vmatprep.subr.bf16.mxu0 %v3068_v11  ;;  %v3153_v10 = vld [vmem:[%s3807_s5 + $0x3f0] ss:$8 sps:$4 sm:$0xff]   ;;  %v3162_v11 = vld [vmem:[%s3807_s5 + $0x404] ss:$8 sps:$4 sm:$0xff]  }
 0x133   : > { %2395 = vmatprep.subr.bf16.mxu1 %v3071_v12  ;;  %2384 = vmatprep.mubr.bf16.mxu0 %v2696_v37  ;;  %v3165_v12 = vld [vmem:[%s3807_s5 + $0x504] ss:$8 sps:$4 sm:$0xff]   ;;  %v3192_v37 = vld [vmem:[%s3807_s5 + $0x454] ss:$8 sps:$4 sm:$0xff]  }
 0x134   : > { %2425 = vmatprep.mubr.bf16.mxu1 %v2698_v38  ;;  %v3195_v38 = vld [vmem:[%s3807_s5 + $0x554] ss:$8 sps:$4 sm:$0xff]  }
 0x135   : > { %2355 = vmatpush1.bf16.msra.mxu0 %v3066_v13  ;;  %v2695_v13 = vcombine.low %v3903_v33, %v3903_v33  ;;  %v3186_v33 = vld [vmem:[%s3807_s5 + $0x444] ss:$8 sps:$4 sm:$0xff]  }
 0x136   : > { %2396 = vmatpush1.bf16.msra.mxu1 %v3069_v14  ;;  %2356 = vmatprep.subr.bf16.mxu0 %v3074_v15  ;;  %v2697_v14 = vcombine.low %v3906_v34, %v3906_v34  ;;  %v3160_v15 = vld [vmem:[%s3807_s5 + $0x400] ss:$8 sps:$4 sm:$0xff]   ;;  %v3189_v34 = vld [vmem:[%s3807_s5 + $0x544] ss:$8 sps:$4 sm:$0xff]  }
 0x137   : > { %2397 = vmatprep.subr.bf16.mxu1 %v3077_v16  ;;  %v3163_v16 = vld [vmem:[%s3807_s5 + $0x500] ss:$8 sps:$4 sm:$0xff]  }
 0x139   : > { %2357 = vmatpush1.bf16.msra.mxu0 %v3072_v17  ;;  %v3168_v17 = vld [vmem:[%s3807_s5 + $0x414] ss:$8 sps:$4 sm:$0xff]  }
 0x13a   : > { %2398 = vmatpush1.bf16.msra.mxu1 %v3075_v18  ;;  %2358 = vmatprep.subr.bf16.mxu0 %v3080_v19  ;;  %v3171_v18 = vld [vmem:[%s3807_s5 + $0x514] ss:$8 sps:$4 sm:$0xff]  }
 0x13b   : > { %2399 = vmatprep.subr.bf16.mxu1 %v3083_v20  ;;  %v3961_v19 = vld [vmem:[%s3795_s26 + $0x20] sm:$0xff]  ;;  %v3964_v20 = vld [vmem:[%s3795_s26 + $0x28] sm:$0xff] }
 0x13d   : > { %2359 = vmatpush1.bf16.msra.mxu0 %v3078_v21  ;;  %v2700_v21 = vcombine.high %v3961_v19, %v3961_v19 }
 0x13e   : > { %2400 = vmatpush1.bf16.msra.mxu1 %v3081_v22  ;;  %2360 = vmatprep.subr.bf16.mxu0 %v3086_v23  ;;  %v2702_v22 = vcombine.high %v3964_v20, %v3964_v20  ;;  %v3166_v23 = vld [vmem:[%s3807_s5 + $0x410] ss:$8 sps:$4 sm:$0xff]  }
 0x13f   : > { %2401 = vmatprep.subr.bf16.mxu1 %v3089_v24  ;;  %v3169_v24 = vld [vmem:[%s3807_s5 + $0x510] ss:$8 sps:$4 sm:$0xff]  }
 0x141   : > { %2361 = vmatpush1.bf16.msra.mxu0 %v3084_v25  ;;  %v3174_v25 = vld [vmem:[%s3807_s5 + $0x424] ss:$8 sps:$4 sm:$0xff]  }
 0x142   : > { %2402 = vmatpush1.bf16.msra.mxu1 %v3087_v26  ;;  %2362 = vmatprep.subr.bf16.mxu0 %v3092_v27  ;;  %v3177_v26 = vld [vmem:[%s3807_s5 + $0x524] ss:$8 sps:$4 sm:$0xff]   ;;  %v3172_v27 = vld [vmem:[%s3807_s5 + $0x420] ss:$8 sps:$4 sm:$0xff]  }
 0x143   : > { %2403 = vmatprep.subr.bf16.mxu1 %v3095_v28  ;;  %v3175_v28 = vld [vmem:[%s3807_s5 + $0x520] ss:$8 sps:$4 sm:$0xff]  }
 0x145   : > { %2363 = vmatpush1.bf16.msra.mxu0 %v3090_v29  ;;  %v3180_v29 = vld [vmem:[%s3807_s5 + $0x434] ss:$8 sps:$4 sm:$0xff]  }
 0x146   : > { %2404 = vmatpush1.bf16.msra.mxu1 %v3093_v30  ;;  %2364 = vmatprep.subr.bf16.mxu0 %v3098_v31  ;;  %v3183_v30 = vld [vmem:[%s3807_s5 + $0x534] ss:$8 sps:$4 sm:$0xff]   ;;  %v3178_v31 = vld [vmem:[%s3807_s5 + $0x430] ss:$8 sps:$4 sm:$0xff]  }
 0x147   : > { %2405 = vmatprep.subr.bf16.mxu1 %v3101_v32  ;;  %v3181_v32 = vld [vmem:[%s3807_s5 + $0x530] ss:$8 sps:$4 sm:$0xff]  }
 0x149   : > { %2365 = vmatpush1.bf16.msra.mxu0 %v3096_v35  ;;  %v3184_v35 = vld [vmem:[%s3807_s5 + $0x440] ss:$8 sps:$4 sm:$0xff]  }
 0x14a   : > { %2406 = vmatpush1.bf16.msra.mxu1 %v3099_v36  ;;  %2366 = vmatprep.subr.bf16.mxu0 %v3104_v39  ;;  %v3187_v36 = vld [vmem:[%s3807_s5 + $0x540] ss:$8 sps:$4 sm:$0xff]   ;;  %v3190_v39 = vld [vmem:[%s3807_s5 + $0x450] ss:$8 sps:$4 sm:$0xff]  }
 0x14b   : > { %2407 = vmatprep.subr.bf16.mxu1 %v3107_v40  ;;  %v3193_v40 = vld [vmem:[%s3807_s5 + $0x550] ss:$8 sps:$4 sm:$0xff]  }
 0x14d   : > { %2367 = vmatpush1.bf16.msra.mxu0 %v3102_v41  ;;  %v3198_v41 = vld [vmem:[%s3807_s5 + $0x464] ss:$8 sps:$4 sm:$0xff]  }
 0x14e   : > { %2408 = vmatpush1.bf16.msra.mxu1 %v3105_v42  ;;  %2368 = vmatprep.subr.bf16.mxu0 %v3110_v43  ;;  %v3201_v42 = vld [vmem:[%s3807_s5 + $0x564] ss:$8 sps:$4 sm:$0xff]   ;;  %v3196_v43 = vld [vmem:[%s3807_s5 + $0x460] ss:$8 sps:$4 sm:$0xff]  }
 0x14f   : > { %2409 = vmatprep.subr.bf16.mxu1 %v3113_v44  ;;  %v3199_v44 = vld [vmem:[%s3807_s5 + $0x560] ss:$8 sps:$4 sm:$0xff]  }
 0x151   : > { %2369 = vmatpush1.bf16.msra.mxu0 %v3108_v45  ;;  %v3204_v45 = vld [vmem:[%s3807_s5 + $0x474] ss:$8 sps:$4 sm:$0xff]  }
 0x152   : > { %2410 = vmatpush1.bf16.msra.mxu1 %v3111_v46  ;;  %2370 = vmatprep.subr.bf16.mxu0 %v3116_v47  ;;  %v3207_v46 = vld [vmem:[%s3807_s5 + $0x574] ss:$8 sps:$4 sm:$0xff]   ;;  %v3202_v47 = vld [vmem:[%s3807_s5 + $0x470] ss:$8 sps:$4 sm:$0xff]  }
 0x153   : > { %2411 = vmatprep.subr.bf16.mxu1 %v3119_v48  ;;  %v3205_v48 = vld [vmem:[%s3807_s5 + $0x570] ss:$8 sps:$4 sm:$0xff]  }
 0x155   : > { %2371 = vmatpush1.bf16.msra.mxu0 %v3114_v49  ;;  %v3210_v49 = vld [vmem:[%s3807_s5 + $0x484] ss:$8 sps:$4 sm:$0xff]  }
 0x156   : > { %2412 = vmatpush1.bf16.msra.mxu1 %v3117_v50  ;;  %2372 = vmatprep.subr.bf16.mxu0 %v3122_v51  ;;  %v3213_v50 = vld [vmem:[%s3807_s5 + $0x584] ss:$8 sps:$4 sm:$0xff]   ;;  %v3208_v51 = vld [vmem:[%s3807_s5 + $0x480] ss:$8 sps:$4 sm:$0xff]  }
 0x157   : > { %2413 = vmatprep.subr.bf16.mxu1 %v3125_v52  ;;  %v3211_v52 = vld [vmem:[%s3807_s5 + $0x580] ss:$8 sps:$4 sm:$0xff]  }
 0x159   : > { %2373 = vmatpush1.bf16.msra.mxu0 %v3120_v53  ;;  %v3216_v53 = vld [vmem:[%s3807_s5 + $0x494] ss:$8 sps:$4 sm:$0xff]  }
 0x15a   : > { %2414 = vmatpush1.bf16.msra.mxu1 %v3123_v54  ;;  %2374 = vmatprep.subr.bf16.mxu0 %v3128_v55  ;;  %v3219_v54 = vld [vmem:[%s3807_s5 + $0x594] ss:$8 sps:$4 sm:$0xff]   ;;  %v3214_v55 = vld [vmem:[%s3807_s5 + $0x490] ss:$8 sps:$4 sm:$0xff]  }
 0x15b   : > { %2415 = vmatprep.subr.bf16.mxu1 %v3131_v56  ;;  %v3217_v56 = vld [vmem:[%s3807_s5 + $0x590] ss:$8 sps:$4 sm:$0xff]  }
 0x15d   : > { %2375 = vmatpush1.bf16.msra.mxu0 %v3126_v57  ;;  %v3222_v57 = vld [vmem:[%s3807_s5 + $0x4a4] ss:$8 sps:$4 sm:$0xff]  }
 0x15e   : > { %2416 = vmatpush1.bf16.msra.mxu1 %v3129_v58  ;;  %2376 = vmatprep.subr.bf16.mxu0 %v3134_v59  ;;  %v3225_v58 = vld [vmem:[%s3807_s5 + $0x5a4] ss:$8 sps:$4 sm:$0xff]   ;;  %v3220_v59 = vld [vmem:[%s3807_s5 + $0x4a0] ss:$8 sps:$4 sm:$0xff]  }
 0x15f   : > { %2417 = vmatprep.subr.bf16.mxu1 %v3137_v60  ;;  %v3223_v60 = vld [vmem:[%s3807_s5 + $0x5a0] ss:$8 sps:$4 sm:$0xff]  }
 0x161   : > { %2377 = vmatpush1.bf16.msra.mxu0 %v3132_v61  ;;  %v3228_v61 = vld [vmem:[%s3807_s5 + $0x4b4] ss:$8 sps:$4 sm:$0xff]  }
 0x162   : > { %2418 = vmatpush1.bf16.msra.mxu1 %v3135_v62  ;;  %2378 = vmatprep.subr.bf16.mxu0 %v3140_v63  ;;  %v3231_v62 = vld [vmem:[%s3807_s5 + $0x5b4] ss:$8 sps:$4 sm:$0xff]   ;;  %v3226_v63 = vld [vmem:[%s3807_s5 + $0x4b0] ss:$8 sps:$4 sm:$0xff]  }
 0x163   : > { %2419 = vmatprep.subr.bf16.mxu1 %v3143_v0  ;;  %v3229_v0 = vld [vmem:[%s3807_s5 + $0x5b0] ss:$8 sps:$4 sm:$0xff]  }
 0x165   : > { %2379 = vmatpush1.bf16.msra.mxu0 %v3138_v1  ;;  %v3234_v1 = vld [vmem:[%s3807_s5 + $0x4c4] ss:$8 sps:$4 sm:$0xff]  }
 0x166   : > { %2420 = vmatpush1.bf16.msra.mxu1 %v3141_v2  ;;  %2380 = vmatprep.subr.bf16.mxu0 %v3146_v3  ;;  %v3237_v2 = vld [vmem:[%s3807_s5 + $0x5c4] ss:$8 sps:$4 sm:$0xff]   ;;  %v3232_v3 = vld [vmem:[%s3807_s5 + $0x4c0] ss:$8 sps:$4 sm:$0xff]  }
 0x167   : > { %2421 = vmatprep.subr.bf16.mxu1 %v3149_v4  ;;  %v3235_v4 = vld [vmem:[%s3807_s5 + $0x5c0] ss:$8 sps:$4 sm:$0xff]  }
 0x169   : > { %2381 = vmatpush1.bf16.msra.mxu0 %v3144_v5  ;;  %v3240_v5 = vld [vmem:[%s3807_s5 + $0x4d4] ss:$8 sps:$4 sm:$0xff]  }
 0x16a   : > { %2422 = vmatpush1.bf16.msra.mxu1 %v3147_v6  ;;  %2382 = vmatprep.subr.bf16.mxu0 %v3152_v7  ;;  %v3243_v6 = vld [vmem:[%s3807_s5 + $0x5d4] ss:$8 sps:$4 sm:$0xff]   ;;  %v3238_v7 = vld [vmem:[%s3807_s5 + $0x4d0] ss:$8 sps:$4 sm:$0xff]  }
 0x16b   : > { %2423 = vmatprep.subr.bf16.mxu1 %v3155_v8  ;;  %v3241_v8 = vld [vmem:[%s3807_s5 + $0x5d0] ss:$8 sps:$4 sm:$0xff]  }
 0x16d   : > { %2383 = vmatpush1.bf16.msra.mxu0 %v3150_v9  ;;  %v3246_v9 = vld [vmem:[%s3807_s5 + $0x4e4] ss:$8 sps:$4 sm:$0xff]  }
 0x16e   : > { %2424 = vmatpush1.bf16.msra.mxu1 %v3153_v10  ;;  %2434 = vmatprep.subr.bf16.mxu0 %v3162_v11  ;;  %v3249_v10 = vld [vmem:[%s3807_s5 + $0x5e4] ss:$8 sps:$4 sm:$0xff]   ;;  %v3244_v11 = vld [vmem:[%s3807_s5 + $0x4e0] ss:$8 sps:$4 sm:$0xff]  }
 0x16f   : > { %2475 = vmatprep.subr.bf16.mxu1 %v3165_v12  ;;  %v3247_v12 = vld [vmem:[%s3807_s5 + $0x5e0] ss:$8 sps:$4 sm:$0xff]  }
 0x170   : > { %2385 = vmatmul.mubr.bf16.vlgmr.msra.gmra.mrb[4].mxu0 %v2695_v13  ;;  %v3252_v13 = vld [vmem:[%s3807_s5 + $0x4f4] ss:$8 sps:$4 sm:$0xff]  }
 0x171   : > { %2426 = vmatmul.mubr.bf16.vlgmr.msra.gmra.mrb[4].mxu1 %v2697_v14  ;;  %2435 = vmatpush1.bf16.msra.mxu0 %v3160_v15  ;;  %v3255_v14 = vld [vmem:[%s3807_s5 + $0x5f4] ss:$8 sps:$4 sm:$0xff]   ;;  %v3250_v15 = vld [vmem:[%s3807_s5 + $0x4f0] ss:$8 sps:$4 sm:$0xff]  }
 0x172   : > { %2476 = vmatpush1.bf16.msra.mxu1 %v3163_v16  ;;  %2436 = vmatprep.subr.bf16.mxu0 %v3168_v17  ;;  %v3253_v16 = vld [vmem:[%s3807_s5 + $0x5f0] ss:$8 sps:$4 sm:$0xff]   ;;  %v2699_v17 = vcombine.low %v3961_v19, %v3961_v19 }
 0x173   : > { %2477 = vmatprep.subr.bf16.mxu1 %v3171_v18  ;;  %2466 = vmatprep.mubr.bf16.mxu0 %v2700_v21  ;;  %v2701_v18 = vcombine.low %v3964_v20, %v3964_v20 }
 0x174   : > { %2507 = vmatprep.mubr.bf16.mxu1 %v2702_v22 }
 0x175   : > { %2437 = vmatpush1.bf16.msra.mxu0 %v3166_v23 }
 0x176   : > { %2478 = vmatpush1.bf16.msra.mxu1 %v3169_v24  ;;  %2438 = vmatprep.subr.bf16.mxu0 %v3174_v25 }
 0x177   : > { %2479 = vmatprep.subr.bf16.mxu1 %v3177_v26 }
 0x179   : > { %2439 = vmatpush1.bf16.msra.mxu0 %v3172_v27 }
 0x17a   : > { %2480 = vmatpush1.bf16.msra.mxu1 %v3175_v28  ;;  %2440 = vmatprep.subr.bf16.mxu0 %v3180_v29 }
 0x17b   : > { %2481 = vmatprep.subr.bf16.mxu1 %v3183_v30 }
 0x17d   : > { %2441 = vmatpush1.bf16.msra.mxu0 %v3178_v31 }
 0x17e   : > { %2482 = vmatpush1.bf16.msra.mxu1 %v3181_v32  ;;  %2442 = vmatprep.subr.bf16.mxu0 %v3186_v33 }
 0x17f   : > { %2483 = vmatprep.subr.bf16.mxu1 %v3189_v34 }
 0x181   : > { %2443 = vmatpush1.bf16.msra.mxu0 %v3184_v35 }
 0x182   : > { %2484 = vmatpush1.bf16.msra.mxu1 %v3187_v36  ;;  %2444 = vmatprep.subr.bf16.mxu0 %v3192_v37 }
 0x183   : > { %2485 = vmatprep.subr.bf16.mxu1 %v3195_v38 }
 0x185   : > { %2445 = vmatpush1.bf16.msra.mxu0 %v3190_v39 }
 0x186   : > { %2486 = vmatpush1.bf16.msra.mxu1 %v3193_v40  ;;  %2446 = vmatprep.subr.bf16.mxu0 %v3198_v41 }
 0x187   : > { %2487 = vmatprep.subr.bf16.mxu1 %v3201_v42 }
 0x189   : > { %2447 = vmatpush1.bf16.msra.mxu0 %v3196_v43 }
 0x18a   : > { %2488 = vmatpush1.bf16.msra.mxu1 %v3199_v44  ;;  %2448 = vmatprep.subr.bf16.mxu0 %v3204_v45 }
 0x18b   : > { %2489 = vmatprep.subr.bf16.mxu1 %v3207_v46  ;;  %v1068_v46 = vld [vmem:[#allocation2] sm:$0xff] }
 0x18d   : > { %2449 = vmatpush1.bf16.msra.mxu0 %v3202_v47 }
 0x18e   : > { %2490 = vmatpush1.bf16.msra.mxu1 %v3205_v48  ;;  %2450 = vmatprep.subr.bf16.mxu0 %v3210_v49 }
 0x18f   : > { %2491 = vmatprep.subr.bf16.mxu1 %v3213_v50 }
 0x191   : > { %2451 = vmatpush1.bf16.msra.mxu0 %v3208_v51  ;;  %v1069_v51 = vld [vmem:[#allocation2 + $0x8] sm:$0xff] }
 0x192   : > { %2492 = vmatpush1.bf16.msra.mxu1 %v3211_v52  ;;  %2452 = vmatprep.subr.bf16.mxu0 %v3216_v53 }
 0x193   : > { %2493 = vmatprep.subr.bf16.mxu1 %v3219_v54 }
 0x195   : > { %2453 = vmatpush1.bf16.msra.mxu0 %v3214_v55 }
 0x196   : > { %2494 = vmatpush1.bf16.msra.mxu1 %v3217_v56  ;;  %2454 = vmatprep.subr.bf16.mxu0 %v3222_v57  ;;  %v2528_v57 = vlaneseq (!%p2895_p13) }
 0x197   : > { %2495 = vmatprep.subr.bf16.mxu1 %v3225_v58 }
 0x198   : > { %v2529_v58 = vshrl.u32 (!%p2895_p13), %v2528_v57, 7 }
 0x199   : > { %2455 = vmatpush1.bf16.msra.mxu0 %v3220_v59  ;;  %v2526_v59 = vld [vmem:[%s1050_s12] sm:$0x3] (!%p2895_p13) }
 0x19a   : > { %2496 = vmatpush1.bf16.msra.mxu1 %v3223_v60  ;;  %2456 = vmatprep.subr.bf16.mxu0 %v3228_v61  ;;  %v2530_v60 = vsub.s32 (!%p2895_p13), 0, %v2529_v58  ;;  %v2534_v61 = vsub.s32 (!%p2895_p13), 1, %v2529_v58 }
 0x19b   : > { %2497 = vmatprep.subr.bf16.mxu1 %v3231_v62 }
 0x19d   : > { %2457 = vmatpush1.bf16.msra.mxu0 %v3226_v63 }
 0x19e   : > { %2498 = vmatpush1.bf16.msra.mxu1 %v3229_v0  ;;  %2458 = vmatprep.subr.bf16.mxu0 %v3234_v1  ;;  %v2531_v0 = vrot.slane (!%p2895_p13), %v2526_v59, %v2530_v60  ;;  %v2535_v1 = vrot.slane (!%p2895_p13), %v2526_v59, %v2534_v61 }
 0x19f   : > { %2499 = vmatprep.subr.bf16.mxu1 %v3237_v2 }
 0x1a1   : > { %2459 = vmatpush1.bf16.msra.mxu0 %v3232_v3 }
 0x1a2   : > { %2500 = vmatpush1.bf16.msra.mxu1 %v3235_v4  ;;  %2460 = vmatprep.subr.bf16.mxu0 %v3240_v5 }
 0x1a3   : > { %2501 = vmatprep.subr.bf16.mxu1 %v3243_v6 }
 0x1a5   : > { %2461 = vmatpush1.bf16.msra.mxu0 %v3238_v7 }
 0x1a6   : > { %2502 = vmatpush1.bf16.msra.mxu1 %v3241_v8  ;;  %2462 = vmatprep.subr.bf16.mxu0 %v3246_v9 }
 0x1a7   : > { %2503 = vmatprep.subr.bf16.mxu1 %v3249_v10 }
 0x1a9   : > { %2463 = vmatpush1.bf16.msra.mxu0 %v3244_v11 }
 0x1aa   : > { %2504 = vmatpush1.bf16.msra.mxu1 %v3247_v12  ;;  %2464 = vmatprep.subr.bf16.mxu0 %v3252_v13 }
 0x1ab   : > { %2505 = vmatprep.subr.bf16.mxu1 %v3255_v14 }
 0x1ad   : > { %2465 = vmatpush1.bf16.msra.mxu0 %v3250_v15 }
 0x1ae   : > { %2506 = vmatpush1.bf16.msra.mxu1 %v3253_v16 }
 0x1b0   : > { %2467 = vmatmul.mubr.bf16.vlgmr.msra.gmra.mrb[8].mxu0 %v2699_v17 }
 0x1b1   : > { %2508 = vmatmul.mubr.bf16.vlgmr.msra.gmra.mrb[8].mxu1 %v2701_v18 }
 0x203   : > { %v2304_v21 = vpop.f32.mrb[0].mxu0 }
 0x204   : > { %v2345_v22 = vpop.f32.mrb[0].mxu1  ;;  %v2306_v24 = vpop.f32.mrb[1].mxu0 }
 0x205   : > { %v2346_v23 = vadd.f32 %v2345_v22, %v2304_v21  ;;  %v2347_v25 = vpop.f32.mrb[1].mxu1  ;;  %v2308_v27 = vpop.f32.mrb[2].mxu0 }
 0x206   : > { %v2348_v26 = vadd.f32 %v2347_v25, %v2306_v24  ;;  %v2349_v28 = vpop.f32.mrb[2].mxu1  ;;  %v2309_v29 = vpop.f32.mrb[3].mxu0 }
 0x207   : > { %v2350_v30 = vpop.f32.mrb[3].mxu1 }
 0x243   : > { %v2386_v31 = vpop.f32.mrb[4].mxu0 }
 0x244   : > { %v2427_v32 = vpop.f32.mrb[4].mxu1  ;;  %v2387_v19 = vadd.f32 %v2386_v31, %v2346_v23  ;;  %v2388_v33 = vpop.f32.mrb[5].mxu0 }
 0x245   : > { %v2429_v34 = vpop.f32.mrb[5].mxu1  ;;  %v2389_v20 = vadd.f32 %v2388_v33, %v2348_v26  ;;  %v2390_v35 = vpop.f32.mrb[6].mxu0 }
 0x246   : > { %v2431_v36 = vpop.f32.mrb[6].mxu1  ;;  %v2428_v37 = vadd.f32 %v2427_v32, %v2387_v19  ;;  %v2391_v38 = vpop.f32.mrb[7].mxu0 }
 0x247   : > { %v2432_v39 = vpop.f32.mrb[7].mxu1  ;;  %v2430_v40 = vadd.f32 %v2429_v34, %v2389_v20 }
 0x283   : > { %v2468_v41 = vpop.f32.mrb[8].mxu0 }
 0x284   : > { %v2509_v42 = vpop.f32.mrb[8].mxu1  ;;  %v2469_v43 = vadd.f32 %v2468_v41, %v2428_v37  ;;  %v2470_v44 = vpop.f32.mrb[9].mxu0 }
 0x285   : > { %v2511_v45 = vpop.f32.mrb[9].mxu1  ;;  %v2471_v47 = vadd.f32 %v2470_v44, %v2430_v40  ;;  %v2472_v48 = vpop.f32.mrb[10].mxu0  ;;  %2523 = sbr.rel (%p2895_p13) target bundleno = 667 (0x29b), region = 78 }
 0x286   : > { %v2513_v49 = vpop.f32.mrb[10].mxu1  ;;  %v2510_v50 = vadd.f32 %v2509_v42, %v2469_v43  ;;  %v2473_v52 = vpop.f32.mrb[11].mxu0 }
 0x287   : > { %v2514_v53 = vpop.f32.mrb[11].mxu1  ;;  %v2512_v54 = vadd.f32 %v2511_v45, %v2471_v47 }
 0x288   : > { %v2516_v55 = vadd.f32 %v2510_v50, %v1068_v46 }
 0x289   : > { %v2517_v56 = vadd.f32 %v2512_v54, %v1069_v51 }
 0x28a   : > { %2518 = vst [vmem:[#allocation2] sm:$0xff] %v2516_v55 }
 0x28b   : > { %2519 = vst [vmem:[#allocation2 + $0x8] sm:$0xff] %v2517_v56 }
 0x291   : > { %v2524_v62 = vld [vmem:[#allocation2] sm:$0xff] }
 0x292   : > { %v2525_v63 = vld [vmem:[#allocation2 + $0x8] sm:$0xff]  ;;  %v2538_v2 = vadd.f32 %v2531_v0, %v2524_v62 }
 0x293   : > { %v2539_v3 = vadd.f32 %v2535_v1, %v2525_v63 }
 0x294   : > { %vm2540_vm0 = vcmp.gt.f32.partialorder %v2538_v2, 0.0  ;;  %v2542_v4 = vmul.f32 0.1, %v2538_v2 }
 0x295   : > { %vm2541_vm1 = vcmp.gt.f32.partialorder %v2539_v3, 0.0  ;;  %v2543_v5 = vmul.f32 0.1, %v2539_v3 }
 0x296   : > { %v2544_v6 = vsel %vm2540_vm0, %v2538_v2, %v2542_v4 }
 0x297   : > { %v2545_v7 = vsel %vm2541_vm1, %v2539_v3, %v2543_v5 }
 0x298   : > { %v2900_v8 = vpack.c.bf16 %v2545_v7, %v2544_v6 }
 0x29a   : > { %2554 = vst [vmem:[%s3805_s4] sm:$0xff] %v2900_v8 }
 0x29b PF: > { %s13_s18 = sadd.s32 1, %s3314_s18   ;;  %s4064_s12 = smov %s3294_s13 }
 0x29c   : > { %p10_p0 = scmp.ge.s32.totalorder %s13_s18, 26   ;;  %s4065_s13 = smov %s3388_s25 }
 0x29d   : > { %s4066_s14 = smov %s3306_s16  ;;  %s4067_s15 = smov %s3310_s17 }
 0x29e   : > { %s4068_s16 = smov %s4071_s19  ;;  %s4069_s17 = smov %s4075_s20 }
 0x29f   :  { %12 = sbr.rel (!%p10_p0) target bundleno = 4 (0x4), region = 119 }

</bundles_post_ra>
